<compile_context>
chip_gen: v7x
topology: tpu7x:2x2x1
jax: 0.10.0
libtpu: 0.0.40
codegen_flags: <defaults>
</compile_context>

<pallas_src>
import jax
import jax.numpy as jnp
from jax import lax
from jax.experimental import pallas as pl
from jax.experimental.pallas import tpu as pltpu

EPS = 1e-5
LANE = 128


def _round_up(x, m):
    return (x + m - 1) // m * m


# --------------------------------------------------------------------------
# Kernels
# --------------------------------------------------------------------------
def _conv_body(x_ref, w_ref, scale_ref, shift_ref, y_ref, stats_ref, pad_ref,
               *, fuse_bn_relu):
    """(optional bn+relu) -> 3x3 conv (K-split im2col matmuls) -> partial stats."""
    NB, H, W, Cp = x_ref.shape
    M = NB * H * W

    if fuse_bn_relu:
        scale = scale_ref[...].reshape(1, 1, 1, Cp)
        shift = shift_ref[...].reshape(1, 1, 1, Cp)
        x = jnp.maximum(x_ref[...].astype(jnp.float32) * scale + shift, 0.0)
        xin = x.astype(pad_ref.dtype)
    else:
        xin = x_ref[...]                                   # already bf16

    # Zero-padded conv input in VMEM scratch.  Interior rows are stored at
    # full width W+2 with the two halo columns already zeroed (one dense
    # store, no 1-wide masked column vst's); only the two full-width
    # top/bottom halo rows get separate zero stores.  The buffer is never
    # fully cleared and no padded copy of x ever lives in HBM.
    zcol = jnp.zeros((NB, H, 1, Cp), pad_ref.dtype)
    pad_ref[:, 1:H + 1, :, :] = jnp.concatenate([zcol, xin, zcol], axis=2)
    zrow = jnp.zeros((NB, 1, W + 2, Cp), pad_ref.dtype)
    pad_ref[:, 0:1, :, :] = zrow
    pad_ref[:, H + 1:H + 2, :, :] = zrow

    # K-split im2col: three accumulating MXU matmuls (one per kernel row).
    # K = 3*Cp (>= 384 for Cp=128) keeps the 256-deep v6e/v7x MXUs full
    # while the bf16 patch temporary is 3x smaller than a single (M, 9*Cp)
    # matrix, cutting concat read/write traffic and peak VMEM per step.
    acc = jnp.zeros((M, Cp), jnp.float32)
    for dh in range(3):
        group = jnp.concatenate(
            [pad_ref[:, dh:dh + H, dw:dw + W, :].reshape(M, Cp)
             for dw in range(3)], axis=-1)                          # (M, 3*Cp) bf16
        acc = acc + jnp.dot(group, w_ref[dh * 3 * Cp:(dh + 1) * 3 * Cp, :],
                            preferred_element_type=jnp.float32)     # (M, Cp) f32

    y_ref[...] = acc.reshape(NB, H, W, Cp).astype(y_ref.dtype)

    # Single-pass per-tile BN statistics (sum and sum-of-squares) in f32.
    # NOTE: E[x^2]-E[x]^2 in f32; the downstream maximum(...,0) clamp guards
    # against small negative variances from cancellation.
    ssum = jnp.sum(acc, axis=0, keepdims=True)
    ssq = jnp.sum(acc * acc, axis=0, keepdims=True)
    stats_ref[...] = jnp.concatenate(
        [ssum, ssq, jnp.zeros((6, Cp), jnp.float32)], axis=0).reshape(1, 8, Cp)


def _conv1_kernel(x_ref, w_ref, y_ref, stats_ref, pad_ref):
    _conv_body(x_ref, w_ref, None, None, y_ref, stats_ref, pad_ref,
               fuse_bn_relu=False)


def _bn_relu_conv2_kernel(x_ref, w_ref, scale_ref, shift_ref, y_ref, stats_ref,
                          pad_ref):
    _conv_body(x_ref, w_ref, scale_ref, shift_ref, y_ref, stats_ref, pad_ref,
               fuse_bn_relu=True)


def _bn2_residual_relu_kernel(y_ref, x_ref, scale_ref, shift_ref, o_ref):
    Cp = y_ref.shape[-1]
    scale = scale_ref[...].reshape(1, 1, 1, Cp)
    shift = shift_ref[...].reshape(1, 1, 1, Cp)
    out = y_ref[...].astype(jnp.float32) * scale + shift \
        + x_ref[...].astype(jnp.float32)
    o_ref[...] = jnp.maximum(out, 0.0).astype(o_ref.dtype)


# --------------------------------------------------------------------------
# VMEM budgeting & batch-tile selection
# --------------------------------------------------------------------------
def _vmem_budget_bytes():
    """~75% of physical VMEM: ~48 MiB on v7x (64 MiB/TC), ~96 MiB on v5e/v6e."""
    phys = 64 << 20                     # conservative default = v7x per-TC VMEM
    try:
        phys = int(pltpu.get_tpu_info().vmem_capacity_bytes)
    except Exception:
        pass
    return (phys * 3) // 4


def _conv_vmem_bytes(nb, H, W, Cp):
    """Real per-step footprint of a conv pass (incl. the im2col patch group)."""
    blk = nb * H * W * Cp
    return (2 * blk * 2                        # bf16 input block, double-buffered
            + 2 * blk * 2                      # bf16 output block, double-buffered
            + 2 * 9 * Cp * Cp * 2              # bf16 im2col weights, double-buffered
            + nb * (H + 2) * (W + 2) * Cp * 2  # padded VMEM scratch
            + blk * 3 * 2                      # one (M, 3*Cp) bf16 patch group
            + blk * 4                          # f32 accumulator
            + blk * 4                          # f32 temporaries (bn/relu, stats)
            + (2 << 20))                       # compiler-internal slack


def _eltwise_vmem_bytes(nb, H, W, Cp):
    blk = nb * H * W * Cp
    return 3 * 2 * blk * 2 + 2 * blk * 4 + (2 << 20)


def _pick_nb(N, H, W, Cp, budget, footprint_fn):
    """Batch tile choice.  Priorities: fits in the VMEM budget > MXU M dim is
    a multiple of 8 (dense sublanes) > M >= 256 > keep >= 2 grid steps
    (megacore sharding) > larger M (up to ~512) > smallest nb."""
    cands = [d for d in range(1, N + 1) if N % d == 0]

    def score(nb):
        M = nb * H * W
        return (footprint_fn(nb, H, W, Cp) <= budget,
                M % 8 == 0,
                M >= 256,
                (N // nb) >= 2,
                min(M, 512),
                -nb)

    return max(cands, key=score)


# --------------------------------------------------------------------------
# pallas_call builders
# --------------------------------------------------------------------------
def _conv_pass(x, w_im2col, scale, shift, *, nb, vmem_limit, cost):
    """One gridded conv pass: returns (conv output bf16, per-tile stats f32)."""
    N, H, W, Cp = x.shape
    grid = (N // nb,)
    act_spec = pl.BlockSpec((nb, H, W, Cp), lambda i: (i, 0, 0, 0))
    vec_spec = pl.BlockSpec((1, Cp), lambda i: (0, 0))
    w_spec = pl.BlockSpec(w_im2col.shape, lambda i: (0, 0))

    if scale is None:
        kernel = _conv1_kernel
        in_specs = [act_spec, w_spec]
        args = (x, w_im2col)
    else:
        kernel = _bn_relu_conv2_kernel
        in_specs = [act_spec, w_spec, vec_spec, vec_spec]
        args = (x, w_im2col, scale, shift)

    y, stats = pl.pallas_call(
        kernel,
        grid=grid,
        in_specs=in_specs,
        out_specs=[
            pl.BlockSpec((nb, H, W, Cp), lambda i: (i, 0, 0, 0)),
            pl.BlockSpec((1, 8, Cp), lambda i: (i, 0, 0)),
        ],
        out_shape=[
            jax.ShapeDtypeStruct((N, H, W, Cp), jnp.bfloat16),       # conv output
            jax.ShapeDtypeStruct((N // nb, 8, Cp), jnp.float32),     # partial stats
        ],
        scratch_shapes=[pltpu.VMEM((nb, H + 2, W + 2, Cp), jnp.bfloat16)],
        compiler_params=pltpu.CompilerParams(
            dimension_semantics=("parallel",),
            vmem_limit_bytes=vmem_limit),
        cost_estimate=cost,
    )(*args)
    return y, stats


def _bn_scale_shift(stats, gamma, beta, count):
    """Reduce per-tile sums -> fused (scale, shift) for y*scale + shift."""
    ssum = jnp.sum(stats[:, 0, :], axis=0)
    ssq = jnp.sum(stats[:, 1, :], axis=0)
    mean = ssum / count
    var = jnp.maximum(ssq / count - mean * mean, 0.0)   # biased batch variance
    scale = gamma * lax.rsqrt(var + EPS)
    shift = beta - mean * scale
    return scale.reshape(1, -1), shift.reshape(1, -1)


def basic_block(x_nchw, w1, g1, b1, w2, g2, b2):
    """x_nchw: (N, C, H, W); conv weights in HWIO. Returns (N, C, H, W) f32."""
    N, C, H, W = x_nchw.shape
    Cp = _round_up(C, LANE)
    count = float(N * H * W)

    budget = _vmem_budget_bytes()
    nb_conv = _pick_nb(N, H, W, Cp, budget, _conv_vmem_bytes)
    nb_elt = _pick_nb(N, H, W, Cp, budget, _eltwise_vmem_bytes)
    vmem_conv = int(min(budget,
                        max(32 << 20, 2 * _conv_vmem_bytes(nb_conv, H, W, Cp))))
    vmem_elt = int(min(budget,
                       max(32 << 20, 2 * _eltwise_vmem_bytes(nb_elt, H, W, Cp))))

    # Single NCHW->NHWC transpose + channel pad + bf16 downcast (fused by
    # XLA).  The same bf16 x_c feeds pass 1 and is reused as the residual in
    # pass 3 -- half the HBM input traffic of an f32 copy; numerics are
    # already bf16-limited by the matmul operands.
    x_nhwc = jnp.transpose(x_nchw, (0, 2, 3, 1)).astype(jnp.bfloat16)
    x_c = jnp.pad(x_nhwc, ((0, 0), (0, 0), (0, 0), (0, Cp - C)))

    def pad_w(w):   # (3,3,C,C) HWIO -> (9*Cp, Cp) bf16 im2col layout
        wp = jnp.pad(w.astype(jnp.float32),
                     ((0, 0), (0, 0), (0, Cp - C), (0, Cp - C)))
        return wp.reshape(9 * Cp, Cp).astype(jnp.bfloat16)

    def pad_v(v):   # (C,) -> (1, Cp) f32
        return jnp.pad(v.astype(jnp.float32), (0, Cp - C)).reshape(1, Cp)

    w1p, w2p = pad_w(w1), pad_w(w2)
    g1p, b1p, g2p, b2p = pad_v(g1), pad_v(b1), pad_v(g2), pad_v(b2)

    conv_cost = pl.CostEstimate(
        flops=2 * N * H * W * 9 * Cp * Cp,
        transcendentals=0,
        bytes_accessed=int(2 * N * H * W * Cp * 2 + 9 * Cp * Cp * 2
                           + (N // nb_conv) * 8 * Cp * 4))

    # ---- pass 1: conv1 + partial stats for bn1 ----
    y1, s1 = _conv_pass(x_c, w1p, None, None, nb=nb_conv,
                        vmem_limit=vmem_conv, cost=conv_cost)
    scale1, shift1 = _bn_scale_shift(s1, g1p[0], b1p[0], count)

    # ---- pass 2: bn1 + relu + conv2 + partial stats for bn2 ----
    y2, s2 = _conv_pass(y1, w2p, scale1, shift1, nb=nb_conv,
                        vmem_limit=vmem_conv, cost=conv_cost)
    scale2, shift2 = _bn_scale_shift(s2, g2p[0], b2p[0], count)

    # ---- pass 3: bn2 + residual add + relu (bf16 out, its own larger tile) ----
    out = pl.pallas_call(
        _bn2_residual_relu_kernel,
        grid=(N // nb_elt,),
        in_specs=[
            pl.BlockSpec((nb_elt, H, W, Cp), lambda i: (i, 0, 0, 0)),   # y2
            pl.BlockSpec((nb_elt, H, W, Cp), lambda i: (i, 0, 0, 0)),   # residual x
            pl.BlockSpec((1, Cp), lambda i: (0, 0)),                    # scale2
            pl.BlockSpec((1, Cp), lambda i: (0, 0)),                    # shift2
        ],
        out_specs=pl.BlockSpec((nb_elt, H, W, Cp), lambda i: (i, 0, 0, 0)),
        out_shape=jax.ShapeDtypeStruct((N, H, W, Cp), jnp.bfloat16),
        compiler_params=pltpu.CompilerParams(
            dimension_semantics=("parallel",),
            vmem_limit_bytes=vmem_elt),
    )(y2, x_c, scale2, shift2)

    # Channel un-pad + NHWC->NCHW + f32 upcast fuse into one XLA copy
    # (no padded-f32 round trip through HBM).
    return jnp.transpose(out[..., :C], (0, 3, 1, 2)).astype(jnp.float32)


# --------------------------------------------------------------------------
# Pure-JAX reference for the correctness check
# --------------------------------------------------------------------------
def _bn_train(x_nhwc, gamma, beta):
    mean = jnp.mean(x_nhwc, axis=(0, 1, 2), keepdims=True)
    var = jnp.mean((x_nhwc - mean) ** 2, axis=(0, 1, 2), keepdims=True)
    return (x_nhwc - mean) * lax.rsqrt(var + EPS) * gamma + beta


def basic_block_ref(x_nchw, w1, g1, b1, w2, g2, b2):
    x = jnp.transpose(x_nchw, (0, 2, 3, 1)).astype(jnp.float32)
    dn = ('NHWC', 'HWIO', 'NHWC')
    o = lax.conv_general_dilated(x, w1, (1, 1), ((1, 1), (1, 1)),
                                 dimension_numbers=dn)
    o = jnp.maximum(_bn_train(o, g1, b1), 0.0)
    o = lax.conv_general_dilated(o, w2, (1, 1), ((1, 1), (1, 1)),
                                 dimension_numbers=dn)
    o = _bn_train(o, g2, b2)
    o = jnp.maximum(o + x, 0.0)
    return jnp.transpose(o, (0, 3, 1, 2))


if __name__ == "__main__":
    # inplanes == planes (downsample=None, stride=1)
    N, C, H, W = 2, 4, 16, 16
    key = jax.random.PRNGKey(0)
    kx, k1, k2, kg1, kb1, kg2, kb2 = jax.random.split(key, 7)

    x = jax.random.normal(kx, (N, C, H, W), jnp.float32)
    w1 = jax.random.normal(k1, (3, 3, C, C), jnp.float32) * 0.1     # conv1 (HWIO)
    w2 = jax.random.normal(k2, (3, 3, C, C), jnp.float32) * 0.1     # conv2 (HWIO)
    g1 = 1.0 + 0.1 * jax.random.normal(kg1, (C,), jnp.float32)      # bn1 gamma
    b1 = 0.1 * jax.random.normal(kb1, (C,), jnp.float32)            # bn1 beta
    g2 = 1.0 + 0.1 * jax.random.normal(kg2, (C,), jnp.float32)      # bn2 gamma
    b2 = 0.1 * jax.random.normal(kb2, (C,), jnp.float32)            # bn2 beta

    out = jax.block_until_ready(jax.jit(basic_block)(x, w1, g1, b1, w2, g2, b2))
    ref = jax.block_until_ready(basic_block_ref(x, w1, g1, b1, w2, g2, b2))

    assert out.shape == (N, C, H, W)
    max_err = float(jnp.max(jnp.abs(out - ref)))
    # bf16 matmul operands + bf16 intermediate/residual activations -> looser
    # tolerance than the pure-f32 reference.
    assert jnp.allclose(out, ref, rtol=5e-2, atol=5e-2), f"max abs err {max_err}"
    print("KERNEL_OK")
</pallas_src>

<mosaic_0001>
module attributes {stable_mosaic.version = 11 : i64} {
  func.func @_conv1_kernel(%arg0: i32, %arg1: memref<1x16x16x128xbf16, #tpu.memory_space<vmem>>, %arg2: memref<1152x128xbf16, #tpu.memory_space<vmem>>, %arg3: memref<1x16x16x128xbf16, #tpu.memory_space<vmem>>, %arg4: memref<1x8x128xf32, #tpu.memory_space<vmem>>, %arg5: memref<1x18x18x128xbf16, #tpu.memory_space<vmem>>) attributes {dimension_semantics = [#tpu.dimension_semantics<parallel>], iteration_bounds = array<i64: 2>, scalar_prefetch = 0 : i64, scratch_operands = 1 : i64, tpu.core_type = #tpu.core_type<tc>, window_params = [{transform_indices = @transform_0, window_bounds = array<i64: 1, 16, 16, 128>}, {pipeline_mode = #tpu.pipeline_mode<synchronous>, transform_indices = @transform_1, window_bounds = array<i64: 1152, 128>}, {transform_indices = @transform_2, window_bounds = array<i64: 1, 16, 16, 128>}, {transform_indices = @transform_3, window_bounds = array<i64: 1, 8, 128>}]} {
    %c0 = arith.constant 0 : index
    %c0_0 = arith.constant 0 : index
    %c0_1 = arith.constant 0 : index
    %c0_2 = arith.constant 0 : index
    %0 = vector.load %arg1[%c0, %c0_0, %c0_1, %c0_2] : memref<1x16x16x128xbf16, #tpu.memory_space<vmem>>, vector<1x16x16x128xbf16>
    %cst = arith.constant 0.000000e+00 : bf16
    %1 = vector.broadcast %cst : bf16 to vector<1x16x1x128xbf16>
    %2 = tpu.concatenate %1, %0, %1 in 2 : vector<1x16x1x128xbf16>, vector<1x16x16x128xbf16>, vector<1x16x1x128xbf16> -> vector<1x16x18x128xbf16>
    %c0_3 = arith.constant 0 : index
    %c1 = arith.constant 1 : index
    %c0_4 = arith.constant 0 : index
    %c0_5 = arith.constant 0 : index
    %3 = vector.load %arg5[%c0_3, %c1, %c0_4, %c0_5] : memref<1x18x18x128xbf16, #tpu.memory_space<vmem>>, vector<1x16x18x128xbf16>
    tpu.vector_store %arg5[%c0_3, %c1, %c0_4, %c0_5], %2 {strides = array<i32>} : memref<1x18x18x128xbf16, #tpu.memory_space<vmem>>, vector<1x16x18x128xbf16>,
    %cst_6 = arith.constant 0.000000e+00 : bf16
    %4 = vector.broadcast %cst_6 : bf16 to vector<1x1x18x128xbf16>
    %c0_7 = arith.constant 0 : index
    %c0_8 = arith.constant 0 : index
    %c0_9 = arith.constant 0 : index
    %c0_10 = arith.constant 0 : index
    %5 = vector.load %arg5[%c0_7, %c0_8, %c0_9, %c0_10] : memref<1x18x18x128xbf16, #tpu.memory_space<vmem>>, vector<1x1x18x128xbf16>
    tpu.vector_store %arg5[%c0_7, %c0_8, %c0_9, %c0_10], %4 {strides = array<i32>} : memref<1x18x18x128xbf16, #tpu.memory_space<vmem>>, vector<1x1x18x128xbf16>,
    %c0_11 = arith.constant 0 : index
    %c17 = arith.constant 17 : index
    %c0_12 = arith.constant 0 : index
    %c0_13 = arith.constant 0 : index
    %6 = vector.load %arg5[%c0_11, %c17, %c0_12, %c0_13] : memref<1x18x18x128xbf16, #tpu.memory_space<vmem>>, vector<1x1x18x128xbf16>
    tpu.vector_store %arg5[%c0_11, %c17, %c0_12, %c0_13], %4 {strides = array<i32>} : memref<1x18x18x128xbf16, #tpu.memory_space<vmem>>, vector<1x1x18x128xbf16>,
    %cst_14 = arith.constant 0.000000e+00 : f32
    %7 = vector.broadcast %cst_14 : f32 to vector<256x128xf32>
    %c0_15 = arith.constant 0 : index
    %c0_16 = arith.constant 0 : index
    %c0_17 = arith.constant 0 : index
    %c0_18 = arith.constant 0 : index
    %8 = vector.load %arg5[%c0_15, %c0_16, %c0_17, %c0_18] : memref<1x18x18x128xbf16, #tpu.memory_space<vmem>>, vector<1x16x16x128xbf16>
    %9 = vector.shape_cast %8 : vector<1x16x16x128xbf16> to vector<256x128xbf16>
    %c0_19 = arith.constant 0 : index
    %c0_20 = arith.constant 0 : index
    %c1_21 = arith.constant 1 : index
    %c0_22 = arith.constant 0 : index
    %10 = vector.load %arg5[%c0_19, %c0_20, %c1_21, %c0_22] : memref<1x18x18x128xbf16, #tpu.memory_space<vmem>>, vector<1x16x16x128xbf16>
    %11 = vector.shape_cast %10 : vector<1x16x16x128xbf16> to vector<256x128xbf16>
    %c0_23 = arith.constant 0 : index
    %c0_24 = arith.constant 0 : index
    %c2 = arith.constant 2 : index
    %c0_25 = arith.constant 0 : index
    %12 = vector.load %arg5[%c0_23, %c0_24, %c2, %c0_25] : memref<1x18x18x128xbf16, #tpu.memory_space<vmem>>, vector<1x16x16x128xbf16>
    %13 = vector.shape_cast %12 : vector<1x16x16x128xbf16> to vector<256x128xbf16>
    %14 = tpu.concatenate %9, %11, %13 in 1 : vector<256x128xbf16>, vector<256x128xbf16>, vector<256x128xbf16> -> vector<256x384xbf16>
    %c0_26 = arith.constant 0 : index
    %c0_27 = arith.constant 0 : index
    %15 = vector.load %arg2[%c0_26, %c0_27] : memref<1152x128xbf16, #tpu.memory_space<vmem>>, vector<384x128xbf16>
    %cst_28 = arith.constant dense<0.000000e+00> : vector<256x128xf32>
    %16 = tpu.matmul %14, %15, %cst_28 {dimension_numbers = #tpu.dot_dimension_numbers<[1], [0], [0], [1], [0, 0, 1, 1], [], []>} : vector<256x384xbf16>, vector<384x128xbf16>, vector<256x128xf32> -> vector<256x128xf32>
    %17 = arith.addf %7, %16 : vector<256x128xf32>
    %c0_29 = arith.constant 0 : index
    %c1_30 = arith.constant 1 : index
    %c0_31 = arith.constant 0 : index
    %c0_32 = arith.constant 0 : index
    %18 = vector.load %arg5[%c0_29, %c1_30, %c0_31, %c0_32] : memref<1x18x18x128xbf16, #tpu.memory_space<vmem>>, vector<1x16x16x128xbf16>
    %19 = vector.shape_cast %18 : vector<1x16x16x128xbf16> to vector<256x128xbf16>
    %c0_33 = arith.constant 0 : index
    %c1_34 = arith.constant 1 : index
    %c1_35 = arith.constant 1 : index
    %c0_36 = arith.constant 0 : index
    %20 = vector.load %arg5[%c0_33, %c1_34, %c1_35, %c0_36] : memref<1x18x18x128xbf16, #tpu.memory_space<vmem>>, vector<1x16x16x128xbf16>
    %21 = vector.shape_cast %20 : vector<1x16x16x128xbf16> to vector<256x128xbf16>
    %c0_37 = arith.constant 0 : index
    %c1_38 = arith.constant 1 : index
    %c2_39 = arith.constant 2 : index
    %c0_40 = arith.constant 0 : index
    %22 = vector.load %arg5[%c0_37, %c1_38, %c2_39, %c0_40] : memref<1x18x18x128xbf16, #tpu.memory_space<vmem>>, vector<1x16x16x128xbf16>
    %23 = vector.shape_cast %22 : vector<1x16x16x128xbf16> to vector<256x128xbf16>
    %24 = tpu.concatenate %19, %21, %23 in 1 : vector<256x128xbf16>, vector<256x128xbf16>, vector<256x128xbf16> -> vector<256x384xbf16>
    %c384 = arith.constant 384 : index
    %c0_41 = arith.constant 0 : index
    %25 = vector.load %arg2[%c384, %c0_41] : memref<1152x128xbf16, #tpu.memory_space<vmem>>, vector<384x128xbf16>
    %cst_42 = arith.constant dense<0.000000e+00> : vector<256x128xf32>
    %26 = tpu.matmul %24, %25, %cst_42 {dimension_numbers = #tpu.dot_dimension_numbers<[1], [0], [0], [1], [0, 0, 1, 1], [], []>} : vector<256x384xbf16>, vector<384x128xbf16>, vector<256x128xf32> -> vector<256x128xf32>
    %27 = arith.addf %17, %26 : vector<256x128xf32>
    %c0_43 = arith.constant 0 : index
    %c2_44 = arith.constant 2 : index
    %c0_45 = arith.constant 0 : index
    %c0_46 = arith.constant 0 : index
    %28 = vector.load %arg5[%c0_43, %c2_44, %c0_45, %c0_46] : memref<1x18x18x128xbf16, #tpu.memory_space<vmem>>, vector<1x16x16x128xbf16>
    %29 = vector.shape_cast %28 : vector<1x16x16x128xbf16> to vector<256x128xbf16>
    %c0_47 = arith.constant 0 : index
    %c2_48 = arith.constant 2 : index
    %c1_49 = arith.constant 1 : index
    %c0_50 = arith.constant 0 : index
    %30 = vector.load %arg5[%c0_47, %c2_48, %c1_49, %c0_50] : memref<1x18x18x128xbf16, #tpu.memory_space<vmem>>, vector<1x16x16x128xbf16>
    %31 = vector.shape_cast %30 : vector<1x16x16x128xbf16> to vector<256x128xbf16>
    %c0_51 = arith.constant 0 : index
    %c2_52 = arith.constant 2 : index
    %c2_53 = arith.constant 2 : index
    %c0_54 = arith.constant 0 : index
    %32 = vector.load %arg5[%c0_51, %c2_52, %c2_53, %c0_54] : memref<1x18x18x128xbf16, #tpu.memory_space<vmem>>, vector<1x16x16x128xbf16>
    %33 = vector.shape_cast %32 : vector<1x16x16x128xbf16> to vector<256x128xbf16>
    %34 = tpu.concatenate %29, %31, %33 in 1 : vector<256x128xbf16>, vector<256x128xbf16>, vector<256x128xbf16> -> vector<256x384xbf16>
    %c768 = arith.constant 768 : index
    %c0_55 = arith.constant 0 : index
    %35 = vector.load %arg2[%c768, %c0_55] : memref<1152x128xbf16, #tpu.memory_space<vmem>>, vector<384x128xbf16>
    %cst_56 = arith.constant dense<0.000000e+00> : vector<256x128xf32>
    %36 = tpu.matmul %34, %35, %cst_56 {dimension_numbers = #tpu.dot_dimension_numbers<[1], [0], [0], [1], [0, 0, 1, 1], [], []>} : vector<256x384xbf16>, vector<384x128xbf16>, vector<256x128xf32> -> vector<256x128xf32>
    %37 = arith.addf %27, %36 : vector<256x128xf32>
    %38 = vector.shape_cast %37 : vector<256x128xf32> to vector<1x16x16x128xf32>
    %39 = arith.truncf %38 : vector<1x16x16x128xf32> to vector<1x16x16x128xbf16>
    %c0_57 = arith.constant 0 : index
    %c0_58 = arith.constant 0 : index
    %c0_59 = arith.constant 0 : index
    %c0_60 = arith.constant 0 : index
    %40 = vector.load %arg3[%c0_57, %c0_58, %c0_59, %c0_60] : memref<1x16x16x128xbf16, #tpu.memory_space<vmem>>, vector<1x16x16x128xbf16>
    tpu.vector_store %arg3[%c0_57, %c0_58, %c0_59, %c0_60], %39 {strides = array<i32>} : memref<1x16x16x128xbf16, #tpu.memory_space<vmem>>, vector<1x16x16x128xbf16>,
    %cst_61 = arith.constant dense<0.000000e+00> : vector<128xf32>
    %41 = vector.multi_reduction <add>, %37, %cst_61 [0] : vector<256x128xf32> to vector<128xf32>
    %42 = vector.shape_cast %41 : vector<128xf32> to vector<1x128xf32>
    %43 = arith.mulf %37, %37 : vector<256x128xf32>
    %cst_62 = arith.constant dense<0.000000e+00> : vector<128xf32>
    %44 = vector.multi_reduction <add>, %43, %cst_62 [0] : vector<256x128xf32> to vector<128xf32>
    %45 = vector.shape_cast %44 : vector<128xf32> to vector<1x128xf32>
    %cst_63 = arith.constant 0.000000e+00 : f32
    %46 = vector.broadcast %cst_63 : f32 to vector<6x128xf32>
    %47 = tpu.concatenate %42, %45, %46 in 0 : vector<1x128xf32>, vector<1x128xf32>, vector<6x128xf32> -> vector<8x128xf32>
    %48 = vector.shape_cast %47 : vector<8x128xf32> to vector<1x8x128xf32>
    %c0_64 = arith.constant 0 : index
    %c0_65 = arith.constant 0 : index
    %c0_66 = arith.constant 0 : index
    %49 = vector.load %arg4[%c0_64, %c0_65, %c0_66] : memref<1x8x128xf32, #tpu.memory_space<vmem>>, vector<1x8x128xf32>
    tpu.vector_store %arg4[%c0_64, %c0_65, %c0_66], %48 {strides = array<i32>} : memref<1x8x128xf32, #tpu.memory_space<vmem>>, vector<1x8x128xf32>,
    return
  }
  func.func @transform_0(%arg0: i32) -> (i32, i32, i32, i32) {
    %c0_i32 = arith.constant 0 : i32
    %c0_i32_0 = arith.constant 0 : i32
    %c0_i32_1 = arith.constant 0 : i32
    %c0_i32_2 = arith.constant 0 : i32
    return %arg0, %c0_i32, %c0_i32_0, %c0_i32_1 : i32, i32, i32, i32
  }
  func.func @transform_1(%arg0: i32) -> (i32, i32) {
    %c0_i32 = arith.constant 0 : i32
    %c0_i32_0 = arith.constant 0 : i32
    %c0_i32_1 = arith.constant 0 : i32
    return %c0_i32, %c0_i32_0 : i32, i32
  }
  func.func @transform_2(%arg0: i32) -> (i32, i32, i32, i32) {
    %c0_i32 = arith.constant 0 : i32
    %c0_i32_0 = arith.constant 0 : i32
    %c0_i32_1 = arith.constant 0 : i32
    %c0_i32_2 = arith.constant 0 : i32
    return %arg0, %c0_i32, %c0_i32_0, %c0_i32_1 : i32, i32, i32, i32
  }
  func.func @transform_3(%arg0: i32) -> (i32, i32, i32) {
    %c0_i32 = arith.constant 0 : i32
    %c0_i32_0 = arith.constant 0 : i32
    %c0_i32_1 = arith.constant 0 : i32
    return %arg0, %c0_i32, %c0_i32_0 : i32, i32, i32
  }
}

module attributes {stable_mosaic.version = 11 : i64} {
  func.func @_bn_relu_conv2_kernel(%arg0: i32, %arg1: memref<1x16x16x128xbf16, #tpu.memory_space<vmem>>, %arg2: memref<1152x128xbf16, #tpu.memory_space<vmem>>, %arg3: memref<1x128xf32, #tpu.memory_space<vmem>>, %arg4: memref<1x128xf32, #tpu.memory_space<vmem>>, %arg5: memref<1x16x16x128xbf16, #tpu.memory_space<vmem>>, %arg6: memref<1x8x128xf32, #tpu.memory_space<vmem>>, %arg7: memref<1x18x18x128xbf16, #tpu.memory_space<vmem>>) attributes {dimension_semantics = [#tpu.dimension_semantics<parallel>], iteration_bounds = array<i64: 2>, scalar_prefetch = 0 : i64, scratch_operands = 1 : i64, tpu.core_type = #tpu.core_type<tc>, window_params = [{transform_indices = @transform_0, window_bounds = array<i64: 1, 16, 16, 128>}, {pipeline_mode = #tpu.pipeline_mode<synchronous>, transform_indices = @transform_1, window_bounds = array<i64: 1152, 128>}, {pipeline_mode = #tpu.pipeline_mode<synchronous>, transform_indices = @transform_2, window_bounds = array<i64: 1, 128>}, {pipeline_mode = #tpu.pipeline_mode<synchronous>, transform_indices = @transform_3, window_bounds = array<i64: 1, 128>}, {transform_indices = @transform_4, window_bounds = array<i64: 1, 16, 16, 128>}, {transform_indices = @transform_5, window_bounds = array<i64: 1, 8, 128>}]} {
    %c0 = arith.constant 0 : index
    %c0_0 = arith.constant 0 : index
    %0 = vector.load %arg3[%c0, %c0_0] : memref<1x128xf32, #tpu.memory_space<vmem>>, vector<1x128xf32>
    %1 = vector.shape_cast %0 : vector<1x128xf32> to vector<1x1x1x128xf32>
    %c0_1 = arith.constant 0 : index
    %c0_2 = arith.constant 0 : index
    %2 = vector.load %arg4[%c0_1, %c0_2] : memref<1x128xf32, #tpu.memory_space<vmem>>, vector<1x128xf32>
    %3 = vector.shape_cast %2 : vector<1x128xf32> to vector<1x1x1x128xf32>
    %c0_3 = arith.constant 0 : index
    %c0_4 = arith.constant 0 : index
    %c0_5 = arith.constant 0 : index
    %c0_6 = arith.constant 0 : index
    %4 = vector.load %arg1[%c0_3, %c0_4, %c0_5, %c0_6] : memref<1x16x16x128xbf16, #tpu.memory_space<vmem>>, vector<1x16x16x128xbf16>
    %5 = arith.extf %4 : vector<1x16x16x128xbf16> to vector<1x16x16x128xf32>
    %6 = vector.broadcast %1 : vector<1x1x1x128xf32> to vector<1x16x16x128xf32>
    %7 = arith.mulf %5, %6 : vector<1x16x16x128xf32>
    %8 = vector.broadcast %3 : vector<1x1x1x128xf32> to vector<1x16x16x128xf32>
    %9 = arith.addf %7, %8 : vector<1x16x16x128xf32>
    %cst = arith.constant 0.000000e+00 : f32
    %10 = vector.broadcast %cst : f32 to vector<1x16x16x128xf32>
    %11 = arith.maximumf %9, %10 : vector<1x16x16x128xf32>
    %12 = arith.truncf %11 : vector<1x16x16x128xf32> to vector<1x16x16x128xbf16>
    %cst_7 = arith.constant 0.000000e+00 : bf16
    %13 = vector.broadcast %cst_7 : bf16 to vector<1x16x1x128xbf16>
    %14 = tpu.concatenate %13, %12, %13 in 2 : vector<1x16x1x128xbf16>, vector<1x16x16x128xbf16>, vector<1x16x1x128xbf16> -> vector<1x16x18x128xbf16>
    %c0_8 = arith.constant 0 : index
    %c1 = arith.constant 1 : index
    %c0_9 = arith.constant 0 : index
    %c0_10 = arith.constant 0 : index
    %15 = vector.load %arg7[%c0_8, %c1, %c0_9, %c0_10] : memref<1x18x18x128xbf16, #tpu.memory_space<vmem>>, vector<1x16x18x128xbf16>
    tpu.vector_store %arg7[%c0_8, %c1, %c0_9, %c0_10], %14 {strides = array<i32>} : memref<1x18x18x128xbf16, #tpu.memory_space<vmem>>, vector<1x16x18x128xbf16>,
    %cst_11 = arith.constant 0.000000e+00 : bf16
    %16 = vector.broadcast %cst_11 : bf16 to vector<1x1x18x128xbf16>
    %c0_12 = arith.constant 0 : index
    %c0_13 = arith.constant 0 : index
    %c0_14 = arith.constant 0 : index
    %c0_15 = arith.constant 0 : index
    %17 = vector.load %arg7[%c0_12, %c0_13, %c0_14, %c0_15] : memref<1x18x18x128xbf16, #tpu.memory_space<vmem>>, vector<1x1x18x128xbf16>
    tpu.vector_store %arg7[%c0_12, %c0_13, %c0_14, %c0_15], %16 {strides = array<i32>} : memref<1x18x18x128xbf16, #tpu.memory_space<vmem>>, vector<1x1x18x128xbf16>,
    %c0_16 = arith.constant 0 : index
    %c17 = arith.constant 17 : index
    %c0_17 = arith.constant 0 : index
    %c0_18 = arith.constant 0 : index
    %18 = vector.load %arg7[%c0_16, %c17, %c0_17, %c0_18] : memref<1x18x18x128xbf16, #tpu.memory_space<vmem>>, vector<1x1x18x128xbf16>
    tpu.vector_store %arg7[%c0_16, %c17, %c0_17, %c0_18], %16 {strides = array<i32>} : memref<1x18x18x128xbf16, #tpu.memory_space<vmem>>, vector<1x1x18x128xbf16>,
    %cst_19 = arith.constant 0.000000e+00 : f32
    %19 = vector.broadcast %cst_19 : f32 to vector<256x128xf32>
    %c0_20 = arith.constant 0 : index
    %c0_21 = arith.constant 0 : index
    %c0_22 = arith.constant 0 : index
    %c0_23 = arith.constant 0 : index
    %20 = vector.load %arg7[%c0_20, %c0_21, %c0_22, %c0_23] : memref<1x18x18x128xbf16, #tpu.memory_space<vmem>>, vector<1x16x16x128xbf16>
    %21 = vector.shape_cast %20 : vector<1x16x16x128xbf16> to vector<256x128xbf16>
    %c0_24 = arith.constant 0 : index
    %c0_25 = arith.constant 0 : index
    %c1_26 = arith.constant 1 : index
    %c0_27 = arith.constant 0 : index
    %22 = vector.load %arg7[%c0_24, %c0_25, %c1_26, %c0_27] : memref<1x18x18x128xbf16, #tpu.memory_space<vmem>>, vector<1x16x16x128xbf16>
    %23 = vector.shape_cast %22 : vector<1x16x16x128xbf16> to vector<256x128xbf16>
    %c0_28 = arith.constant 0 : index
    %c0_29 = arith.constant 0 : index
    %c2 = arith.constant 2 : index
    %c0_30 = arith.constant 0 : index
    %24 = vector.load %arg7[%c0_28, %c0_29, %c2, %c0_30] : memref<1x18x18x128xbf16, #tpu.memory_space<vmem>>, vector<1x16x16x128xbf16>
    %25 = vector.shape_cast %24 : vector<1x16x16x128xbf16> to vector<256x128xbf16>
    %26 = tpu.concatenate %21, %23, %25 in 1 : vector<256x128xbf16>, vector<256x128xbf16>, vector<256x128xbf16> -> vector<256x384xbf16>
    %c0_31 = arith.constant 0 : index
    %c0_32 = arith.constant 0 : index
    %27 = vector.load %arg2[%c0_31, %c0_32] : memref<1152x128xbf16, #tpu.memory_space<vmem>>, vector<384x128xbf16>
    %cst_33 = arith.constant dense<0.000000e+00> : vector<256x128xf32>
    %28 = tpu.matmul %26, %27, %cst_33 {dimension_numbers = #tpu.dot_dimension_numbers<[1], [0], [0], [1], [0, 0, 1, 1], [], []>} : vector<256x384xbf16>, vector<384x128xbf16>, vector<256x128xf32> -> vector<256x128xf32>
    %29 = arith.addf %19, %28 : vector<256x128xf32>
    %c0_34 = arith.constant 0 : index
    %c1_35 = arith.constant 1 : index
    %c0_36 = arith.constant 0 : index
    %c0_37 = arith.constant 0 : index
    %30 = vector.load %arg7[%c0_34, %c1_35, %c0_36, %c0_37] : memref<1x18x18x128xbf16, #tpu.memory_space<vmem>>, vector<1x16x16x128xbf16>
    %31 = vector.shape_cast %30 : vector<1x16x16x128xbf16> to vector<256x128xbf16>
    %c0_38 = arith.constant 0 : index
    %c1_39 = arith.constant 1 : index
    %c1_40 = arith.constant 1 : index
    %c0_41 = arith.constant 0 : index
    %32 = vector.load %arg7[%c0_38, %c1_39, %c1_40, %c0_41] : memref<1x18x18x128xbf16, #tpu.memory_space<vmem>>, vector<1x16x16x128xbf16>
    %33 = vector.shape_cast %32 : vector<1x16x16x128xbf16> to vector<256x128xbf16>
    %c0_42 = arith.constant 0 : index
    %c1_43 = arith.constant 1 : index
    %c2_44 = arith.constant 2 : index
    %c0_45 = arith.constant 0 : index
    %34 = vector.load %arg7[%c0_42, %c1_43, %c2_44, %c0_45] : memref<1x18x18x128xbf16, #tpu.memory_space<vmem>>, vector<1x16x16x128xbf16>
    %35 = vector.shape_cast %34 : vector<1x16x16x128xbf16> to vector<256x128xbf16>
    %36 = tpu.concatenate %31, %33, %35 in 1 : vector<256x128xbf16>, vector<256x128xbf16>, vector<256x128xbf16> -> vector<256x384xbf16>
    %c384 = arith.constant 384 : index
    %c0_46 = arith.constant 0 : index
    %37 = vector.load %arg2[%c384, %c0_46] : memref<1152x128xbf16, #tpu.memory_space<vmem>>, vector<384x128xbf16>
    %cst_47 = arith.constant dense<0.000000e+00> : vector<256x128xf32>
    %38 = tpu.matmul %36, %37, %cst_47 {dimension_numbers = #tpu.dot_dimension_numbers<[1], [0], [0], [1], [0, 0, 1, 1], [], []>} : vector<256x384xbf16>, vector<384x128xbf16>, vector<256x128xf32> -> vector<256x128xf32>
    %39 = arith.addf %29, %38 : vector<256x128xf32>
    %c0_48 = arith.constant 0 : index
    %c2_49 = arith.constant 2 : index
    %c0_50 = arith.constant 0 : index
    %c0_51 = arith.constant 0 : index
    %40 = vector.load %arg7[%c0_48, %c2_49, %c0_50, %c0_51] : memref<1x18x18x128xbf16, #tpu.memory_space<vmem>>, vector<1x16x16x128xbf16>
    %41 = vector.shape_cast %40 : vector<1x16x16x128xbf16> to vector<256x128xbf16>
    %c0_52 = arith.constant 0 : index
    %c2_53 = arith.constant 2 : index
    %c1_54 = arith.constant 1 : index
    %c0_55 = arith.constant 0 : index
    %42 = vector.load %arg7[%c0_52, %c2_53, %c1_54, %c0_55] : memref<1x18x18x128xbf16, #tpu.memory_space<vmem>>, vector<1x16x16x128xbf16>
    %43 = vector.shape_cast %42 : vector<1x16x16x128xbf16> to vector<256x128xbf16>
    %c0_56 = arith.constant 0 : index
    %c2_57 = arith.constant 2 : index
    %c2_58 = arith.constant 2 : index
    %c0_59 = arith.constant 0 : index
    %44 = vector.load %arg7[%c0_56, %c2_57, %c2_58, %c0_59] : memref<1x18x18x128xbf16, #tpu.memory_space<vmem>>, vector<1x16x16x128xbf16>
    %45 = vector.shape_cast %44 : vector<1x16x16x128xbf16> to vector<256x128xbf16>
    %46 = tpu.concatenate %41, %43, %45 in 1 : vector<256x128xbf16>, vector<256x128xbf16>, vector<256x128xbf16> -> vector<256x384xbf16>
    %c768 = arith.constant 768 : index
    %c0_60 = arith.constant 0 : index
    %47 = vector.load %arg2[%c768, %c0_60] : memref<1152x128xbf16, #tpu.memory_space<vmem>>, vector<384x128xbf16>
    %cst_61 = arith.constant dense<0.000000e+00> : vector<256x128xf32>
    %48 = tpu.matmul %46, %47, %cst_61 {dimension_numbers = #tpu.dot_dimension_numbers<[1], [0], [0], [1], [0, 0, 1, 1], [], []>} : vector<256x384xbf16>, vector<384x128xbf16>, vector<256x128xf32> -> vector<256x128xf32>
    %49 = arith.addf %39, %48 : vector<256x128xf32>
    %50 = vector.shape_cast %49 : vector<256x128xf32> to vector<1x16x16x128xf32>
    %51 = arith.truncf %50 : vector<1x16x16x128xf32> to vector<1x16x16x128xbf16>
    %c0_62 = arith.constant 0 : index
    %c0_63 = arith.constant 0 : index
    %c0_64 = arith.constant 0 : index
    %c0_65 = arith.constant 0 : index
    %52 = vector.load %arg5[%c0_62, %c0_63, %c0_64, %c0_65] : memref<1x16x16x128xbf16, #tpu.memory_space<vmem>>, vector<1x16x16x128xbf16>
    tpu.vector_store %arg5[%c0_62, %c0_63, %c0_64, %c0_65], %51 {strides = array<i32>} : memref<1x16x16x128xbf16, #tpu.memory_space<vmem>>, vector<1x16x16x128xbf16>,
    %cst_66 = arith.constant dense<0.000000e+00> : vector<128xf32>
    %53 = vector.multi_reduction <add>, %49, %cst_66 [0] : vector<256x128xf32> to vector<128xf32>
    %54 = vector.shape_cast %53 : vector<128xf32> to vector<1x128xf32>
    %55 = arith.mulf %49, %49 : vector<256x128xf32>
    %cst_67 = arith.constant dense<0.000000e+00> : vector<128xf32>
    %56 = vector.multi_reduction <add>, %55, %cst_67 [0] : vector<256x128xf32> to vector<128xf32>
    %57 = vector.shape_cast %56 : vector<128xf32> to vector<1x128xf32>
    %cst_68 = arith.constant 0.000000e+00 : f32
    %58 = vector.broadcast %cst_68 : f32 to vector<6x128xf32>
    %59 = tpu.concatenate %54, %57, %58 in 0 : vector<1x128xf32>, vector<1x128xf32>, vector<6x128xf32> -> vector<8x128xf32>
    %60 = vector.shape_cast %59 : vector<8x128xf32> to vector<1x8x128xf32>
    %c0_69 = arith.constant 0 : index
    %c0_70 = arith.constant 0 : index
    %c0_71 = arith.constant 0 : index
    %61 = vector.load %arg6[%c0_69, %c0_70, %c0_71] : memref<1x8x128xf32, #tpu.memory_space<vmem>>, vector<1x8x128xf32>
    tpu.vector_store %arg6[%c0_69, %c0_70, %c0_71], %60 {strides = array<i32>} : memref<1x8x128xf32, #tpu.memory_space<vmem>>, vector<1x8x128xf32>,
    return
  }
  func.func @transform_0(%arg0: i32) -> (i32, i32, i32, i32) {
    %c0_i32 = arith.constant 0 : i32
    %c0_i32_0 = arith.constant 0 : i32
    %c0_i32_1 = arith.constant 0 : i32
    %c0_i32_2 = arith.constant 0 : i32
    return %arg0, %c0_i32, %c0_i32_0, %c0_i32_1 : i32, i32, i32, i32
  }
  func.func @transform_1(%arg0: i32) -> (i32, i32) {
    %c0_i32 = arith.constant 0 : i32
    %c0_i32_0 = arith.constant 0 : i32
    %c0_i32_1 = arith.constant 0 : i32
    return %c0_i32, %c0_i32_0 : i32, i32
  }
  func.func @transform_2(%arg0: i32) -> (i32, i32) {
    %c0_i32 = arith.constant 0 : i32
    %c0_i32_0 = arith.constant 0 : i32
    %c0_i32_1 = arith.constant 0 : i32
    return %c0_i32, %c0_i32_0 : i32, i32
  }
  func.func @transform_3(%arg0: i32) -> (i32, i32) {
    %c0_i32 = arith.constant 0 : i32
    %c0_i32_0 = arith.constant 0 : i32
    %c0_i32_1 = arith.constant 0 : i32
    return %c0_i32, %c0_i32_0 : i32, i32
  }
  func.func @transform_4(%arg0: i32) -> (i32, i32, i32, i32) {
    %c0_i32 = arith.constant 0 : i32
    %c0_i32_0 = arith.constant 0 : i32
    %c0_i32_1 = arith.constant 0 : i32
    %c0_i32_2 = arith.constant 0 : i32
    return %arg0, %c0_i32, %c0_i32_0, %c0_i32_1 : i32, i32, i32, i32
  }
  func.func @transform_5(%arg0: i32) -> (i32, i32, i32) {
    %c0_i32 = arith.constant 0 : i32
    %c0_i32_0 = arith.constant 0 : i32
    %c0_i32_1 = arith.constant 0 : i32
    return %arg0, %c0_i32, %c0_i32_0 : i32, i32, i32
  }
}

module attributes {stable_mosaic.version = 11 : i64} {
  func.func @_bn2_residual_relu_kernel(%arg0: i32, %arg1: memref<1x16x16x128xbf16, #tpu.memory_space<vmem>>, %arg2: memref<1x16x16x128xbf16, #tpu.memory_space<vmem>>, %arg3: memref<1x128xf32, #tpu.memory_space<vmem>>, %arg4: memref<1x128xf32, #tpu.memory_space<vmem>>, %arg5: memref<1x16x16x128xbf16, #tpu.memory_space<vmem>>) attributes {dimension_semantics = [#tpu.dimension_semantics<parallel>], iteration_bounds = array<i64: 2>, scalar_prefetch = 0 : i64, scratch_operands = 0 : i64, tpu.core_type = #tpu.core_type<tc>, window_params = [{transform_indices = @transform_0, window_bounds = array<i64: 1, 16, 16, 128>}, {transform_indices = @transform_1, window_bounds = array<i64: 1, 16, 16, 128>}, {pipeline_mode = #tpu.pipeline_mode<synchronous>, transform_indices = @transform_2, window_bounds = array<i64: 1, 128>}, {pipeline_mode = #tpu.pipeline_mode<synchronous>, transform_indices = @transform_3, window_bounds = array<i64: 1, 128>}, {transform_indices = @transform_4, window_bounds = array<i64: 1, 16, 16, 128>}]} {
    %c0 = arith.constant 0 : index
    %c0_0 = arith.constant 0 : index
    %0 = vector.load %arg3[%c0, %c0_0] : memref<1x128xf32, #tpu.memory_space<vmem>>, vector<1x128xf32>
    %1 = vector.shape_cast %0 : vector<1x128xf32> to vector<1x1x1x128xf32>
    %c0_1 = arith.constant 0 : index
    %c0_2 = arith.constant 0 : index
    %2 = vector.load %arg4[%c0_1, %c0_2] : memref<1x128xf32, #tpu.memory_space<vmem>>, vector<1x128xf32>
    %3 = vector.shape_cast %2 : vector<1x128xf32> to vector<1x1x1x128xf32>
    %c0_3 = arith.constant 0 : index
    %c0_4 = arith.constant 0 : index
    %c0_5 = arith.constant 0 : index
    %c0_6 = arith.constant 0 : index
    %4 = vector.load %arg1[%c0_3, %c0_4, %c0_5, %c0_6] : memref<1x16x16x128xbf16, #tpu.memory_space<vmem>>, vector<1x16x16x128xbf16>
    %5 = arith.extf %4 : vector<1x16x16x128xbf16> to vector<1x16x16x128xf32>
    %6 = vector.broadcast %1 : vector<1x1x1x128xf32> to vector<1x16x16x128xf32>
    %7 = arith.mulf %5, %6 : vector<1x16x16x128xf32>
    %8 = vector.broadcast %3 : vector<1x1x1x128xf32> to vector<1x16x16x128xf32>
    %9 = arith.addf %7, %8 : vector<1x16x16x128xf32>
    %c0_7 = arith.constant 0 : index
    %c0_8 = arith.constant 0 : index
    %c0_9 = arith.constant 0 : index
    %c0_10 = arith.constant 0 : index
    %10 = vector.load %arg2[%c0_7, %c0_8, %c0_9, %c0_10] : memref<1x16x16x128xbf16, #tpu.memory_space<vmem>>, vector<1x16x16x128xbf16>
    %11 = arith.extf %10 : vector<1x16x16x128xbf16> to vector<1x16x16x128xf32>
    %12 = arith.addf %9, %11 : vector<1x16x16x128xf32>
    %cst = arith.constant 0.000000e+00 : f32
    %13 = vector.broadcast %cst : f32 to vector<1x16x16x128xf32>
    %14 = arith.maximumf %12, %13 : vector<1x16x16x128xf32>
    %15 = arith.truncf %14 : vector<1x16x16x128xf32> to vector<1x16x16x128xbf16>
    %c0_11 = arith.constant 0 : index
    %c0_12 = arith.constant 0 : index
    %c0_13 = arith.constant 0 : index
    %c0_14 = arith.constant 0 : index
    %16 = vector.load %arg5[%c0_11, %c0_12, %c0_13, %c0_14] : memref<1x16x16x128xbf16, #tpu.memory_space<vmem>>, vector<1x16x16x128xbf16>
    tpu.vector_store %arg5[%c0_11, %c0_12, %c0_13, %c0_14], %15 {strides = array<i32>} : memref<1x16x16x128xbf16, #tpu.memory_space<vmem>>, vector<1x16x16x128xbf16>,
    return
  }
  func.func @transform_0(%arg0: i32) -> (i32, i32, i32, i32) {
    %c0_i32 = arith.constant 0 : i32
    %c0_i32_0 = arith.constant 0 : i32
    %c0_i32_1 = arith.constant 0 : i32
    %c0_i32_2 = arith.constant 0 : i32
    return %arg0, %c0_i32, %c0_i32_0, %c0_i32_1 : i32, i32, i32, i32
  }
  func.func @transform_1(%arg0: i32) -> (i32, i32, i32, i32) {
    %c0_i32 = arith.constant 0 : i32
    %c0_i32_0 = arith.constant 0 : i32
    %c0_i32_1 = arith.constant 0 : i32
    %c0_i32_2 = arith.constant 0 : i32
    return %arg0, %c0_i32, %c0_i32_0, %c0_i32_1 : i32, i32, i32, i32
  }
  func.func @transform_2(%arg0: i32) -> (i32, i32) {
    %c0_i32 = arith.constant 0 : i32
    %c0_i32_0 = arith.constant 0 : i32
    %c0_i32_1 = arith.constant 0 : i32
    return %c0_i32, %c0_i32_0 : i32, i32
  }
  func.func @transform_3(%arg0: i32) -> (i32, i32) {
    %c0_i32 = arith.constant 0 : i32
    %c0_i32_0 = arith.constant 0 : i32
    %c0_i32_1 = arith.constant 0 : i32
    return %c0_i32, %c0_i32_0 : i32, i32
  }
  func.func @transform_4(%arg0: i32) -> (i32, i32, i32, i32) {
    %c0_i32 = arith.constant 0 : i32
    %c0_i32_0 = arith.constant 0 : i32
    %c0_i32_1 = arith.constant 0 : i32
    %c0_i32_2 = arith.constant 0 : i32
    return %arg0, %c0_i32, %c0_i32_0, %c0_i32_1 : i32, i32, i32, i32
  }
}

</mosaic_0001>

<bundles_post_ra>
// kernel: basic_block.5
= control target key start
LH: loop header
LB: loop body
LE: loop exit
PB: predicated region body
PF: predicated region fallthrough
CT: control target
= control target key end

     0   :  { %s1091_s15 = smov 0   ;;  %s1244_s0 = inlined_call_operand.vmem [shape: bf16[2,16,16,128], index: 0, kind: input, shape index: {}]   ;;  %s1245_s1 = inlined_call_operand.vmem [shape: bf16[2,16,16,128], index: 1, kind: input, shape index: {}]   ;;  %s1246_s2 = inlined_call_operand.vmem [shape: f32[1,128], index: 2, kind: input, shape index: {}]   ;;  %s1247_s3 = inlined_call_operand.vmem [shape: f32[1,128], index: 3, kind: input, shape index: {}]   ;;  %s1248_s4 = inlined_call_operand.vmem [shape: bf16[2,16,16,128], index: 4, kind: output, shape index: {}]  }
   0x1 LB: > { %s715_s16 = sadd.s32 4294967295, %s1064_s15   ;;  %p719_p0 = scmp.ge.s32.totalorder %s1064_s15, 1  ;;  %s1064_s15 = sphi %s1091_s15, %s14_s15  }
   0x2   : > { %p172_p1 = scmp.lt.s32.totalorder %s1064_s15, 3 }
   0x4   : > { %p173_p2 = pnand %p719_p0, %p172_p1 }
   0x5   : > { %p203_p3 = scmp.lt.s32.totalorder (!%p173_p2), %s715_s16, 1  ;;  %v1116_v0 = vld [vmem:[%s1246_s2] ss:$0 sm:$0xff] (!%p173_p2) }
   0x6   : > { %176 = sbr.rel (%p173_p2) target bundleno = 76 (0x4c), region = 36  ;;  %v1127_v11 = vld [vmem:[%s1247_s3] ss:$0 sm:$0xff] (!%p173_p2) }
   0xd   : > { %s1250_s16 = smov (!%p203_p3, %s715_s16), 1 }
   0xe   : > { %s1099_s17 = sshll.u32 %s1250_s16, 7 }
   0xf   : > { %s1105_s20 = scalar_lea.vmem %s1244_s0, %s1099_s17  ;;  %s1111_s23 = scalar_lea.vmem %s1245_s1, %s1099_s17 }
  0x10   : > { %v798_v1 = vld [vmem:[%s1105_s20] sm:$0xff]   ;;  %v1005_v3 = vld [vmem:[%s1105_s20 + $0x8] sm:$0xff]   ;;  %v1006_v9 = vld [vmem:[%s1105_s20 + $0x10] sm:$0xff]   ;;  %s1150_s30 = scalar_lea.vmem %s1248_s4, %s1099_s17 }
  0x11   : > { %v862_v2 = vld [vmem:[%s1111_s23] sm:$0xff]   ;;  %v799_v4 = vunpack.c.l.bf16 %v798_v1  ;;  %v800_v5 = vunpack.c.h.bf16 %v798_v1  ;;  %v1020_v8 = vld [vmem:[%s1111_s23 + $0x8] sm:$0xff]   ;;  %v1021_v10 = vld [vmem:[%s1111_s23 + $0x10] sm:$0xff]   ;;  %v803_v12 = vunpack.c.l.bf16 %v1005_v3  ;;  %v804_v13 = vunpack.c.h.bf16 %v1005_v3 }
  0x12   : > { %v863_v6 = vunpack.c.l.bf16 %v862_v2  ;;  %v864_v7 = vunpack.c.h.bf16 %v862_v2  ;;  %v867_v14 = vunpack.c.l.bf16 %v1020_v8  ;;  %v868_v15 = vunpack.c.h.bf16 %v1020_v8  ;;  %v1007_v20 = vld [vmem:[%s1105_s20 + $0x18] sm:$0xff]   ;;  %v1008_v46 = vld [vmem:[%s1105_s20 + $0x20] sm:$0xff]   ;;  %v1009_v56 = vld [vmem:[%s1105_s20 + $0x28] sm:$0xff]  }
  0x13   : > { %v290_v16 = vmul.f32 %v799_v4, %v1116_v0  ;;  %v291_v17 = vmul.f32 %v800_v5, %v1116_v0  ;;  %v807_v18 = vunpack.c.l.bf16 %v1006_v9  ;;  %v808_v19 = vunpack.c.h.bf16 %v1006_v9  ;;  %v1022_v41 = vld [vmem:[%s1111_s23 + $0x18] sm:$0xff]   ;;  %v1023_v51 = vld [vmem:[%s1111_s23 + $0x20] sm:$0xff]   ;;  %v1024_v61 = vld [vmem:[%s1111_s23 + $0x28] sm:$0xff]  }
  0x14   : > { %v292_v21 = vmul.f32 %v803_v12, %v1116_v0  ;;  %v293_v22 = vmul.f32 %v804_v13, %v1116_v0  ;;  %v871_v23 = vunpack.c.l.bf16 %v1021_v10  ;;  %v872_v24 = vunpack.c.h.bf16 %v1021_v10  ;;  %v1025_v8 = vld [vmem:[%s1111_s23 + $0x30] sm:$0xff]  }
  0x15   : > { %v328_v25 = vadd.f32 %v1127_v11, %v290_v16  ;;  %v329_v26 = vadd.f32 %v1127_v11, %v291_v17  ;;  %v294_v27 = vmul.f32 %v807_v18, %v1116_v0  ;;  %v295_v28 = vmul.f32 %v808_v19, %v1116_v0 }
  0x16   : > { %v330_v29 = vadd.f32 %v1127_v11, %v292_v21  ;;  %v331_v30 = vadd.f32 %v1127_v11, %v293_v22  ;;  %v811_v31 = vunpack.c.l.bf16 %v1007_v20  ;;  %v812_v32 = vunpack.c.h.bf16 %v1007_v20  ;;  %v1011_v22 = vld [vmem:[%s1105_s20 + $0x38] sm:$0xff]  }
  0x17   : > { %v424_v33 = vadd.f32 %v863_v6, %v328_v25  ;;  %v425_v34 = vadd.f32 %v864_v7, %v329_v26  ;;  %v332_v35 = vadd.f32 %v1127_v11, %v294_v27  ;;  %v333_v36 = vadd.f32 %v1127_v11, %v295_v28  ;;  %v1010_v7 = vld [vmem:[%s1105_s20 + $0x30] sm:$0xff]  }
  0x18   : > { %v426_v37 = vadd.f32 %v867_v14, %v330_v29  ;;  %v427_v38 = vadd.f32 %v868_v15, %v331_v30  ;;  %v296_v39 = vmul.f32 %v811_v31, %v1116_v0  ;;  %v297_v40 = vmul.f32 %v812_v32, %v1116_v0  ;;  %v1026_v31 = vld [vmem:[%s1111_s23 + $0x38] sm:$0xff]  }
  0x19   : > { %v456_v42 = vmax.f32 %v424_v33, 0.0  ;;  %v457_v43 = vmax.f32 %v425_v34, 0.0  ;;  %v428_v44 = vadd.f32 %v871_v23, %v332_v35  ;;  %v429_v45 = vadd.f32 %v872_v24, %v333_v36 }
  0x1a   : > { %v458_v47 = vmax.f32 %v426_v37, 0.0  ;;  %v459_v48 = vmax.f32 %v427_v38, 0.0  ;;  %v334_v49 = vadd.f32 %v1127_v11, %v296_v39  ;;  %v335_v50 = vadd.f32 %v1127_v11, %v297_v40  ;;  %v1012_v40 = vld [vmem:[%s1105_s20 + $0x40] sm:$0xff]  }
  0x1b   : > { %v928_v52 = vpack.c.bf16 %v457_v43, %v456_v42  ;;  %v460_v53 = vmax.f32 %v428_v44, 0.0  ;;  %v461_v54 = vmax.f32 %v429_v45, 0.0  ;;  %v875_v55 = vunpack.c.l.bf16 %v1022_v41 }
  0x1c   : > { %v933_v57 = vpack.c.bf16 %v459_v48, %v458_v47  ;;  %v876_v58 = vunpack.c.h.bf16 %v1022_v41  ;;  %v815_v59 = vunpack.c.l.bf16 %v1008_v46  ;;  %v816_v60 = vunpack.c.h.bf16 %v1008_v46 }
  0x1d   : > { %929 = vst [vmem:[%s1150_s30] sm:$0xff] %v928_v52   ;;  %v938_v62 = vpack.c.bf16 %v461_v54, %v460_v53  ;;  %v430_v63 = vadd.f32 %v875_v55, %v334_v49  ;;  %v879_v1 = vunpack.c.l.bf16 %v1023_v51  ;;  %v880_v2 = vunpack.c.h.bf16 %v1023_v51  ;;  %v1027_v49 = vld [vmem:[%s1111_s23 + $0x40] sm:$0xff]   ;;  %v1013_v54 = vld [vmem:[%s1105_s20 + $0x48] sm:$0xff]  }
  0x1e   : > { %1035 = vst [vmem:[%s1150_s30 + $0x8] sm:$0xff] %v933_v57   ;;  %v431_v3 = vadd.f32 %v876_v58, %v335_v50  ;;  %v298_v4 = vmul.f32 %v815_v59, %v1116_v0  ;;  %v299_v5 = vmul.f32 %v816_v60, %v1116_v0  ;;  %v819_v6 = vunpack.c.l.bf16 %v1009_v56 }
  0x1f   : > { %1036 = vst [vmem:[%s1150_s30 + $0x10] sm:$0xff] %v938_v62   ;;  %v462_v9 = vmax.f32 %v430_v63, 0.0  ;;  %v820_v10 = vunpack.c.h.bf16 %v1009_v56  ;;  %v883_v12 = vunpack.c.l.bf16 %v1024_v61  ;;  %v884_v13 = vunpack.c.h.bf16 %v1024_v61  ;;  %v1028_v63 = vld [vmem:[%s1111_s23 + $0x48] sm:$0xff]  }
  0x20   : > { %v463_v14 = vmax.f32 %v431_v3, 0.0  ;;  %v336_v15 = vadd.f32 %v1127_v11, %v298_v4  ;;  %v337_v16 = vadd.f32 %v1127_v11, %v299_v5  ;;  %v300_v17 = vmul.f32 %v819_v6, %v1116_v0  ;;  %v1014_v5 = vld [vmem:[%s1105_s20 + $0x50] sm:$0xff]  }
  0x21   : > { %v301_v18 = vmul.f32 %v820_v10, %v1116_v0  ;;  %v823_v19 = vunpack.c.l.bf16 %v1010_v7  ;;  %v824_v20 = vunpack.c.h.bf16 %v1010_v7  ;;  %v887_v21 = vunpack.c.l.bf16 %v1025_v8  ;;  %v1029_v10 = vld [vmem:[%s1111_s23 + $0x50] sm:$0xff]  }
  0x22   : > { %v943_v23 = vpack.c.bf16 %v463_v14, %v462_v9  ;;  %v432_v24 = vadd.f32 %v879_v1, %v336_v15  ;;  %v433_v25 = vadd.f32 %v880_v2, %v337_v16  ;;  %v338_v26 = vadd.f32 %v1127_v11, %v300_v17 }
  0x23   : > { %v339_v27 = vadd.f32 %v1127_v11, %v301_v18  ;;  %v302_v28 = vmul.f32 %v823_v19, %v1116_v0  ;;  %v303_v29 = vmul.f32 %v824_v20, %v1116_v0  ;;  %v888_v30 = vunpack.c.h.bf16 %v1025_v8  ;;  %v1015_v20 = vld [vmem:[%s1105_s20 + $0x58] sm:$0xff]  }
  0x24   : > { %1037 = vst [vmem:[%s1150_s30 + $0x18] sm:$0xff] %v943_v23   ;;  %v464_v32 = vmax.f32 %v432_v24, 0.0  ;;  %v465_v33 = vmax.f32 %v433_v25, 0.0  ;;  %v434_v34 = vadd.f32 %v883_v12, %v338_v26  ;;  %v827_v35 = vunpack.c.l.bf16 %v1011_v22 }
  0x25   : > { %v435_v36 = vadd.f32 %v884_v13, %v339_v27  ;;  %v340_v37 = vadd.f32 %v1127_v11, %v302_v28  ;;  %v341_v38 = vadd.f32 %v1127_v11, %v303_v29  ;;  %v828_v39 = vunpack.c.h.bf16 %v1011_v22  ;;  %v1030_v29 = vld [vmem:[%s1111_s23 + $0x58] sm:$0xff]  }
  0x26   : > { %v948_v41 = vpack.c.bf16 %v465_v33, %v464_v32  ;;  %v466_v42 = vmax.f32 %v434_v34, 0.0  ;;  %v304_v43 = vmul.f32 %v827_v35, %v1116_v0  ;;  %v891_v44 = vunpack.c.l.bf16 %v1026_v31 }
  0x27   : > { %v467_v45 = vmax.f32 %v435_v36, 0.0  ;;  %v436_v46 = vadd.f32 %v887_v21, %v340_v37  ;;  %v437_v47 = vadd.f32 %v888_v30, %v341_v38  ;;  %v305_v48 = vmul.f32 %v828_v39, %v1116_v0  ;;  %v1016_v38 = vld [vmem:[%s1105_s20 + $0x60] sm:$0xff]  }
  0x28   : > { %1038 = vst [vmem:[%s1150_s30 + $0x20] sm:$0xff] %v948_v41   ;;  %v342_v50 = vadd.f32 %v1127_v11, %v304_v43  ;;  %v892_v51 = vunpack.c.h.bf16 %v1026_v31  ;;  %v831_v52 = vunpack.c.l.bf16 %v1012_v40  ;;  %v832_v53 = vunpack.c.h.bf16 %v1012_v40  ;;  %v1031_v43 = vld [vmem:[%s1111_s23 + $0x60] sm:$0xff]  }
  0x29   : > { %v953_v55 = vpack.c.bf16 %v467_v45, %v466_v42  ;;  %v468_v56 = vmax.f32 %v436_v46, 0.0  ;;  %v469_v57 = vmax.f32 %v437_v47, 0.0  ;;  %v343_v58 = vadd.f32 %v1127_v11, %v305_v48 }
  0x2a   : > { %v438_v59 = vadd.f32 %v891_v44, %v342_v50  ;;  %v306_v60 = vmul.f32 %v831_v52, %v1116_v0  ;;  %v307_v61 = vmul.f32 %v832_v53, %v1116_v0  ;;  %v895_v62 = vunpack.c.l.bf16 %v1027_v49  ;;  %v1017_v52 = vld [vmem:[%s1105_s20 + $0x68] sm:$0xff]  }
  0x2b   : > { %1039 = vst [vmem:[%s1150_s30 + $0x28] sm:$0xff] %v953_v55   ;;  %v958_v1 = vpack.c.bf16 %v469_v57, %v468_v56  ;;  %v439_v2 = vadd.f32 %v892_v51, %v343_v58  ;;  %v896_v3 = vunpack.c.h.bf16 %v1027_v49  ;;  %v835_v4 = vunpack.c.l.bf16 %v1013_v54 }
  0x2c   : > { %v470_v6 = vmax.f32 %v438_v59, 0.0  ;;  %v344_v7 = vadd.f32 %v1127_v11, %v306_v60  ;;  %v345_v8 = vadd.f32 %v1127_v11, %v307_v61  ;;  %v836_v9 = vunpack.c.h.bf16 %v1013_v54  ;;  %v1032_v61 = vld [vmem:[%s1111_s23 + $0x68] sm:$0xff]  }
  0x2d   : > { %1040 = vst [vmem:[%s1150_s30 + $0x30] sm:$0xff] %v958_v1   ;;  %v471_v12 = vmax.f32 %v439_v2, 0.0  ;;  %v308_v13 = vmul.f32 %v835_v4, %v1116_v0  ;;  %v899_v14 = vunpack.c.l.bf16 %v1028_v63  ;;  %v900_v15 = vunpack.c.h.bf16 %v1028_v63 }
  0x2e   : > { %v440_v16 = vadd.f32 %v895_v62, %v344_v7  ;;  %v441_v17 = vadd.f32 %v896_v3, %v345_v8  ;;  %v309_v18 = vmul.f32 %v836_v9, %v1116_v0  ;;  %v839_v19 = vunpack.c.l.bf16 %v1014_v5  ;;  %v1018_v3 = vld [vmem:[%s1105_s20 + $0x70] sm:$0xff]  }
  0x2f   : > { %v963_v21 = vpack.c.bf16 %v471_v12, %v470_v6  ;;  %v346_v22 = vadd.f32 %v1127_v11, %v308_v13  ;;  %v840_v23 = vunpack.c.h.bf16 %v1014_v5  ;;  %v903_v24 = vunpack.c.l.bf16 %v1029_v10  ;;  %v1033_v13 = vld [vmem:[%s1111_s23 + $0x70] sm:$0xff]  }
  0x30   : > { %v472_v25 = vmax.f32 %v440_v16, 0.0  ;;  %v473_v26 = vmax.f32 %v441_v17, 0.0  ;;  %v347_v27 = vadd.f32 %v1127_v11, %v309_v18  ;;  %v310_v28 = vmul.f32 %v839_v19, %v1116_v0 }
  0x31   : > { %1041 = vst [vmem:[%s1150_s30 + $0x38] sm:$0xff] %v963_v21   ;;  %v442_v30 = vadd.f32 %v899_v14, %v346_v22  ;;  %v311_v31 = vmul.f32 %v840_v23, %v1116_v0  ;;  %v904_v32 = vunpack.c.h.bf16 %v1029_v10  ;;  %v843_v33 = vunpack.c.l.bf16 %v1015_v20  ;;  %v1019_v22 = vld [vmem:[%s1105_s20 + $0x78] sm:$0xff]  }
  0x32   : > { %v968_v34 = vpack.c.bf16 %v473_v26, %v472_v25  ;;  %v443_v35 = vadd.f32 %v900_v15, %v347_v27  ;;  %v348_v36 = vadd.f32 %v1127_v11, %v310_v28  ;;  %v844_v37 = vunpack.c.h.bf16 %v1015_v20  ;;  %v1034_v27 = vld [vmem:[%s1111_s23 + $0x78] sm:$0xff]  }
  0x33   : > { %v474_v39 = vmax.f32 %v442_v30, 0.0  ;;  %v349_v40 = vadd.f32 %v1127_v11, %v311_v31  ;;  %v312_v41 = vmul.f32 %v843_v33, %v1116_v0  ;;  %v907_v42 = vunpack.c.l.bf16 %v1030_v29 }
  0x34   : > { %1042 = vst [vmem:[%s1150_s30 + $0x40] sm:$0xff] %v968_v34   ;;  %v475_v44 = vmax.f32 %v443_v35, 0.0  ;;  %v444_v45 = vadd.f32 %v903_v24, %v348_v36  ;;  %v313_v46 = vmul.f32 %v844_v37, %v1116_v0  ;;  %v908_v47 = vunpack.c.h.bf16 %v1030_v29 }
  0x35   : > { %v445_v48 = vadd.f32 %v904_v32, %v349_v40  ;;  %v350_v49 = vadd.f32 %v1127_v11, %v312_v41  ;;  %v847_v50 = vunpack.c.l.bf16 %v1016_v38  ;;  %v848_v51 = vunpack.c.h.bf16 %v1016_v38 }
  0x36   : > { %v973_v53 = vpack.c.bf16 %v475_v44, %v474_v39  ;;  %v476_v54 = vmax.f32 %v444_v45, 0.0  ;;  %v351_v55 = vadd.f32 %v1127_v11, %v313_v46  ;;  %v911_v56 = vunpack.c.l.bf16 %v1031_v43 }
  0x37   : > { %v477_v57 = vmax.f32 %v445_v48, 0.0  ;;  %v446_v58 = vadd.f32 %v907_v42, %v350_v49  ;;  %v314_v59 = vmul.f32 %v847_v50, %v1116_v0  ;;  %v315_v60 = vmul.f32 %v848_v51, %v1116_v0 }
  0x38   : > { %1043 = vst [vmem:[%s1150_s30 + $0x48] sm:$0xff] %v973_v53   ;;  %v447_v62 = vadd.f32 %v908_v47, %v351_v55  ;;  %v912_v63 = vunpack.c.h.bf16 %v1031_v43  ;;  %v851_v1 = vunpack.c.l.bf16 %v1017_v52  ;;  %v852_v2 = vunpack.c.h.bf16 %v1017_v52 }
  0x39   : > { %v978_v4 = vpack.c.bf16 %v477_v57, %v476_v54  ;;  %v478_v5 = vmax.f32 %v446_v58, 0.0  ;;  %v352_v6 = vadd.f32 %v1127_v11, %v314_v59  ;;  %v353_v7 = vadd.f32 %v1127_v11, %v315_v60 }
  0x3a   : > { %v479_v8 = vmax.f32 %v447_v62, 0.0  ;;  %v316_v9 = vmul.f32 %v851_v1, %v1116_v0  ;;  %v317_v10 = vmul.f32 %v852_v2, %v1116_v0  ;;  %v915_v12 = vunpack.c.l.bf16 %v1032_v61 }
  0x3b   : > { %1044 = vst [vmem:[%s1150_s30 + $0x50] sm:$0xff] %v978_v4   ;;  %v448_v14 = vadd.f32 %v911_v56, %v352_v6  ;;  %v449_v15 = vadd.f32 %v912_v63, %v353_v7  ;;  %v916_v16 = vunpack.c.h.bf16 %v1032_v61  ;;  %v855_v17 = vunpack.c.l.bf16 %v1018_v3 }
  0x3c   : > { %v983_v18 = vpack.c.bf16 %v479_v8, %v478_v5  ;;  %v354_v19 = vadd.f32 %v1127_v11, %v316_v9  ;;  %v355_v20 = vadd.f32 %v1127_v11, %v317_v10  ;;  %v856_v21 = vunpack.c.h.bf16 %v1018_v3 }
  0x3d   : > { %v480_v23 = vmax.f32 %v448_v14, 0.0  ;;  %v481_v24 = vmax.f32 %v449_v15, 0.0  ;;  %v318_v25 = vmul.f32 %v855_v17, %v1116_v0  ;;  %v919_v26 = vunpack.c.l.bf16 %v1033_v13 }
  0x3e   : > { %1045 = vst [vmem:[%s1150_s30 + $0x58] sm:$0xff] %v983_v18   ;;  %v450_v28 = vadd.f32 %v915_v12, %v354_v19  ;;  %v451_v29 = vadd.f32 %v916_v16, %v355_v20  ;;  %v319_v30 = vmul.f32 %v856_v21, %v1116_v0  ;;  %v920_v31 = vunpack.c.h.bf16 %v1033_v13 }
  0x3f   : > { %v988_v32 = vpack.c.bf16 %v481_v24, %v480_v23  ;;  %v356_v33 = vadd.f32 %v1127_v11, %v318_v25  ;;  %v859_v34 = vunpack.c.l.bf16 %v1019_v22  ;;  %v860_v35 = vunpack.c.h.bf16 %v1019_v22 }
  0x40   : > { %v482_v36 = vmax.f32 %v450_v28, 0.0  ;;  %v483_v37 = vmax.f32 %v451_v29, 0.0  ;;  %v357_v38 = vadd.f32 %v1127_v11, %v319_v30  ;;  %v923_v39 = vunpack.c.l.bf16 %v1034_v27 }
  0x41   : > { %1046 = vst [vmem:[%s1150_s30 + $0x60] sm:$0xff] %v988_v32   ;;  %v452_v40 = vadd.f32 %v919_v26, %v356_v33  ;;  %v320_v41 = vmul.f32 %v859_v34, %v1116_v0  ;;  %v321_v42 = vmul.f32 %v860_v35, %v1116_v0  ;;  %v924_v43 = vunpack.c.h.bf16 %v1034_v27 }
  0x42   : > { %v993_v44 = vpack.c.bf16 %v483_v37, %v482_v36  ;;  %v453_v45 = vadd.f32 %v920_v31, %v357_v38 }
  0x43   : > { %v484_v46 = vmax.f32 %v452_v40, 0.0  ;;  %v358_v47 = vadd.f32 %v1127_v11, %v320_v41  ;;  %v359_v48 = vadd.f32 %v1127_v11, %v321_v42 }
  0x44   : > { %1047 = vst [vmem:[%s1150_s30 + $0x68] sm:$0xff] %v993_v44   ;;  %v485_v49 = vmax.f32 %v453_v45, 0.0 }
  0x45   : > { %v454_v50 = vadd.f32 %v923_v39, %v358_v47  ;;  %v455_v51 = vadd.f32 %v924_v43, %v359_v48 }
  0x46   : > { %v998_v52 = vpack.c.bf16 %v485_v49, %v484_v46 }
  0x47   : > { %v486_v53 = vmax.f32 %v454_v50, 0.0  ;;  %v487_v54 = vmax.f32 %v455_v51, 0.0 }
  0x48   : > { %1048 = vst [vmem:[%s1150_s30 + $0x70] sm:$0xff] %v998_v52  }
  0x49   : > { %v1003_v55 = vpack.c.bf16 %v487_v54, %v486_v53 }
  0x4b   : > { %1049 = vst [vmem:[%s1150_s30 + $0x78] sm:$0xff] %v1003_v55  }
  0x4c PF: > { %s14_s15 = sadd.s32 1, %s1064_s15  }
  0x4d   : > { %p11_p4 = scmp.ge.s32.totalorder %s14_s15, 4  }
  0x4f   :  { %13 = sbr.rel (!%p11_p4) target bundleno = 1 (0x1), region = 69 }

// kernel: basic_block.4
= control target key start
LH: loop header
LB: loop body
LE: loop exit
PB: predicated region body
PF: predicated region fallthrough
CT: control target
= control target key end

     0   :  { %s6737_s18 = smov 0   ;;  %s8739_s0 = inlined_call_operand.vmem [shape: bf16[2,16,16,128], index: 0, kind: input, shape index: {}]   ;;  %s8740_s1 = inlined_call_operand.vmem [shape: bf16[1152,128], index: 1, kind: input, shape index: {}]   ;;  %s8741_s2 = inlined_call_operand.vmem [shape: f32[1,128], index: 2, kind: input, shape index: {}]   ;;  %s8742_s3 = inlined_call_operand.vmem [shape: f32[1,128], index: 3, kind: input, shape index: {}]   ;;  %s8743_s4 = inlined_call_operand.vmem [shape: bf16[2,16,16,128], index: 4, kind: output, shape index: {0}]   ;;  %s8744_s5 = inlined_call_operand.vmem [shape: f32[2,8,128], index: 5, kind: output, shape index: {1}]  }
   0x1 LB: > { %s5224_s19 = sadd.s32 4294967295, %s6704_s18   ;;  %p5228_p0 = scmp.ge.s32.totalorder %s6704_s18, 1  ;;  %s6704_s18 = sphi %s6737_s18, %s16_s18  }
   0x2   : > { %p190_p1 = scmp.lt.s32.totalorder %s6704_s18, 3 }
   0x4   : > { %p191_p2 = pnand %p5228_p0, %p190_p1 }
   0x6   : > { %194 = sbr.rel (%p191_p2) target bundleno = 657 (0x291), region = 36 }
   0xd   : > { %v6748_v0 = vld [vmem:[%s8740_s1 + $0x140] sm:$0xff]   ;;  %v6761_v3 = vld [vmem:[%s8740_s1 + $0x148] sm:$0xff]   ;;  %v6773_v6 = vld [vmem:[%s8740_s1 + $0x150] sm:$0xff]   ;;  %v6706_v8 = vmov 0   ;;  %p222_p3 = scmp.lt.s32.totalorder %s5224_s19, 1  ;;  %vm571_vm1 = vcmask 1040384  }
   0xe   : > { %v6528_v1 = vld [vmem:[%s8740_s1 + $0x100] sm:$0xff]   ;;  %6342 = vmatprep.subr.bf16.mxu1 %v6748_v0  ;;  %v6531_v4 = vld [vmem:[%s8740_s1 + $0x108] sm:$0xff]   ;;  %v6534_v7 = vld [vmem:[%s8740_s1 + $0x110] sm:$0xff]   ;;  %831 = vst [vmem:[#allocation2] sm:$0xf] %v6706_v8  ;;  %vm1337_vm3 = vcmask 1042432  }
   0xf   : > { %v6529_v2 = vld [vmem:[%s8740_s1 + $0xc0] sm:$0xff]   ;;  %6350 = vmatpush3.bf16.msra.mxu1 %v6748_v0  ;;  %5790 = vmatprep.subr.bf16.mxu0 %v6528_v1  ;;  %v6532_v5 = vld [vmem:[%s8740_s1 + $0xc8] sm:$0xff]   ;;  %832 = vst [vmem:[#allocation2 + $0x4] sm:$0xf] %v6706_v8  ;;  %833 = vst [vmem:[#allocation2 + $0x8] sm:$0x1] %v6706_v8 }
  0x10   : > { %5791 = vmatpush3.bf16.msra.mxu0 %v6529_v2  ;;  %6343 = vmatprep.subr.bf16.mxu1 %v6761_v3  ;;  %835 = vst [vmem:[#allocation2 + $0xcc] sm:$0xf] %v6706_v8  ;;  %836 = vst [vmem:[#allocation2 + $0xd0] sm:$0xf] %v6706_v8  ;;  %v6535_v9 = vld [vmem:[%s8740_s1 + $0xd0] sm:$0xff]   ;;  %v6786_v10 = vld [vmem:[%s8740_s1 + $0x158] sm:$0xff]  }
  0x11   : > { %5792 = vmatprep.subr.bf16.mxu0 %v6531_v4  ;;  %837 = vst [vmem:[#allocation2 + $0xd4] sm:$0x1] %v6706_v8  ;;  %v6537_v11 = vld [vmem:[%s8740_s1 + $0x118] sm:$0xff]   ;;  %v6801_v13 = vld [vmem:[%s8740_s1 + $0x160] sm:$0xff]   ;;  %s8758_s19 = smov (!%p222_p3, %s5224_s19), 1  ;;  %v6818_v16 = vld [vmem:[%s8740_s1 + $0x168] sm:$0xff]  }
  0x12   : > { %v6538_v12 = vld [vmem:[%s8740_s1 + $0xd8] sm:$0xff]   ;;  %v6540_v14 = vld [vmem:[%s8740_s1 + $0x120] sm:$0xff]   ;;  %v6543_v17 = vld [vmem:[%s8740_s1 + $0x128] sm:$0xff]   ;;  %s5582_s6 = sshll.u32 %s8758_s19, 7  ;;  %vm572_vm0 = vsmask.f32 256 }
  0x13   : > { %6351 = vmatpush3.bf16.msra.mxu1 %v6761_v3  ;;  %v6541_v15 = vld [vmem:[%s8740_s1 + $0xe0] sm:$0xff]   ;;  %v6544_v18 = vld [vmem:[%s8740_s1 + $0xe8] sm:$0xff]   ;;  %v6832_v19 = vld [vmem:[%s8740_s1 + $0x170] sm:$0xff]   ;;  %s6839_s13 = scalar_lea.vmem %s8739_s0, %s5582_s6  ;;  %vm1338_vm4 = vcmask 1046532   ;;  %vm886_vm6 = vsmask.f32 3328  ;;  %s8674_s28 = scalar_lea.vmem %s8743_s4, %s5582_s6 }
  0x14   : > { %5793 = vmatpush3.bf16.msra.mxu0 %v6532_v5  ;;  %6344 = vmatprep.subr.bf16.mxu1 %v6773_v6  ;;  %v6546_v20 = vld [vmem:[%s8740_s1 + $0x130] sm:$0xff]   ;;  %v6851_v22 = vld [vmem:[%s8741_s2] ss:$0 sm:$0xff]  ;;  %v6858_v24 = vld [vmem:[%s8740_s1 + $0x178] sm:$0xff]   ;;  %vm887_vm7 = vsmask.f32 7440 }
  0x15   : > { %5794 = vmatprep.subr.bf16.mxu0 %v6534_v7  ;;  %v6547_v21 = vld [vmem:[%s8740_s1 + $0xf0] sm:$0xff]   ;;  %v5767_v23 = vld [vmem:[%s6839_s13 + $0x40] sm:$0xff]   ;;  %v6549_v27 = vld [vmem:[%s8740_s1 + $0x138] sm:$0xff]   ;;  %s5233_s6 = sshll.u32 %s8758_s19, 3  ;;  %vm5135_vm9 = vcmask 1041408  }
  0x16   : > { %v5650_v25 = vunpack.c.l.bf16 %v5767_v23  ;;  %v5651_v26 = vunpack.c.h.bf16 %v5767_v23  ;;  %v6866_v28 = vld [vmem:[%s8742_s3] ss:$0 sm:$0xff]  ;;  %v5768_v29 = vld [vmem:[%s6839_s13 + $0x48] sm:$0xff]   ;;  %v6550_v34 = vld [vmem:[%s8740_s1 + $0xf8] sm:$0xff]   ;;  %s235_s7 = scalar_lea.vmem %s8744_s5, %s5233_s6 }
  0x17   : > { %6352 = vmatpush3.bf16.msra.mxu1 %v6773_v6  ;;  %v5654_v32 = vunpack.c.l.bf16 %v5768_v29  ;;  %v5655_v33 = vunpack.c.h.bf16 %v5768_v29  ;;  %v6551_v38 = vld [vmem:[%s8740_s1 + $0x40] sm:$0xff]   ;;  %v5769_v46 = vld [vmem:[%s6839_s13 + $0x50] sm:$0xff]   ;;  %v5770_v51 = vld [vmem:[%s6839_s13 + $0x58] sm:$0xff]  }
  0x18   : > { %5795 = vmatpush3.bf16.msra.mxu0 %v6535_v9  ;;  %6345 = vmatprep.subr.bf16.mxu1 %v6786_v10  ;;  %v325_v30 = vmul.f32 %v5650_v25, %v6851_v22  ;;  %v326_v31 = vmul.f32 %v5651_v26, %v6851_v22  ;;  %v5617_v39 = vld [vmem:[%s6839_s13] sm:$0xff]   ;;  %v5658_v50 = vunpack.c.l.bf16 %v5769_v46  ;;  %v5659_v54 = vunpack.c.h.bf16 %v5769_v46  ;;  %vm6902_vm2 = vmand %vm571_vm1, %vm572_vm0 }
  0x19   : > { %5796 = vmatprep.subr.bf16.mxu0 %v6537_v11  ;;  %v327_v37 = vmul.f32 %v5654_v32, %v6851_v22  ;;  %v328_v40 = vmul.f32 %v5655_v33, %v6851_v22  ;;  %v5618_v41 = vunpack.c.l.bf16 %v5617_v39  ;;  %v5619_v42 = vunpack.c.h.bf16 %v5617_v39  ;;  %vm6936_vm5 = vmor %vm1337_vm3, %vm1338_vm4 }
  0x1a   : > { %v363_v35 = vadd.f32 %v6866_v28, %v325_v30  ;;  %v364_v36 = vadd.f32 %v6866_v28, %v326_v31  ;;  %v5662_v55 = vunpack.c.l.bf16 %v5770_v51  ;;  %v329_v59 = vmul.f32 %v5658_v50, %v6851_v22  ;;  %v5760_v31 = vld [vmem:[%s6839_s13 + $0x8] sm:$0xff]   ;;  %vm6988_vm8 = vmor %vm886_vm6, %vm887_vm7 }
  0x1b   : > { %6353 = vmatpush3.bf16.msra.mxu1 %v6786_v10  ;;  %v365_v45 = vadd.f32 %v6866_v28, %v327_v37  ;;  %v366_v47 = vadd.f32 %v6866_v28, %v328_v40  ;;  %v309_v48 = vmul.f32 %v5618_v41, %v6851_v22  ;;  %v310_v49 = vmul.f32 %v5619_v42, %v6851_v22 }
  0x1c   : > { %5797 = vmatpush3.bf16.msra.mxu0 %v6538_v12  ;;  %6346 = vmatprep.subr.bf16.mxu1 %v6801_v13  ;;  %v395_v43 = vmax.f32 %v363_v35, 0.0  ;;  %v396_v44 = vmax.f32 %v364_v36, 0.0  ;;  %v330_v62 = vmul.f32 %v5659_v54, %v6851_v22  ;;  %v5663_v63 = vunpack.c.h.bf16 %v5770_v51 }
  0x1d   : > { %5798 = vmatprep.subr.bf16.mxu0 %v6540_v14  ;;  %v397_v53 = vmax.f32 %v365_v45, 0.0  ;;  %v398_v56 = vmax.f32 %v366_v47, 0.0  ;;  %v347_v57 = vadd.f32 %v6866_v28, %v309_v48  ;;  %v348_v58 = vadd.f32 %v6866_v28, %v310_v49 }
  0x1e   : > { %v419_v52 = vpack.c.bf16 %v396_v44, %v395_v43  ;;  %v367_v5 = vadd.f32 %v6866_v28, %v329_v59  ;;  %v368_v8 = vadd.f32 %v6866_v28, %v330_v62  ;;  %v331_v9 = vmul.f32 %v5662_v55, %v6851_v22  ;;  %v6916_v44 = vld [vmem:[%s6839_s13 + $0x60] sm:$0xff]  }
  0x1f   : > { %6354 = vmatpush3.bf16.msra.mxu1 %v6801_v13  ;;  %v420_v1 = vpack.c.bf16 %v398_v56, %v397_v53  ;;  %v379_v2 = vmax.f32 %v347_v57, 0.0  ;;  %v380_v4 = vmax.f32 %v348_v58, 0.0  ;;  %v332_v11 = vmul.f32 %v5663_v63, %v6851_v22 }
  0x20   : > { %5799 = vmatpush3.bf16.msra.mxu0 %v6541_v15  ;;  %6347 = vmatprep.subr.bf16.mxu1 %v6818_v16  ;;  %v484_v60 = vshrl.u32 %v419_v52, 16  ;;  %v487_v61 = vshll.u32 %v419_v52, 16  ;;  %v400_v23 = vmax.f32 %v368_v8, 0.0  ;;  %v369_v25 = vadd.f32 %v6866_v28, %v331_v9 }
  0x21   : > { %5800 = vmatprep.subr.bf16.mxu0 %v6543_v17  ;;  %v491_v14 = vshrl.u32 %v420_v1, 16  ;;  %v494_v15 = vshll.u32 %v420_v1, 16  ;;  %v411_v17 = vpack.c.bf16 %v380_v4, %v379_v2  ;;  %v5622_v47 = vunpack.c.l.bf16 %v5760_v31 }
  0x22   : > { %v486_v7 = vrot.slane %v484_v60, 7  ;;  %v401_v35 = vmax.f32 %v369_v25, 0.0  ;;  %v5623_v48 = vunpack.c.h.bf16 %v5760_v31  ;;  %v5666_v59 = vunpack.c.l.bf16 %v6916_v44 }
  0x23   : > { %6355 = vmatpush3.bf16.msra.mxu1 %v6818_v16  ;;  %v428_v29 = vshrl.u32 %v411_v17, 16  ;;  %v431_v30 = vshll.u32 %v411_v17, 16  ;;  %v311_v56 = vmul.f32 %v5622_v47, %v6851_v22  ;;  %v5667_v60 = vunpack.c.h.bf16 %v6916_v44 }
  0x24   : > { %5801 = vmatpush3.bf16.msra.mxu0 %v6544_v18  ;;  %6348 = vmatprep.subr.bf16.mxu1 %v6832_v19  ;;  %v399_v18 = vmax.f32 %v367_v5, 0.0  ;;  %v312_v58 = vmul.f32 %v5623_v48, %v6851_v22 }
  0x25   : > { %5802 = vmatprep.subr.bf16.mxu0 %v6546_v20  ;;  %v489_v20 = vor.u32 %v487_v61, %v486_v7  ;;  %v430_v41 = vrot.slane %v428_v29, 7  ;;  %v349_v8 = vadd.f32 %v6866_v28, %v311_v56  ;;  %v334_v47 = vmul.f32 %v5667_v60, %v6851_v22 }
  0x26   : > { %v421_v33 = vpack.c.bf16 %v400_v23, %v399_v18 }
  0x27   : > { %6356 = vmatpush3.bf16.msra.mxu1 %v6832_v19  ;;  %v582_v32 = vsel %vm6902_vm2, 0, %v489_v20  ;;  %v433_v51 = vor.u32 %v431_v30, %v430_v41  ;;  %v590_v52 = vsel %vm6902_vm2, %v430_v41, 0 }
  0x28   : > { %5803 = vmatpush3.bf16.msra.mxu0 %v6547_v21  ;;  %6349 = vmatprep.subr.bf16.mxu1 %v6858_v24  ;;  %v598_v21 = vsel %vm6902_vm2, %v486_v7, 0  ;;  %v5260_v36 = vcombine.low %v582_v32, %v582_v32  ;;  %v5261_v37 = vcombine.high %v582_v32, %v582_v32  ;;  %v498_v42 = vshrl.u32 %v421_v33, 16 }
  0x29   : > { %5804 = vmatprep.subr.bf16.mxu0 %v6549_v27  ;;  %v5262_v26 = vcombine.low %v598_v21, %v598_v21  ;;  %v493_v27 = vrot.slane %v491_v14, 7  ;;  %v501_v43 = vshll.u32 %v421_v33, 16  ;;  %v5238_v53 = vcombine.low %v590_v52, %v590_v52 }
  0x2a   : > { %807 = vst [vmem:[#allocation2 + $0x6c] sm:$0xf] %v5260_v36  ;;  %808 = vst [vmem:[#allocation2 + $0x70] sm:$0xf] %v5261_v37  ;;  %v500_v54 = vrot.slane %v498_v42, 7  ;;  %v574_v57 = vsel %vm6902_vm2, 0, %v433_v51  ;;  %v333_v36 = vmul.f32 %v5666_v59, %v6851_v22 }
  0x2b   : > { %6357 = vmatpush3.bf16.msra.mxu1 %v6858_v24  ;;  %809 = vst [vmem:[#allocation2 + $0x74] sm:$0x1] %v5262_v26  ;;  %v599_v39 = vsel %vm6902_vm2, %v493_v27, 0  ;;  %v5236_v61 = vcombine.low %v574_v57, %v574_v57  ;;  %v5237_v62 = vcombine.high %v574_v57, %v574_v57  ;;  %785 = vst [vmem:[#allocation2 + $0x14] sm:$0x1] %v5238_v53  ;;  %v381_v26 = vmax.f32 %v349_v8, 0.0 }
  0x2c   : > { %5805 = vmatpush3.bf16.msra.mxu0 %v6550_v34  ;;  %5926 = vmatprep.subr.bf16.mxu1 %v6551_v38  ;;  %v370_v34 = vadd.f32 %v6866_v28, %v332_v11  ;;  %v496_v38 = vor.u32 %v494_v15, %v493_v27  ;;  %v5265_v40 = vcombine.low %v599_v39, %v599_v39  ;;  %v600_v1 = vsel %vm6902_vm2, %v500_v54, 0 }
  0x2d   : > { %6198 = vmatprep.subr.bf16.mxu0 %v6748_v0  ;;  %v503_v63 = vor.u32 %v501_v43, %v500_v54  ;;  %v5268_v4 = vcombine.low %v600_v1, %v600_v1  ;;  %783 = vst [vmem:[#allocation2 + $0xc] sm:$0xf] %v5236_v61  ;;  %784 = vst [vmem:[#allocation2 + $0x10] sm:$0xf] %v5237_v62  ;;  %v350_v15 = vadd.f32 %v6866_v28, %v312_v58  ;;  %v6552_v1 = vld [vmem:[%s8740_s1] sm:$0xff]  }
  0x2e   : > { %v583_v45 = vsel %vm6902_vm2, 0, %v496_v38  ;;  %v402_v46 = vmax.f32 %v370_v34, 0.0  ;;  %812 = vst [vmem:[#allocation2 + $0x80] sm:$0x1] %v5265_v40 }
  0x2f   : > { %v5263_v49 = vcombine.low %v583_v45, %v583_v45  ;;  %v5264_v50 = vcombine.high %v583_v45, %v583_v45  ;;  %v584_v14 = vsel %vm6902_vm2, 0, %v503_v63  ;;  %815 = vst [vmem:[#allocation2 + $0x8c] sm:$0x1] %v5268_v4  ;;  %v382_v32 = vmax.f32 %v350_v15, 0.0 }
  0x30   : > { %v422_v55 = vpack.c.bf16 %v402_v46, %v401_v35  ;;  %v5266_v21 = vcombine.low %v584_v14, %v584_v14  ;;  %v5267_v23 = vcombine.high %v584_v14, %v584_v14 }
  0x31   : > { %810 = vst [vmem:[#allocation2 + $0x78] sm:$0xf] %v5263_v49  ;;  %811 = vst [vmem:[#allocation2 + $0x7c] sm:$0xf] %v5264_v50  ;;  %v1725_v18 = vld [vmem:[#allocation2 + $0x70] sm:$0xf]  ;;  %v6947_v42 = vpack.c.bf16 %v382_v32, %v381_v26  ;;  %v371_v32 = vadd.f32 %v6866_v28, %v333_v36 }
  0x32   : > { %v1748_v2 = vld [vmem:[#allocation2 + $0x74] sm:$0x1]  ;;  %v505_v5 = vshrl.u32 %v422_v55, 16  ;;  %v508_v7 = vshll.u32 %v422_v55, 16  ;;  %v2148_v20 = vld [vmem:[#allocation2 + $0x6c] sm:$0xe] }
  0x33   : > { %v1968_v9 = vshll.u32 %v1748_v2, 16  ;;  %v2265_v11 = vrot.slane %v1748_v2, 5  ;;  %v5356_v29 = vrot.slane %v2148_v20, 9  ;;  %v2262_v30 = vrot.slane %v1725_v18, 5  ;;  %813 = vst [vmem:[#allocation2 + $0x84] sm:$0xf] %v5266_v21 }
  0x34   : > { %v507_v25 = vrot.slane %v505_v5, 7  ;;  %814 = vst [vmem:[#allocation2 + $0x88] sm:$0xf] %v5267_v23  ;;  %v6949_v45 = vld [vmem:[#allocation2 + $0x14] sm:$0x1]  ;;  %v6554_v5 = vld [vmem:[%s8740_s1 + $0x48] sm:$0xff]  }
  0x35   : > { %v6940_v27 = vrot.slane %v1968_v9, 5  ;;  %v1749_v31 = vld [vmem:[#allocation2 + $0x80] sm:$0x1]  ;;  %v2263_v37 = vsel %vm6936_vm5, %v5356_v29, %v2262_v30  ;;  %v2264_v38 = vrot.slane %v2262_v30, 4  ;;  %v1776_v49 = vshll.u32 %v6949_v45, 16  ;;  %v5772_v18 = vld [vmem:[%s6839_s13 + $0x68] sm:$0xff]  }
  0x36   : > { %v2272_v33 = vrot.slane %v1749_v31, 5  ;;  %v510_v34 = vor.u32 %v508_v7, %v507_v25  ;;  %v601_v35 = vsel %vm6902_vm2, %v507_v25, 0  ;;  %v2209_v50 = vrot.slane %v6949_v45, 5  ;;  %v6960_v55 = vld [vmem:[#allocation2 + $0xc] sm:$0xf] }
  0x37   : > { %v5271_v41 = vcombine.low %v601_v35, %v601_v35  ;;  %v2266_v48 = vsel %vm6936_vm5, %v2264_v38, %v2265_v11  ;;  %v6962_v56 = vld [vmem:[#allocation2 + $0x10] sm:$0xf]  ;;  %v1757_v58 = vshrl.u32 %v6960_v55, 16  ;;  %v1760_v59 = vshll.u32 %v6960_v55, 16  ;;  %v1750_v62 = vld [vmem:[#allocation2 + $0x8c] sm:$0x1] }
  0x38   : > { %v1727_v39 = vld [vmem:[#allocation2 + $0x7c] sm:$0xf]  ;;  %v2149_v40 = vld [vmem:[#allocation2 + $0x78] sm:$0xe]  ;;  %v585_v46 = vsel %vm6902_vm2, 0, %v510_v34  ;;  %v5404_v52 = vcombine.low %v2263_v37, %v2266_v48  ;;  %v1766_v60 = vshll.u32 %v6962_v56, 16  ;;  %v5364_v4 = vcombine.low %v6960_v55, %v6962_v56 }
  0x39   : > { %v5357_v43 = vrot.slane %v2149_v40, 9  ;;  %v2269_v44 = vrot.slane %v1727_v39, 5  ;;  %v5269_v51 = vcombine.low %v585_v46, %v585_v46  ;;  %818 = vst [vmem:[#allocation2 + $0x98] sm:$0x1] %v5271_v41  ;;  %v5270_v57 = vcombine.high %v585_v46, %v585_v46  ;;  %v6555_v30 = vld [vmem:[%s8740_s1 + $0x8] sm:$0xff]  }
  0x3a   : > { %v1770_v61 = vshrl.u32 %v6962_v56, 16  ;;  %6230 = vmatprep.mubr.bf16.mxu1 %v5404_v52  ;;  %v1778_v2 = vrot.slane %v1776_v49, 5  ;;  %v2279_v7 = vrot.slane %v1750_v62, 5  ;;  %v1759_v9 = vrot.slane %v1757_v58, 4  ;;  %v2150_v21 = vld [vmem:[#allocation2 + $0x84] sm:$0xe] }
  0x3b   : > { %v2270_v53 = vsel %vm6936_vm5, %v5357_v43, %v2269_v44  ;;  %v2271_v54 = vrot.slane %v2269_v44, 4  ;;  %816 = vst [vmem:[#allocation2 + $0x90] sm:$0xf] %v5269_v51  ;;  %817 = vst [vmem:[#allocation2 + $0x94] sm:$0xf] %v5270_v57  ;;  %v1762_v11 = vrot.slane %v1760_v59, 5  ;;  %v5670_v40 = vunpack.c.l.bf16 %v5772_v18 }
  0x3c   : > { %v1768_v14 = vrot.slane %v1766_v60, 5  ;;  %v1729_v15 = vld [vmem:[#allocation2 + $0x88] sm:$0xf]  ;;  %v1772_v20 = vrot.slane %v1770_v61, 4  ;;  %v435_v25 = vshrl.u32 %v6947_v42, 16  ;;  %v438_v26 = vshll.u32 %v6947_v42, 16 }
  0x3d   : > { %v2273_v63 = vsel %vm6936_vm5, %v2271_v54, %v2272_v33  ;;  %v2276_v23 = vrot.slane %v1729_v15, 5  ;;  %v1763_v29 = vor.u32 %v1762_v11, %v1759_v9  ;;  %v5358_v31 = vrot.slane %v2150_v21, 9  ;;  %v6556_v43 = vld [vmem:[%s8740_s1 + $0x50] sm:$0xff]   ;;  %v6559_v60 = vld [vmem:[%s8740_s1 + $0x58] sm:$0xff]  }
  0x3e   : > { %v5405_v8 = vcombine.low %v2270_v53, %v2273_v63  ;;  %v372_v33 = vadd.f32 %v6866_v28, %v334_v47  ;;  %v1773_v35 = vor.u32 %v1772_v20, %v1768_v14  ;;  %v437_v39 = vrot.slane %v435_v25, 7  ;;  %v6557_v49 = vld [vmem:[%s8740_s1 + $0x10] sm:$0xff]   ;;  %v7022_v25 = vld [vmem:[%s6839_s13 + $0x78] sm:$0xff]  }
  0x3f   : > { %v2278_v37 = vrot.slane %v2276_v23, 4  ;;  %v1764_v41 = vrot.slane %v1763_v29, 4  ;;  %v2277_v42 = vsel %vm6936_vm5, %v5358_v31, %v2276_v23  ;;  %v403_v44 = vmax.f32 %v371_v32, 0.0  ;;  %v5761_v61 = vld [vmem:[%s6839_s13 + $0x10] sm:$0xff]  }
  0x40   : > { %6231 = vmatmul.mubr.bf16.vlgmr.msra.gmra.mrb[0].mxu1 %v5405_v8  ;;  %v1751_v38 = vld [vmem:[#allocation2 + $0x98] sm:$0x1]  ;;  %v1774_v46 = vrot.slane %v1773_v35, 4  ;;  %v440_v51 = vor.u32 %v438_v26, %v437_v39  ;;  %v591_v52 = vsel %vm6902_vm2, %v437_v39, 0  ;;  %v335_v23 = vmul.f32 %v5670_v40, %v6851_v22 }
  0x41   : > { %5927 = vmatpush3.bf16.msra.mxu1 %v6552_v1  ;;  %v2286_v36 = vrot.slane %v1751_v38, 5  ;;  %v2280_v47 = vsel %vm6936_vm5, %v2278_v37, %v2279_v7  ;;  %v1769_v53 = vsel %vm6988_vm8, %v1764_v41, %v1768_v14  ;;  %v5241_v59 = vcombine.low %v591_v52, %v591_v52  ;;  %v5773_v7 = vld [vmem:[%s6839_s13 + $0x70] sm:$0xff]   ;;  %v6564_v52 = vld [vmem:[%s8740_s1 + $0x68] sm:$0xff]  }
  0x42   : > { %5928 = vmatprep.subr.bf16.mxu1 %v6554_v5  ;;  %v2151_v48 = vld [vmem:[#allocation2 + $0x90] sm:$0xe]  ;;  %v5406_v54 = vcombine.low %v2277_v42, %v2280_v47  ;;  %v1731_v57 = vld [vmem:[#allocation2 + $0x94] sm:$0xf]  ;;  %v1779_v62 = vsel %vm6988_vm8, %v1774_v46, %v1778_v2  ;;  %v575_v1 = vsel %vm6902_vm2, 0, %v440_v51  ;;  %v404_v5 = vmax.f32 %v372_v33, 0.0 }
  0x43   : > { %v5359_v58 = vrot.slane %v2151_v48, 9  ;;  %v2283_v63 = vrot.slane %v1731_v57, 5  ;;  %v5380_v8 = vcombine.low %v1769_v53, %v1779_v62  ;;  %v5239_v9 = vcombine.low %v575_v1, %v575_v1  ;;  %788 = vst [vmem:[#allocation2 + $0x20] sm:$0x1] %v5241_v59  ;;  %v6560_v2 = vld [vmem:[%s8740_s1 + $0x18] sm:$0xff]  }
  0x44   : > { %6234 = vmatprep.mubr.bf16.mxu1 %v5406_v54  ;;  %v5240_v11 = vcombine.high %v575_v1, %v575_v1  ;;  %v5671_v14 = vunpack.c.h.bf16 %v5772_v18  ;;  %v423_v21 = vpack.c.bf16 %v404_v5, %v403_v44  ;;  %v6561_v18 = vld [vmem:[%s8740_s1 + $0x60] sm:$0xff]   ;;  %v5626_v29 = vunpack.c.l.bf16 %v5761_v61 }
  0x45   : > { %5929 = vmatpush3.bf16.msra.mxu1 %v6555_v30  ;;  %v2284_v15 = vsel %vm6936_vm5, %v5359_v58, %v2283_v63  ;;  %v2285_v20 = vrot.slane %v2283_v63, 4  ;;  %2748 = vmatprep.mubr.bf16.mxu0 %v5380_v8  ;;  %786 = vst [vmem:[#allocation2 + $0x18] sm:$0xf] %v5239_v9  ;;  %v5627_v30 = vunpack.c.h.bf16 %v5761_v61  ;;  %v5674_v31 = vunpack.c.l.bf16 %v5773_v7 }
  0x46   : > { %5930 = vmatprep.subr.bf16.mxu1 %v6556_v43  ;;  %787 = vst [vmem:[#allocation2 + $0x1c] sm:$0xf] %v5240_v11  ;;  %v336_v26 = vmul.f32 %v5671_v14, %v6851_v22  ;;  %2749 = vmatmul.mubr.bf16.vlgmr.msra.gmra.mrb[0].mxu0 %v5364_v4  ;;  %v512_v33 = vshrl.u32 %v423_v21, 16  ;;  %v515_v35 = vshll.u32 %v423_v21, 16  ;;  %v373_v37 = vadd.f32 %v6866_v28, %v335_v23 }
  0x47   : > { %v2287_v32 = vsel %vm6936_vm5, %v2285_v20, %v2286_v36  ;;  %6199 = vmatpush3.bf16.msra.mxu0 %v6748_v0  ;;  %v313_v40 = vmul.f32 %v5626_v29, %v6851_v22  ;;  %v5675_v41 = vunpack.c.h.bf16 %v5773_v7  ;;  %v314_v56 = vmul.f32 %v5627_v30, %v6851_v22  ;;  %v7080_v29 = vld [vmem:[%s6839_s13 + $0x18] sm:$0xff]  }
  0x48   : > { %v5407_v38 = vcombine.low %v2284_v15, %v2287_v32  ;;  %v374_v39 = vadd.f32 %v6866_v28, %v336_v26  ;;  %v514_v42 = vrot.slane %v512_v33, 7  ;;  %v405_v55 = vmax.f32 %v373_v37, 0.0  ;;  %6200 = vmatprep.subr.bf16.mxu0 %v6761_v3 }
  0x49   : > { %5931 = vmatpush3.bf16.msra.mxu1 %v6557_v49  ;;  %v337_v4 = vmul.f32 %v5674_v31, %v6851_v22  ;;  %v351_v43 = vadd.f32 %v6866_v28, %v313_v40  ;;  %v338_v0 = vmul.f32 %v5675_v41, %v6851_v22  ;;  %v5678_v44 = vunpack.c.l.bf16 %v7022_v25  ;;  %v6562_v49 = vld [vmem:[%s8740_s1 + $0x20] sm:$0xff]   ;;  %v6567_v40 = vld [vmem:[%s8740_s1 + $0x30] sm:$0xff]  }
  0x4a   : > { %5932 = vmatprep.subr.bf16.mxu1 %v6559_v60  ;;  %6235 = vmatmul.mubr.bf16.gmra.mrb[4].mxu1 %v5407_v38  ;;  %v406_v36 = vmax.f32 %v374_v39, 0.0  ;;  %v7043_v46 = vld [vmem:[#allocation2 + $0x20] sm:$0x1]  ;;  %v517_v47 = vor.u32 %v515_v35, %v514_v42  ;;  %v602_v48 = vsel %vm6902_vm2, %v514_v42, 0  ;;  %v352_v51 = vadd.f32 %v6866_v28, %v314_v56  ;;  %v6569_v56 = vld [vmem:[%s8740_s1 + $0x78] sm:$0xff]  }
  0x4b   : > { %v375_v53 = vadd.f32 %v6866_v28, %v337_v4  ;;  %v1800_v54 = vshll.u32 %v7043_v46, 16  ;;  %v2216_v57 = vrot.slane %v7043_v46, 5  ;;  %v5274_v58 = vcombine.low %v602_v48, %v602_v48  ;;  %6201 = vmatpush3.bf16.msra.mxu0 %v6761_v3 }
  0x4c   : > { %v424_v59 = vpack.c.bf16 %v406_v36, %v405_v55  ;;  %v7058_v60 = vld [vmem:[#allocation2 + $0x18] sm:$0xf]  ;;  %v586_v62 = vsel %vm6902_vm2, 0, %v517_v47  ;;  %v383_v63 = vmax.f32 %v351_v43, 0.0  ;;  %v376_v1 = vadd.f32 %v6866_v28, %v338_v0  ;;  %6202 = vmatprep.subr.bf16.mxu0 %v6773_v6 }
  0x4d   : > { %5933 = vmatpush3.bf16.msra.mxu1 %v6560_v2  ;;  %v7060_v61 = vld [vmem:[#allocation2 + $0x1c] sm:$0xf]  ;;  %v5679_v5 = vunpack.c.h.bf16 %v7022_v25  ;;  %v1781_v7 = vshrl.u32 %v7058_v60, 16  ;;  %v1784_v8 = vshll.u32 %v7058_v60, 16  ;;  %821 = vst [vmem:[#allocation2 + $0xa4] sm:$0x1] %v5274_v58  ;;  %v5272_v15 = vcombine.low %v586_v62, %v586_v62 }
  0x4e   : > { %5934 = vmatprep.subr.bf16.mxu1 %v6561_v18  ;;  %v1790_v3 = vshll.u32 %v7060_v61, 16  ;;  %v1794_v9 = vshrl.u32 %v7060_v61, 16  ;;  %v1802_v11 = vrot.slane %v1800_v54, 5  ;;  %v5365_v14 = vcombine.low %v7058_v60, %v7060_v61  ;;  %v6565_v2 = vld [vmem:[%s8740_s1 + $0x28] sm:$0xff]   ;;  %v6566_v18 = vld [vmem:[%s8740_s1 + $0x70] sm:$0xff]  }
  0x4f   : > { %v5273_v20 = vcombine.high %v586_v62, %v586_v62  ;;  %v1783_v21 = vrot.slane %v1781_v7, 4  ;;  %v1786_v23 = vrot.slane %v1784_v8, 5  ;;  %6203 = vmatpush3.bf16.msra.mxu0 %v6773_v6  ;;  %819 = vst [vmem:[#allocation2 + $0x9c] sm:$0xf] %v5272_v15  ;;  %v519_v30 = vshrl.u32 %v424_v59, 16  ;;  %v7111_v15 = vld [vmem:[%s8740_s1 + $0x80] sm:$0xff]  }
  0x50   : > { %v1792_v25 = vrot.slane %v1790_v3, 5  ;;  %v1796_v26 = vrot.slane %v1794_v9, 4  ;;  %v522_v31 = vshll.u32 %v424_v59, 16  ;;  %v384_v32 = vmax.f32 %v352_v51, 0.0  ;;  %6204 = vmatprep.subr.bf16.mxu0 %v6786_v10 }
  0x51   : > { %5935 = vmatpush3.bf16.msra.mxu1 %v6562_v49  ;;  %820 = vst [vmem:[#allocation2 + $0xa0] sm:$0xf] %v5273_v20  ;;  %v407_v33 = vmax.f32 %v375_v53, 0.0  ;;  %v1787_v35 = vor.u32 %v1786_v23, %v1783_v21  ;;  %v408_v38 = vmax.f32 %v376_v1, 0.0  ;;  %v339_v39 = vmul.f32 %v5678_v44, %v6851_v22  ;;  %v6570_v1 = vld [vmem:[%s8740_s1 + $0x38] sm:$0xff]  }
  0x52   : > { %5936 = vmatprep.subr.bf16.mxu1 %v6564_v52  ;;  %v1797_v37 = vor.u32 %v1796_v26, %v1792_v25  ;;  %v521_v41 = vrot.slane %v519_v30, 7  ;;  %v413_v42 = vpack.c.bf16 %v384_v32, %v383_v63  ;;  %v340_v6 = vmul.f32 %v5679_v5, %v6851_v22 }
  0x53   : > { %v5630_v55 = vunpack.c.l.bf16 %v7080_v29  ;;  %v1788_v4 = vrot.slane %v1787_v35, 4  ;;  %v425_v43 = vpack.c.bf16 %v408_v38, %v407_v33  ;;  %v377_v0 = vadd.f32 %v6866_v28, %v339_v39  ;;  %6205 = vmatpush3.bf16.msra.mxu0 %v6786_v10 }
  0x54   : > { %v1798_v36 = vrot.slane %v1797_v37, 4  ;;  %v1752_v44 = vld [vmem:[#allocation2 + $0xa4] sm:$0x1]  ;;  %v524_v47 = vor.u32 %v522_v31, %v521_v41  ;;  %v603_v48 = vsel %vm6902_vm2, %v521_v41, 0  ;;  %v442_v49 = vshrl.u32 %v413_v42, 16  ;;  %6206 = vmatprep.subr.bf16.mxu0 %v6801_v13 }
  0x55   : > { %5937 = vmatpush3.bf16.msra.mxu1 %v6565_v2  ;;  %v445_v51 = vshll.u32 %v413_v42, 16  ;;  %v1793_v52 = vsel %vm6988_vm8, %v1788_v4, %v1792_v25  ;;  %v2293_v54 = vrot.slane %v1752_v44, 5  ;;  %v5277_v58 = vcombine.low %v603_v48, %v603_v48  ;;  %v7142_v4 = vld [vmem:[%s6839_s13 + $0x20] sm:$0xff]  }
  0x56   : > { %5938 = vmatprep.subr.bf16.mxu1 %v6566_v18  ;;  %v1803_v53 = vsel %vm6988_vm8, %v1798_v36, %v1802_v11  ;;  %v587_v10 = vsel %vm6902_vm2, 0, %v524_v47  ;;  %v444_v62 = vrot.slane %v442_v49, 7  ;;  %v526_v63 = vshrl.u32 %v425_v43, 16  ;;  %v2152_v7 = vld [vmem:[#allocation2 + $0x9c] sm:$0xe] }
  0x57   : > { %v5381_v59 = vcombine.low %v1793_v52, %v1803_v53  ;;  %v5275_v8 = vcombine.low %v587_v10, %v587_v10  ;;  %v5276_v3 = vcombine.high %v587_v10, %v587_v10  ;;  %824 = vst [vmem:[#allocation2 + $0xb0] sm:$0x1] %v5277_v58  ;;  %v529_v9 = vshll.u32 %v425_v43, 16  ;;  %6207 = vmatpush3.bf16.msra.mxu0 %v6801_v13  ;;  %v7120_v13 = vld [vmem:[#allocation2] sm:$0xf] }
  0x58   : > { %v1733_v5 = vld [vmem:[#allocation2 + $0xa0] sm:$0xf]  ;;  %v378_v11 = vadd.f32 %v6866_v28, %v340_v6  ;;  %v5360_v20 = vrot.slane %v2152_v7, 9  ;;  %v447_v21 = vor.u32 %v445_v51, %v444_v62  ;;  %v592_v23 = vsel %vm6902_vm2, %v444_v62, 0  ;;  %6208 = vmatprep.subr.bf16.mxu0 %v6818_v16  ;;  %v7146_v49 = vld [vmem:[#allocation2 + $0x4] sm:$0xf] }
  0x59   : > { %5939 = vmatpush3.bf16.msra.mxu1 %v6567_v40  ;;  %2756 = vmatprep.mubr.bf16.mxu0 %v5381_v59  ;;  %v2290_v2 = vrot.slane %v1733_v5, 5  ;;  %822 = vst [vmem:[#allocation2 + $0xa8] sm:$0xf] %v5275_v8  ;;  %823 = vst [vmem:[#allocation2 + $0xac] sm:$0xf] %v5276_v3  ;;  %v5244_v25 = vcombine.low %v592_v23, %v592_v23  ;;  %v528_v26 = vrot.slane %v526_v63, 7  ;;  %v5631_v35 = vunpack.c.h.bf16 %v7080_v29 }
  0x5a   : > { %5940 = vmatprep.subr.bf16.mxu1 %v6569_v56  ;;  %2757 = vmatmul.mubr.bf16.gmra.mrb[4].mxu0 %v5365_v14  ;;  %v409_v18 = vmax.f32 %v377_v0, 0.0  ;;  %v410_v30 = vmax.f32 %v378_v11, 0.0  ;;  %v576_v33 = vsel %vm6902_vm2, 0, %v447_v21  ;;  %v315_v41 = vmul.f32 %v5630_v55, %v6851_v22 }
  0x5b   : > { %v2291_v31 = vsel %vm6936_vm5, %v5360_v20, %v2290_v2  ;;  %v2292_v32 = vrot.slane %v2290_v2, 4  ;;  %v5242_v60 = vcombine.low %v576_v33, %v576_v33  ;;  %v5243_v61 = vcombine.high %v576_v33, %v576_v33  ;;  %791 = vst [vmem:[#allocation2 + $0x2c] sm:$0x1] %v5244_v25  ;;  %6209 = vmatpush3.bf16.msra.mxu0 %v6818_v16 }
  0x5c   : > { %v531_v14 = vor.u32 %v529_v9, %v528_v26  ;;  %v604_v37 = vsel %vm6902_vm2, %v528_v26, 0  ;;  %v426_v40 = vpack.c.bf16 %v410_v30, %v409_v18  ;;  %6210 = vmatprep.subr.bf16.mxu0 %v6832_v19  ;;  %v316_v56 = vmul.f32 %v5631_v35, %v6851_v22 }
  0x5d   : > { %5941 = vmatpush3.bf16.msra.mxu1 %v6570_v1  ;;  %v2294_v38 = vsel %vm6936_vm5, %v2292_v32, %v2293_v54  ;;  %v5280_v39 = vcombine.low %v604_v37, %v604_v37  ;;  %789 = vst [vmem:[#allocation2 + $0x24] sm:$0xf] %v5242_v60  ;;  %790 = vst [vmem:[#allocation2 + $0x28] sm:$0xf] %v5243_v61  ;;  %v890_v16 = vshrl.u32 %v7120_v13, 16  ;;  %v893_v54 = vshll.u32 %v7120_v13, 16 }
  0x5e   : > { %6246 = vmatprep.subr.bf16.mxu1 %v7111_v15  ;;  %v5408_v42 = vcombine.low %v2291_v31, %v2294_v38  ;;  %v588_v6 = vsel %vm6902_vm2, 0, %v531_v14  ;;  %v1753_v36 = vld [vmem:[#allocation2 + $0xb0] sm:$0x1]  ;;  %v533_v29 = vshrl.u32 %v426_v40, 16  ;;  %v536_v55 = vshll.u32 %v426_v40, 16 }
  0x5f   : > { %v5278_v43 = vcombine.low %v588_v6, %v588_v6  ;;  %v5279_v0 = vcombine.high %v588_v6, %v588_v6  ;;  %827 = vst [vmem:[#allocation2 + $0xbc] sm:$0x1] %v5280_v39  ;;  %v2300_v44 = vrot.slane %v1753_v36, 5  ;;  %v353_v47 = vadd.f32 %v6866_v28, %v315_v41  ;;  %6211 = vmatpush3.bf16.msra.mxu0 %v6832_v19 }
  0x60   : > { %6238 = vmatprep.mubr.bf16.mxu1 %v5408_v42  ;;  %v354_v48 = vadd.f32 %v6866_v28, %v316_v56  ;;  %v892_v51 = vrot.slane %v890_v16, 4  ;;  %v1735_v22 = vld [vmem:[#allocation2 + $0xac] sm:$0xf]  ;;  %v2153_v52 = vld [vmem:[#allocation2 + $0xa8] sm:$0xe]  ;;  %v535_v53 = vrot.slane %v533_v29, 7  ;;  %v5300_v58 = vcombine.low %v7120_v13, %v7146_v49  ;;  %6212 = vmatprep.subr.bf16.mxu0 %v6858_v24 }
  0x61   : > { %825 = vst [vmem:[#allocation2 + $0xb4] sm:$0xf] %v5278_v43  ;;  %826 = vst [vmem:[#allocation2 + $0xb8] sm:$0xf] %v5279_v0  ;;  %v5634_v59 = vunpack.c.l.bf16 %v7142_v4  ;;  %v5361_v28 = vrot.slane %v2153_v52, 9  ;;  %v2297_v10 = vrot.slane %v1735_v22, 5 }
  0x62   : > { %v385_v62 = vmax.f32 %v353_v47, 0.0  ;;  %v386_v63 = vmax.f32 %v354_v48, 0.0  ;;  %v1742_v1 = vld [vmem:[#allocation2 + $0x2c] sm:$0x1]  ;;  %v538_v19 = vor.u32 %v536_v55, %v535_v53  ;;  %v605_v5 = vsel %vm6902_vm2, %v535_v53, 0  ;;  %v6646_v24 = vld [vmem:[%s8740_s1 + $0x178] sm:$0xff]  }
  0x63   : > { %v895_v7 = vrot.slane %v893_v54, 5  ;;  %v899_v8 = vshll.u32 %v7146_v49, 16  ;;  %v2298_v3 = vsel %vm6936_vm5, %v5361_v28, %v2297_v10  ;;  %v2299_v9 = vrot.slane %v2297_v10, 4  ;;  %6213 = vmatpush3.bf16.msra.mxu0 %v6646_v24  ;;  %v870_v0 = vld [vmem:[#allocation2 + $0x8] sm:$0x1] }
  0x64   : > { %v1824_v11 = vshll.u32 %v1742_v1, 16  ;;  %v5283_v20 = vcombine.low %v605_v5, %v605_v5  ;;  %v7162_v2 = vld [vmem:[#allocation2 + $0x24] sm:$0xf]  ;;  %v7164_v21 = vld [vmem:[#allocation2 + $0x28] sm:$0xf]  ;;  %v589_v23 = vsel %vm6902_vm2, 0, %v538_v19  ;;  %v414_v25 = vpack.c.bf16 %v386_v63, %v385_v62 }
  0x65   : > { %v896_v26 = vor.u32 %v895_v7, %v892_v51  ;;  %v7168_v18 = vrot.slane %v899_v8, 5  ;;  %v2301_v30 = vsel %vm6936_vm5, %v2299_v9, %v2300_v44  ;;  %v1805_v31 = vshrl.u32 %v7162_v2, 16 }
  0x66   : > { %v1808_v32 = vshll.u32 %v7162_v2, 16  ;;  %v1814_v33 = vshll.u32 %v7164_v21, 16  ;;  %v1754_v35 = vld [vmem:[#allocation2 + $0xbc] sm:$0x1]  ;;  %830 = vst [vmem:[#allocation2 + $0xc8] sm:$0x1] %v5283_v20  ;;  %v5409_v60 = vcombine.low %v2298_v3, %v2301_v30  ;;  %v5366_v37 = vcombine.low %v7162_v2, %v7164_v21 }
  0x67   : > { %v1818_v61 = vshrl.u32 %v7164_v21, 16  ;;  %v1826_v14 = vrot.slane %v1824_v11, 5  ;;  %v1807_v38 = vrot.slane %v1805_v31, 4  ;;  %v2307_v42 = vrot.slane %v1754_v35, 5  ;;  %v7188_v11 = vld [vmem:[#allocation2 + $0xc] sm:$0xf] }
  0x68   : > { %v1810_v39 = vrot.slane %v1808_v32, 5  ;;  %v1816_v40 = vrot.slane %v1814_v33, 5  ;;  %v1737_v41 = vld [vmem:[#allocation2 + $0xb8] sm:$0xf]  ;;  %6239 = vmatmul.mubr.bf16.gmra.mrb[8].mxu1 %v5409_v60  ;;  %v2154_v56 = vld [vmem:[#allocation2 + $0xb4] sm:$0xe]  ;;  %v5281_v36 = vcombine.low %v589_v23, %v589_v23  ;;  %v5282_v43 = vcombine.high %v589_v23, %v589_v23 }
  0x69   : > { %v1820_v6 = vrot.slane %v1818_v61, 4  ;;  %v2304_v16 = vrot.slane %v1737_v41, 5  ;;  %v5362_v55 = vrot.slane %v2154_v56, 9  ;;  %v449_v44 = vshrl.u32 %v414_v25, 16  ;;  %v7195_v23 = vld [vmem:[#allocation2 + $0x10] sm:$0xf] }
  0x6a   : > { %v1811_v29 = vor.u32 %v1810_v39, %v1807_v38  ;;  %v452_v47 = vshll.u32 %v414_v25, 16  ;;  %828 = vst [vmem:[#allocation2 + $0xc0] sm:$0xf] %v5281_v36  ;;  %829 = vst [vmem:[#allocation2 + $0xc4] sm:$0xf] %v5282_v43  ;;  %v897_v22 = vrot.slane %v896_v26, 4  ;;  %v5635_v31 = vunpack.c.h.bf16 %v7142_v4 }
  0x6b   : > { %v1821_v48 = vor.u32 %v1820_v6, %v1816_v40  ;;  %v2306_v51 = vrot.slane %v2304_v16, 4  ;;  %v903_v52 = vshrl.u32 %v7146_v49, 16  ;;  %v2305_v54 = vsel %vm6936_vm5, %v5362_v55, %v2304_v16  ;;  %v7203_v60 = vld [vmem:[%s8741_s2] ss:$0 sm:$0xff]  ;;  %v7221_v16 = vld [vmem:[#allocation2 + $0x14] sm:$0x1] }
  0x6c   : > { %v1812_v53 = vrot.slane %v1811_v29, 4  ;;  %v451_v28 = vrot.slane %v449_v44, 7  ;;  %v909_v10 = vshll.u32 %v870_v0, 16  ;;  %v902_v19 = vsel %vm6988_vm8, %v897_v22, %v7168_v18  ;;  %v5764_v36 = vld [vmem:[%s6839_s13 + $0x28] sm:$0xff]  }
  0x6d   : > { %v1822_v62 = vrot.slane %v1821_v48, 4  ;;  %v2308_v63 = vsel %vm6936_vm5, %v2306_v51, %v2307_v42  ;;  %v1755_v1 = vld [vmem:[#allocation2 + $0xc8] sm:$0x1]  ;;  %v905_v5 = vrot.slane %v903_v52, 4  ;;  %v318_v38 = vmul.f32 %v7203_v60, %v5635_v31 }
  0x6e   : > { %v1817_v7 = vsel %vm6988_vm8, %v1812_v53, %v1816_v40  ;;  %v5410_v8 = vcombine.low %v2305_v54, %v2308_v63  ;;  %v2314_v3 = vrot.slane %v1755_v1, 5  ;;  %v454_v9 = vor.u32 %v452_v47, %v451_v28  ;;  %v7230_v54 = vld [vmem:[#allocation2 + $0x18] sm:$0xf] }
  0x6f   : > { %v1827_v20 = vsel %vm6988_vm8, %v1822_v62, %v1826_v14  ;;  %v593_v24 = vsel %vm6902_vm2, %v451_v28, 0  ;;  %v906_v2 = vor.u32 %v905_v5, %v7168_v18  ;;  %v911_v21 = vrot.slane %v909_v10, 5 }
  0x70   : > { %v5382_v25 = vcombine.low %v1817_v7, %v1827_v20  ;;  %6242 = vmatprep.mubr.bf16.mxu1 %v5410_v8  ;;  %v577_v26 = vsel %vm6902_vm2, 0, %v454_v9  ;;  %v5247_v30 = vcombine.low %v593_v24, %v593_v24  ;;  %v317_v18 = vmul.f32 %v7203_v60, %v5634_v59  ;;  %v7218_v59 = vld [vmem:[%s8742_s3] ss:$0 sm:$0xff] }
  0x71   : > { %v5245_v32 = vcombine.low %v577_v26, %v577_v26  ;;  %v5246_v33 = vcombine.high %v577_v26, %v577_v26  ;;  %v907_v35 = vrot.slane %v906_v2, 4  ;;  %v1739_v61 = vld [vmem:[#allocation2 + $0xc4] sm:$0xf]  ;;  %v2155_v14 = vld [vmem:[#allocation2 + $0xc0] sm:$0xe]  ;;  %v914_v39 = vshrl.u32 %v7188_v11, 16 }
  0x72   : > { %2764 = vmatprep.mubr.bf16.mxu0 %v5382_v25  ;;  %794 = vst [vmem:[#allocation2 + $0x38] sm:$0x1] %v5247_v30  ;;  %v917_v40 = vshll.u32 %v7188_v11, 16  ;;  %v5301_v41 = vcombine.low %v7188_v11, %v7195_v23  ;;  %v5363_v42 = vrot.slane %v2155_v14, 9  ;;  %v2311_v6 = vrot.slane %v1739_v61, 5 }
  0x73   : > { %2765 = vmatmul.mubr.bf16.gmra.mrb[8].mxu0 %v5366_v37  ;;  %792 = vst [vmem:[#allocation2 + $0x30] sm:$0xf] %v5245_v32  ;;  %793 = vst [vmem:[#allocation2 + $0x34] sm:$0xf] %v5246_v33  ;;  %v912_v4 = vsel %vm6988_vm8, %v907_v35, %v911_v21  ;;  %v355_v56 = vadd.f32 %v7218_v59, %v317_v18  ;;  %v356_v37 = vadd.f32 %v7218_v59, %v318_v38 }
  0x74   : > { %v5316_v43 = vcombine.low %v902_v19, %v912_v4  ;;  %v916_v0 = vrot.slane %v914_v39, 4  ;;  %v919_v29 = vrot.slane %v917_v40, 5  ;;  %v2312_v55 = vsel %vm6936_vm5, %v5363_v42, %v2311_v6 }
  0x75   : > { %v2313_v44 = vrot.slane %v2311_v6, 4  ;;  %v387_v47 = vmax.f32 %v355_v56, 0.0  ;;  %v923_v48 = vshll.u32 %v7195_v23, 16  ;;  %v388_v51 = vmax.f32 %v356_v37, 0.0 }
  0x76   : > { %v920_v22 = vor.u32 %v919_v29, %v916_v0  ;;  %v927_v52 = vshrl.u32 %v7195_v23, 16  ;;  %v933_v53 = vshll.u32 %v7221_v16, 16  ;;  %v1352_v62 = vrot.slane %v7221_v16, 5 }
  0x77   : > { %v2315_v28 = vsel %vm6936_vm5, %v2313_v44, %v2314_v3  ;;  %v925_v10 = vrot.slane %v923_v48, 5  ;;  %v5638_v63 = vunpack.c.l.bf16 %v5764_v36  ;;  %v415_v19 = vpack.c.bf16 %v388_v51, %v387_v47  ;;  %v872_v47 = vld [vmem:[#allocation2 + $0x20] sm:$0x1] }
  0x78   : > { %v5411_v1 = vcombine.low %v2312_v55, %v2315_v28  ;;  %v921_v5 = vrot.slane %v920_v22, 4  ;;  %v929_v7 = vrot.slane %v927_v52, 4  ;;  %v935_v9 = vrot.slane %v933_v53, 5  ;;  %v7258_v52 = vld [vmem:[#allocation2 + $0x1c] sm:$0xf]  ;;  %v6577_v28 = vld [vmem:[%s8740_s1 + $0x88] sm:$0xff]  }
  0x79   : > { %v1743_v8 = vld [vmem:[#allocation2 + $0x38] sm:$0x1]  ;;  %v5639_v20 = vunpack.c.h.bf16 %v5764_v36  ;;  %v319_v24 = vmul.f32 %v7203_v60, %v5638_v63  ;;  %v938_v2 = vshrl.u32 %v7230_v54, 16  ;;  %v456_v26 = vshrl.u32 %v415_v19, 16 }
  0x7a   : > { %6243 = vmatmul.mubr.bf16.gmra.mrb[12].mxu1 %v5411_v1  ;;  %v7237_v21 = vld [vmem:[#allocation2 + $0x30] sm:$0xf]  ;;  %v7239_v25 = vld [vmem:[#allocation2 + $0x34] sm:$0xf]  ;;  %v1848_v3 = vshll.u32 %v1743_v8, 16  ;;  %v926_v30 = vsel %vm6988_vm8, %v921_v5, %v925_v10  ;;  %v930_v31 = vor.u32 %v929_v7, %v925_v10  ;;  %v459_v39 = vshll.u32 %v415_v19, 16 }
  0x7b   : > { %v1829_v32 = vshrl.u32 %v7237_v21, 16  ;;  %v1832_v33 = vshll.u32 %v7237_v21, 16  ;;  %v1838_v35 = vshll.u32 %v7239_v25, 16  ;;  %v1842_v18 = vshrl.u32 %v7239_v25, 16  ;;  %3214 = vmatprep.mubr.bf16.mxu1 %v5316_v43  ;;  %v6602_v10 = vld [vmem:[%s8740_s1 + $0x1c0] sm:$0xff]  }
  0x7c   : > { %v1850_v61 = vrot.slane %v1848_v3, 5  ;;  %v5367_v14 = vcombine.low %v7237_v21, %v7239_v25  ;;  %v458_v38 = vrot.slane %v456_v26, 7  ;;  %v931_v37 = vrot.slane %v930_v31, 4  ;;  %6062 = vmatprep.subr.bf16.mxu0 %v6602_v10  ;;  %v6582_v31 = vld [vmem:[%s8740_s1 + $0x90] sm:$0xff]  }
  0x7d   : > { %v1831_v40 = vrot.slane %v1829_v32, 4  ;;  %v1834_v42 = vrot.slane %v1832_v33, 5  ;;  %v1840_v6 = vrot.slane %v1838_v35, 5  ;;  %v1844_v4 = vrot.slane %v1842_v18, 4  ;;  %v7285_v18 = vld [vmem:[#allocation2 + $0x28] sm:$0xf] }
  0x7e   : > { %v461_v56 = vor.u32 %v459_v39, %v458_v38  ;;  %v594_v36 = vsel %vm6902_vm2, %v458_v38, 0  ;;  %v320_v0 = vmul.f32 %v7203_v60, %v5639_v20  ;;  %v357_v44 = vadd.f32 %v7218_v59, %v319_v24  ;;  %v5765_v24 = vld [vmem:[%s6839_s13 + $0x30] sm:$0xff]  }
  0x7f   : > { %v1835_v29 = vor.u32 %v1834_v42, %v1831_v40  ;;  %v1845_v55 = vor.u32 %v1844_v4, %v1840_v6  ;;  %v5250_v43 = vcombine.low %v594_v36, %v594_v36  ;;  %v936_v51 = vsel %vm6988_vm8, %v931_v37, %v935_v9  ;;  %v6586_v36 = vld [vmem:[%s8740_s1 + $0x98] sm:$0xff]  }
  0x80   : > { %v578_v48 = vsel %vm6902_vm2, 0, %v461_v56  ;;  %v358_v22 = vadd.f32 %v7218_v59, %v320_v0  ;;  %v940_v53 = vrot.slane %v938_v2, 4  ;;  %v5317_v7 = vcombine.low %v926_v30, %v936_v51  ;;  %v7278_v30 = vld [vmem:[#allocation2 + $0x24] sm:$0xf] }
  0x81   : > { %v1836_v63 = vrot.slane %v1835_v29, 4  ;;  %v1846_v1 = vrot.slane %v1845_v55, 4  ;;  %v5248_v19 = vcombine.low %v578_v48, %v578_v48  ;;  %v5249_v5 = vcombine.high %v578_v48, %v578_v48  ;;  %797 = vst [vmem:[#allocation2 + $0x44] sm:$0x1] %v5250_v43 }
  0x82   : > { %3215 = vmatmul.mubr.bf16.vlgmr.msra.gmra.mrb[16].mxu1 %v5300_v58  ;;  %v389_v8 = vmax.f32 %v357_v44, 0.0  ;;  %v390_v9 = vmax.f32 %v358_v22, 0.0  ;;  %v941_v20 = vshll.u32 %v7230_v54, 16  ;;  %v947_v13 = vshll.u32 %v7258_v52, 16 }
  0x83   : > { %v1841_v2 = vsel %vm6988_vm8, %v1836_v63, %v1840_v6  ;;  %v1851_v21 = vsel %vm6988_vm8, %v1846_v1, %v1850_v61  ;;  %795 = vst [vmem:[#allocation2 + $0x3c] sm:$0xf] %v5248_v19  ;;  %796 = vst [vmem:[#allocation2 + $0x40] sm:$0xf] %v5249_v5  ;;  %6247 = vmatpush3.bf16.msra.mxu1 %v7111_v15  ;;  %v951_v49 = vshrl.u32 %v7258_v52, 16  ;;  %3222 = vmatprep.mubr.bf16.mxu1 %v5317_v7 }
  0x84   : > { %v5383_v58 = vcombine.low %v1841_v2, %v1851_v21  ;;  %v416_v25 = vpack.c.bf16 %v390_v9, %v389_v8  ;;  %v943_v3 = vrot.slane %v941_v20, 5  ;;  %v957_v26 = vshll.u32 %v872_v47, 16  ;;  %6248 = vmatprep.subr.bf16.mxu1 %v6577_v28  ;;  %v6591_v9 = vld [vmem:[%s8740_s1 + $0xa0] sm:$0xff]  }
  0x85   : > { %v949_v32 = vrot.slane %v947_v13, 5  ;;  %v953_v33 = vrot.slane %v951_v49, 4  ;;  %v5302_v15 = vcombine.low %v7230_v54, %v7258_v52  ;;  %v5642_v35 = vunpack.c.l.bf16 %v5765_v24  ;;  %v6601_v52 = vld [vmem:[%s8740_s1 + $0xb0] sm:$0xff]  }
  0x86   : > { %2772 = vmatprep.mubr.bf16.mxu0 %v5383_v58  ;;  %v463_v61 = vshrl.u32 %v416_v25, 16  ;;  %v466_v38 = vshll.u32 %v416_v25, 16  ;;  %v944_v39 = vor.u32 %v943_v3, %v940_v53  ;;  %v959_v40 = vrot.slane %v957_v26, 5  ;;  %v873_v3 = vld [vmem:[#allocation2 + $0x2c] sm:$0x1] }
  0x87   : > { %2773 = vmatmul.mubr.bf16.gmra.mrb[12].mxu0 %v5367_v14  ;;  %v954_v42 = vor.u32 %v953_v33, %v949_v32  ;;  %v5643_v6 = vunpack.c.h.bf16 %v5765_v24  ;;  %v321_v4 = vmul.f32 %v7203_v60, %v5642_v35  ;;  %6249 = vmatpush3.bf16.msra.mxu1 %v6577_v28  ;;  %v962_v56 = vshrl.u32 %v7278_v30, 16  ;;  %v5766_v35 = vld [vmem:[%s6839_s13 + $0x38] sm:$0xff]  }
  0x88   : > { %v1744_v37 = vld [vmem:[#allocation2 + $0x44] sm:$0x1]  ;;  %v465_v0 = vrot.slane %v463_v61, 7  ;;  %v945_v29 = vrot.slane %v944_v39, 4  ;;  %v965_v55 = vshll.u32 %v7278_v30, 16  ;;  %v971_v43 = vshll.u32 %v7285_v18, 16  ;;  %6250 = vmatprep.subr.bf16.mxu1 %v6582_v31 }
  0x89   : > { %v1872_v14 = vshll.u32 %v1744_v37, 16  ;;  %v955_v44 = vrot.slane %v954_v42, 4  ;;  %v322_v47 = vmul.f32 %v7203_v60, %v5643_v6  ;;  %v359_v48 = vadd.f32 %v7218_v59, %v321_v4 }
  0x8a   : > { %v7296_v51 = vld [vmem:[#allocation2 + $0x3c] sm:$0xf]  ;;  %v7298_v22 = vld [vmem:[#allocation2 + $0x40] sm:$0xf]  ;;  %3223 = vmatmul.mubr.bf16.gmra.mrb[20].mxu1 %v5301_v41  ;;  %v468_v53 = vor.u32 %v466_v38, %v465_v0  ;;  %v595_v28 = vsel %vm6902_vm2, %v465_v0, 0  ;;  %v950_v10 = vsel %vm6988_vm8, %v945_v29, %v949_v32  ;;  %v964_v63 = vrot.slane %v962_v56, 4 }
  0x8b   : > { %v1853_v1 = vshrl.u32 %v7296_v51, 16  ;;  %v1856_v19 = vshll.u32 %v7296_v51, 16  ;;  %v1862_v5 = vshll.u32 %v7298_v22, 16  ;;  %v1866_v7 = vshrl.u32 %v7298_v22, 16  ;;  %6251 = vmatpush3.bf16.msra.mxu1 %v6582_v31 }
  0x8c   : > { %v1874_v8 = vrot.slane %v1872_v14, 5  ;;  %v5368_v11 = vcombine.low %v7296_v51, %v7298_v22  ;;  %v579_v23 = vsel %vm6902_vm2, 0, %v468_v53  ;;  %v5253_v41 = vcombine.low %v595_v28, %v595_v28  ;;  %6252 = vmatprep.subr.bf16.mxu1 %v6586_v36 }
  0x8d   : > { %v1855_v20 = vrot.slane %v1853_v1, 4  ;;  %v1858_v24 = vrot.slane %v1856_v19, 5  ;;  %v1864_v2 = vrot.slane %v1862_v5, 5  ;;  %v1868_v21 = vrot.slane %v1866_v7, 4 }
  0x8e   : > { %v5251_v13 = vcombine.low %v579_v23, %v579_v23  ;;  %v5252_v49 = vcombine.high %v579_v23, %v579_v23  ;;  %800 = vst [vmem:[#allocation2 + $0x50] sm:$0x1] %v5253_v41  ;;  %v960_v58 = vsel %vm6988_vm8, %v955_v44, %v959_v40  ;;  %v360_v25 = vadd.f32 %v7218_v59, %v322_v47  ;;  %v6596_v40 = vld [vmem:[%s8740_s1 + $0xa8] sm:$0xff]  }
  0x8f   : > { %v1859_v26 = vor.u32 %v1858_v24, %v1855_v20  ;;  %v1869_v31 = vor.u32 %v1868_v21, %v1864_v2  ;;  %v5318_v32 = vcombine.low %v950_v10, %v960_v58  ;;  %v391_v33 = vmax.f32 %v359_v48, 0.0  ;;  %6253 = vmatpush3.bf16.msra.mxu1 %v6586_v36 }
  0x90   : > { %798 = vst [vmem:[#allocation2 + $0x48] sm:$0xf] %v5251_v13  ;;  %799 = vst [vmem:[#allocation2 + $0x4c] sm:$0xf] %v5252_v49  ;;  %v392_v61 = vmax.f32 %v360_v25, 0.0  ;;  %v967_v38 = vrot.slane %v965_v55, 5  ;;  %6254 = vmatprep.subr.bf16.mxu1 %v6591_v9  ;;  %v5303_v36 = vcombine.low %v7278_v30, %v7285_v18  ;;  %v5646_v55 = vunpack.c.l.bf16 %v5766_v35 }
  0x91   : > { %v7322_v39 = vrot.slane %v971_v43, 5  ;;  %v975_v42 = vshrl.u32 %v7285_v18, 16  ;;  %v1860_v6 = vrot.slane %v1859_v26, 4  ;;  %v1870_v4 = vrot.slane %v1869_v31, 4  ;;  %3230 = vmatprep.mubr.bf16.mxu1 %v5318_v32  ;;  %v7333_v43 = vld [vmem:[#allocation2 + $0x30] sm:$0xf] }
  0x92   : > { %v981_v56 = vshll.u32 %v873_v3, 16  ;;  %3231 = vmatmul.mubr.bf16.gmra.mrb[24].mxu1 %v5302_v15  ;;  %v417_v37 = vpack.c.bf16 %v392_v61, %v391_v33  ;;  %v968_v0 = vor.u32 %v967_v38, %v964_v63  ;;  %v5647_v48 = vunpack.c.h.bf16 %v5766_v35  ;;  %v7367_v35 = vld [vmem:[#allocation2 + $0x34] sm:$0xf] }
  0x93   : > { %v977_v29 = vrot.slane %v975_v42, 4  ;;  %v1865_v14 = vsel %vm6988_vm8, %v1860_v6, %v1864_v2  ;;  %v1875_v44 = vsel %vm6988_vm8, %v1870_v4, %v1874_v8  ;;  %6255 = vmatpush3.bf16.msra.mxu1 %v6591_v9  ;;  %v323_v10 = vmul.f32 %v7203_v60, %v5646_v55 }
  0x94   : > { %v983_v47 = vrot.slane %v981_v56, 5  ;;  %v5384_v51 = vcombine.low %v1865_v14, %v1875_v44  ;;  %v470_v22 = vshrl.u32 %v417_v37, 16  ;;  %v473_v53 = vshll.u32 %v417_v37, 16  ;;  %6256 = vmatprep.subr.bf16.mxu1 %v6596_v40 }
  0x95   : > { %v969_v54 = vrot.slane %v968_v0, 4  ;;  %v1745_v15 = vld [vmem:[#allocation2 + $0x50] sm:$0x1]  ;;  %v978_v28 = vor.u32 %v977_v29, %v7322_v39  ;;  %v324_v63 = vmul.f32 %v7203_v60, %v5647_v48  ;;  %v986_v1 = vshrl.u32 %v7333_v43, 16 }
  0x96   : > { %2780 = vmatprep.mubr.bf16.mxu0 %v5384_v51  ;;  %v1896_v19 = vshll.u32 %v1745_v15, 16  ;;  %v472_v5 = vrot.slane %v470_v22, 7  ;;  %v989_v8 = vshll.u32 %v7333_v43, 16  ;;  %v361_v20 = vadd.f32 %v7218_v59, %v323_v10  ;;  %v7377_v15 = vld [vmem:[#allocation2 + $0x6c] sm:$0xf] }
  0x97   : > { %v974_v7 = vsel %vm6988_vm8, %v969_v54, %v7322_v39  ;;  %2781 = vmatmul.mubr.bf16.gmra.mrb[16].mxu0 %v5368_v11  ;;  %v7350_v23 = vld [vmem:[#allocation2 + $0x48] sm:$0xf]  ;;  %v7352_v41 = vld [vmem:[#allocation2 + $0x4c] sm:$0xf]  ;;  %v979_v9 = vrot.slane %v978_v28, 4  ;;  %v362_v60 = vadd.f32 %v7218_v59, %v324_v63  ;;  %v988_v24 = vrot.slane %v986_v1, 4  ;;  %6257 = vmatpush3.bf16.msra.mxu1 %v6596_v40 }
  0x98   : > { %v1877_v2 = vshrl.u32 %v7350_v23, 16  ;;  %v1880_v21 = vshll.u32 %v7350_v23, 16  ;;  %v1886_v13 = vshll.u32 %v7352_v41, 16  ;;  %v1890_v49 = vshrl.u32 %v7352_v41, 16  ;;  %6258 = vmatprep.subr.bf16.mxu1 %v6601_v52  ;;  %v6612_v11 = vld [vmem:[%s8740_s1 + $0xb8] sm:$0xff]  }
  0x99   : > { %v1898_v58 = vrot.slane %v1896_v19, 5  ;;  %v5369_v25 = vcombine.low %v7350_v23, %v7352_v41  ;;  %v475_v59 = vor.u32 %v473_v53, %v472_v5  ;;  %v596_v3 = vsel %vm6902_vm2, %v472_v5, 0  ;;  %v874_v40 = vld [vmem:[#allocation2 + $0x38] sm:$0x1] }
  0x9a   : > { %v1879_v26 = vrot.slane %v1877_v2, 4  ;;  %v1882_v31 = vrot.slane %v1880_v21, 5  ;;  %v1888_v32 = vrot.slane %v1886_v13, 5  ;;  %v1892_v33 = vrot.slane %v1890_v49, 4  ;;  %v7396_v2 = vld [vmem:[#allocation2 + $0x3c] sm:$0xf] }
  0x9b   : > { %v580_v61 = vsel %vm6902_vm2, 0, %v475_v59  ;;  %v5256_v38 = vcombine.low %v596_v3, %v596_v3  ;;  %v984_v39 = vsel %vm6988_vm8, %v979_v9, %v983_v47  ;;  %v393_v42 = vmax.f32 %v361_v20, 0.0  ;;  %6259 = vmatpush3.bf16.msra.mxu1 %v6601_v52  ;;  %v7388_v20 = vld [vmem:[#allocation2 + $0x70] sm:$0xf]  ;;  %v7398_v21 = vld [vmem:[#allocation2 + $0x40] sm:$0xf] }
  0x9c   : > { %v1883_v6 = vor.u32 %v1882_v31, %v1879_v26  ;;  %v1893_v4 = vor.u32 %v1892_v33, %v1888_v32  ;;  %v5254_v56 = vcombine.low %v580_v61, %v580_v61  ;;  %v5255_v37 = vcombine.high %v580_v61, %v580_v61  ;;  %6260 = vmatprep.subr.bf16.mxu1 %v6612_v11 }
  0x9d   : > { %803 = vst [vmem:[#allocation2 + $0x5c] sm:$0x1] %v5256_v38  ;;  %v5319_v0 = vcombine.low %v974_v7, %v984_v39  ;;  %v394_v29 = vmax.f32 %v362_v60, 0.0  ;;  %v991_v55 = vrot.slane %v989_v8, 5  ;;  %v995_v14 = vshll.u32 %v7367_v35, 16 }
  0x9e   : > { %v1884_v44 = vrot.slane %v1883_v6, 4  ;;  %v1894_v48 = vrot.slane %v1893_v4, 4  ;;  %801 = vst [vmem:[#allocation2 + $0x54] sm:$0xf] %v5254_v56  ;;  %802 = vst [vmem:[#allocation2 + $0x58] sm:$0xf] %v5255_v37  ;;  %v5304_v52 = vcombine.low %v7333_v43, %v7367_v35  ;;  %v5305_v61 = vcombine.low %v7396_v2, %v7398_v21 }
  0x9f   : > { %v999_v47 = vshrl.u32 %v7367_v35, 16  ;;  %v1005_v51 = vshll.u32 %v874_v40, 16  ;;  %3238 = vmatprep.mubr.bf16.mxu1 %v5319_v0  ;;  %v418_v22 = vpack.c.bf16 %v394_v29, %v393_v42  ;;  %v992_v53 = vor.u32 %v991_v55, %v988_v24  ;;  %6261 = vmatpush3.bf16.msra.mxu1 %v6612_v11 }
  0xa0   : > { %v997_v54 = vrot.slane %v995_v14, 5  ;;  %v1889_v28 = vsel %vm6988_vm8, %v1884_v44, %v1888_v32  ;;  %v1899_v10 = vsel %vm6988_vm8, %v1894_v48, %v1898_v58  ;;  %3239 = vmatmul.mubr.bf16.gmra.mrb[28].mxu1 %v5303_v36  ;;  %v1949_v41 = vshrl.u32 %v7377_v15, 16 }
  0xa1   : > { %v1001_v63 = vrot.slane %v999_v47, 4  ;;  %v1007_v1 = vrot.slane %v1005_v51, 5  ;;  %v5385_v19 = vcombine.low %v1889_v28, %v1899_v10  ;;  %v477_v5 = vshrl.u32 %v418_v22, 16  ;;  %v6622_v51 = vld [vmem:[%s8740_s1 + $0x200] sm:$0xff]  }
  0xa2   : > { %v480_v7 = vshll.u32 %v418_v22, 16  ;;  %v993_v8 = vrot.slane %v992_v53, 4  ;;  %v1952_v9 = vshll.u32 %v7377_v15, 16  ;;  %v1958_v60 = vshll.u32 %v7388_v20, 16  ;;  %6294 = vmatprep.subr.bf16.mxu1 %v6622_v51 }
  0xa3   : > { %v1002_v23 = vor.u32 %v1001_v63, %v997_v54  ;;  %2788 = vmatprep.mubr.bf16.mxu0 %v5385_v19  ;;  %v479_v24 = vrot.slane %v477_v5, 7  ;;  %v1962_v18 = vshrl.u32 %v7388_v20, 16  ;;  %v5372_v36 = vcombine.low %v7377_v15, %v7388_v20  ;;  %v7426_v5 = vld [vmem:[#allocation2 + $0x78] sm:$0xf] }
  0xa4   : > { %v998_v30 = vsel %vm6988_vm8, %v993_v8, %v997_v54  ;;  %2789 = vmatmul.mubr.bf16.gmra.mrb[20].mxu0 %v5369_v25  ;;  %v1746_v13 = vld [vmem:[#allocation2 + $0x5c] sm:$0x1]  ;;  %v1951_v11 = vrot.slane %v1949_v41, 4  ;;  %v1954_v58 = vrot.slane %v1952_v9, 5  ;;  %v7400_v59 = vrot.slane %v1958_v60, 5 }
  0xa5   : > { %v1003_v49 = vrot.slane %v1002_v23, 4  ;;  %v7402_v3 = vld [vmem:[#allocation2 + $0x54] sm:$0xf]  ;;  %v7404_v26 = vld [vmem:[#allocation2 + $0x58] sm:$0xf]  ;;  %v1920_v31 = vshll.u32 %v1746_v13, 16  ;;  %v482_v32 = vor.u32 %v480_v7, %v479_v24 }
  0xa6   : > { %v597_v33 = vsel %vm6902_vm2, %v479_v24, 0  ;;  %v1901_v25 = vshrl.u32 %v7402_v3, 16  ;;  %v1904_v38 = vshll.u32 %v7402_v3, 16  ;;  %v1910_v39 = vshll.u32 %v7404_v26, 16  ;;  %v875_v23 = vld [vmem:[#allocation2 + $0x44] sm:$0x1] }
  0xa7   : > { %v1914_v42 = vshrl.u32 %v7404_v26, 16  ;;  %v1922_v40 = vrot.slane %v1920_v31, 5  ;;  %v5370_v6 = vcombine.low %v7402_v3, %v7404_v26  ;;  %v581_v4 = vsel %vm6902_vm2, 0, %v482_v32  ;;  %v7447_v32 = vld [vmem:[#allocation2 + $0x7c] sm:$0xf] }
  0xa8   : > { %v5259_v56 = vcombine.low %v597_v33, %v597_v33  ;;  %v1903_v37 = vrot.slane %v1901_v25, 4  ;;  %v1906_v0 = vrot.slane %v1904_v38, 5  ;;  %v1912_v29 = vrot.slane %v1910_v39, 5  ;;  %v7450_v25 = vld [vmem:[#allocation2 + $0x48] sm:$0xf] }
  0xa9   : > { %v1916_v55 = vrot.slane %v1914_v42, 4  ;;  %v5257_v14 = vcombine.low %v581_v4, %v581_v4  ;;  %v5258_v44 = vcombine.high %v581_v4, %v581_v4  ;;  %v1008_v48 = vsel %vm6988_vm8, %v1003_v49, %v1007_v1  ;;  %v7455_v4 = vld [vmem:[#allocation2 + $0x4c] sm:$0xf] }
  0xaa   : > { %806 = vst [vmem:[#allocation2 + $0x68] sm:$0x1] %v5259_v56  ;;  %v1955_v47 = vor.u32 %v1954_v58, %v1951_v11  ;;  %v1907_v22 = vor.u32 %v1906_v0, %v1903_v37  ;;  %v5320_v12 = vcombine.low %v998_v30, %v1008_v48  ;;  %v1964_v54 = vrot.slane %v1962_v18, 4 }
  0xab   : > { %v1917_v53 = vor.u32 %v1916_v55, %v1912_v29  ;;  %804 = vst [vmem:[#allocation2 + $0x60] sm:$0xf] %v5257_v14  ;;  %805 = vst [vmem:[#allocation2 + $0x64] sm:$0xf] %v5258_v44  ;;  %v1010_v10 = vshrl.u32 %v7396_v2, 16  ;;  %v1013_v63 = vshll.u32 %v7396_v2, 16  ;;  %v5306_v55 = vcombine.low %v7450_v25, %v7455_v4 }
  0xac   : > { %v1956_v28 = vrot.slane %v1955_v47, 4  ;;  %v1019_v19 = vshll.u32 %v7398_v21, 16  ;;  %v1908_v1 = vrot.slane %v1907_v22, 4  ;;  %3246 = vmatprep.mubr.bf16.mxu1 %v5320_v12  ;;  %v1965_v8 = vor.u32 %v1964_v54, %v7400_v59 }
  0xad   : > { %v1918_v7 = vrot.slane %v1917_v53, 4  ;;  %v1023_v41 = vshrl.u32 %v7398_v21, 16  ;;  %3247 = vmatmul.mubr.bf16.gmra.mrb[32].mxu1 %v5304_v52  ;;  %v1012_v60 = vrot.slane %v1010_v10, 4  ;;  %v1015_v24 = vrot.slane %v1013_v63, 5 }
  0xae   : > { %v1961_v9 = vsel %vm6988_vm8, %v1956_v28, %v7400_v59  ;;  %v1021_v30 = vrot.slane %v1019_v19, 5  ;;  %v1913_v18 = vsel %vm6988_vm8, %v1908_v1, %v1912_v29  ;;  %v1966_v49 = vrot.slane %v1965_v8, 4 }
  0xaf   : > { %v1923_v13 = vsel %vm6988_vm8, %v1918_v7, %v1922_v40  ;;  %v1025_v11 = vrot.slane %v1023_v41, 4  ;;  %v1016_v3 = vor.u32 %v1015_v24, %v1012_v60  ;;  %v1029_v26 = vshll.u32 %v875_v23, 16  ;;  %v6651_v41 = vld [vmem:[#allocation2 + $0x80] sm:$0x1] }
  0xb0   : > { %v5386_v58 = vcombine.low %v1913_v18, %v1923_v13  ;;  %v1973_v43 = vshrl.u32 %v7426_v5, 16  ;;  %v1971_v52 = vsel %vm6988_vm8, %v1966_v49, %v6940_v27  ;;  %v1976_v31 = vshll.u32 %v7426_v5, 16  ;;  %v876_v18 = vld [vmem:[#allocation2 + $0x50] sm:$0x1] }
  0xb1   : > { %v7441_v35 = vld [vmem:[#allocation2 + $0x68] sm:$0x1]  ;;  %v1026_v59 = vor.u32 %v1025_v11, %v1021_v30  ;;  %v1982_v33 = vshll.u32 %v7447_v32, 16  ;;  %v7453_v39 = vcombine.low %v1961_v9, %v1971_v52  ;;  %v1017_v42 = vrot.slane %v1016_v3, 4 }
  0xb2   : > { %2796 = vmatprep.mubr.bf16.mxu0 %v5386_v58  ;;  %v1944_v38 = vshll.u32 %v7441_v35, 16  ;;  %v1031_v40 = vrot.slane %v1029_v26, 5  ;;  %v1722_v27 = vld [vmem:[#allocation2 + $0x60] sm:$0xf]  ;;  %v7457_v56 = vld [vmem:[#allocation2 + $0x64] sm:$0xf]  ;;  %v5373_v29 = vcombine.low %v7426_v5, %v7447_v32 }
  0xb3   : > { %2797 = vmatmul.mubr.bf16.gmra.mrb[24].mxu0 %v5370_v6  ;;  %v1027_v37 = vrot.slane %v1026_v59, 4  ;;  %v1975_v0 = vrot.slane %v1973_v43, 4  ;;  %v1925_v14 = vshrl.u32 %v1722_v27, 16  ;;  %v1928_v44 = vshll.u32 %v1722_v27, 16  ;;  %v7531_v20 = vld [vmem:[#allocation2 + $0x64] sm:$0xf] }
  0xb4   : > { %v1934_v48 = vshll.u32 %v7457_v56, 16  ;;  %v1938_v47 = vshrl.u32 %v7457_v56, 16  ;;  %v1946_v51 = vrot.slane %v1944_v38, 5  ;;  %v5371_v6 = vcombine.low %v1722_v27, %v7457_v56 }
  0xb5   : > { %v1022_v22 = vsel %vm6988_vm8, %v1017_v42, %v1021_v30  ;;  %v1032_v53 = vsel %vm6988_vm8, %v1027_v37, %v1031_v40  ;;  %v1927_v12 = vrot.slane %v1925_v14, 4  ;;  %v1930_v54 = vrot.slane %v1928_v44, 5 }
  0xb6   : > { %v1936_v28 = vrot.slane %v1934_v48, 5  ;;  %v1940_v10 = vrot.slane %v1938_v47, 4  ;;  %v5321_v63 = vcombine.low %v1022_v22, %v1032_v53  ;;  %v1978_v19 = vrot.slane %v1976_v31, 5  ;;  %v7490_v22 = vld [vmem:[#allocation2 + $0x88] sm:$0xf] }
  0xb7   : > { %v1984_v1 = vrot.slane %v1982_v33, 5  ;;  %v1986_v7 = vshrl.u32 %v7447_v32, 16  ;;  %v1931_v8 = vor.u32 %v1930_v54, %v1927_v12  ;;  %v1992_v9 = vshll.u32 %v6651_v41, 16  ;;  %v7477_v33 = vld [vmem:[#allocation2 + $0x84] sm:$0xf] }
  0xb8   : > { %v1941_v23 = vor.u32 %v1940_v10, %v1936_v28  ;;  %v1034_v60 = vshrl.u32 %v7450_v25, 16  ;;  %3254 = vmatprep.mubr.bf16.mxu1 %v5321_v63  ;;  %v1979_v24 = vor.u32 %v1978_v19, %v1975_v0  ;;  %v1037_v13 = vshll.u32 %v7450_v25, 16  ;;  %v7494_v54 = vld [vmem:[#allocation2 + $0x54] sm:$0xf]  ;;  %v6653_v41 = vld [vmem:[#allocation2 + $0x8c] sm:$0x1] }
  0xb9   : > { %v1988_v30 = vrot.slane %v1986_v7, 4  ;;  %v1043_v49 = vshll.u32 %v7455_v4, 16  ;;  %v1932_v11 = vrot.slane %v1931_v8, 4  ;;  %3255 = vmatmul.mubr.bf16.gmra.mrb[36].mxu1 %v5305_v61  ;;  %v1994_v3 = vrot.slane %v1992_v9, 5 }
  0xba   : > { %v1942_v58 = vrot.slane %v1941_v23, 4  ;;  %v1036_v26 = vrot.slane %v1034_v60, 4  ;;  %v1980_v43 = vrot.slane %v1979_v24, 4  ;;  %v1039_v59 = vrot.slane %v1037_v13, 5 }
  0xbb   : > { %v1989_v52 = vor.u32 %v1988_v30, %v1984_v1  ;;  %v1045_v31 = vrot.slane %v1043_v49, 5  ;;  %v1937_v38 = vsel %vm6988_vm8, %v1932_v11, %v1936_v28  ;;  %v1047_v40 = vshrl.u32 %v7455_v4, 16  ;;  %v877_v49 = vld [vmem:[#allocation2 + $0x5c] sm:$0x1]  ;;  %v6655_v4 = vld [vmem:[#allocation2 + $0x98] sm:$0x1] }
  0xbc   : > { %v1947_v42 = vsel %vm6988_vm8, %v1942_v58, %v1946_v51  ;;  %v1053_v27 = vshll.u32 %v876_v18, 16  ;;  %v1985_v2 = vsel %vm6988_vm8, %v1980_v43, %v1984_v1  ;;  %v1040_v61 = vor.u32 %v1039_v59, %v1036_v26  ;;  %v7496_v1 = vld [vmem:[#allocation2 + $0x58] sm:$0xf] }
  0xbd   : > { %v5387_v37 = vcombine.low %v1937_v38, %v1947_v42  ;;  %v1990_v21 = vrot.slane %v1989_v52, 4  ;;  %v1049_v0 = vrot.slane %v1047_v40, 4  ;;  %v1997_v44 = vshrl.u32 %v7477_v33, 16  ;;  %v7509_v52 = vld [vmem:[#allocation2 + $0x90] sm:$0xf] }
  0xbe   : > { %v1055_v14 = vrot.slane %v1053_v27, 5  ;;  %v2000_v48 = vshll.u32 %v7477_v33, 16  ;;  %v1041_v51 = vrot.slane %v1040_v61, 4  ;;  %v2006_v53 = vshll.u32 %v7490_v22, 16 }
  0xbf   : > { %2804 = vmatprep.mubr.bf16.mxu0 %v5387_v37  ;;  %v1995_v47 = vsel %vm6988_vm8, %v1990_v21, %v1994_v3  ;;  %v2010_v12 = vshrl.u32 %v7490_v22, 16  ;;  %v1050_v10 = vor.u32 %v1049_v0, %v1045_v31  ;;  %v1999_v63 = vrot.slane %v1997_v44, 4 }
  0xc0   : > { %2805 = vmatmul.mubr.bf16.gmra.mrb[28].mxu0 %v5371_v6  ;;  %v5389_v28 = vcombine.low %v1985_v2, %v1995_v47  ;;  %v2002_v19 = vrot.slane %v2000_v48, 5  ;;  %v1046_v7 = vsel %vm6988_vm8, %v1041_v51, %v1045_v31  ;;  %v2008_v8 = vrot.slane %v2006_v53, 5  ;;  %v7525_v51 = vld [vmem:[#allocation2 + $0x94] sm:$0xf] }
  0xc1   : > { %2812 = vmatprep.mubr.bf16.mxu0 %v7453_v39  ;;  %v2012_v23 = vrot.slane %v2010_v12, 4  ;;  %v2016_v9 = vshll.u32 %v6653_v41, 16  ;;  %v1051_v60 = vrot.slane %v1050_v10, 4  ;;  %v5374_v6 = vcombine.low %v7477_v33, %v7490_v22  ;;  %v7528_v12 = vld [vmem:[#allocation2 + $0x60] sm:$0xf] }
  0xc2   : > { %v2003_v24 = vor.u32 %v2002_v19, %v1999_v63  ;;  %v1058_v30 = vshrl.u32 %v7494_v54, 16  ;;  %v1061_v11 = vshll.u32 %v7494_v54, 16  ;;  %v1067_v39 = vshll.u32 %v7496_v1, 16 }
  0xc3   : > { %v2013_v18 = vor.u32 %v2012_v23, %v2008_v8  ;;  %v2018_v13 = vrot.slane %v2016_v9, 5  ;;  %v1056_v58 = vsel %vm6988_vm8, %v1051_v60, %v1055_v14  ;;  %v1071_v43 = vshrl.u32 %v7496_v1, 16 }
  0xc4   : > { %v2004_v3 = vrot.slane %v2003_v24, 4  ;;  %v1060_v26 = vrot.slane %v1058_v30, 4  ;;  %v5322_v59 = vcombine.low %v1046_v7, %v1056_v58  ;;  %v1063_v38 = vrot.slane %v1061_v11, 5  ;;  %v7542_v30 = vld [vmem:[#allocation2 + $0x9c] sm:$0xf] }
  0xc5   : > { %v2014_v31 = vrot.slane %v2013_v18, 4  ;;  %v1069_v42 = vrot.slane %v1067_v39, 5  ;;  %v1073_v27 = vrot.slane %v1071_v43, 4  ;;  %v1077_v37 = vshll.u32 %v877_v49, 16 }
  0xc6   : > { %v2009_v40 = vsel %vm6988_vm8, %v2004_v3, %v2008_v8  ;;  %v5307_v2 = vcombine.low %v7494_v54, %v7496_v1  ;;  %3262 = vmatprep.mubr.bf16.mxu1 %v5322_v59  ;;  %v1064_v61 = vor.u32 %v1063_v38, %v1060_v26  ;;  %v2021_v0 = vshrl.u32 %v7509_v52, 16 }
  0xc7   : > { %v2019_v21 = vsel %vm6988_vm8, %v2014_v31, %v2018_v13  ;;  %v2024_v14 = vshll.u32 %v7509_v52, 16  ;;  %3263 = vmatmul.mubr.bf16.gmra.mrb[40].mxu1 %v5306_v55  ;;  %v1074_v48 = vor.u32 %v1073_v27, %v1069_v42  ;;  %v1079_v47 = vrot.slane %v1077_v37, 5 }
  0xc8   : > { %2813 = vmatmul.mubr.bf16.gmra.mrb[32].mxu0 %v5372_v36  ;;  %v5390_v44 = vcombine.low %v2009_v40, %v2019_v21  ;;  %v2030_v53 = vshll.u32 %v7525_v51, 16  ;;  %v1065_v54 = vrot.slane %v1064_v61, 4  ;;  %v2023_v10 = vrot.slane %v2021_v0, 4  ;;  %v7556_v0 = vld [vmem:[#allocation2 + $0xa0] sm:$0xf] }
  0xc9   : > { %2820 = vmatprep.mubr.bf16.mxu0 %v5389_v28  ;;  %v2026_v63 = vrot.slane %v2024_v14, 5  ;;  %v2034_v15 = vshrl.u32 %v7525_v51, 16  ;;  %v1075_v36 = vrot.slane %v1074_v48, 4  ;;  %v2040_v55 = vshll.u32 %v6655_v4, 16  ;;  %v878_v28 = vld [vmem:[#allocation2 + $0x68] sm:$0x1] }
  0xca   : > { %v2032_v25 = vrot.slane %v2030_v53, 5  ;;  %v5375_v19 = vcombine.low %v7509_v52, %v7525_v51  ;;  %v1070_v1 = vsel %vm6988_vm8, %v1065_v54, %v1069_v42  ;;  %v1082_v23 = vshrl.u32 %v7528_v12, 16  ;;  %v7562_v53 = vld [vmem:[#allocation2 + $0x70] sm:$0xf]  ;;  %v6657_v54 = vld [vmem:[#allocation2 + $0xa4] sm:$0x1] }
  0xcb   : > { %v2027_v7 = vor.u32 %v2026_v63, %v2023_v10  ;;  %v2036_v8 = vrot.slane %v2034_v15, 4  ;;  %v1080_v41 = vsel %vm6988_vm8, %v1075_v36, %v1079_v47  ;;  %v2042_v9 = vrot.slane %v2040_v55, 5  ;;  %v7560_v47 = vld [vmem:[#allocation2 + $0x6c] sm:$0xf] }
  0xcc   : > { %v1085_v60 = vshll.u32 %v7528_v12, 16  ;;  %v1091_v24 = vshll.u32 %v7531_v20, 16  ;;  %v5323_v18 = vcombine.low %v1070_v1, %v1080_v41  ;;  %v1084_v11 = vrot.slane %v1082_v23, 4  ;;  %v879_v1 = vld [vmem:[#allocation2 + $0x74] sm:$0x1] }
  0xcd   : > { %v2028_v13 = vrot.slane %v2027_v7, 4  ;;  %v2037_v49 = vor.u32 %v2036_v8, %v2032_v25  ;;  %v1095_v3 = vshrl.u32 %v7531_v20, 16  ;;  %v1101_v26 = vshll.u32 %v878_v28, 16 }
  0xce   : > { %v1087_v39 = vrot.slane %v1085_v60, 5  ;;  %v1093_v58 = vrot.slane %v1091_v24, 5  ;;  %3270 = vmatprep.mubr.bf16.mxu1 %v5323_v18  ;;  %v5308_v31 = vcombine.low %v7528_v12, %v7531_v20  ;;  %v2045_v38 = vshrl.u32 %v7542_v30, 16  ;;  %v7574_v60 = vld [vmem:[#allocation2 + $0xa8] sm:$0xf] }
  0xcf   : > { %v2033_v43 = vsel %vm6988_vm8, %v2028_v13, %v2032_v25  ;;  %v2038_v59 = vrot.slane %v2037_v49, 4  ;;  %3271 = vmatmul.mubr.bf16.gmra.mrb[44].mxu1 %v5307_v2  ;;  %v1097_v40 = vrot.slane %v1095_v3, 4  ;;  %v1103_v27 = vrot.slane %v1101_v26, 5 }
  0xd0   : > { %2821 = vmatmul.mubr.bf16.gmra.mrb[36].mxu0 %v5373_v29  ;;  %v1088_v42 = vor.u32 %v1087_v39, %v1084_v11  ;;  %v2048_v37 = vshll.u32 %v7542_v30, 16  ;;  %v2047_v61 = vrot.slane %v2045_v38, 4  ;;  %v2054_v14 = vshll.u32 %v7556_v0, 16 }
  0xd1   : > { %2828 = vmatprep.mubr.bf16.mxu0 %v5390_v44  ;;  %v2043_v21 = vsel %vm6988_vm8, %v2038_v59, %v2042_v9  ;;  %v2058_v48 = vshrl.u32 %v7556_v0, 16  ;;  %v1098_v29 = vor.u32 %v1097_v40, %v1093_v58  ;;  %v2064_v10 = vshll.u32 %v6657_v54, 16 }
  0xd2   : > { %v5391_v5 = vcombine.low %v2033_v43, %v2043_v21  ;;  %v1089_v32 = vrot.slane %v1088_v42, 4  ;;  %v2050_v2 = vrot.slane %v2048_v37, 5  ;;  %v2056_v12 = vrot.slane %v2054_v14, 5  ;;  %v7587_v42 = vld [vmem:[#allocation2 + $0xac] sm:$0xf] }
  0xd3   : > { %v2060_v44 = vrot.slane %v2058_v48, 4  ;;  %v5376_v63 = vcombine.low %v7542_v30, %v7556_v0  ;;  %v1099_v20 = vrot.slane %v1098_v29, 4  ;;  %v1106_v25 = vshrl.u32 %v7560_v47, 16  ;;  %v7593_v48 = vld [vmem:[#allocation2 + $0x7c] sm:$0xf] }
  0xd4   : > { %v1094_v15 = vsel %vm6988_vm8, %v1089_v32, %v1093_v58  ;;  %v2051_v36 = vor.u32 %v2050_v2, %v2047_v61  ;;  %v2066_v55 = vrot.slane %v2064_v10, 5  ;;  %v1109_v7 = vshll.u32 %v7560_v47, 16  ;;  %v6659_v32 = vld [vmem:[#allocation2 + $0xb0] sm:$0x1] }
  0xd5   : > { %v2061_v4 = vor.u32 %v2060_v44, %v2056_v12  ;;  %v1115_v8 = vshll.u32 %v7562_v53, 16  ;;  %v1104_v28 = vsel %vm6988_vm8, %v1099_v20, %v1103_v27  ;;  %v1108_v41 = vrot.slane %v1106_v25, 4  ;;  %v7590_v27 = vld [vmem:[#allocation2 + $0x78] sm:$0xf]  ;;  %v880_v44 = vld [vmem:[#allocation2 + $0x80] sm:$0x1] }
  0xd6   : > { %v2052_v23 = vrot.slane %v2051_v36, 4  ;;  %v1119_v9 = vshrl.u32 %v7562_v53, 16  ;;  %v5324_v24 = vcombine.low %v1094_v15, %v1104_v28  ;;  %v1111_v13 = vrot.slane %v1109_v7, 5  ;;  %v7604_v25 = vld [vmem:[#allocation2 + $0xb4] sm:$0xf] }
  0xd7   : > { %v2062_v18 = vrot.slane %v2061_v4, 4  ;;  %v1117_v49 = vrot.slane %v1115_v8, 5  ;;  %v1125_v58 = vshll.u32 %v879_v1, 16  ;;  %v5309_v3 = vcombine.low %v7560_v47, %v7562_v53 }
  0xd8   : > { %2829 = vmatmul.mubr.bf16.gmra.mrb[40].mxu0 %v5374_v6  ;;  %v2057_v11 = vsel %vm6988_vm8, %v2052_v23, %v2056_v12  ;;  %v1121_v39 = vrot.slane %v1119_v9, 4  ;;  %3278 = vmatprep.mubr.bf16.mxu1 %v5324_v24  ;;  %v1112_v43 = vor.u32 %v1111_v13, %v1108_v41  ;;  %v2069_v59 = vshrl.u32 %v7574_v60, 16 }
  0xd9   : > { %2836 = vmatprep.mubr.bf16.mxu0 %v5391_v5  ;;  %v2067_v26 = vsel %vm6988_vm8, %v2062_v18, %v2066_v55  ;;  %v2072_v38 = vshll.u32 %v7574_v60, 16  ;;  %3279 = vmatmul.mubr.bf16.gmra.mrb[48].mxu1 %v5308_v31  ;;  %v1127_v6 = vrot.slane %v1125_v58, 5  ;;  %v2078_v40 = vshll.u32 %v7587_v42, 16  ;;  %v7618_v58 = vld [vmem:[#allocation2 + $0xb8] sm:$0xf] }
  0xda   : > { %v5392_v33 = vcombine.low %v2057_v11, %v2067_v26  ;;  %v1122_v22 = vor.u32 %v1121_v39, %v1117_v49  ;;  %v1113_v37 = vrot.slane %v1112_v43, 4  ;;  %v2071_v21 = vrot.slane %v2069_v59, 4  ;;  %v7622_v59 = vld [vmem:[#allocation2 + $0x84] sm:$0xf] }
  0xdb   : > { %v2074_v61 = vrot.slane %v2072_v38, 5  ;;  %v2082_v14 = vshrl.u32 %v7587_v42, 16  ;;  %v2080_v5 = vrot.slane %v2078_v40, 5  ;;  %v2088_v31 = vshll.u32 %v6659_v32, 16 }
  0xdc   : > { %v1123_v47 = vrot.slane %v1122_v22, 4  ;;  %v5377_v29 = vcombine.low %v7574_v60, %v7587_v42  ;;  %v1118_v2 = vsel %vm6988_vm8, %v1113_v37, %v1117_v49  ;;  %v1130_v54 = vshrl.u32 %v7590_v27, 16  ;;  %v6661_v37 = vld [vmem:[#allocation2 + $0xbc] sm:$0x1] }
  0xdd   : > { %v2075_v53 = vor.u32 %v2074_v61, %v2071_v21  ;;  %v2084_v12 = vrot.slane %v2082_v14, 4  ;;  %v2090_v15 = vrot.slane %v2088_v31, 5  ;;  %v1133_v20 = vshll.u32 %v7590_v27, 16 }
  0xde   : > { %v1128_v10 = vsel %vm6988_vm8, %v1123_v47, %v1127_v6  ;;  %v1139_v36 = vshll.u32 %v7593_v48, 16  ;;  %v1132_v7 = vrot.slane %v1130_v54, 4  ;;  %v1143_v23 = vshrl.u32 %v7593_v48, 16  ;;  %v7624_v6 = vld [vmem:[#allocation2 + $0x88] sm:$0xf] }
  0xdf   : > { %v5325_v4 = vcombine.low %v1118_v2, %v1128_v10  ;;  %v2076_v55 = vrot.slane %v2075_v53, 4  ;;  %v2085_v1 = vor.u32 %v2084_v12, %v2080_v5  ;;  %v1135_v8 = vrot.slane %v1133_v20, 5  ;;  %v7631_v2 = vld [vmem:[#allocation2 + $0x8c] sm:$0x1]  ;;  %v7641_v20 = vld [vmem:[#allocation2 + $0xc0] sm:$0xf] }
  0xe0   : > { %2837 = vmatmul.mubr.bf16.gmra.mrb[44].mxu0 %v5375_v19  ;;  %v1141_v28 = vrot.slane %v1139_v36, 5  ;;  %v1149_v41 = vshll.u32 %v880_v44, 16  ;;  %v5310_v18 = vcombine.low %v7590_v27, %v7593_v48  ;;  %v2093_v13 = vshrl.u32 %v7604_v25, 16 }
  0xe1   : > { %2844 = vmatprep.mubr.bf16.mxu0 %v5392_v33  ;;  %3286 = vmatprep.mubr.bf16.mxu1 %v5325_v4  ;;  %v2081_v9 = vsel %vm6988_vm8, %v2076_v55, %v2080_v5  ;;  %v2086_v24 = vrot.slane %v2085_v1, 4  ;;  %v1136_v49 = vor.u32 %v1135_v8, %v1132_v7  ;;  %v1145_v52 = vrot.slane %v1143_v23, 4 }
  0xe2   : > { %3287 = vmatmul.mubr.bf16.gmra.mrb[52].mxu1 %v5309_v3  ;;  %v1151_v51 = vrot.slane %v1149_v41, 5  ;;  %v2096_v19 = vshll.u32 %v7604_v25, 16  ;;  %v2095_v39 = vrot.slane %v2093_v13, 4  ;;  %v2102_v26 = vshll.u32 %v7618_v58, 16 }
  0xe3   : > { %v2091_v11 = vsel %vm6988_vm8, %v2086_v24, %v2090_v15  ;;  %v2106_v43 = vshrl.u32 %v7618_v58, 16  ;;  %v1137_v33 = vrot.slane %v1136_v49, 4  ;;  %v1146_v3 = vor.u32 %v1145_v52, %v1141_v28  ;;  %v7652_v49 = vld [vmem:[#allocation2 + $0xc4] sm:$0xf] }
  0xe4   : > { %v5393_v38 = vcombine.low %v2081_v9, %v2091_v11  ;;  %v2098_v22 = vrot.slane %v2096_v19, 5  ;;  %v2104_v40 = vrot.slane %v2102_v26, 5  ;;  %v2112_v21 = vshll.u32 %v6661_v37, 16  ;;  %v7664_v37 = vld [vmem:[#allocation2 + $0x98] sm:$0x1] }
  0xe5   : > { %v2108_v27 = vrot.slane %v2106_v43, 4  ;;  %v5378_v61 = vcombine.low %v7604_v25, %v7618_v58  ;;  %v1142_v14 = vsel %vm6988_vm8, %v1137_v33, %v1141_v28  ;;  %v1147_v48 = vrot.slane %v1146_v3, 4  ;;  %v7658_v43 = vld [vmem:[#allocation2 + $0x94] sm:$0xf]  ;;  %v6663_v33 = vld [vmem:[#allocation2 + $0xc8] sm:$0x1] }
  0xe6   : > { %v2099_v47 = vor.u32 %v2098_v22, %v2095_v39  ;;  %v1154_v5 = vshrl.u32 %v7622_v59, 16  ;;  %v2114_v31 = vrot.slane %v2112_v21, 5  ;;  %v1157_v53 = vshll.u32 %v7622_v59, 16 }
  0xe7   : > { %v2109_v32 = vor.u32 %v2108_v27, %v2104_v40  ;;  %v1163_v12 = vshll.u32 %v7624_v6, 16  ;;  %v1152_v44 = vsel %vm6988_vm8, %v1147_v48, %v1151_v51  ;;  %v1167_v15 = vshrl.u32 %v7624_v6, 16  ;;  %v7655_v51 = vld [vmem:[#allocation2 + $0x90] sm:$0xf] }
  0xe8   : > { %2845 = vmatmul.mubr.bf16.gmra.mrb[48].mxu0 %v5376_v63  ;;  %v2100_v54 = vrot.slane %v2099_v47, 4  ;;  %v1156_v10 = vrot.slane %v1154_v5, 4  ;;  %v5326_v36 = vcombine.low %v1142_v14, %v1152_v44  ;;  %v1159_v55 = vrot.slane %v1157_v53, 5 }
  0xe9   : > { %2852 = vmatprep.mubr.bf16.mxu0 %v5393_v38  ;;  %v2110_v4 = vrot.slane %v2109_v32, 4  ;;  %v1165_v1 = vrot.slane %v1163_v12, 5  ;;  %v1169_v8 = vrot.slane %v1167_v15, 4  ;;  %v1173_v30 = vshll.u32 %v7631_v2, 16  ;;  %v2140_v32 = vld [vmem:[#allocation2 + $0xc] sm:$0xe] }
  0xea   : > { %v2105_v7 = vsel %vm6988_vm8, %v2100_v54, %v2104_v40  ;;  %v5311_v0 = vcombine.low %v7622_v59, %v7624_v6  ;;  %3294 = vmatprep.mubr.bf16.mxu1 %v5326_v36  ;;  %v1160_v28 = vor.u32 %v1159_v55, %v1156_v10  ;;  %v2117_v23 = vshrl.u32 %v7641_v20, 16  ;;  %v7674_v54 = vld [vmem:[#allocation2 + $0x9c] sm:$0xf] }
  0xeb   : > { %v2115_v63 = vsel %vm6988_vm8, %v2110_v4, %v2114_v31  ;;  %v2120_v41 = vshll.u32 %v7641_v20, 16  ;;  %3295 = vmatmul.mubr.bf16.gmra.mrb[56].mxu1 %v5310_v18  ;;  %v1170_v24 = vor.u32 %v1169_v8, %v1165_v1  ;;  %v1175_v13 = vrot.slane %v1173_v30, 5 }
  0xec   : > { %v5394_v9 = vcombine.low %v2105_v7, %v2115_v63  ;;  %v2126_v52 = vshll.u32 %v7652_v49, 16  ;;  %v1161_v19 = vrot.slane %v1160_v28, 4  ;;  %v2119_v11 = vrot.slane %v2117_v23, 4  ;;  %v6664_v63 = vld [vmem:[#allocation2 + $0x10] sm:$0xf] }
  0xed   : > { %v2122_v39 = vrot.slane %v2120_v41, 5  ;;  %v2130_v26 = vshrl.u32 %v7652_v49, 16  ;;  %v1171_v59 = vrot.slane %v1170_v24, 4  ;;  %v2136_v18 = vshll.u32 %v6663_v33, 16 }
  0xee   : > { %v2128_v38 = vrot.slane %v2126_v52, 5  ;;  %v5379_v3 = vcombine.low %v7641_v20, %v7652_v49  ;;  %v1166_v22 = vsel %vm6988_vm8, %v1161_v19, %v1165_v1  ;;  %v1178_v21 = vshrl.u32 %v7655_v51, 16 }
  0xef   : > { %v2123_v40 = vor.u32 %v2122_v39, %v2119_v11  ;;  %v2132_v27 = vrot.slane %v2130_v26, 4  ;;  %v1176_v14 = vsel %vm6988_vm8, %v1171_v59, %v1175_v13  ;;  %v2138_v48 = vrot.slane %v2136_v18, 5  ;;  %v7684_v13 = vld [vmem:[#allocation2 + $0xa0] sm:$0xf]  ;;  %v7689_v39 = vld [vmem:[#allocation2 + $0xa4] sm:$0x1] }
  0xf0   : > { %2853 = vmatmul.mubr.bf16.gmra.mrb[52].mxu0 %v5377_v29  ;;  %v1181_v47 = vshll.u32 %v7655_v51, 16  ;;  %v1187_v5 = vshll.u32 %v7658_v43, 16  ;;  %v5327_v31 = vcombine.low %v1166_v22, %v1176_v14  ;;  %v1180_v44 = vrot.slane %v1178_v21, 4  ;;  %v2141_v29 = vld [vmem:[#allocation2 + $0x18] sm:$0xe] }
  0xf1   : > { %2860 = vmatprep.mubr.bf16.mxu0 %v5394_v9  ;;  %v2124_v53 = vrot.slane %v2123_v40, 4  ;;  %v2133_v12 = vor.u32 %v2132_v27, %v2128_v38  ;;  %v1191_v60 = vshrl.u32 %v7658_v43, 16  ;;  %v1197_v42 = vshll.u32 %v7664_v37, 16  ;;  %v6665_v9 = vld [vmem:[#allocation2 + $0x1c] sm:$0xf] }
  0xf2   : > { %v1183_v10 = vrot.slane %v1181_v47, 5  ;;  %v1189_v15 = vrot.slane %v1187_v5, 5  ;;  %3302 = vmatprep.mubr.bf16.mxu1 %v5327_v31  ;;  %v5312_v55 = vcombine.low %v7655_v51, %v7658_v43  ;;  %v5348_v1 = vrot.slane %v2140_v32, 9  ;;  %v2142_v14 = vld [vmem:[#allocation2 + $0x24] sm:$0xe] }
  0xf3   : > { %v2129_v36 = vsel %vm6988_vm8, %v2124_v53, %v2128_v38  ;;  %v2134_v4 = vrot.slane %v2133_v12, 4  ;;  %3303 = vmatmul.mubr.bf16.gmra.mrb[60].mxu1 %v5311_v0  ;;  %v1193_v8 = vrot.slane %v1191_v60, 4  ;;  %v1199_v30 = vrot.slane %v1197_v42, 5  ;;  %v7720_v60 = vld [vmem:[#allocation2 + $0xa8] sm:$0xf] }
  0xf4   : > { %v1184_v7 = vor.u32 %v1183_v10, %v1180_v44  ;;  %v2206_v28 = vrot.slane %v6664_v63, 5  ;;  %v5349_v41 = vrot.slane %v2141_v29, 9  ;;  %v2213_v24 = vrot.slane %v6665_v9, 5  ;;  %v6666_v10 = vld [vmem:[#allocation2 + $0x28] sm:$0xf] }
  0xf5   : > { %v2139_v23 = vsel %vm6988_vm8, %v2134_v4, %v2138_v48  ;;  %v1202_v52 = vshrl.u32 %v7674_v54, 16  ;;  %v1194_v51 = vor.u32 %v1193_v8, %v1189_v15  ;;  %v1205_v40 = vshll.u32 %v7674_v54, 16  ;;  %v6667_v29 = vld [vmem:[#allocation2 + $0x2c] sm:$0x1] }
  0xf6   : > { %v5395_v19 = vcombine.low %v2129_v36, %v2139_v23  ;;  %v1185_v11 = vrot.slane %v1184_v7, 4  ;;  %v2207_v0 = vsel %vm6936_vm5, %v5348_v1, %v2206_v28  ;;  %v2208_v26 = vrot.slane %v2206_v28, 4  ;;  %v6668_v1 = vld [vmem:[#allocation2 + $0x34] sm:$0xf]  ;;  %v7722_v8 = vld [vmem:[#allocation2 + $0xac] sm:$0xf] }
  0xf7   : > { %v7693_v59 = vsel %vm6936_vm5, %v5349_v41, %v2213_v24  ;;  %v2215_v38 = vrot.slane %v2213_v24, 4  ;;  %v1204_v33 = vrot.slane %v1202_v52, 4  ;;  %v1195_v22 = vrot.slane %v1194_v51, 4  ;;  %v6669_v28 = vld [vmem:[#allocation2 + $0x38] sm:$0x1] }
  0xf8   : > { %2861 = vmatmul.mubr.bf16.gmra.mrb[56].mxu0 %v5378_v61  ;;  %v1190_v18 = vsel %vm6988_vm8, %v1185_v11, %v1189_v15  ;;  %v1211_v27 = vshll.u32 %v7684_v13, 16  ;;  %v2210_v21 = vsel %vm6936_vm5, %v2208_v26, %v2209_v50  ;;  %v1215_v58 = vshrl.u32 %v7684_v13, 16  ;;  %v2143_v50 = vld [vmem:[#allocation2 + $0x30] sm:$0xe]  ;;  %v7740_v11 = vld [vmem:[#allocation2 + $0xb0] sm:$0x1] }
  0xf9   : > { %2868 = vmatprep.mubr.bf16.mxu0 %v5395_v19  ;;  %v7710_v25 = vsel %vm6936_vm5, %v2215_v38, %v2216_v57  ;;  %v1221_v61 = vshll.u32 %v7689_v39, 16  ;;  %v1200_v48 = vsel %vm6988_vm8, %v1195_v22, %v1199_v30  ;;  %v5396_v47 = vcombine.low %v2207_v0, %v2210_v21  ;;  %v2144_v26 = vld [vmem:[#allocation2 + $0x3c] sm:$0xe] }
  0xfa   : > { %v5397_v45 = vcombine.low %v7693_v59, %v7710_v25  ;;  %v1207_v5 = vrot.slane %v1205_v40, 5  ;;  %v5328_v32 = vcombine.low %v1190_v18, %v1200_v48  ;;  %v1213_v46 = vrot.slane %v1211_v27, 5  ;;  %v7757_v48 = vld [vmem:[#allocation2 + $0xb4] sm:$0xf] }
  0xfb   : > { %v1217_v31 = vrot.slane %v1215_v58, 4  ;;  %v1223_v53 = vrot.slane %v1221_v61, 5  ;;  %v5313_v12 = vcombine.low %v7674_v54, %v7684_v13  ;;  %v5350_v44 = vrot.slane %v2142_v14, 9 }
  0xfc   : > { %v1208_v57 = vor.u32 %v1207_v5, %v1204_v33  ;;  %v2220_v15 = vrot.slane %v6666_v10, 5  ;;  %3310 = vmatprep.mubr.bf16.mxu1 %v5328_v32  ;;  %v2223_v36 = vrot.slane %v6667_v29, 5  ;;  %v5351_v4 = vrot.slane %v2143_v50, 9  ;;  %v2145_v33 = vld [vmem:[#allocation2 + $0x48] sm:$0xe] }
  0xfd   : > { %v1218_v42 = vor.u32 %v1217_v31, %v1213_v46  ;;  %v2227_v7 = vrot.slane %v6668_v1, 5  ;;  %3311 = vmatmul.mubr.bf16.gmra.mrb[64].mxu1 %v5312_v55  ;;  %v2230_v23 = vrot.slane %v6669_v28, 5  ;;  %v1226_v52 = vshrl.u32 %v7720_v60, 16  ;;  %v6670_v50 = vld [vmem:[#allocation2 + $0x40] sm:$0xf] }
  0xfe   : > { %v1209_v30 = vrot.slane %v1208_v57, 4  ;;  %v7726_v63 = vsel %vm6936_vm5, %v5350_v44, %v2220_v15  ;;  %v2222_v54 = vrot.slane %v2220_v15, 4  ;;  %v1229_v51 = vshll.u32 %v7720_v60, 16  ;;  %v6672_v10 = vld [vmem:[#allocation2 + $0x4c] sm:$0xf] }
  0xff   : > { %v1219_v41 = vrot.slane %v1218_v42, 4  ;;  %v7730_v9 = vsel %vm6936_vm5, %v5351_v4, %v2227_v7  ;;  %v2229_v24 = vrot.slane %v2227_v7, 4  ;;  %v1235_v0 = vshll.u32 %v7722_v8, 16  ;;  %v6673_v42 = vld [vmem:[#allocation2 + $0x50] sm:$0x1]  ;;  %v6604_v4 = vld [vmem:[%s8740_s1 + $0x1c8] sm:$0xff]  }
 0x100   : > { %2869 = vmatmul.mubr.bf16.gmra.mrb[60].mxu0 %v5379_v3  ;;  %v1214_v55 = vsel %vm6988_vm8, %v1209_v30, %v1213_v46  ;;  %v2224_v19 = vsel %vm6936_vm5, %v2222_v54, %v2223_v36  ;;  %v1228_v3 = vrot.slane %v1226_v52, 4  ;;  %v1231_v40 = vrot.slane %v1229_v51, 5  ;;  %v6671_v46 = vld [vmem:[#allocation2 + $0x44] sm:$0x1]  ;;  %v7762_v36 = vld [vmem:[#allocation2 + $0xb8] sm:$0xf] }
 0x101   : > { %6214 = vmatprep.mubr.bf16.mxu0 %v5396_v47  ;;  %v1224_v38 = vsel %vm6988_vm8, %v1219_v41, %v1223_v53  ;;  %v5398_v20 = vcombine.low %v7726_v63, %v2224_v19  ;;  %v7749_v49 = vsel %vm6936_vm5, %v2229_v24, %v2230_v23  ;;  %v1237_v27 = vrot.slane %v1235_v0, 5  ;;  %v6603_v47 = vld [vmem:[%s8740_s1 + $0x180] sm:$0xff]   ;;  %v7776_v41 = vld [vmem:[#allocation2 + $0xbc] sm:$0x1]  ;;  %v2146_v51 = vld [vmem:[#allocation2 + $0x54] sm:$0xe] }
 0x102   : > { %v5329_v18 = vcombine.low %v1214_v55, %v1224_v38  ;;  %v5399_v22 = vcombine.low %v7730_v9, %v7749_v49  ;;  %v1239_v21 = vshrl.u32 %v7722_v8, 16  ;;  %v1245_v58 = vshll.u32 %v7740_v11, 16  ;;  %v6606_v0 = vld [vmem:[%s8740_s1 + $0x188] sm:$0xff]   ;;  %v6607_v38 = vld [vmem:[%s8740_s1 + $0x1d0] sm:$0xff]  }
 0x103   : > { %v5314_v61 = vcombine.low %v7720_v60, %v7722_v8  ;;  %v5352_v14 = vrot.slane %v2144_v26, 9  ;;  %v1232_v5 = vor.u32 %v1231_v40, %v1228_v3  ;;  %v2234_v32 = vrot.slane %v6670_v50, 5  ;;  %v2147_v40 = vld [vmem:[#allocation2 + $0x60] sm:$0xe] }
 0x104   : > { %3318 = vmatprep.mubr.bf16.mxu1 %v5329_v18  ;;  %v2237_v31 = vrot.slane %v6671_v46, 5  ;;  %v5353_v53 = vrot.slane %v2145_v33, 9  ;;  %v1241_v57 = vrot.slane %v1239_v21, 4  ;;  %v1247_v44 = vrot.slane %v1245_v58, 5 }
 0x105   : > { %v2241_v15 = vrot.slane %v6672_v10, 5  ;;  %v2244_v29 = vrot.slane %v6673_v42, 5  ;;  %3319 = vmatmul.mubr.bf16.gmra.mrb[68].mxu1 %v5313_v12  ;;  %v1233_v1 = vrot.slane %v1232_v5, 4  ;;  %v7769_v7 = vsel %vm6936_vm5, %v5352_v14, %v2234_v32  ;;  %v6675_v10 = vld [vmem:[#allocation2 + $0x5c] sm:$0x1] }
 0x106   : > { %v2236_v30 = vrot.slane %v2234_v32, 4  ;;  %v1250_v63 = vshrl.u32 %v7757_v48, 16  ;;  %v1242_v54 = vor.u32 %v1241_v57, %v1237_v27  ;;  %v1253_v24 = vshll.u32 %v7757_v48, 16  ;;  %v6674_v32 = vld [vmem:[#allocation2 + $0x58] sm:$0xf] }
 0x107   : > { %v7774_v28 = vsel %vm6936_vm5, %v5353_v53, %v2241_v15  ;;  %v2243_v23 = vrot.slane %v2241_v15, 4  ;;  %v1238_v12 = vsel %vm6988_vm8, %v1233_v1, %v1237_v27  ;;  %v1259_v19 = vshll.u32 %v7762_v36, 16  ;;  %v6608_v53 = vld [vmem:[%s8740_s1 + $0x190] sm:$0xff]  }
 0x108   : > { %6215 = vmatmul.mubr.bf16.vlgmr.msra.gmra.mrb[64].mxu0 %v5397_v45  ;;  %v2238_v52 = vsel %vm6936_vm5, %v2236_v30, %v2237_v31  ;;  %v1252_v55 = vrot.slane %v1250_v63, 4  ;;  %v1243_v26 = vrot.slane %v1242_v54, 4  ;;  %v1255_v45 = vrot.slane %v1253_v24, 5  ;;  %v1273_v31 = vld [vmem:[#allocation2] sm:$0xe] }
 0x109   : > { %6063 = vmatpush3.bf16.msra.mxu0 %v6603_v47  ;;  %6218 = vmatprep.mubr.bf16.mxu0 %v5398_v20  ;;  %v5400_v59 = vcombine.low %v7769_v7, %v2238_v52  ;;  %v7793_v25 = vsel %vm6936_vm5, %v2243_v23, %v2244_v29  ;;  %v1261_v33 = vrot.slane %v1259_v19, 5  ;;  %v1263_v18 = vshrl.u32 %v7762_v36, 16  ;;  %v6609_v29 = vld [vmem:[%s8740_s1 + $0x1d8] sm:$0xff]   ;;  %v1274_v63 = vld [vmem:[#allocation2 + $0xc] sm:$0xe] }
 0x10a   : > { %6064 = vmatprep.subr.bf16.mxu0 %v6604_v4  ;;  %v5401_v3 = vcombine.low %v7774_v28, %v7793_v25  ;;  %v1269_v20 = vshll.u32 %v7776_v41, 16  ;;  %v1248_v27 = vsel %vm6988_vm8, %v1243_v26, %v1247_v44  ;;  %v1256_v21 = vor.u32 %v1255_v45, %v1252_v55  ;;  %v6676_v52 = vld [vmem:[#allocation2 + $0x4] sm:$0xf]  ;;  %v7832_v19 = vld [vmem:[#allocation2 + $0x18] sm:$0xf] }
 0x10b   : > { %v5315_v58 = vcombine.low %v7757_v48, %v7762_v36  ;;  %v5354_v14 = vrot.slane %v2146_v51, 9  ;;  %v5330_v47 = vcombine.low %v1238_v12, %v1248_v27  ;;  %v1265_v5 = vrot.slane %v1263_v18, 4  ;;  %v6611_v51 = vld [vmem:[%s8740_s1 + $0x198] sm:$0xff]   ;;  %v6681_v25 = vld [vmem:[#allocation2 + $0x28] sm:$0xf] }
 0x10c   : > { %v1271_v50 = vrot.slane %v1269_v20, 5  ;;  %v2248_v46 = vrot.slane %v6674_v32, 5  ;;  %v1257_v57 = vrot.slane %v1256_v21, 4  ;;  %v2251_v15 = vrot.slane %v6675_v10, 5  ;;  %v7842_v45 = vld [vmem:[#allocation2 + $0x1c] sm:$0xf] }
 0x10d   : > { %6065 = vmatpush3.bf16.msra.mxu0 %v6606_v0  ;;  %v5355_v44 = vrot.slane %v2147_v40, 9  ;;  %v2255_v42 = vrot.slane %v7457_v56, 5  ;;  %3326 = vmatprep.mubr.bf16.mxu1 %v5330_v47  ;;  %v1266_v4 = vor.u32 %v1265_v5, %v1261_v33  ;;  %v2258_v30 = vrot.slane %v7441_v35, 5  ;;  %v7853_v40 = vld [vmem:[#allocation2 + $0x20] sm:$0x1] }
 0x10e   : > { %6066 = vmatprep.subr.bf16.mxu0 %v6607_v38  ;;  %v7815_v1 = vsel %vm6936_vm5, %v5354_v14, %v2248_v46  ;;  %v2250_v7 = vrot.slane %v2248_v46, 4  ;;  %3327 = vmatmul.mubr.bf16.gmra.mrb[72].mxu1 %v5314_v61  ;;  %v1262_v56 = vsel %vm6988_vm8, %v1257_v57, %v1261_v33  ;;  %v5284_v24 = vrot.slane %v1273_v31, 9  ;;  %v6677_v61 = vld [vmem:[#allocation2 + $0x8] sm:$0x1]  ;;  %v6613_v38 = vld [vmem:[%s8740_s1 + $0x1e0] sm:$0xff]  }
 0x10f   : > { %v7825_v54 = vsel %vm6936_vm5, %v5355_v44, %v2255_v42  ;;  %v2257_v23 = vrot.slane %v2255_v42, 4  ;;  %v1267_v12 = vrot.slane %v1266_v4, 4  ;;  %v1342_v60 = vrot.slane %v6676_v52, 5  ;;  %v1275_v31 = vld [vmem:[#allocation2 + $0x18] sm:$0xe] }
 0x110   : > { %6219 = vmatmul.mubr.bf16.gmra.mrb[68].mxu0 %v5399_v22  ;;  %v2252_v35 = vsel %vm6936_vm5, %v2250_v7, %v2251_v15  ;;  %v1345_v55 = vrot.slane %v6677_v61, 5  ;;  %v5285_v49 = vrot.slane %v1274_v63, 9  ;;  %v6678_v22 = vld [vmem:[#allocation2 + $0x10] sm:$0xf]  ;;  %v3554_v47 = vshrl.u32 %v7832_v19, 16  ;;  %v6617_v61 = vld [vmem:[%s8740_s1 + $0x1a8] sm:$0xff]  }
 0x111   : > { %6067 = vmatpush3.bf16.msra.mxu0 %v6608_v53  ;;  %6222 = vmatprep.mubr.bf16.mxu0 %v5400_v59  ;;  %v5402_v0 = vcombine.low %v7815_v1, %v2252_v35  ;;  %v7840_v9 = vsel %vm6936_vm5, %v2257_v23, %v2258_v30  ;;  %v1349_v26 = vrot.slane %v6678_v22, 5  ;;  %v1272_v33 = vsel %vm6988_vm8, %v1267_v12, %v1271_v50  ;;  %v6614_v53 = vld [vmem:[%s8740_s1 + $0x1a0] sm:$0xff]   ;;  %v6618_v22 = vld [vmem:[%s8740_s1 + $0x1f0] sm:$0xff]  }
 0x112   : > { %6068 = vmatprep.subr.bf16.mxu0 %v6609_v29  ;;  %v5403_v59 = vcombine.low %v7825_v54, %v7840_v9  ;;  %v1343_v18 = vsel %vm6936_vm5, %v5284_v24, %v1342_v60  ;;  %v1344_v20 = vrot.slane %v1342_v60, 4  ;;  %v5331_v27 = vcombine.low %v1262_v56, %v1272_v33  ;;  %v1276_v42 = vld [vmem:[#allocation2 + $0x24] sm:$0xe]  ;;  %v6615_v29 = vld [vmem:[%s8740_s1 + $0x1e8] sm:$0xff]   ;;  %v6679_v56 = vld [vmem:[#allocation2 + $0x1c] sm:$0xf] }
 0x113   : > { %v7857_v21 = vsel %vm6936_vm5, %v5285_v49, %v1349_v26  ;;  %v1351_v14 = vrot.slane %v1349_v26, 4  ;;  %v3557_v50 = vshll.u32 %v7832_v19, 16  ;;  %v3563_v32 = vshll.u32 %v7842_v45, 16  ;;  %v7885_v24 = vld [vmem:[#allocation2 + $0x24] sm:$0xf] }
 0x114   : > { %v1346_v5 = vsel %vm6936_vm5, %v1344_v20, %v1345_v55  ;;  %v3567_v46 = vshrl.u32 %v7842_v45, 16  ;;  %3334 = vmatprep.mubr.bf16.mxu1 %v5331_v27  ;;  %v3556_v15 = vrot.slane %v3554_v47, 4  ;;  %v3573_v44 = vshll.u32 %v7853_v40, 16  ;;  %v6680_v52 = vld [vmem:[#allocation2 + $0x20] sm:$0x1] }
 0x115   : > { %6069 = vmatpush3.bf16.msra.mxu0 %v6611_v51  ;;  %v5332_v57 = vcombine.low %v1343_v18, %v1346_v5  ;;  %v7872_v10 = vsel %vm6936_vm5, %v1351_v14, %v1352_v62  ;;  %v3559_v1 = vrot.slane %v3557_v50, 5  ;;  %v3565_v7 = vrot.slane %v3563_v32, 5  ;;  %v6682_v51 = vld [vmem:[#allocation2 + $0x2c] sm:$0x1] }
 0x116   : > { %6070 = vmatprep.subr.bf16.mxu0 %v6613_v38  ;;  %v5333_v4 = vcombine.low %v7857_v21, %v7872_v10  ;;  %v3569_v30 = vrot.slane %v3567_v46, 4  ;;  %3335 = vmatmul.mubr.bf16.gmra.mrb[76].mxu1 %v5315_v58  ;;  %v3575_v16 = vrot.slane %v3573_v44, 5  ;;  %v5476_v62 = vcombine.low %v7832_v19, %v7842_v45  ;;  %v7890_v58 = vld [vmem:[#allocation2 + $0x28] sm:$0xf]  ;;  %v7910_v21 = vld [vmem:[#allocation2 + $0x2c] sm:$0x1] }
 0x117   : > { %v5286_v63 = vrot.slane %v1275_v31, 9  ;;  %v1356_v23 = vrot.slane %v6679_v56, 5  ;;  %6262 = vmatprep.mubr.bf16.mxu1 %v5332_v57  ;;  %v3560_v12 = vor.u32 %v3559_v1, %v3556_v15  ;;  %v1359_v60 = vrot.slane %v6680_v52, 5  ;;  %v1277_v31 = vld [vmem:[#allocation2 + $0x30] sm:$0xe] }
 0x118   : > { %6223 = vmatmul.mubr.bf16.gmra.mrb[72].mxu0 %v5401_v3  ;;  %v3570_v35 = vor.u32 %v3569_v30, %v3565_v7  ;;  %v5287_v48 = vrot.slane %v1276_v42, 9  ;;  %v1363_v3 = vrot.slane %v6681_v25, 5  ;;  %v1366_v49 = vrot.slane %v6682_v51, 5  ;;  %v6619_v57 = vld [vmem:[%s8740_s1 + $0x1b0] sm:$0xff]   ;;  %v6685_v51 = vld [vmem:[#allocation2 + $0x38] sm:$0x1] }
 0x119   : > { %6071 = vmatpush3.bf16.msra.mxu0 %v6614_v53  ;;  %6226 = vmatprep.mubr.bf16.mxu0 %v5402_v0  ;;  %v7897_v55 = vsel %vm6936_vm5, %v5286_v63, %v1356_v23  ;;  %v1358_v28 = vrot.slane %v1356_v23, 4  ;;  %v3561_v26 = vrot.slane %v3560_v12, 4  ;;  %v3578_v33 = vshrl.u32 %v7885_v24, 16  ;;  %v7913_v47 = vpop.f32.mrb[0].mxu0 }
 0x11a   : > { %6072 = vmatprep.subr.bf16.mxu0 %v6615_v29  ;;  %v3571_v38 = vrot.slane %v3570_v35, 4  ;;  %v3581_v0 = vshll.u32 %v7885_v24, 16  ;;  %v7908_v20 = vsel %vm6936_vm5, %v5287_v48, %v1363_v3  ;;  %v1365_v27 = vrot.slane %v1363_v3, 4  ;;  %v7920_v53 = vpop.f32.mrb[1].mxu0  ;;  %v1278_v29 = vld [vmem:[#allocation2 + $0x3c] sm:$0xe] }
 0x11b   : > { %v1360_v18 = vsel %vm6936_vm5, %v1358_v28, %v1359_v60  ;;  %v3587_v14 = vshll.u32 %v7890_v58, 16  ;;  %v3566_v5 = vsel %vm6988_vm8, %v3561_v26, %v3565_v7  ;;  %v3580_v46 = vrot.slane %v3578_v33, 4  ;;  %v7931_v1 = vpop.f32.mrb[2].mxu0  ;;  %v6620_v7 = vld [vmem:[%s8740_s1 + $0x1f8] sm:$0xff]   ;;  %v6624_v35 = vld [vmem:[%s8740_s1 + $0x208] sm:$0xff]   ;;  %v6684_v28 = vld [vmem:[%s8740_s1 + $0x200] sm:$0xff]  }
 0x11c   : > { %v3576_v50 = vsel %vm6988_vm8, %v3571_v38, %v3575_v16  ;;  %v5334_v32 = vcombine.low %v7897_v55, %v1360_v18  ;;  %v7927_v15 = vsel %vm6936_vm5, %v1365_v27, %v1366_v49  ;;  %v3583_v44 = vrot.slane %v3581_v0, 5  ;;  %v7941_v23 = vpop.f32.mrb[3].mxu0  ;;  %v6683_v48 = vld [vmem:[#allocation2 + $0x34] sm:$0xf]  ;;  %v7948_v55 = vld [vmem:[#allocation2 + $0x30] sm:$0xf] }
 0x11d   : > { %6073 = vmatpush3.bf16.msra.mxu0 %v6617_v61  ;;  %v5492_v10 = vcombine.low %v3566_v5, %v3576_v50  ;;  %v7929_v42 = vrot.slane %v3587_v14, 5  ;;  %v5335_v30 = vcombine.low %v7908_v20, %v7927_v15  ;;  %v3591_v16 = vshrl.u32 %v7890_v58, 16  ;;  %v7961_v33 = vld [vmem:[#allocation2 + $0x34] sm:$0xf]  ;;  %v6687_v20 = vld [vmem:[#allocation2 + $0x44] sm:$0x1] }
 0x11e   : > { %6074 = vmatprep.subr.bf16.mxu0 %v6618_v22  ;;  %v3597_v63 = vshll.u32 %v7910_v21, 16  ;;  %v4013_v56 = vrot.slane %v7910_v21, 5  ;;  %6263 = vmatmul.mubr.bf16.vlgmr.msra.gmra.mrb[80].mxu1 %v5333_v4  ;;  %v3584_v12 = vor.u32 %v3583_v44, %v3580_v46  ;;  %v5477_v52 = vcombine.low %v7885_v24, %v7890_v58  ;;  %v6621_v4 = vld [vmem:[%s8740_s1 + $0x1b8] sm:$0xff]   ;;  %v6626_v0 = vld [vmem:[%s8740_s1 + $0x210] sm:$0xff]  }
 0x11f   : > { %v5288_v60 = vrot.slane %v1277_v31, 9  ;;  %v1370_v61 = vrot.slane %v6683_v48, 5  ;;  %6295 = vmatpush3.bf16.msra.mxu1 %v6684_v28  ;;  %v3593_v25 = vrot.slane %v3591_v16, 4  ;;  %v1373_v49 = vrot.slane %v6685_v51, 5  ;;  %6266 = vmatprep.mubr.bf16.mxu1 %v5334_v32  ;;  %v7967_v14 = vld [vmem:[#allocation2 + $0x38] sm:$0x1] }
 0x120   : > { %6227 = vmatmul.mubr.bf16.gmra.mrb[76].mxu0 %v5403_v59  ;;  %v3599_v3 = vrot.slane %v3597_v63, 5  ;;  %v5289_v22 = vrot.slane %v1278_v29, 9  ;;  %v3585_v26 = vrot.slane %v3584_v12, 4  ;;  %v6686_v59 = vld [vmem:[#allocation2 + $0x40] sm:$0xf]  ;;  %v1380_v27 = vrot.slane %v6687_v20, 5  ;;  %6296 = vmatprep.subr.bf16.mxu1 %v6624_v35 }
 0x121   : > { %6075 = vmatpush3.bf16.msra.mxu0 %v6619_v57  ;;  %4545 = vmatprep.mubr.bf16.mxu0 %v5492_v10  ;;  %v1371_v54 = vsel %vm6936_vm5, %v5288_v60, %v1370_v61  ;;  %v1372_v9 = vrot.slane %v1370_v61, 4  ;;  %v1377_v38 = vrot.slane %v6686_v59, 5  ;;  %v3594_v18 = vor.u32 %v3593_v25, %v7929_v42  ;;  %v1279_v12 = vld [vmem:[#allocation2 + $0x48] sm:$0xe]  ;;  %v6628_v28 = vld [vmem:[%s8740_s1 + $0x218] sm:$0xff]  }
 0x122   : > { %6076 = vmatprep.subr.bf16.mxu0 %v6620_v7  ;;  %v3602_v5 = vshrl.u32 %v7948_v55, 16  ;;  %v3605_v50 = vshll.u32 %v7948_v55, 16  ;;  %v3590_v46 = vsel %vm6988_vm8, %v3585_v26, %v7929_v42  ;;  %v3611_v42 = vshll.u32 %v7961_v33, 16  ;;  %v7996_v26 = vld [vmem:[#allocation2 + $0x3c] sm:$0xf] }
 0x123   : > { %v1374_v31 = vsel %vm6936_vm5, %v1372_v9, %v1373_v49  ;;  %v7978_v32 = vsel %vm6936_vm5, %v5289_v22, %v1377_v38  ;;  %v1379_v57 = vrot.slane %v1377_v38, 4  ;;  %v3595_v10 = vrot.slane %v3594_v18, 4  ;;  %6297 = vmatpush3.bf16.msra.mxu1 %v6624_v35  ;;  %v6688_v9 = vld [vmem:[#allocation2 + $0x4c] sm:$0xf]  ;;  %v6689_v38 = vld [vmem:[#allocation2 + $0x50] sm:$0x1] }
 0x124   : > { %v5336_v15 = vcombine.low %v1371_v54, %v1374_v31  ;;  %v3604_v44 = vrot.slane %v3602_v5, 4  ;;  %v3607_v29 = vrot.slane %v3605_v50, 5  ;;  %v3615_v16 = vshrl.u32 %v7961_v33, 16  ;;  %6298 = vmatprep.subr.bf16.mxu1 %v6626_v0  ;;  %v6691_v50 = vld [vmem:[#allocation2 + $0x5c] sm:$0x1] }
 0x125   : > { %6077 = vmatpush3.bf16.msra.mxu0 %v6621_v4  ;;  %v7982_v7 = vsel %vm6936_vm5, %v1379_v57, %v1380_v27  ;;  %v3621_v63 = vshll.u32 %v7967_v14, 16  ;;  %v3600_v60 = vsel %vm6988_vm8, %v3595_v10, %v3599_v3  ;;  %v5478_v61 = vcombine.low %v7948_v55, %v7961_v33  ;;  %v1280_v4 = vld [vmem:[#allocation2 + $0x54] sm:$0xe]  ;;  %v6690_v27 = vld [vmem:[#allocation2 + $0x58] sm:$0xf] }
 0x126   : > { %v5337_v35 = vcombine.low %v7978_v32, %v7982_v7  ;;  %v3608_v48 = vor.u32 %v3607_v29, %v3604_v44  ;;  %6267 = vmatmul.mubr.bf16.gmra.mrb[84].mxu1 %v5335_v30  ;;  %v5493_v25 = vcombine.low %v3590_v46, %v3600_v60  ;;  %v3613_v51 = vrot.slane %v3611_v42, 5  ;;  %v8001_v31 = vld [vmem:[#allocation2 + $0x40] sm:$0xf]  ;;  %v8015_v29 = vld [vmem:[#allocation2 + $0x44] sm:$0x1] }
 0x127   : > { %v3617_v49 = vrot.slane %v3615_v16, 4  ;;  %v3623_v22 = vrot.slane %v3621_v63, 5  ;;  %6270 = vmatprep.mubr.bf16.mxu1 %v5336_v15  ;;  %v5290_v54 = vrot.slane %v1279_v12, 9  ;;  %v1384_v59 = vrot.slane %v6688_v9, 5  ;;  %6299 = vmatpush3.bf16.msra.mxu1 %v6626_v0  ;;  %v6630_v0 = vld [vmem:[%s8740_s1 + $0x220] sm:$0xff]  }
 0x128   : > { %4546 = vmatmul.mubr.bf16.vlgmr.msra.gmra.mrb[80].mxu0 %v5476_v62  ;;  %v3609_v3 = vrot.slane %v3608_v48, 4  ;;  %v1387_v18 = vrot.slane %v6689_v38, 5  ;;  %v5291_v30 = vrot.slane %v1280_v4, 9  ;;  %v1391_v5 = vrot.slane %v6690_v27, 5  ;;  %6300 = vmatprep.subr.bf16.mxu1 %v6628_v28  ;;  %v1281_v60 = vld [vmem:[#allocation2 + $0x60] sm:$0xe] }
 0x129   : > { %4553 = vmatprep.mubr.bf16.mxu0 %v5493_v25  ;;  %v3618_v20 = vor.u32 %v3617_v49, %v3613_v51  ;;  %v1394_v46 = vrot.slane %v6691_v50, 5  ;;  %v1385_v62 = vsel %vm6936_vm5, %v5290_v54, %v1384_v59  ;;  %v1386_v32 = vrot.slane %v1384_v59, 4  ;;  %v1282_v49 = vld [vmem:[#allocation2 + $0x6c] sm:$0xe]  ;;  %v8038_v27 = vld [vmem:[#allocation2 + $0x48] sm:$0xf] }
 0x12a   : > { %v3614_v19 = vsel %vm6988_vm8, %v3609_v3, %v3613_v51  ;;  %v3626_v57 = vshrl.u32 %v7996_v26, 16  ;;  %v8013_v15 = vsel %vm6936_vm5, %v5291_v30, %v1391_v5  ;;  %v1393_v44 = vrot.slane %v1391_v5, 4  ;;  %v6632_v38 = vld [vmem:[%s8740_s1 + $0x228] sm:$0xff]  }
 0x12b   : > { %v3619_v10 = vrot.slane %v3618_v20, 4  ;;  %v3629_v7 = vshll.u32 %v7996_v26, 16  ;;  %v1388_v42 = vsel %vm6936_vm5, %v1386_v32, %v1387_v18  ;;  %v3635_v63 = vshll.u32 %v8001_v31, 16  ;;  %6301 = vmatpush3.bf16.msra.mxu1 %v6628_v28 }
 0x12c   : > { %v3628_v16 = vrot.slane %v3626_v57, 4  ;;  %v3639_v12 = vshrl.u32 %v8001_v31, 16  ;;  %v5338_v4 = vcombine.low %v1385_v62, %v1388_v42  ;;  %v8026_v25 = vsel %vm6936_vm5, %v1393_v44, %v1394_v46  ;;  %6302 = vmatprep.subr.bf16.mxu1 %v6630_v0  ;;  %v6692_v46 = vld [vmem:[#allocation2 + $0x64] sm:$0xf]  ;;  %v8045_v57 = vld [vmem:[#allocation2 + $0x4c] sm:$0xf] }
 0x12d   : > { %v3624_v48 = vsel %vm6988_vm8, %v3619_v10, %v3623_v22  ;;  %v3631_v51 = vrot.slane %v3629_v7, 5  ;;  %v5339_v54 = vcombine.low %v8013_v15, %v8026_v25  ;;  %v3637_v9 = vrot.slane %v3635_v63, 5  ;;  %v8033_v22 = vpop.f32.mrb[4].mxu0  ;;  %v6694_v7 = vld [vmem:[#allocation2 + $0x70] sm:$0xf] }
 0x12e   : > { %v5494_v3 = vcombine.low %v3614_v19, %v3624_v48  ;;  %v3641_v59 = vrot.slane %v3639_v12, 4  ;;  %6271 = vmatmul.mubr.bf16.gmra.mrb[88].mxu1 %v5337_v35  ;;  %v3645_v20 = vshll.u32 %v8015_v29, 16  ;;  %v5479_v28 = vcombine.low %v7996_v26, %v8001_v31  ;;  %v8040_v5 = vpop.f32.mrb[5].mxu0  ;;  %v6693_v35 = vld [vmem:[#allocation2 + $0x68] sm:$0x1] }
 0x12f   : > { %v3632_v18 = vor.u32 %v3631_v51, %v3628_v16  ;;  %v5292_v30 = vrot.slane %v1281_v60, 9  ;;  %6274 = vmatprep.mubr.bf16.mxu1 %v5338_v4  ;;  %v1398_v19 = vrot.slane %v6692_v46, 5  ;;  %v1401_v62 = vrot.slane %v6693_v35, 5  ;;  %v8047_v10 = vpop.f32.mrb[6].mxu0  ;;  %v6695_v16 = vld [vmem:[#allocation2 + $0x74] sm:$0x1]  ;;  %6303 = vmatpush3.bf16.msra.mxu1 %v6630_v0 }
 0x130   : > { %4554 = vmatmul.mubr.bf16.gmra.mrb[84].mxu0 %v5477_v52  ;;  %v3642_v50 = vor.u32 %v3641_v59, %v3637_v9  ;;  %v5293_v32 = vrot.slane %v1282_v49, 9  ;;  %v3647_v44 = vrot.slane %v3645_v20, 5  ;;  %v1405_v42 = vrot.slane %v6694_v7, 5  ;;  %v8049_v24 = vpop.f32.mrb[7].mxu0  ;;  %6304 = vmatprep.subr.bf16.mxu1 %v6632_v38  ;;  %v6634_v4 = vld [vmem:[%s8740_s1 + $0x230] sm:$0xff]  }
 0x131   : > { %4561 = vmatprep.mubr.bf16.mxu0 %v5494_v3  ;;  %v3633_v15 = vrot.slane %v3632_v18, 4  ;;  %v1408_v63 = vrot.slane %v6695_v16, 5  ;;  %v1399_v12 = vsel %vm6936_vm5, %v5292_v30, %v1398_v19  ;;  %v1400_v60 = vrot.slane %v1398_v19, 4  ;;  %v8063_v49 = vld [vmem:[#allocation2 + $0x50] sm:$0x1] }
 0x132   : > { %v3643_v52 = vrot.slane %v3642_v50, 4  ;;  %v3650_v48 = vshrl.u32 %v8038_v27, 16  ;;  %v8061_v0 = vsel %vm6936_vm5, %v5293_v32, %v1405_v42  ;;  %v1407_v51 = vrot.slane %v1405_v42, 4  ;;  %v1283_v50 = vld [vmem:[#allocation2 + $0x78] sm:$0xe] }
 0x133   : > { %v3638_v25 = vsel %vm6988_vm8, %v3633_v15, %v3637_v9  ;;  %v3653_v3 = vshll.u32 %v8038_v27, 16  ;;  %v1402_v18 = vsel %vm6936_vm5, %v1400_v60, %v1401_v62  ;;  %v3659_v30 = vshll.u32 %v8045_v57, 16  ;;  %v1284_v32 = vld [vmem:[#allocation2 + $0x84] sm:$0xe]  ;;  %6305 = vmatpush3.bf16.msra.mxu1 %v6632_v38  ;;  %v6636_v62 = vld [vmem:[%s8740_s1 + $0x238] sm:$0xff]  }
 0x134   : > { %v3648_v59 = vsel %vm6988_vm8, %v3643_v52, %v3647_v44  ;;  %v3652_v20 = vrot.slane %v3650_v48, 4  ;;  %v5340_v46 = vcombine.low %v1399_v12, %v1402_v18  ;;  %v1409_v19 = vsel %vm6936_vm5, %v1407_v51, %v1408_v63  ;;  %6306 = vmatprep.subr.bf16.mxu1 %v6634_v4  ;;  %v6696_v12 = vld [vmem:[#allocation2 + $0x7c] sm:$0xf]  ;;  %v8081_v60 = vld [vmem:[#allocation2 + $0x54] sm:$0xf] }
 0x135   : > { %v5495_v9 = vcombine.low %v3638_v25, %v3648_v59  ;;  %v3655_v35 = vrot.slane %v3653_v3, 5  ;;  %v5341_v15 = vcombine.low %v8061_v0, %v1409_v19  ;;  %v3661_v7 = vrot.slane %v3659_v30, 5  ;;  %v6697_v0 = vld [vmem:[#allocation2 + $0x80] sm:$0x1]  ;;  %v8089_v30 = vld [vmem:[#allocation2 + $0x58] sm:$0xf] }
 0x136   : > { %v3663_v44 = vshrl.u32 %v8045_v57, 16  ;;  %v3669_v42 = vshll.u32 %v8063_v49, 16  ;;  %6275 = vmatmul.mubr.bf16.gmra.mrb[92].mxu1 %v5339_v54  ;;  %v5480_v63 = vcombine.low %v8038_v27, %v8045_v57  ;;  %v5294_v52 = vrot.slane %v1283_v50, 9 }
 0x137   : > { %v3656_v16 = vor.u32 %v3655_v35, %v3652_v20  ;;  %v1412_v38 = vrot.slane %v6696_v12, 5  ;;  %6278 = vmatprep.mubr.bf16.mxu1 %v5340_v46  ;;  %v1415_v51 = vrot.slane %v6697_v0, 5  ;;  %v5295_v3 = vrot.slane %v1284_v32, 9  ;;  %6307 = vmatpush3.bf16.msra.mxu1 %v6634_v4 }
 0x138   : > { %4562 = vmatmul.mubr.bf16.gmra.mrb[88].mxu0 %v5478_v61  ;;  %v3665_v48 = vrot.slane %v3663_v44, 4  ;;  %v3671_v25 = vrot.slane %v3669_v42, 5  ;;  %v1419_v20 = vrot.slane %v7624_v6, 5  ;;  %v1422_v55 = vrot.slane %v7631_v2, 5  ;;  %v8092_v61 = vld [vmem:[#allocation2 + $0x5c] sm:$0x1]  ;;  %6308 = vmatprep.subr.bf16.mxu1 %v6636_v62 }
 0x139   : > { %4569 = vmatprep.mubr.bf16.mxu0 %v5495_v9  ;;  %v3657_v54 = vrot.slane %v3656_v16, 4  ;;  %v1413_v59 = vsel %vm6936_vm5, %v5294_v52, %v1412_v38  ;;  %v1414_v18 = vrot.slane %v1412_v38, 4  ;;  %v3674_v46 = vshrl.u32 %v8081_v60, 16  ;;  %v1285_v38 = vld [vmem:[#allocation2 + $0x90] sm:$0xe] }
 0x13a   : > { %v3666_v50 = vor.u32 %v3665_v48, %v3661_v7  ;;  %v3677_v19 = vshll.u32 %v8081_v60, 16  ;;  %v1420_v6 = vsel %vm6936_vm5, %v5295_v3, %v1419_v20  ;;  %v1421_v4 = vrot.slane %v1419_v20, 4 }
 0x13b   : > { %v3662_v9 = vsel %vm6988_vm8, %v3657_v54, %v3661_v7  ;;  %v1416_v35 = vsel %vm6936_vm5, %v1414_v18, %v1415_v51  ;;  %v3676_v2 = vrot.slane %v3674_v46, 4  ;;  %v3683_v52 = vshll.u32 %v8089_v30, 16  ;;  %6309 = vmatpush3.bf16.msra.mxu1 %v6636_v62  ;;  %v1286_v54 = vld [vmem:[#allocation2 + $0x9c] sm:$0xe] }
 0x13c   : > { %v3667_v32 = vrot.slane %v3666_v50, 4  ;;  %v5342_v44 = vcombine.low %v1413_v59, %v1416_v35  ;;  %v3679_v42 = vrot.slane %v3677_v19, 5  ;;  %v1423_v16 = vsel %vm6936_vm5, %v1421_v4, %v1422_v55  ;;  %v8111_v55 = vld [vmem:[#allocation2 + $0x60] sm:$0xf]  ;;  %v8120_v4 = vld [vmem:[#allocation2 + $0x64] sm:$0xf] }
 0x13d   : > { %v3687_v12 = vshrl.u32 %v8089_v30, 16  ;;  %v3693_v7 = vshll.u32 %v8092_v61, 16  ;;  %v5343_v0 = vcombine.low %v1420_v6, %v1423_v16  ;;  %v5481_v3 = vcombine.low %v8081_v60, %v8089_v30 }
 0x13e   : > { %v3672_v48 = vsel %vm6988_vm8, %v3667_v32, %v3671_v25  ;;  %v3680_v51 = vor.u32 %v3679_v42, %v3676_v2  ;;  %6279 = vmatmul.mubr.bf16.gmra.mrb[0].mxu1 %v5341_v15  ;;  %v3685_v18 = vrot.slane %v3683_v52, 5  ;;  %v5296_v25 = vrot.slane %v1285_v38, 9 }
 0x13f   : > { %v5496_v59 = vcombine.low %v3662_v9, %v3672_v48  ;;  %v3689_v20 = vrot.slane %v3687_v12, 4  ;;  %v3695_v50 = vrot.slane %v3693_v7, 5  ;;  %6282 = vmatprep.mubr.bf16.mxu1 %v5342_v44  ;;  %v1426_v46 = vrot.slane %v7658_v43, 5  ;;  %v1287_v7 = vld [vmem:[#allocation2 + $0xa8] sm:$0xe] }
 0x140   : > { %4570 = vmatmul.mubr.bf16.gmra.mrb[92].mxu0 %v5479_v28  ;;  %v3681_v62 = vrot.slane %v3680_v51, 4  ;;  %v1429_v19 = vrot.slane %v7664_v37, 5  ;;  %v5297_v15 = vrot.slane %v1286_v54, 9  ;;  %v1433_v9 = vrot.slane %v7684_v13, 5  ;;  %v8131_v13 = vld [vmem:[#allocation2 + $0x68] sm:$0x1] }
 0x141   : > { %4577 = vmatprep.mubr.bf16.mxu0 %v5496_v59  ;;  %v3690_v35 = vor.u32 %v3689_v20, %v3685_v18  ;;  %v1436_v6 = vrot.slane %v7689_v39, 5  ;;  %v1427_v28 = vsel %vm6936_vm5, %v5296_v25, %v1426_v46  ;;  %v1428_v32 = vrot.slane %v1426_v46, 4  ;;  %v1288_v25 = vld [vmem:[#allocation2 + $0xb4] sm:$0xe] }
 0x142   : > { %v3686_v26 = vsel %vm6988_vm8, %v3681_v62, %v3685_v18  ;;  %v3698_v43 = vshrl.u32 %v8111_v55, 16  ;;  %v8129_v37 = vsel %vm6936_vm5, %v5297_v15, %v1433_v9  ;;  %v1435_v2 = vrot.slane %v1433_v9, 4 }
 0x143   : > { %v3691_v44 = vrot.slane %v3690_v35, 4  ;;  %v3701_v39 = vshll.u32 %v8111_v55, 16  ;;  %v1430_v42 = vsel %vm6936_vm5, %v1428_v32, %v1429_v19  ;;  %v3707_v52 = vshll.u32 %v8120_v4, 16 }
 0x144   : > { %v3700_v16 = vrot.slane %v3698_v43, 4  ;;  %v3711_v12 = vshrl.u32 %v8120_v4, 16  ;;  %v5344_v48 = vcombine.low %v1427_v28, %v1430_v42  ;;  %v1437_v51 = vsel %vm6936_vm5, %v1435_v2, %v1436_v6  ;;  %v8157_v28 = vld [vmem:[#allocation2 + $0x6c] sm:$0xf] }
 0x145   : > { %v3696_v38 = vsel %vm6988_vm8, %v3691_v44, %v3695_v50  ;;  %v3703_v54 = vrot.slane %v3701_v39, 5  ;;  %v5345_v18 = vcombine.low %v8129_v37, %v1437_v51  ;;  %v3709_v20 = vrot.slane %v3707_v52, 5  ;;  %v3937_v51 = vld [vmem:[#allocation2 + $0x18] sm:$0xe] }
 0x146   : > { %v5497_v59 = vcombine.low %v3686_v26, %v3696_v38  ;;  %v3713_v62 = vrot.slane %v3711_v12, 4  ;;  %6283 = vmatmul.mubr.bf16.gmra.mrb[4].mxu1 %v5343_v0  ;;  %v3717_v19 = vshll.u32 %v8131_v13, 16  ;;  %v5482_v35 = vcombine.low %v8111_v55, %v8120_v4  ;;  %v8146_v50 = vpop.f32.mrb[8].mxu0 }
 0x147   : > { %v3704_v46 = vor.u32 %v3703_v54, %v3700_v16  ;;  %v5298_v15 = vrot.slane %v1287_v7, 9  ;;  %6286 = vmatprep.mubr.bf16.mxu1 %v5344_v48  ;;  %v1440_v6 = vrot.slane %v7722_v8, 5  ;;  %v1443_v26 = vrot.slane %v7740_v11, 5  ;;  %v8159_v32 = vpop.f32.mrb[9].mxu0  ;;  %v8183_v7 = vld [vmem:[#allocation2 + $0x74] sm:$0x1] }
 0x148   : > { %4578 = vmatmul.mubr.bf16.gmra.mrb[96].mxu0 %v5480_v63  ;;  %v3714_v9 = vor.u32 %v3713_v62, %v3709_v20  ;;  %v8155_v0 = vadd.f32 %v7920_v53, %v7913_v47  ;;  %v3719_v44 = vrot.slane %v3717_v19, 5  ;;  %v5299_v37 = vrot.slane %v1288_v25, 9  ;;  %v8162_v63 = vpop.f32.mrb[10].mxu0  ;;  %v8167_v53 = vld [vmem:[#allocation2 + $0x70] sm:$0xf] }
 0x149   : > { %4585 = vmatprep.mubr.bf16.mxu0 %v5497_v59  ;;  %v3705_v43 = vrot.slane %v3704_v46, 4  ;;  %v1447_v27 = vrot.slane %v7762_v36, 5  ;;  %v1441_v8 = vsel %vm6936_vm5, %v5298_v15, %v1440_v6  ;;  %v1442_v11 = vrot.slane %v1440_v6, 4  ;;  %v8169_v39 = vpop.f32.mrb[11].mxu0  ;;  %v3938_v19 = vld [vmem:[#allocation2 + $0x24] sm:$0xe] }
 0x14a   : > { %v3715_v2 = vrot.slane %v3714_v9, 4  ;;  %v1450_v47 = vrot.slane %v7776_v41, 5  ;;  %v8177_v52 = vadd.f32 %v7941_v23, %v7931_v1  ;;  %v3722_v38 = vshrl.u32 %v8157_v28, 16 }
 0x14b   : > { %v3710_v42 = vsel %vm6988_vm8, %v3705_v43, %v3709_v20  ;;  %v1448_v16 = vsel %vm6936_vm5, %v5299_v37, %v1447_v27  ;;  %v1449_v36 = vrot.slane %v1447_v27, 4  ;;  %v1444_v41 = vsel %vm6936_vm5, %v1442_v11, %v1443_v26 }
 0x14c   : > { %v3720_v12 = vsel %vm6988_vm8, %v3715_v2, %v3719_v44  ;;  %v3725_v48 = vshll.u32 %v8157_v28, 16  ;;  %v5346_v59 = vcombine.low %v1441_v8, %v1444_v41  ;;  %v3731_v1 = vshll.u32 %v8167_v53, 16  ;;  %v8199_v2 = vld [vmem:[#allocation2 + $0x78] sm:$0xf] }
 0x14d   : > { %v5498_v54 = vcombine.low %v3710_v42, %v3720_v12  ;;  %v1451_v20 = vsel %vm6936_vm5, %v1449_v36, %v1450_v47  ;;  %v3724_v62 = vrot.slane %v3722_v38, 4  ;;  %v3735_v46 = vshrl.u32 %v8167_v53, 16  ;;  %v8223_v38 = vld [vmem:[#allocation2 + $0x80] sm:$0x1] }
 0x14e   : > { %v5347_v23 = vcombine.low %v1448_v16, %v1451_v20  ;;  %v3727_v25 = vrot.slane %v3725_v48, 5  ;;  %6287 = vmatmul.mubr.bf16.gmra.mrb[8].mxu1 %v5345_v18  ;;  %v3733_v15 = vrot.slane %v3731_v1, 5  ;;  %v3741_v9 = vshll.u32 %v8183_v7, 16 }
 0x14f   : > { %v5483_v6 = vcombine.low %v8157_v28, %v8167_v53  ;;  %v5460_v26 = vrot.slane %v3937_v51, 9  ;;  %6290 = vmatprep.mubr.bf16.mxu1 %v5346_v59  ;;  %v3737_v44 = vrot.slane %v3735_v46, 4  ;;  %v4003_v37 = vrot.slane %v7842_v45, 5  ;;  %v8208_v45 = vld [vmem:[#allocation2 + $0x7c] sm:$0xf] }
 0x150   : > { %4586 = vmatmul.mubr.bf16.gmra.mrb[100].mxu0 %v5481_v3  ;;  %v3728_v43 = vor.u32 %v3727_v25, %v3724_v62  ;;  %v4006_v27 = vrot.slane %v7853_v40, 5  ;;  %v3743_v18 = vrot.slane %v3741_v9, 5  ;;  %v8203_v8 = vadd.f32 %v8040_v5, %v8033_v22  ;;  %v3939_v59 = vld [vmem:[#allocation2 + $0x30] sm:$0xe]  ;;  %v3940_v46 = vld [vmem:[#allocation2 + $0x3c] sm:$0xe] }
 0x151   : > { %4593 = vmatprep.mubr.bf16.mxu0 %v5498_v54  ;;  %v5461_v11 = vrot.slane %v3938_v19, 9  ;;  %v4010_v47 = vrot.slane %v7890_v58, 5  ;;  %v3738_v3 = vor.u32 %v3737_v44, %v3733_v15  ;;  %v4004_v42 = vsel %vm6936_vm5, %v5460_v26, %v4003_v37 }
 0x152   : > { %v3729_v60 = vrot.slane %v3728_v43, 4  ;;  %v4005_v16 = vrot.slane %v4003_v37, 4  ;;  %v8216_v22 = vadd.f32 %v8049_v24, %v8047_v10  ;;  %v3746_v5 = vshrl.u32 %v8199_v2, 16 }
 0x153   : > { %v8212_v40 = vsel %vm6936_vm5, %v5461_v11, %v4010_v47  ;;  %v4012_v36 = vrot.slane %v4010_v47, 4  ;;  %v3739_v12 = vrot.slane %v3738_v3, 4  ;;  %v3749_v48 = vshll.u32 %v8199_v2, 16 }
 0x154   : > { %v3734_v58 = vsel %vm6988_vm8, %v3729_v60, %v3733_v15  ;;  %v4007_v41 = vsel %vm6936_vm5, %v4005_v16, %v4006_v27  ;;  %v3748_v24 = vrot.slane %v3746_v5, 4  ;;  %v3755_v54 = vshll.u32 %v8208_v45, 16  ;;  %v8265_v5 = vld [vmem:[#allocation2 + $0x88] sm:$0xf] }
 0x155   : > { %v5508_v51 = vcombine.low %v4004_v42, %v4007_v41  ;;  %v4014_v10 = vsel %vm6936_vm5, %v4012_v36, %v4013_v56  ;;  %v3744_v20 = vsel %vm6988_vm8, %v3739_v12, %v3743_v18  ;;  %v3751_v62 = vrot.slane %v3749_v48, 5  ;;  %v8235_v19 = vpop.f32.mrb[16].mxu1  ;;  %v8272_v48 = vld [vmem:[#allocation2 + $0x8c] sm:$0x1] }
 0x156   : > { %v5509_v1 = vcombine.low %v8212_v40, %v4014_v10  ;;  %v3759_v25 = vshrl.u32 %v8208_v45, 16  ;;  %6291 = vmatmul.mubr.bf16.gmra.mrb[12].mxu1 %v5347_v23  ;;  %v5499_v21 = vcombine.low %v3734_v58, %v3744_v20  ;;  %v3757_v15 = vrot.slane %v3755_v54, 5  ;;  %v8240_v26 = vpop.f32.mrb[17].mxu1  ;;  %v8246_v23 = vld [vmem:[#allocation2 + $0x84] sm:$0xf] }
 0x157   : > { %v3765_v56 = vshll.u32 %v8223_v38, 16  ;;  %v5484_v9 = vcombine.low %v8199_v2, %v8208_v45  ;;  %6310 = vmatprep.mubr.bf16.mxu1 %v5508_v51  ;;  %v3752_v43 = vor.u32 %v3751_v62, %v3748_v24  ;;  %v5462_v37 = vrot.slane %v3939_v59, 9  ;;  %v8248_v18 = vpop.f32.mrb[18].mxu1  ;;  %v3941_v24 = vld [vmem:[#allocation2 + $0x48] sm:$0xe] }
 0x158   : > { %4594 = vmatmul.mubr.bf16.gmra.mrb[104].mxu0 %v5482_v35  ;;  %v3761_v44 = vrot.slane %v3759_v25, 4  ;;  %v4017_v27 = vrot.slane %v7961_v33, 5  ;;  %v4020_v47 = vrot.slane %v7967_v14, 5  ;;  %v8253_v60 = vadd.f32 %v8159_v32, %v8146_v50  ;;  %v8255_v35 = vpop.f32.mrb[19].mxu1 }
 0x159   : > { %4601 = vmatprep.mubr.bf16.mxu0 %v5499_v21  ;;  %v3767_v11 = vrot.slane %v3765_v56, 5  ;;  %v5463_v55 = vrot.slane %v3940_v46, 9  ;;  %v3753_v3 = vrot.slane %v3752_v43, 4  ;;  %v4024_v40 = vrot.slane %v8001_v31, 5 }
 0x15a   : > { %v3762_v42 = vor.u32 %v3761_v44, %v3757_v15  ;;  %v4018_v33 = vsel %vm6936_vm5, %v5462_v37, %v4017_v27  ;;  %v4019_v16 = vrot.slane %v4017_v27, 4  ;;  %v4027_v36 = vrot.slane %v8015_v29, 5  ;;  %v5824_v32 = vpop.f32.mrb[12].mxu0  ;;  %v3942_v37 = vld [vmem:[#allocation2 + $0x54] sm:$0xe] }
 0x15b   : > { %v8263_v14 = vadd.f32 %v8169_v39, %v8162_v63  ;;  %v3770_v50 = vshrl.u32 %v8246_v23, 16  ;;  %v3758_v58 = vsel %vm6988_vm8, %v3753_v3, %v3757_v15  ;;  %v3773_v31 = vshll.u32 %v8246_v23, 16  ;;  %v5825_v29 = vpop.f32.mrb[13].mxu0  ;;  %v8293_v3 = vld [vmem:[#allocation2 + $0x90] sm:$0xf] }
 0x15c   : > { %v3763_v12 = vrot.slane %v3762_v42, 4  ;;  %v4021_v41 = vsel %vm6936_vm5, %v4019_v16, %v4020_v47  ;;  %v4025_v63 = vsel %vm6936_vm5, %v5463_v55, %v4024_v40  ;;  %v4026_v39 = vrot.slane %v4024_v40, 4  ;;  %v5827_v54 = vpop.f32.mrb[14].mxu0 }
 0x15d   : > { %v5510_v51 = vcombine.low %v4018_v33, %v4021_v41  ;;  %v3772_v10 = vrot.slane %v3770_v50, 4  ;;  %v3775_v20 = vrot.slane %v3773_v31, 5  ;;  %v3779_v62 = vshll.u32 %v8265_v5, 16  ;;  %v5828_v46 = vpop.f32.mrb[15].mxu0  ;;  %v8281_v21 = vpop.f32.mrb[20].mxu1 }
 0x15e   : > { %v3768_v59 = vsel %vm6988_vm8, %v3763_v12, %v3767_v11  ;;  %v3783_v25 = vshrl.u32 %v8265_v5, 16  ;;  %6311 = vmatmul.mubr.bf16.vlgmr.msra.gmra.mrb[80].mxu1 %v5509_v1  ;;  %v4028_v56 = vsel %vm6936_vm5, %v4026_v39, %v4027_v36  ;;  %v3789_v43 = vshll.u32 %v8272_v48, 16  ;;  %v8288_v27 = vpop.f32.mrb[21].mxu1  ;;  %v8307_v39 = vld [vmem:[#allocation2 + $0x94] sm:$0xf] }
 0x15f   : > { %v5500_v15 = vcombine.low %v3758_v58, %v3768_v59  ;;  %v5485_v44 = vcombine.low %v8246_v23, %v8265_v5  ;;  %6314 = vmatprep.mubr.bf16.mxu1 %v5510_v51  ;;  %v5511_v11 = vcombine.low %v4025_v63, %v4028_v56  ;;  %v3776_v47 = vor.u32 %v3775_v20, %v3772_v10  ;;  %v8295_v42 = vpop.f32.mrb[22].mxu1 }
 0x160   : > { %4602 = vmatmul.mubr.bf16.gmra.mrb[108].mxu0 %v5483_v6  ;;  %v3781_v1 = vrot.slane %v3779_v62, 5  ;;  %v3785_v55 = vrot.slane %v3783_v25, 4  ;;  %v3791_v33 = vrot.slane %v3789_v43, 5  ;;  %v5464_v16 = vrot.slane %v3941_v24, 9  ;;  %v8299_v50 = vpop.f32.mrb[23].mxu1 }
 0x161   : > { %4609 = vmatprep.mubr.bf16.mxu0 %v5500_v15  ;;  %v4031_v40 = vrot.slane %v8045_v57, 5  ;;  %v4034_v36 = vrot.slane %v8063_v49, 5  ;;  %v3777_v28 = vrot.slane %v3776_v47, 4  ;;  %v8301_v58 = vadd.f32 %v5825_v29, %v5824_v32  ;;  %v3943_v47 = vld [vmem:[#allocation2 + $0x60] sm:$0xe] }
 0x162   : > { %v3786_v6 = vor.u32 %v3785_v55, %v3781_v1  ;;  %v5465_v12 = vrot.slane %v3942_v37, 9  ;;  %v4038_v51 = vrot.slane %v8089_v30, 5  ;;  %v4041_v63 = vrot.slane %v8092_v61, 5  ;;  %v8318_v30 = vld [vmem:[#allocation2 + $0x98] sm:$0x1] }
 0x163   : > { %v4032_v41 = vsel %vm6936_vm5, %v5464_v16, %v4031_v40  ;;  %v4033_v31 = vrot.slane %v4031_v40, 4  ;;  %v3782_v57 = vsel %vm6988_vm8, %v3777_v28, %v3781_v1  ;;  %v8311_v10 = vadd.f32 %v5828_v46, %v5827_v54  ;;  %v3944_v40 = vld [vmem:[#allocation2 + $0x6c] sm:$0xe] }
 0x164   : > { %v3787_v49 = vrot.slane %v3786_v6, 4  ;;  %v3794_v32 = vshrl.u32 %v8293_v3, 16  ;;  %v4039_v24 = vsel %vm6936_vm5, %v5465_v12, %v4038_v51  ;;  %v4040_v59 = vrot.slane %v4038_v51, 4 }
 0x165   : > { %v4035_v29 = vsel %vm6936_vm5, %v4033_v31, %v4034_v36  ;;  %v3797_v61 = vshll.u32 %v8293_v3, 16  ;;  %v3803_v54 = vshll.u32 %v8307_v39, 16  ;;  %v8324_v46 = vpop.f32.mrb[24].mxu1  ;;  %v3807_v37 = vshrl.u32 %v8307_v39, 16 }
 0x166   : > { %v3792_v20 = vsel %vm6988_vm8, %v3787_v49, %v3791_v33  ;;  %v5512_v62 = vcombine.low %v4032_v41, %v4035_v29  ;;  %v3796_v25 = vrot.slane %v3794_v32, 4  ;;  %6315 = vmatmul.mubr.bf16.gmra.mrb[84].mxu1 %v5511_v11  ;;  %v4042_v56 = vsel %vm6936_vm5, %v4040_v59, %v4041_v63  ;;  %v8329_v1 = vpop.f32.mrb[25].mxu1 }
 0x167   : > { %v5501_v15 = vcombine.low %v3782_v57, %v3792_v20  ;;  %v3799_v43 = vrot.slane %v3797_v61, 5  ;;  %v5513_v55 = vcombine.low %v4039_v24, %v4042_v56  ;;  %v3805_v33 = vrot.slane %v3803_v54, 5  ;;  %v8337_v36 = vpop.f32.mrb[26].mxu1  ;;  %v8357_v61 = vld [vmem:[#allocation2 + $0xa0] sm:$0xf] }
 0x168   : > { %4610 = vmatmul.mubr.bf16.gmra.mrb[112].mxu0 %v5484_v9  ;;  %6318 = vmatprep.mubr.bf16.mxu1 %v5512_v62  ;;  %v3813_v16 = vshll.u32 %v8318_v30, 16  ;;  %v5486_v11 = vcombine.low %v8293_v3, %v8307_v39  ;;  %v3809_v6 = vrot.slane %v3807_v37, 4  ;;  %v8341_v12 = vadd.f32 %v8240_v26, %v8235_v19  ;;  %v8347_v9 = vld [vmem:[#allocation2 + $0x9c] sm:$0xf]  ;;  %v8349_v41 = vpop.f32.mrb[27].mxu1 }
 0x169   : > { %4617 = vmatprep.mubr.bf16.mxu0 %v5501_v15  ;;  %v3800_v28 = vor.u32 %v3799_v43, %v3796_v25  ;;  %v8345_v2 = vadd.f32 %v8255_v35, %v8248_v18  ;;  %v5466_v51 = vrot.slane %v3943_v47, 9  ;;  %v4045_v63 = vrot.slane %v8120_v4, 5 }
 0x16a   : > { %v3815_v31 = vrot.slane %v3813_v16, 5  ;;  %v4048_v57 = vrot.slane %v8131_v13, 5  ;;  %v3810_v32 = vor.u32 %v3809_v6, %v3805_v33  ;;  %v5830_v29 = vpop.f32.mrb[16].mxu0  ;;  %v5467_v24 = vrot.slane %v3944_v40, 9 }
 0x16b   : > { %v3801_v49 = vrot.slane %v3800_v28, 4  ;;  %v4052_v19 = vrot.slane %v8167_v53, 5  ;;  %v4046_v26 = vsel %vm6936_vm5, %v5466_v51, %v4045_v63  ;;  %v4047_v18 = vrot.slane %v4045_v63, 4  ;;  %v5831_v35 = vpop.f32.mrb[17].mxu0 }
 0x16c   : > { %v4055_v59 = vrot.slane %v8183_v7, 5  ;;  %v3818_v20 = vshrl.u32 %v8347_v9, 16  ;;  %v3811_v13 = vrot.slane %v3810_v32, 4  ;;  %v8362_v62 = vadd.f32 %v5831_v35, %v5830_v29  ;;  %v5833_v25 = vpop.f32.mrb[18].mxu0  ;;  %v8368_v7 = vld [vmem:[#allocation2 + $0xa4] sm:$0x1] }
 0x16d   : > { %v3806_v4 = vsel %vm6988_vm8, %v3801_v49, %v3805_v33  ;;  %v4053_v53 = vsel %vm6936_vm5, %v5467_v24, %v4052_v19  ;;  %v4049_v54 = vsel %vm6936_vm5, %v4047_v18, %v4048_v57  ;;  %v4054_v15 = vrot.slane %v4052_v19, 4  ;;  %v5834_v56 = vpop.f32.mrb[19].mxu0  ;;  %v3946_v29 = vld [vmem:[#allocation2 + $0x84] sm:$0xe] }
 0x16e   : > { %v3820_v43 = vrot.slane %v3818_v20, 4  ;;  %v3821_v37 = vshll.u32 %v8347_v9, 16  ;;  %6319 = vmatmul.mubr.bf16.gmra.mrb[88].mxu1 %v5513_v55  ;;  %v3816_v47 = vsel %vm6988_vm8, %v3811_v13, %v3815_v31  ;;  %v5514_v33 = vcombine.low %v4046_v26, %v4049_v54  ;;  %v3945_v55 = vld [vmem:[#allocation2 + $0x78] sm:$0xe]  ;;  %v8393_v26 = vld [vmem:[#allocation2 + $0xa8] sm:$0xf] }
 0x16f   : > { %v8373_v16 = vadd.f32 %v5834_v56, %v5833_v25  ;;  %v3827_v40 = vshll.u32 %v8357_v61, 16  ;;  %v5502_v28 = vcombine.low %v3806_v4, %v3816_v47  ;;  %v4056_v6 = vsel %vm6936_vm5, %v4054_v15, %v4055_v59  ;;  %v8398_v54 = vld [vmem:[#allocation2 + $0xac] sm:$0xf] }
 0x170   : > { %4618 = vmatmul.mubr.bf16.gmra.mrb[116].mxu0 %v5485_v44  ;;  %v3823_v51 = vrot.slane %v3821_v37, 5  ;;  %v3831_v63 = vshrl.u32 %v8357_v61, 16  ;;  %6322 = vmatprep.mubr.bf16.mxu1 %v5514_v33  ;;  %v5515_v57 = vcombine.low %v4053_v53, %v4056_v6  ;;  %v3837_v49 = vshll.u32 %v8368_v7, 16  ;;  %v8416_v33 = vld [vmem:[#allocation2 + $0xb0] sm:$0x1] }
 0x171   : > { %v3829_v31 = vrot.slane %v3827_v40, 5  ;;  %v5487_v32 = vcombine.low %v8347_v9, %v8357_v61  ;;  %4625 = vmatprep.mubr.bf16.mxu0 %v5502_v28  ;;  %v8387_v24 = vadd.f32 %v8288_v27, %v8281_v21  ;;  %v8391_v19 = vadd.f32 %v8299_v50, %v8295_v42 }
 0x172   : > { %v3824_v23 = vor.u32 %v3823_v51, %v3820_v43  ;;  %v3833_v44 = vrot.slane %v3831_v63, 4  ;;  %v3839_v18 = vrot.slane %v3837_v49, 5  ;;  %v5468_v35 = vrot.slane %v3945_v55, 9  ;;  %v3947_v49 = vld [vmem:[#allocation2 + $0x90] sm:$0xe] }
 0x173   : > { %v4059_v59 = vrot.slane %v8208_v45, 5  ;;  %v4062_v20 = vrot.slane %v8223_v38, 5  ;;  %v5469_v53 = vrot.slane %v3946_v29, 9  ;;  %v4066_v25 = vrot.slane %v8265_v5, 5  ;;  %v8400_v21 = vpop.f32.mrb[28].mxu1 }
 0x174   : > { %v3825_v4 = vrot.slane %v3824_v23, 4  ;;  %v3834_v13 = vor.u32 %v3833_v44, %v3829_v31  ;;  %v4069_v50 = vrot.slane %v8272_v48, 5  ;;  %v3842_v15 = vshrl.u32 %v8393_v26, 16  ;;  %v8406_v45 = vpop.f32.mrb[29].mxu1 }
 0x175   : > { %v4060_v27 = vsel %vm6936_vm5, %v5468_v35, %v4059_v59  ;;  %v4061_v42 = vrot.slane %v4059_v59, 4  ;;  %v4067_v5 = vsel %vm6936_vm5, %v5469_v53, %v4066_v25  ;;  %v4068_v43 = vrot.slane %v4066_v25, 4  ;;  %v8412_v37 = vpop.f32.mrb[30].mxu1 }
 0x176   : > { %v3830_v38 = vsel %vm6988_vm8, %v3825_v4, %v3829_v31  ;;  %v3835_v56 = vrot.slane %v3834_v13, 4  ;;  %6323 = vmatmul.mubr.bf16.gmra.mrb[92].mxu1 %v5515_v57  ;;  %v3844_v48 = vrot.slane %v3842_v15, 4  ;;  %v3845_v40 = vshll.u32 %v8393_v26, 16  ;;  %v8420_v6 = vpop.f32.mrb[31].mxu1  ;;  %v3948_v13 = vld [vmem:[#allocation2 + $0x9c] sm:$0xe] }
 0x177   : > { %v4063_v47 = vsel %vm6936_vm5, %v4061_v42, %v4062_v20  ;;  %v3851_v28 = vshll.u32 %v8398_v54, 16  ;;  %v5836_v63 = vpop.f32.mrb[20].mxu0  ;;  %v4070_v57 = vsel %vm6936_vm5, %v4068_v43, %v4069_v50  ;;  %v3855_v31 = vshrl.u32 %v8398_v54, 16  ;;  %v8446_v43 = vld [vmem:[#allocation2 + $0xb4] sm:$0xf] }
 0x178   : > { %4626 = vmatmul.mubr.bf16.gmra.mrb[120].mxu0 %v5486_v11  ;;  %v3840_v51 = vsel %vm6988_vm8, %v3835_v56, %v3839_v18  ;;  %v5516_v55 = vcombine.low %v4060_v27, %v4063_v47  ;;  %v5837_v23 = vpop.f32.mrb[21].mxu0  ;;  %v5517_v44 = vcombine.low %v4067_v5, %v4070_v57  ;;  %v3847_v35 = vrot.slane %v3845_v40, 5 }
 0x179   : > { %v5503_v29 = vcombine.low %v3830_v38, %v3840_v51  ;;  %v3853_v59 = vrot.slane %v3851_v28, 5  ;;  %v8430_v20 = vadd.f32 %v5837_v23, %v5836_v63  ;;  %v5839_v3 = vpop.f32.mrb[22].mxu0  ;;  %v3857_v11 = vrot.slane %v3855_v31, 4  ;;  %v3550_v31 = vld [vmem:[#allocation2 + $0xbc] sm:$0x1] }
 0x17a   : > { %6326 = vmatprep.mubr.bf16.mxu1 %v5516_v55  ;;  %v3861_v18 = vshll.u32 %v8416_v33, 16  ;;  %v5488_v4 = vcombine.low %v8393_v26, %v8398_v54  ;;  %v5840_v53 = vpop.f32.mrb[23].mxu0  ;;  %v3848_v25 = vor.u32 %v3847_v35, %v3844_v48  ;;  %v8437_v27 = vadd.f32 %v8329_v1, %v8324_v46  ;;  %v8450_v1 = vld [vmem:[#allocation2 + $0xb8] sm:$0xf] }
 0x17b   : > { %4633 = vmatprep.mubr.bf16.mxu0 %v5503_v29  ;;  %v8441_v42 = vadd.f32 %v8349_v41, %v8337_v36  ;;  %v5470_v50 = vrot.slane %v3947_v49, 9  ;;  %v8443_v15 = vadd.f32 %v5840_v53, %v5839_v3  ;;  %v3858_v38 = vor.u32 %v3857_v11, %v3853_v59  ;;  %v3949_v3 = vld [vmem:[#allocation2 + $0xa8] sm:$0xe] }
 0x17c   : > { %v3863_v56 = vrot.slane %v3861_v18, 5  ;;  %v4073_v5 = vrot.slane %v8307_v39, 5  ;;  %v3849_v47 = vrot.slane %v3848_v25, 4  ;;  %v4076_v48 = vrot.slane %v8318_v30, 5 }
 0x17d   : > { %v5471_v40 = vrot.slane %v3948_v13, 9  ;;  %v4080_v46 = vrot.slane %v8357_v61, 5  ;;  %v3859_v28 = vrot.slane %v3858_v38, 4  ;;  %v4083_v51 = vrot.slane %v8368_v7, 5  ;;  %v3950_v13 = vld [vmem:[#allocation2 + $0xb4] sm:$0xe] }
 0x17e   : > { %v4074_v36 = vsel %vm6936_vm5, %v5470_v50, %v4073_v5  ;;  %v4075_v41 = vrot.slane %v4073_v5, 4  ;;  %6327 = vmatmul.mubr.bf16.gmra.mrb[0].mxu1 %v5517_v44  ;;  %v3854_v39 = vsel %vm6988_vm8, %v3849_v47, %v3853_v59  ;;  %v3866_v55 = vshrl.u32 %v8446_v43, 16 }
 0x17f   : > { %v4081_v63 = vsel %vm6936_vm5, %v5471_v40, %v4080_v46  ;;  %v4082_v30 = vrot.slane %v4080_v46, 4  ;;  %v3864_v57 = vsel %vm6988_vm8, %v3859_v28, %v3863_v56  ;;  %v3869_v49 = vshll.u32 %v8446_v43, 16  ;;  %v8483_v28 = vld [vmem:[#allocation2 + $0xc0] sm:$0xf] }
 0x180   : > { %4634 = vmatmul.mubr.bf16.gmra.mrb[124].mxu0 %v5487_v32  ;;  %v4077_v7 = vsel %vm6936_vm5, %v4075_v41, %v4076_v48  ;;  %v3875_v29 = vshll.u32 %v8450_v1, 16  ;;  %v5504_v23 = vcombine.low %v3854_v39, %v3864_v57  ;;  %v3868_v59 = vrot.slane %v3866_v55, 4  ;;  %v5966_v9 = vpop.f32.mrb[32].mxu1 }
 0x181   : > { %v5518_v44 = vcombine.low %v4074_v36, %v4077_v7  ;;  %v4084_v35 = vsel %vm6936_vm5, %v4082_v30, %v4083_v51  ;;  %v3871_v32 = vrot.slane %v3869_v49, 5  ;;  %v3879_v18 = vshrl.u32 %v8450_v1, 16  ;;  %v5967_v53 = vpop.f32.mrb[33].mxu1 }
 0x182   : > { %v5519_v61 = vcombine.low %v4081_v63, %v4084_v35  ;;  %v3877_v11 = vrot.slane %v3875_v29, 5  ;;  %4641 = vmatprep.mubr.bf16.mxu0 %v5504_v23  ;;  %v3885_v25 = vshll.u32 %v3550_v31, 16  ;;  %v5489_v50 = vcombine.low %v8446_v43, %v8450_v1  ;;  %v5969_v5 = vpop.f32.mrb[34].mxu1  ;;  %v8491_v29 = vld [vmem:[#allocation2 + $0xc4] sm:$0xf] }
 0x183   : > { %6330 = vmatprep.mubr.bf16.mxu1 %v5518_v44  ;;  %v8476_v38 = vadd.f32 %v8406_v45, %v8400_v21  ;;  %v8480_v56 = vadd.f32 %v8420_v6, %v8412_v37  ;;  %v3872_v47 = vor.u32 %v3871_v32, %v3868_v59  ;;  %v3881_v48 = vrot.slane %v3879_v18, 4  ;;  %v5970_v36 = vpop.f32.mrb[35].mxu1 }
 0x184   : > { %v5472_v40 = vrot.slane %v3949_v3, 9  ;;  %v4087_v46 = vrot.slane %v8398_v54, 5  ;;  %v3887_v41 = vrot.slane %v3885_v25, 5  ;;  %v4090_v51 = vrot.slane %v8416_v33, 5 }
 0x185   : > { %v5473_v39 = vrot.slane %v3950_v13, 9  ;;  %v4094_v21 = vrot.slane %v8450_v1, 5  ;;  %v3873_v63 = vrot.slane %v3872_v47, 4  ;;  %v3882_v30 = vor.u32 %v3881_v48, %v3877_v11  ;;  %v3951_v47 = vld [vmem:[#allocation2 + $0xc0] sm:$0xe] }
 0x186   : > { %v5842_v45 = vpop.f32.mrb[24].mxu0  ;;  %v4088_v37 = vsel %vm6936_vm5, %v5472_v40, %v4087_v46  ;;  %v4089_v6 = vrot.slane %v4087_v46, 4  ;;  %6331 = vmatmul.mubr.bf16.gmra.mrb[4].mxu1 %v5519_v61  ;;  %v4097_v49 = vrot.slane %v3550_v31, 5  ;;  %v3890_v33 = vshrl.u32 %v8483_v28, 16  ;;  %v3551_v61 = vld [vmem:[#allocation2 + $0xc8] sm:$0x1] }
 0x187   : > { %v5843_v55 = vpop.f32.mrb[25].mxu0  ;;  %v4095_v57 = vsel %vm6936_vm5, %v5473_v39, %v4094_v21  ;;  %v4096_v7 = vrot.slane %v4094_v21, 4  ;;  %v3878_v35 = vsel %vm6988_vm8, %v3873_v63, %v3877_v11  ;;  %v3883_v59 = vrot.slane %v3882_v30, 4  ;;  %v8511_v48 = vld [vmem:[#allocation2 + $0xd0] sm:$0xf] }
 0x188   : > { %4642 = vmatmul.mubr.bf16.gmra.mrb[128].mxu0 %v5488_v4  ;;  %v8497_v23 = vadd.f32 %v5843_v55, %v5842_v45  ;;  %v5845_v44 = vpop.f32.mrb[26].mxu0  ;;  %v4091_v3 = vsel %vm6936_vm5, %v4089_v6, %v4090_v51  ;;  %v3892_v13 = vrot.slane %v3890_v33, 4  ;;  %v3893_v26 = vshll.u32 %v8483_v28, 16  ;;  %v3952_v21 = vld [vmem:[#allocation2 + $0xcc] sm:$0xe] }
 0x189   : > { %v5846_v31 = vpop.f32.mrb[27].mxu0  ;;  %v5520_v32 = vcombine.low %v4088_v37, %v4091_v3  ;;  %v4098_v18 = vsel %vm6936_vm5, %v4096_v7, %v4097_v49  ;;  %v3888_v4 = vsel %vm6988_vm8, %v3883_v59, %v3887_v41  ;;  %v3899_v11 = vshll.u32 %v8491_v29, 16  ;;  %v3552_v37 = vld [vmem:[#allocation2 + $0xd4] sm:$0x1]  ;;  %v8520_v6 = vld [vmem:[#allocation2 + $0xcc] sm:$0xf] }
 0x18a   : > { %v8506_v54 = vadd.f32 %v5846_v31, %v5845_v44  ;;  %v5521_v25 = vcombine.low %v4095_v57, %v4098_v18  ;;  %v5505_v40 = vcombine.low %v3878_v35, %v3888_v4  ;;  %v3895_v46 = vrot.slane %v3893_v26, 5 }
 0x18b   : > { %6334 = vmatprep.mubr.bf16.mxu1 %v5520_v32  ;;  %v3903_v51 = vshrl.u32 %v8491_v29, 16  ;;  %v3909_v39 = vshll.u32 %v3551_v61, 16  ;;  %v3901_v45 = vrot.slane %v3899_v11, 5  ;;  %v5490_v63 = vcombine.low %v8483_v28, %v8491_v29 }
 0x18c   : > { %v8516_v30 = vadd.f32 %v5967_v53, %v5966_v9  ;;  %v8518_v41 = vadd.f32 %v5970_v36, %v5969_v5  ;;  %4649 = vmatprep.mubr.bf16.mxu0 %v5505_v40  ;;  %v3896_v55 = vor.u32 %v3895_v46, %v3892_v13  ;;  %v5474_v49 = vrot.slane %v3951_v47, 9  ;;  %v5972_v33 = vpop.f32.mrb[36].mxu1 }
 0x18d   : > { %v3905_v57 = vrot.slane %v3903_v51, 4  ;;  %v3911_v7 = vrot.slane %v3909_v39, 5  ;;  %v4101_v44 = vrot.slane %v8491_v29, 5  ;;  %v4104_v35 = vrot.slane %v3551_v61, 5  ;;  %v5973_v28 = vpop.f32.mrb[37].mxu1 }
 0x18e   : > { %v5475_v59 = vrot.slane %v3952_v21, 9  ;;  %v4108_v3 = vrot.slane %v8511_v48, 5  ;;  %6335 = vmatmul.mubr.bf16.gmra.mrb[8].mxu1 %v5521_v25  ;;  %v3897_v9 = vrot.slane %v3896_v55, 4  ;;  %v4111_v5 = vrot.slane %v3552_v37, 5  ;;  %v5975_v31 = vpop.f32.mrb[38].mxu1 }
 0x18f   : > { %v3906_v53 = vor.u32 %v3905_v57, %v3901_v45  ;;  %v3914_v36 = vshrl.u32 %v8520_v6, 16  ;;  %v4102_v32 = vsel %vm6936_vm5, %v5474_v49, %v4101_v44  ;;  %v4103_v29 = vrot.slane %v4101_v44, 4  ;;  %v5976_v13 = vpop.f32.mrb[39].mxu1 }
 0x190   : > { %4650 = vmatmul.mubr.bf16.gmra.mrb[132].mxu0 %v5489_v50  ;;  %v4109_v61 = vsel %vm6936_vm5, %v5475_v59, %v4108_v3  ;;  %v4110_v18 = vrot.slane %v4108_v3, 4  ;;  %v3902_v26 = vsel %vm6988_vm8, %v3897_v9, %v3901_v45  ;;  %v3917_v11 = vshll.u32 %v8520_v6, 16 }
 0x191   : > { %v3907_v4 = vrot.slane %v3906_v53, 4  ;;  %v3916_v25 = vrot.slane %v3914_v36, 4  ;;  %v4105_v43 = vsel %vm6936_vm5, %v4103_v29, %v4104_v35  ;;  %v3923_v50 = vshll.u32 %v8511_v48, 16 }
 0x192   : > { %v4112_v1 = vsel %vm6936_vm5, %v4110_v18, %v4111_v5  ;;  %v3927_v47 = vshrl.u32 %v8511_v48, 16  ;;  %v5522_v51 = vcombine.low %v4102_v32, %v4105_v43  ;;  %v3919_v21 = vrot.slane %v3917_v11, 5 }
 0x193   : > { %v5848_v40 = vpop.f32.mrb[28].mxu0  ;;  %v3912_v46 = vsel %vm6988_vm8, %v3907_v4, %v3911_v7  ;;  %v5523_v39 = vcombine.low %v4109_v61, %v4112_v1  ;;  %v3925_v57 = vrot.slane %v3923_v50, 5  ;;  %v3933_v44 = vshll.u32 %v3552_v37, 16 }
 0x194   : > { %v5849_v45 = vpop.f32.mrb[29].mxu0  ;;  %v5506_v55 = vcombine.low %v3902_v26, %v3912_v46  ;;  %v3929_v49 = vrot.slane %v3927_v47, 4  ;;  %6338 = vmatprep.mubr.bf16.mxu1 %v5522_v51  ;;  %v3920_v59 = vor.u32 %v3919_v21, %v3916_v25  ;;  %v8545_v3 = vadd.f32 %v5973_v28, %v5972_v33 }
 0x195   : > { %v8543_v35 = vadd.f32 %v5849_v45, %v5848_v40  ;;  %v5851_v17 = vpop.f32.mrb[30].mxu0  ;;  %v3935_v5 = vrot.slane %v3933_v44, 5  ;;  %v8547_v7 = vadd.f32 %v5976_v13, %v5975_v31  ;;  %v5491_v31 = vcombine.low %v8520_v6, %v8511_v48 }
 0x196   : > { %v5852_v9 = vpop.f32.mrb[31].mxu0  ;;  %4657 = vmatprep.mubr.bf16.mxu0 %v5506_v55  ;;  %v3930_v53 = vor.u32 %v3929_v49, %v3925_v57  ;;  %6339 = vmatmul.mubr.bf16.gmra.mrb[12].mxu1 %v5523_v39  ;;  %v3921_v32 = vrot.slane %v3920_v59, 4 }
 0x197   : > { %v8549_v36 = vadd.f32 %v5852_v9, %v5851_v17 }
 0x198   : > { %4658 = vmatmul.mubr.bf16.gmra.mrb[136].mxu0 %v5490_v63  ;;  %v3931_v29 = vrot.slane %v3930_v53, 4  ;;  %v3926_v37 = vsel %vm6988_vm8, %v3921_v32, %v3925_v57 }
 0x19a   : > { %v3936_v61 = vsel %vm6988_vm8, %v3931_v29, %v3935_v5  ;;  %v5978_v18 = vpop.f32.mrb[40].mxu1 }
 0x19b   : > { %v5854_v33 = vpop.f32.mrb[32].mxu0  ;;  %v5507_v28 = vcombine.low %v3926_v37, %v3936_v61  ;;  %v5979_v13 = vpop.f32.mrb[41].mxu1 }
 0x19c   : > { %v5855_v26 = vpop.f32.mrb[33].mxu0  ;;  %v8557_v11 = vadd.f32 %v5979_v13, %v5978_v18  ;;  %v5981_v63 = vpop.f32.mrb[42].mxu1 }
 0x19d   : > { %v5856_v4 = vadd.f32 %v5855_v26, %v5854_v33  ;;  %v5857_v25 = vpop.f32.mrb[34].mxu0  ;;  %4665 = vmatprep.mubr.bf16.mxu0 %v5507_v28  ;;  %v5982_v1 = vpop.f32.mrb[43].mxu1 }
 0x19e   : > { %v5858_v43 = vpop.f32.mrb[35].mxu0  ;;  %v8559_v47 = vadd.f32 %v5982_v1, %v5981_v63 }
 0x19f   : > { %v5859_v50 = vadd.f32 %v5858_v43, %v5857_v25 }
 0x1a0   : > { %4666 = vmatmul.mubr.bf16.gmra.mrb[140].mxu0 %v5491_v31 }
 0x1a2   : > { %v5984_v40 = vpop.f32.mrb[44].mxu1 }
 0x1a3   : > { %v5860_v34 = vpop.f32.mrb[36].mxu0  ;;  %v5985_v51 = vpop.f32.mrb[45].mxu1 }
 0x1a4   : > { %v5861_v46 = vpop.f32.mrb[37].mxu0  ;;  %v8561_v48 = vadd.f32 %v5985_v51, %v5984_v40  ;;  %v5987_v6 = vpop.f32.mrb[46].mxu1 }
 0x1a5   : > { %v5862_v39 = vadd.f32 %v5861_v46, %v5860_v34  ;;  %v5863_v21 = vpop.f32.mrb[38].mxu0  ;;  %v5988_v55 = vpop.f32.mrb[47].mxu1 }
 0x1a6   : > { %v5864_v45 = vpop.f32.mrb[39].mxu0  ;;  %v8563_v49 = vadd.f32 %v5988_v55, %v5987_v6 }
 0x1a7   : > { %v5865_v57 = vadd.f32 %v5864_v45, %v5863_v21 }
 0x1ab   : > { %v5866_v44 = vpop.f32.mrb[40].mxu0 }
 0x1ac   : > { %v5867_v17 = vpop.f32.mrb[41].mxu0  ;;  %v5990_v53 = vpop.f32.mrb[48].mxu1 }
 0x1ad   : > { %v5868_v59 = vadd.f32 %v5867_v17, %v5866_v44  ;;  %v5869_v9 = vpop.f32.mrb[42].mxu0  ;;  %v5991_v32 = vpop.f32.mrb[49].mxu1 }
 0x1ae   : > { %v5870_v5 = vpop.f32.mrb[43].mxu0  ;;  %v5992_v37 = vadd.f32 %v5991_v32, %v5990_v53  ;;  %v5993_v61 = vpop.f32.mrb[50].mxu1 }
 0x1af   : > { %v5871_v29 = vadd.f32 %v5870_v5, %v5869_v9  ;;  %v5994_v33 = vpop.f32.mrb[51].mxu1 }
 0x1b0   : > { %v8565_v28 = vadd.f32 %v5992_v37, %v5856_v4  ;;  %v5995_v18 = vadd.f32 %v5994_v33, %v5993_v61 }
 0x1b2   : > { %v8567_v31 = vadd.f32 %v5995_v18, %v5859_v50 }
 0x1b3   : > { %v5872_v26 = vpop.f32.mrb[44].mxu0 }
 0x1b4   : > { %v5873_v13 = vpop.f32.mrb[45].mxu0 }
 0x1b5   : > { %v5874_v25 = vadd.f32 %v5873_v13, %v5872_v26  ;;  %v5875_v63 = vpop.f32.mrb[46].mxu0  ;;  %v5996_v43 = vpop.f32.mrb[52].mxu1 }
 0x1b6   : > { %v5876_v1 = vpop.f32.mrb[47].mxu0  ;;  %v5997_v34 = vpop.f32.mrb[53].mxu1 }
 0x1b7   : > { %v5877_v40 = vadd.f32 %v5876_v1, %v5875_v63  ;;  %v5998_v46 = vadd.f32 %v5997_v34, %v5996_v43  ;;  %v5999_v51 = vpop.f32.mrb[54].mxu1 }
 0x1b8   : > { %v6000_v21 = vpop.f32.mrb[55].mxu1 }
 0x1b9   : > { %v8569_v6 = vadd.f32 %v5998_v46, %v5862_v39  ;;  %v6001_v45 = vadd.f32 %v6000_v21, %v5999_v51 }
 0x1bb   : > { %v5878_v55 = vpop.f32.mrb[48].mxu0  ;;  %v8571_v4 = vadd.f32 %v6001_v45, %v5865_v57 }
 0x1bc   : > { %v5879_v44 = vpop.f32.mrb[49].mxu0 }
 0x1bd   : > { %v5880_v17 = vadd.f32 %v5879_v44, %v5878_v55  ;;  %v5881_v50 = vpop.f32.mrb[50].mxu0 }
 0x1be   : > { %v5882_v9 = vpop.f32.mrb[51].mxu0  ;;  %v6002_v5 = vpop.f32.mrb[56].mxu1 }
 0x1bf   : > { %v5883_v53 = vadd.f32 %v5882_v9, %v5881_v50  ;;  %v6003_v32 = vpop.f32.mrb[57].mxu1 }
 0x1c0   : > { %v6004_v37 = vadd.f32 %v6003_v32, %v6002_v5  ;;  %v6005_v61 = vpop.f32.mrb[58].mxu1 }
 0x1c1   : > { %v6006_v33 = vpop.f32.mrb[59].mxu1 }
 0x1c2   : > { %v8573_v26 = vadd.f32 %v6004_v37, %v5868_v59  ;;  %v6007_v13 = vadd.f32 %v6006_v33, %v6005_v61 }
 0x1c3   : > { %v5884_v18 = vpop.f32.mrb[52].mxu0 }
 0x1c4   : > { %8751 = vst [vmem:[#allocation3_spill] sm:$0xff] %v8573_v26  ;;  %v5885_v39 = vpop.f32.mrb[53].mxu0  ;;  %v8575_v1 = vadd.f32 %v6007_v13, %v5871_v29 }
 0x1c5   : > { %v5886_v63 = vadd.f32 %v5885_v39, %v5884_v18  ;;  %v5887_v43 = vpop.f32.mrb[54].mxu0 }
 0x1c6   : > { %8752 = vst [vmem:[#allocation4_spill] sm:$0xff] %v8575_v1  ;;  %v5888_v57 = vpop.f32.mrb[55].mxu0  ;;  %v6008_v46 = vpop.f32.mrb[60].mxu1 }
 0x1c7   : > { %v5889_v34 = vadd.f32 %v5888_v57, %v5887_v43  ;;  %v6009_v51 = vpop.f32.mrb[61].mxu1 }
 0x1c8   : > { %v6010_v21 = vadd.f32 %v6009_v51, %v6008_v46  ;;  %v6011_v45 = vpop.f32.mrb[62].mxu1 }
 0x1c9   : > { %v6012_v55 = vpop.f32.mrb[63].mxu1 }
 0x1ca   : > { %v8577_v50 = vadd.f32 %v6010_v21, %v5874_v25  ;;  %v6013_v9 = vadd.f32 %v6012_v55, %v6011_v45 }
 0x1cb   : > { %v5890_v44 = vpop.f32.mrb[56].mxu0 }
 0x1cc   : > { %v5891_v5 = vpop.f32.mrb[57].mxu0  ;;  %v8579_v37 = vadd.f32 %v6013_v9, %v5877_v40 }
 0x1cd   : > { %v5892_v59 = vadd.f32 %v5891_v5, %v5890_v44  ;;  %v5893_v32 = vpop.f32.mrb[58].mxu0 }
 0x1ce   : > { %8753 = vst [vmem:[#allocation5_spill] sm:$0xff] %v8579_v37  ;;  %v5894_v61 = vpop.f32.mrb[59].mxu0 }
 0x1cf   : > { %v5895_v33 = vadd.f32 %v5894_v61, %v5893_v32 }
 0x1d0   : > { %v6014_v29 = vpop.f32.mrb[64].mxu1 }
 0x1d1   : > { %v6015_v18 = vpop.f32.mrb[65].mxu1 }
 0x1d2   : > { %v6016_v39 = vadd.f32 %v6015_v18, %v6014_v29  ;;  %v6017_v43 = vpop.f32.mrb[66].mxu1 }
 0x1d3   : > { %v5896_v13 = vpop.f32.mrb[60].mxu0  ;;  %v6018_v46 = vpop.f32.mrb[67].mxu1 }
 0x1d4   : > { %v5897_v57 = vpop.f32.mrb[61].mxu0  ;;  %v8581_v26 = vadd.f32 %v6016_v39, %v5880_v17  ;;  %v6019_v25 = vadd.f32 %v6018_v46, %v6017_v43 }
 0x1d5   : > { %v5898_v51 = vadd.f32 %v5897_v57, %v5896_v13  ;;  %v5899_v1 = vpop.f32.mrb[62].mxu0 }
 0x1d6   : > { %v5900_v21 = vpop.f32.mrb[63].mxu0  ;;  %v8583_v55 = vadd.f32 %v6019_v25, %v5883_v53 }
 0x1d7   : > { %v5901_v45 = vadd.f32 %v5900_v21, %v5899_v1 }
 0x1d8   : > { %v6020_v40 = vpop.f32.mrb[68].mxu1 }
 0x1d9   : > { %v6021_v44 = vpop.f32.mrb[69].mxu1 }
 0x1da   : > { %v6022_v5 = vadd.f32 %v6021_v44, %v6020_v40  ;;  %v6023_v32 = vpop.f32.mrb[70].mxu1 }
 0x1db   : > { %v6216_v9 = vpop.f32.mrb[64].mxu0  ;;  %v6024_v18 = vpop.f32.mrb[71].mxu1 }
 0x1dc   : > { %v2920_v61 = vadd.f32 %v6216_v9, %v8203_v8  ;;  %v2911_v29 = vpop.f32.mrb[65].mxu0  ;;  %v8587_v57 = vadd.f32 %v6022_v5, %v5886_v63  ;;  %v6025_v17 = vadd.f32 %v6024_v18, %v6023_v32 }
 0x1dd   : > { %v2912_v37 = vadd.f32 %v8155_v0, %v2911_v29  ;;  %v6217_v13 = vpop.f32.mrb[66].mxu0 }
 0x1de   : > { %v8590_v39 = vadd.f32 %v8387_v24, %v2920_v61  ;;  %v2923_v53 = vadd.f32 %v6217_v13, %v8216_v22  ;;  %v2914_v1 = vpop.f32.mrb[67].mxu0  ;;  %v8597_v8 = vadd.f32 %v6025_v17, %v5889_v34 }
 0x1df   : > { %v8594_v43 = vadd.f32 %v8341_v12, %v2912_v37  ;;  %v2915_v46 = vadd.f32 %v8177_v52, %v2914_v1 }
 0x1e0   : > { %v8600_v25 = vadd.f32 %v8391_v19, %v2923_v53 }
 0x1e1   : > { %v3220_v0 = vadd.f32 %v8345_v2, %v2915_v46  ;;  %v6026_v63 = vpop.f32.mrb[72].mxu1 }
 0x1e2   : > { %v6027_v40 = vpop.f32.mrb[73].mxu1 }
 0x1e3   : > { %v6220_v21 = vpop.f32.mrb[68].mxu0  ;;  %v6028_v22 = vadd.f32 %v6027_v40, %v6026_v63  ;;  %v6029_v9 = vpop.f32.mrb[74].mxu1 }
 0x1e4   : > { %v2936_v24 = vadd.f32 %v6220_v21, %v8301_v58  ;;  %v2927_v44 = vpop.f32.mrb[69].mxu0  ;;  %v6030_v5 = vpop.f32.mrb[75].mxu1 }
 0x1e5   : > { %v2928_v12 = vadd.f32 %v8253_v60, %v2927_v44  ;;  %v6221_v37 = vpop.f32.mrb[70].mxu0  ;;  %v8609_v32 = vadd.f32 %v6028_v22, %v5892_v59  ;;  %v6031_v2 = vadd.f32 %v6030_v5, %v6029_v9 }
 0x1e6   : > { %v8606_v52 = vadd.f32 %v8476_v38, %v2936_v24  ;;  %v2939_v19 = vadd.f32 %v6221_v37, %v8311_v10  ;;  %v2930_v34 = vpop.f32.mrb[71].mxu0 }
 0x1e7   : > { %v3233_v61 = vadd.f32 %v8437_v27, %v2928_v12  ;;  %v2931_v58 = vadd.f32 %v8263_v14, %v2930_v34  ;;  %v8616_v18 = vadd.f32 %v6031_v2, %v5895_v33 }
 0x1e8   : > { %v8614_v29 = vadd.f32 %v8480_v56, %v2939_v19 }
 0x1e9   : > { %v3236_v60 = vadd.f32 %v8441_v42, %v2931_v58  ;;  %v6032_v13 = vpop.f32.mrb[76].mxu1 }
 0x1ea   : > { %v6033_v17 = vpop.f32.mrb[77].mxu1 }
 0x1eb   : > { %v6224_v38 = vpop.f32.mrb[72].mxu0  ;;  %v6034_v59 = vadd.f32 %v6033_v17, %v6032_v13  ;;  %v6035_v1 = vpop.f32.mrb[78].mxu1 }
 0x1ec   : > { %v2952_v10 = vadd.f32 %v6224_v38, %v8430_v20  ;;  %v2943_v53 = vpop.f32.mrb[73].mxu0  ;;  %v6036_v63 = vpop.f32.mrb[79].mxu1 }
 0x1ed   : > { %v2944_v46 = vadd.f32 %v8362_v62, %v2943_v53  ;;  %v6225_v27 = vpop.f32.mrb[74].mxu0  ;;  %v8625_v21 = vadd.f32 %v6034_v59, %v5898_v51  ;;  %v6037_v42 = vadd.f32 %v6036_v63, %v6035_v1 }
 0x1ee   : > { %v8622_v14 = vadd.f32 %v8545_v3, %v2952_v10  ;;  %v2955_v56 = vadd.f32 %v6225_v27, %v8443_v15  ;;  %v2946_v33 = vpop.f32.mrb[75].mxu0 }
 0x1ef   : > { %v3249_v40 = vadd.f32 %v8516_v30, %v2944_v46  ;;  %v2947_v20 = vadd.f32 %v8373_v16, %v2946_v33  ;;  %v8630_v44 = vadd.f32 %v6037_v42, %v5901_v45 }
 0x1f0   : > { %v3260_v24 = vadd.f32 %v8547_v7, %v2955_v56 }
 0x1f1   : > { %v3252_v62 = vadd.f32 %v8518_v41, %v2947_v20 }
 0x1f3   : > { %v6228_v22 = vpop.f32.mrb[76].mxu0 }
 0x1f4   : > { %v2968_v3 = vadd.f32 %v6228_v22, %v8543_v35  ;;  %v2959_v9 = vpop.f32.mrb[77].mxu0 }
 0x1f5   : > { %v2960_v15 = vadd.f32 %v8497_v23, %v2959_v9  ;;  %v6229_v12 = vpop.f32.mrb[78].mxu0 }
 0x1f6   : > { %v8636_v51 = vadd.f32 %v8561_v48, %v2968_v3  ;;  %v2971_v30 = vadd.f32 %v6229_v12, %v8549_v36  ;;  %v2962_v37 = vpop.f32.mrb[79].mxu0 }
 0x1f7   : > { %v3265_v16 = vadd.f32 %v8557_v11, %v2960_v15  ;;  %v2963_v7 = vadd.f32 %v8506_v54, %v2962_v37 }
 0x1f8   : > { %v8642_v45 = vadd.f32 %v8563_v49, %v2971_v30 }
 0x1f9   : > { %v3268_v41 = vadd.f32 %v8559_v47, %v2963_v7 }
 0x1fb   : > { %v6078_v35 = vpop.f32.mrb[80].mxu0 }
 0x1fc   : > { %v6079_v5 = vpop.f32.mrb[81].mxu0 }
 0x1fd   : > { %v6080_v19 = vadd.f32 %v6079_v5, %v6078_v35  ;;  %v6081_v23 = vpop.f32.mrb[82].mxu0 }
 0x1fe   : > { %v6082_v34 = vpop.f32.mrb[83].mxu0 }
 0x1ff   : > { %v6083_v2 = vadd.f32 %v6082_v34, %v6081_v23  ;;  %v6364_v48 = vadd.f32 %v6080_v19, %v8594_v43 }
 0x201   : > { %v6372_v58 = vadd.f32 %v6083_v2, %v3220_v0 }
 0x203   : > { %v6084_v36 = vpop.f32.mrb[84].mxu0 }
 0x204   : > { %v6085_v13 = vpop.f32.mrb[85].mxu0 }
 0x205   : > { %v6086_v38 = vadd.f32 %v6085_v13, %v6084_v36  ;;  %v6087_v11 = vpop.f32.mrb[86].mxu0 }
 0x206   : > { %v6088_v17 = vpop.f32.mrb[87].mxu0 }
 0x207   : > { %v6089_v54 = vadd.f32 %v6088_v17, %v6087_v11  ;;  %v6360_v49 = vadd.f32 %v6086_v38, %v8590_v39 }
 0x209   : > { %v6368_v10 = vadd.f32 %v6089_v54, %v8600_v25 }
 0x20b   : > { %v6090_v47 = vpop.f32.mrb[88].mxu0 }
 0x20c   : > { %v6091_v53 = vpop.f32.mrb[89].mxu0 }
 0x20d   : > { %v6092_v59 = vadd.f32 %v6091_v53, %v6090_v47  ;;  %v6093_v1 = vpop.f32.mrb[90].mxu0 }
 0x20e   : > { %v6094_v46 = vpop.f32.mrb[91].mxu0 }
 0x20f   : > { %v6095_v27 = vadd.f32 %v6094_v46, %v6093_v1  ;;  %v8648_v63 = vadd.f32 %v6092_v59, %v3233_v61 }
 0x211   : > { %v8650_v43 = vadd.f32 %v6095_v27, %v3236_v60 }
 0x213   : > { %v6096_v0 = vpop.f32.mrb[92].mxu0 }
 0x214   : > { %v6097_v56 = vpop.f32.mrb[93].mxu0 }
 0x215   : > { %v6098_v33 = vadd.f32 %v6097_v56, %v6096_v0  ;;  %v6099_v42 = vpop.f32.mrb[94].mxu0 }
 0x216   : > { %v6100_v20 = vpop.f32.mrb[95].mxu0 }
 0x217   : > { %v6101_v22 = vadd.f32 %v6100_v20, %v6099_v42  ;;  %v6376_v39 = vadd.f32 %v6098_v33, %v8606_v52 }
 0x219   : > { %v8654_v25 = vadd.f32 %v6101_v22, %v8614_v29 }
 0x21b   : > { %v6102_v3 = vpop.f32.mrb[96].mxu0 }
 0x21c   : > { %v6103_v9 = vpop.f32.mrb[97].mxu0 }
 0x21d   : > { %v6104_v15 = vadd.f32 %v6103_v9, %v6102_v3  ;;  %v6105_v12 = vpop.f32.mrb[98].mxu0 }
 0x21e   : > { %v6106_v30 = vpop.f32.mrb[99].mxu0 }
 0x21f   : > { %v6107_v61 = vadd.f32 %v6106_v30, %v6105_v12  ;;  %v8656_v37 = vadd.f32 %v6104_v15, %v3249_v40 }
 0x221   : > { %v8658_v60 = vadd.f32 %v6107_v61, %v3252_v62 }
 0x223   : > { %v6108_v7 = vpop.f32.mrb[100].mxu0 }
 0x224   : > { %v6109_v35 = vpop.f32.mrb[101].mxu0 }
 0x225   : > { %v6110_v5 = vadd.f32 %v6109_v35, %v6108_v7  ;;  %v6111_v19 = vpop.f32.mrb[102].mxu0 }
 0x226   : > { %v6112_v23 = vpop.f32.mrb[103].mxu0 }
 0x227   : > { %v6113_v34 = vadd.f32 %v6112_v23, %v6111_v19  ;;  %v8661_v52 = vadd.f32 %v6110_v5, %v8622_v14 }
 0x229   : > { %v8663_v29 = vadd.f32 %v6113_v34, %v3260_v24 }
 0x22b   : > { %v6114_v2 = vpop.f32.mrb[104].mxu0 }
 0x22c   : > { %v6115_v36 = vpop.f32.mrb[105].mxu0 }
 0x22d   : > { %v6116_v13 = vadd.f32 %v6115_v36, %v6114_v2  ;;  %v6117_v38 = vpop.f32.mrb[106].mxu0 }
 0x22e   : > { %v6118_v11 = vpop.f32.mrb[107].mxu0 }
 0x22f   : > { %v6119_v40 = vadd.f32 %v6118_v11, %v6117_v38  ;;  %v8665_v62 = vadd.f32 %v6116_v13, %v3265_v16 }
 0x231   : > { %v8667_v17 = vadd.f32 %v6119_v40, %v3268_v41  ;;  %v6312_v54 = vpop.f32.mrb[80].mxu1 }
 0x232   : > { %v6361_v53 = vadd.f32 %v6360_v49, %v6312_v54  ;;  %v4708_v59 = vpop.f32.mrb[81].mxu1 }
 0x233   : > { %v6120_v47 = vpop.f32.mrb[108].mxu0  ;;  %v6365_v14 = vadd.f32 %v6364_v48, %v4708_v59  ;;  %v6313_v46 = vpop.f32.mrb[82].mxu1 }
 0x234   : > { %v6121_v1 = vpop.f32.mrb[109].mxu0  ;;  %v6369_v0 = vadd.f32 %v6368_v10, %v6313_v46  ;;  %v4711_v56 = vpop.f32.mrb[83].mxu1  ;;  %v5066_v9 = vmul.f32 %v6361_v53, %v6361_v53 }
 0x235   : > { %v6122_v24 = vadd.f32 %v6121_v1, %v6120_v47  ;;  %v6123_v27 = vpop.f32.mrb[110].mxu0  ;;  %v6373_v16 = vadd.f32 %v6372_v58, %v4711_v56  ;;  %v5064_v48 = vmul.f32 %v6365_v14, %v6365_v14 }
 0x236   : > { %v6124_v33 = vpop.f32.mrb[111].mxu0  ;;  %v5688_v49 = vpack.c.bf16 %v6369_v0, %v6361_v53  ;;  %v5067_v35 = vmul.f32 %v6369_v0, %v6369_v0 }
 0x237   : > { %v6125_v41 = vadd.f32 %v6124_v33, %v6123_v27  ;;  %v8677_v42 = vadd.f32 %v6122_v24, %v8636_v51  ;;  %v5683_v20 = vpack.c.bf16 %v6373_v16, %v6365_v14  ;;  %v5027_v22 = vadd.f32 %v6373_v16, %v6365_v14 }
 0x238   : > { %v5065_v10 = vmul.f32 %v6373_v16, %v6373_v16  ;;  %5775 = vst [vmem:[%s8674_s28 + $0x8] sm:$0xff] %v5688_v49  }
 0x239   : > { %v8681_v3 = vadd.f32 %v6125_v41, %v8642_v45  ;;  %5684 = vst [vmem:[%s8674_s28] sm:$0xff] %v5683_v20   ;;  %v5028_v15 = vadd.f32 %v6361_v53, %v5027_v22  ;;  %v6316_v30 = vpop.f32.mrb[84].mxu1 }
 0x23a   : > { %v5096_v12 = vadd.f32 %v5065_v10, %v5064_v48  ;;  %v6377_v58 = vadd.f32 %v6376_v39, %v6316_v30  ;;  %v4724_v7 = vpop.f32.mrb[85].mxu1 }
 0x23b   : > { %v6126_v61 = vpop.f32.mrb[112].mxu0  ;;  %v6381_v19 = vadd.f32 %v8648_v63, %v4724_v7  ;;  %v5029_v23 = vadd.f32 %v6369_v0, %v5028_v15  ;;  %v6317_v34 = vpop.f32.mrb[86].mxu1 }
 0x23c   : > { %v5097_v5 = vadd.f32 %v5096_v12, %v5066_v9  ;;  %v6127_v51 = vpop.f32.mrb[113].mxu0  ;;  %v6385_v45 = vadd.f32 %v8654_v25, %v6317_v34  ;;  %v4727_v13 = vpop.f32.mrb[87].mxu1  ;;  %v5070_v24 = vmul.f32 %v6377_v58, %v6377_v58 }
 0x23d   : > { %v6128_v2 = vadd.f32 %v6127_v51, %v6126_v61  ;;  %v6129_v36 = vpop.f32.mrb[114].mxu0  ;;  %v5030_v11 = vadd.f32 %v6381_v19, %v5029_v23  ;;  %v5068_v40 = vmul.f32 %v6381_v19, %v6381_v19  ;;  %v6389_v39 = vadd.f32 %v8650_v43, %v4727_v13 }
 0x23e   : > { %v6130_v38 = vpop.f32.mrb[115].mxu0  ;;  %v5098_v54 = vadd.f32 %v5097_v5, %v5067_v35  ;;  %v5698_v53 = vpack.c.bf16 %v6385_v45, %v6377_v58  ;;  %v5071_v41 = vmul.f32 %v6385_v45, %v6385_v45 }
 0x23f   : > { %v6131_v47 = vadd.f32 %v6130_v38, %v6129_v36  ;;  %v8688_v59 = vadd.f32 %v8565_v28, %v6128_v2  ;;  %v5693_v1 = vpack.c.bf16 %v6389_v39, %v6381_v19  ;;  %v5031_v14 = vadd.f32 %v6389_v39, %v5030_v11 }
 0x240   : > { %v5099_v63 = vadd.f32 %v5098_v54, %v5068_v40  ;;  %v5069_v46 = vmul.f32 %v6389_v39, %v6389_v39  ;;  %5777 = vst [vmem:[%s8674_s28 + $0x18] sm:$0xff] %v5698_v53  }
 0x241   : > { %v8692_v25 = vadd.f32 %v8567_v31, %v6131_v47  ;;  %5776 = vst [vmem:[%s8674_s28 + $0x10] sm:$0xff] %v5693_v1   ;;  %v5032_v27 = vadd.f32 %v6377_v58, %v5031_v14  ;;  %v6320_v56 = vpop.f32.mrb[88].mxu1 }
 0x242   : > { %v5100_v0 = vadd.f32 %v5099_v63, %v5069_v46  ;;  %v6393_v43 = vadd.f32 %v8661_v52, %v6320_v56  ;;  %v4740_v16 = vpop.f32.mrb[89].mxu1 }
 0x243   : > { %v6132_v33 = vpop.f32.mrb[116].mxu0  ;;  %v6397_v48 = vadd.f32 %v8656_v37, %v4740_v16  ;;  %v5033_v20 = vadd.f32 %v6385_v45, %v5032_v27  ;;  %v6321_v22 = vpop.f32.mrb[90].mxu1 }
 0x244   : > { %v5101_v28 = vadd.f32 %v5100_v0, %v5070_v24  ;;  %v6133_v49 = vpop.f32.mrb[117].mxu0  ;;  %v6401_v9 = vadd.f32 %v8663_v29, %v6321_v22  ;;  %v4743_v15 = vpop.f32.mrb[91].mxu1  ;;  %v5074_v29 = vmul.f32 %v6393_v43, %v6393_v43 }
 0x245   : > { %v6134_v10 = vadd.f32 %v6133_v49, %v6132_v33  ;;  %v6135_v31 = vpop.f32.mrb[118].mxu0  ;;  %v5034_v30 = vadd.f32 %v6397_v48, %v5033_v20  ;;  %v5072_v61 = vmul.f32 %v6397_v48, %v6397_v48  ;;  %v6405_v52 = vadd.f32 %v8658_v60, %v4743_v15  ;;  %v8754_v33 = vld [vmem:[#allocation3_spill] sm:$0xff]  ;;  %v8755_v49 = vld [vmem:[#allocation4_spill] sm:$0xff] }
 0x246   : > { %v6136_v12 = vpop.f32.mrb[119].mxu0  ;;  %v5102_v58 = vadd.f32 %v5101_v28, %v5071_v41  ;;  %v5708_v35 = vpack.c.bf16 %v6401_v9, %v6393_v43  ;;  %v5075_v11 = vmul.f32 %v6401_v9, %v6401_v9 }
 0x247   : > { %v6137_v7 = vadd.f32 %v6136_v12, %v6135_v31  ;;  %v6423_v5 = vadd.f32 %v8569_v6, %v6134_v10  ;;  %v5703_v51 = vpack.c.bf16 %v6405_v52, %v6397_v48  ;;  %v5035_v19 = vadd.f32 %v6405_v52, %v5034_v30 }
 0x248   : > { %v5103_v37 = vadd.f32 %v5102_v58, %v5072_v61  ;;  %v5073_v23 = vmul.f32 %v6405_v52, %v6405_v52  ;;  %5779 = vst [vmem:[%s8674_s28 + $0x28] sm:$0xff] %v5708_v35  }
 0x249   : > { %v6429_v34 = vadd.f32 %v8571_v4, %v6137_v7  ;;  %5778 = vst [vmem:[%s8674_s28 + $0x20] sm:$0xff] %v5703_v51   ;;  %v5036_v2 = vadd.f32 %v6393_v43, %v5035_v19  ;;  %v6324_v45 = vpop.f32.mrb[92].mxu1 }
 0x24a   : > { %v5104_v36 = vadd.f32 %v5103_v37, %v5073_v23  ;;  %v6409_v38 = vadd.f32 %v8677_v42, %v6324_v45  ;;  %v4756_v60 = vpop.f32.mrb[93].mxu1 }
 0x24b   : > { %v6138_v13 = vpop.f32.mrb[120].mxu0  ;;  %v6413_v6 = vadd.f32 %v8665_v62, %v4756_v60  ;;  %v5037_v39 = vadd.f32 %v6401_v9, %v5036_v2  ;;  %v6325_v47 = vpop.f32.mrb[94].mxu1 }
 0x24c   : > { %v5105_v40 = vadd.f32 %v5104_v36, %v5074_v29  ;;  %v6139_v54 = vpop.f32.mrb[121].mxu0  ;;  %v6417_v4 = vadd.f32 %v8681_v3, %v6325_v47  ;;  %v4759_v1 = vpop.f32.mrb[95].mxu1  ;;  %v5078_v3 = vmul.f32 %v6409_v38, %v6409_v38 }
 0x24d   : > { %v6140_v53 = vadd.f32 %v6139_v54, %v6138_v13  ;;  %v6141_v63 = vpop.f32.mrb[122].mxu0  ;;  %v5038_v46 = vadd.f32 %v6413_v6, %v5037_v39  ;;  %v5076_v24 = vmul.f32 %v6413_v6, %v6413_v6  ;;  %v6421_v42 = vadd.f32 %v8667_v17, %v4759_v1 }
 0x24e   : > { %v6142_v14 = vpop.f32.mrb[123].mxu0  ;;  %v5106_v27 = vadd.f32 %v5105_v40, %v5075_v11  ;;  %v5718_v56 = vpack.c.bf16 %v6417_v4, %v6409_v38  ;;  %v5079_v17 = vmul.f32 %v6417_v4, %v6417_v4  ;;  %v8756_v40 = vld [vmem:[#allocation5_spill] sm:$0xff] }
 0x24f   : > { %v6143_v0 = vadd.f32 %v6142_v14, %v6141_v63  ;;  %v6438_v43 = vadd.f32 %v8754_v33, %v6140_v53  ;;  %v5713_v16 = vpack.c.bf16 %v6421_v42, %v6413_v6  ;;  %v5039_v41 = vadd.f32 %v6421_v42, %v5038_v46 }
 0x250   : > { %v5107_v62 = vadd.f32 %v5106_v27, %v5076_v24  ;;  %v5077_v28 = vmul.f32 %v6421_v42, %v6421_v42  ;;  %5781 = vst [vmem:[%s8674_s28 + $0x38] sm:$0xff] %v5718_v56  }
 0x251   : > { %v6444_v48 = vadd.f32 %v8755_v49, %v6143_v0  ;;  %5780 = vst [vmem:[%s8674_s28 + $0x30] sm:$0xff] %v5713_v16   ;;  %v5040_v20 = vadd.f32 %v6409_v38, %v5039_v41  ;;  %v6328_v10 = vpop.f32.mrb[0].mxu1 }
 0x252   : > { %v5108_v22 = vadd.f32 %v5107_v62, %v5077_v28  ;;  %v6424_v9 = vadd.f32 %v6423_v5, %v6328_v10  ;;  %v4772_v15 = vpop.f32.mrb[1].mxu1 }
 0x253   : > { %v6144_v31 = vpop.f32.mrb[124].mxu0  ;;  %v6427_v61 = vadd.f32 %v8688_v59, %v4772_v15  ;;  %v5041_v58 = vadd.f32 %v6417_v4, %v5040_v20  ;;  %v6329_v52 = vpop.f32.mrb[2].mxu1 }
 0x254   : > { %v5109_v12 = vadd.f32 %v5108_v22, %v5078_v3  ;;  %v6145_v30 = vpop.f32.mrb[125].mxu0  ;;  %v6430_v37 = vadd.f32 %v6429_v34, %v6329_v52  ;;  %v4775_v51 = vpop.f32.mrb[3].mxu1  ;;  %v5082_v34 = vmul.f32 %v6424_v9, %v6424_v9 }
 0x255   : > { %v6146_v7 = vadd.f32 %v6145_v30, %v6144_v31  ;;  %v6147_v35 = vpop.f32.mrb[126].mxu0  ;;  %v5042_v23 = vadd.f32 %v6427_v61, %v5041_v58  ;;  %v5080_v29 = vmul.f32 %v6427_v61, %v6427_v61  ;;  %v6433_v5 = vadd.f32 %v8692_v25, %v4775_v51 }
 0x256   : > { %v6148_v19 = vpop.f32.mrb[127].mxu0  ;;  %v5110_v2 = vadd.f32 %v5109_v12, %v5079_v17  ;;  %v5728_v45 = vpack.c.bf16 %v6430_v37, %v6424_v9  ;;  %v5083_v25 = vmul.f32 %v6430_v37, %v6430_v37 }
 0x257   : > { %v6149_v36 = vadd.f32 %v6148_v19, %v6147_v35  ;;  %v6435_v13 = vadd.f32 %v8577_v50, %v6146_v7  ;;  %v5723_v59 = vpack.c.bf16 %v6433_v5, %v6427_v61  ;;  %v5043_v60 = vadd.f32 %v6433_v5, %v5042_v23 }
 0x258   : > { %v5111_v38 = vadd.f32 %v5110_v2, %v5080_v29  ;;  %v5081_v11 = vmul.f32 %v6433_v5, %v6433_v5  ;;  %5783 = vst [vmem:[%s8674_s28 + $0x48] sm:$0xff] %v5728_v45  }
 0x259   : > { %v6441_v54 = vadd.f32 %v8756_v40, %v6149_v36  ;;  %5782 = vst [vmem:[%s8674_s28 + $0x40] sm:$0xff] %v5723_v59   ;;  %v5044_v6 = vadd.f32 %v6424_v9, %v5043_v60  ;;  %v6332_v47 = vpop.f32.mrb[4].mxu1 }
 0x25a   : > { %v5112_v39 = vadd.f32 %v5111_v38, %v5081_v11  ;;  %v6436_v63 = vadd.f32 %v6435_v13, %v6332_v47  ;;  %v4788_v4 = vpop.f32.mrb[5].mxu1 }
 0x25b   : > { %v6150_v53 = vpop.f32.mrb[128].mxu0  ;;  %v6439_v46 = vadd.f32 %v6438_v43, %v4788_v4  ;;  %v5045_v50 = vadd.f32 %v6430_v37, %v5044_v6  ;;  %v6333_v24 = vpop.f32.mrb[6].mxu1 }
 0x25c   : > { %v5113_v1 = vadd.f32 %v5112_v39, %v5082_v34  ;;  %v6151_v14 = vpop.f32.mrb[129].mxu0  ;;  %v6442_v0 = vadd.f32 %v6441_v54, %v6333_v24  ;;  %v4791_v56 = vpop.f32.mrb[7].mxu1  ;;  %v5086_v15 = vmul.f32 %v6436_v63, %v6436_v63 }
 0x25d   : > { %v6152_v27 = vadd.f32 %v6151_v14, %v6150_v53  ;;  %v6153_v42 = vpop.f32.mrb[130].mxu0  ;;  %v5046_v62 = vadd.f32 %v6439_v46, %v5045_v50  ;;  %v5084_v16 = vmul.f32 %v6439_v46, %v6439_v46  ;;  %v6445_v28 = vadd.f32 %v6444_v48, %v4791_v56 }
 0x25e   : > { %v6154_v33 = vpop.f32.mrb[131].mxu0  ;;  %v5114_v41 = vadd.f32 %v5113_v1, %v5083_v25  ;;  %v5738_v3 = vpack.c.bf16 %v6442_v0, %v6436_v63  ;;  %v5087_v52 = vmul.f32 %v6442_v0, %v6442_v0 }
 0x25f   : > { %v6155_v49 = vadd.f32 %v6154_v33, %v6153_v42  ;;  %v6450_v20 = vadd.f32 %v8581_v26, %v6152_v27  ;;  %v5733_v10 = vpack.c.bf16 %v6445_v28, %v6439_v46  ;;  %v5047_v43 = vadd.f32 %v6445_v28, %v5046_v62 }
 0x260   : > { %v5115_v22 = vadd.f32 %v5114_v41, %v5084_v16  ;;  %v5085_v31 = vmul.f32 %v6445_v28, %v6445_v28  ;;  %5785 = vst [vmem:[%s8674_s28 + $0x58] sm:$0xff] %v5738_v3  }
 0x261   : > { %v6456_v9 = vadd.f32 %v8583_v55, %v6155_v49  ;;  %5784 = vst [vmem:[%s8674_s28 + $0x50] sm:$0xff] %v5733_v10   ;;  %v5048_v17 = vadd.f32 %v6436_v63, %v5047_v43  ;;  %v6336_v30 = vpop.f32.mrb[8].mxu1 }
 0x262   : > { %v5116_v12 = vadd.f32 %v5115_v22, %v5085_v31  ;;  %v4804_v58 = vpop.f32.mrb[9].mxu1 }
 0x263   : > { %v6156_v61 = vpop.f32.mrb[132].mxu0  ;;  %v6451_v35 = vadd.f32 %v6450_v20, %v4804_v58  ;;  %v5049_v37 = vadd.f32 %v6442_v0, %v5048_v17  ;;  %v6337_v26 = vpop.f32.mrb[10].mxu1 }
 0x264   : > { %v5117_v48 = vadd.f32 %v5116_v12, %v5086_v15  ;;  %v6157_v7 = vpop.f32.mrb[133].mxu0  ;;  %v4807_v23 = vpop.f32.mrb[11].mxu1 }
 0x265   : > { %v6158_v51 = vadd.f32 %v6157_v7, %v6156_v61  ;;  %v6159_v19 = vpop.f32.mrb[134].mxu0  ;;  %v5050_v2 = vadd.f32 %v6451_v35, %v5049_v37  ;;  %v5088_v55 = vmul.f32 %v6451_v35, %v6451_v35  ;;  %v6457_v36 = vadd.f32 %v6456_v9, %v4807_v23 }
 0x266   : > { %v6160_v29 = vpop.f32.mrb[135].mxu0  ;;  %v5118_v5 = vadd.f32 %v5117_v48, %v5087_v52 }
 0x267   : > { %v6161_v45 = vadd.f32 %v6160_v29, %v6159_v19  ;;  %v6447_v13 = vadd.f32 %v8587_v57, %v6158_v51  ;;  %v5743_v59 = vpack.c.bf16 %v6457_v36, %v6451_v35  ;;  %v5051_v60 = vadd.f32 %v6457_v36, %v5050_v2 }
 0x268   : > { %v5119_v38 = vadd.f32 %v5118_v5, %v5088_v55  ;;  %v5089_v11 = vmul.f32 %v6457_v36, %v6457_v36 }
 0x269   : > { %v6448_v40 = vadd.f32 %v6447_v13, %v6336_v30  ;;  %v6453_v54 = vadd.f32 %v8597_v8, %v6161_v45  ;;  %5786 = vst [vmem:[%s8674_s28 + $0x60] sm:$0xff] %v5743_v59   ;;  %v6340_v6 = vpop.f32.mrb[12].mxu1 }
 0x26a   : > { %v5120_v34 = vadd.f32 %v5119_v38, %v5089_v11  ;;  %v4820_v4 = vpop.f32.mrb[13].mxu1 }
 0x26b   : > { %v5090_v39 = vmul.f32 %v6448_v40, %v6448_v40  ;;  %v6454_v47 = vadd.f32 %v6453_v54, %v6337_v26  ;;  %v5052_v53 = vadd.f32 %v6448_v40, %v5051_v60  ;;  %v6162_v63 = vpop.f32.mrb[136].mxu0  ;;  %v6341_v1 = vpop.f32.mrb[14].mxu1 }
 0x26c   : > { %v6163_v25 = vpop.f32.mrb[137].mxu0  ;;  %v4823_v27 = vpop.f32.mrb[15].mxu1 }
 0x26d   : > { %v5748_v14 = vpack.c.bf16 %v6454_v47, %v6448_v40  ;;  %v5091_v57 = vmul.f32 %v6454_v47, %v6454_v47  ;;  %v5121_v46 = vadd.f32 %v5120_v34, %v5090_v39  ;;  %v6164_v50 = vadd.f32 %v6163_v25, %v6162_v63  ;;  %v6165_v24 = vpop.f32.mrb[138].mxu0 }
 0x26e   : > { %v6166_v42 = vpop.f32.mrb[139].mxu0  ;;  %v5053_v0 = vadd.f32 %v6454_v47, %v5052_v53 }
 0x26f   : > { %5787 = vst [vmem:[%s8674_s28 + $0x68] sm:$0xff] %v5748_v14   ;;  %v6167_v8 = vadd.f32 %v6166_v42, %v6165_v24  ;;  %v6462_v56 = vadd.f32 %v8609_v32, %v6164_v50  ;;  %v5122_v33 = vadd.f32 %v5121_v46, %v5091_v57 }
 0x271   : > { %v6463_v62 = vadd.f32 %v6462_v56, %v4820_v4  ;;  %v6468_v16 = vadd.f32 %v8616_v18, %v6167_v8 }
 0x273   : > { %v5054_v41 = vadd.f32 %v6463_v62, %v5053_v0  ;;  %v5092_v28 = vmul.f32 %v6463_v62, %v6463_v62  ;;  %v6469_v49 = vadd.f32 %v6468_v16, %v4823_v27  ;;  %v6168_v3 = vpop.f32.mrb[140].mxu0 }
 0x274   : > { %v6169_v20 = vpop.f32.mrb[141].mxu0 }
 0x275   : > { %v5123_v22 = vadd.f32 %v5122_v33, %v5092_v28  ;;  %v5753_v10 = vpack.c.bf16 %v6469_v49, %v6463_v62  ;;  %v5055_v43 = vadd.f32 %v6469_v49, %v5054_v41  ;;  %v5093_v31 = vmul.f32 %v6469_v49, %v6469_v49  ;;  %v6171_v9 = vpop.f32.mrb[142].mxu0 }
 0x276   : > { %v6170_v15 = vadd.f32 %v6169_v20, %v6168_v3  ;;  %v6172_v17 = vpop.f32.mrb[143].mxu0 }
 0x277   : > { %5788 = vst [vmem:[%s8674_s28 + $0x70] sm:$0xff] %v5753_v10   ;;  %v5124_v32 = vadd.f32 %v5123_v22, %v5093_v31  ;;  %v6173_v12 = vadd.f32 %v6172_v17, %v6171_v9 }
 0x278   : > { %v6459_v30 = vadd.f32 %v8625_v21, %v6170_v15 }
 0x279   : > { %v6465_v18 = vadd.f32 %v8630_v44, %v6173_v12 }
 0x27a   : > { %v6460_v61 = vadd.f32 %v6459_v30, %v6340_v6 }
 0x27b   : > { %v6466_v58 = vadd.f32 %v6465_v18, %v6341_v1 }
 0x27c   : > { %v5056_v52 = vadd.f32 %v6460_v61, %v5055_v43  ;;  %v5094_v48 = vmul.f32 %v6460_v61, %v6460_v61 }
 0x27d   : > { %v5758_v7 = vpack.c.bf16 %v6466_v58, %v6460_v61  ;;  %v5095_v35 = vmul.f32 %v6466_v58, %v6466_v58 }
 0x27e   : > { %v5125_v37 = vadd.f32 %v5124_v32, %v5094_v48  ;;  %v5057_v26 = vadd.f32 %v6466_v58, %v5056_v52 }
 0x27f   : > { %5789 = vst [vmem:[%s8674_s28 + $0x78] sm:$0xff] %v5758_v7  }
 0x280   : > { %v5058_v51 = vrot.slane %v5057_v26, 4  ;;  %v5126_v19 = vadd.f32 %v5125_v37, %v5095_v35 }
 0x282   : > { %v5059_v23 = vadd.f32 %v5058_v51, %v5057_v26  ;;  %v5127_v29 = vrot.slane %v5126_v19, 4 }
 0x284   : > { %v5060_v2 = vrot.slane %v5059_v23, 2  ;;  %v5128_v55 = vadd.f32 %v5127_v29, %v5126_v19 }
 0x286   : > { %v5061_v5 = vadd.f32 %v5060_v2, %v5059_v23  ;;  %v5129_v21 = vrot.slane %v5128_v55, 2 }
 0x288   : > { %v5062_v36 = vrot.slane %v5061_v5, 1  ;;  %v5130_v44 = vadd.f32 %v5129_v21, %v5128_v55 }
 0x28a   : > { %v5131_v45 = vrot.slane %v5130_v44, 1  ;;  %v5063_v13 = vadd.f32 %v5062_v36, %v5061_v5 }
 0x28c   : > { %v5132_v38 = vadd.f32 %v5131_v45, %v5130_v44 }
 0x28e   : > { %v5134_v59 = vsel %vm571_vm1, %v5063_v13, %v5132_v38 }
 0x28f   : > { %v5136_v60 = vsel %vm5135_vm9, %v5134_v59, 0.0 }
 0x290   : > { %5137 = vst [vmem:[%s235_s7] sm:$0xff] %v5136_v60 }
 0x291 PF: > { %s16_s18 = sadd.s32 1, %s6704_s18  }
 0x292   : > { %p13_p4 = scmp.ge.s32.totalorder %s16_s18, 4  }
 0x294   :  { %15 = sbr.rel (!%p13_p4) target bundleno = 1 (0x1), region = 81 }

// kernel: basic_block.3
= control target key start
LH: loop header
LB: loop body
LE: loop exit
PB: predicated region body
PF: predicated region fallthrough
CT: control target
= control target key end

     0   :  { %s6545_s12 = smov 0   ;;  %s8365_s0 = inlined_call_operand.vmem [shape: bf16[2,16,16,128], index: 0, kind: input, shape index: {}]   ;;  %s8366_s1 = inlined_call_operand.vmem [shape: bf16[1152,128], index: 1, kind: input, shape index: {}]   ;;  %s8367_s2 = inlined_call_operand.vmem [shape: bf16[2,16,16,128], index: 2, kind: output, shape index: {0}]   ;;  %s8368_s3 = inlined_call_operand.vmem [shape: f32[2,8,128], index: 3, kind: output, shape index: {1}]  }
   0x1 LB: > { %s5092_s13 = sadd.s32 4294967295, %s6522_s12   ;;  %p5096_p0 = scmp.ge.s32.totalorder %s6522_s12, 1  ;;  %s6522_s12 = sphi %s6545_s12, %s14_s12  }
   0x2   : > { %p140_p1 = scmp.lt.s32.totalorder %s6522_s12, 3 }
   0x4   : > { %p141_p2 = pnand %p5096_p0, %p140_p1 }
   0x5   : > { %v6556_v0 = vld [vmem:[%s8366_s1 + $0x140] sm:$0xff] (!%p141_p2)   ;;  %v6569_v3 = vld [vmem:[%s8366_s1 + $0x148] sm:$0xff] (!%p141_p2)   ;;  %v6581_v6 = vld [vmem:[%s8366_s1 + $0x150] sm:$0xff] (!%p141_p2)   ;;  %v6524_v8 = vmov (!%p141_p2), 0   ;;  %p168_p3 = scmp.lt.s32.totalorder (!%p141_p2), %s5092_s13, 1  ;;  %vm439_vm0 = vcmask (!%p141_p2), 1040384  }
   0x6   : > { %144 = sbr.rel (%p141_p2) target bundleno = 615 (0x267), region = 28  ;;  %v6331_v1 = vld [vmem:[%s8366_s1 + $0x100] sm:$0xff] (!%p141_p2)   ;;  %6145 = vmatprep.subr.bf16.mxu1 (!%p141_p2), %v6556_v0  ;;  %v6334_v4 = vld [vmem:[%s8366_s1 + $0x108] sm:$0xff] (!%p141_p2)   ;;  %v6337_v7 = vld [vmem:[%s8366_s1 + $0x110] sm:$0xff] (!%p141_p2)   ;;  %699 = vst [vmem:[#allocation2] sm:$0xf] (!%p141_p2), %v6524_v8 }
   0x7   : > { %v6332_v2 = vld [vmem:[%s8366_s1 + $0xc0] sm:$0xff] (!%p141_p2)   ;;  %6153 = vmatpush3.bf16.msra.mxu1 (!%p141_p2), %v6556_v0  ;;  %5593 = vmatprep.subr.bf16.mxu0 (!%p141_p2), %v6331_v1  ;;  %v6335_v5 = vld [vmem:[%s8366_s1 + $0xc8] sm:$0xff] (!%p141_p2)   ;;  %700 = vst [vmem:[#allocation2 + $0x4] sm:$0xf] (!%p141_p2), %v6524_v8  ;;  %701 = vst [vmem:[#allocation2 + $0x8] sm:$0x1] (!%p141_p2), %v6524_v8 }
   0x8   : > { %5594 = vmatpush3.bf16.msra.mxu0 (!%p141_p2), %v6332_v2  ;;  %6146 = vmatprep.subr.bf16.mxu1 (!%p141_p2), %v6569_v3  ;;  %703 = vst [vmem:[#allocation2 + $0xcc] sm:$0xf] (!%p141_p2), %v6524_v8  ;;  %704 = vst [vmem:[#allocation2 + $0xd0] sm:$0xf] (!%p141_p2), %v6524_v8  ;;  %v6338_v9 = vld [vmem:[%s8366_s1 + $0xd0] sm:$0xff] (!%p141_p2)   ;;  %v6594_v10 = vld [vmem:[%s8366_s1 + $0x158] sm:$0xff] (!%p141_p2)  }
   0x9   : > { %5595 = vmatprep.subr.bf16.mxu0 (!%p141_p2), %v6334_v4  ;;  %705 = vst [vmem:[#allocation2 + $0xd4] sm:$0x1] (!%p141_p2), %v6524_v8  ;;  %v6340_v11 = vld [vmem:[%s8366_s1 + $0x118] sm:$0xff] (!%p141_p2)   ;;  %v6609_v13 = vld [vmem:[%s8366_s1 + $0x160] sm:$0xff] (!%p141_p2)   ;;  %v6626_v16 = vld [vmem:[%s8366_s1 + $0x168] sm:$0xff] (!%p141_p2)   ;;  %vm1205_vm3 = vcmask (!%p141_p2), 1042432  }
   0xa   : > { %v6341_v12 = vld [vmem:[%s8366_s1 + $0xd8] sm:$0xff] (!%p141_p2)   ;;  %v6343_v14 = vld [vmem:[%s8366_s1 + $0x120] sm:$0xff] (!%p141_p2)   ;;  %v6346_v17 = vld [vmem:[%s8366_s1 + $0x128] sm:$0xff] (!%p141_p2)   ;;  %vm440_vm1 = vsmask.f32 (!%p141_p2), 256  ;;  %vm1206_vm4 = vcmask (!%p141_p2), 1046532  }
   0xb   : > { %6154 = vmatpush3.bf16.msra.mxu1 (!%p141_p2), %v6569_v3  ;;  %v6344_v15 = vld [vmem:[%s8366_s1 + $0xe0] sm:$0xff] (!%p141_p2)   ;;  %v6347_v18 = vld [vmem:[%s8366_s1 + $0xe8] sm:$0xff] (!%p141_p2)   ;;  %v6640_v19 = vld [vmem:[%s8366_s1 + $0x170] sm:$0xff] (!%p141_p2)   ;;  %vm754_vm6 = vsmask.f32 (!%p141_p2), 3328  ;;  %vm5003_vm9 = vcmask (!%p141_p2), 1041408  }
   0xc   : > { %5596 = vmatpush3.bf16.msra.mxu0 (!%p141_p2), %v6335_v5  ;;  %6147 = vmatprep.subr.bf16.mxu1 (!%p141_p2), %v6581_v6  ;;  %v6349_v20 = vld [vmem:[%s8366_s1 + $0x130] sm:$0xff] (!%p141_p2)   ;;  %v6658_v22 = vld [vmem:[%s8366_s1 + $0x178] sm:$0xff] (!%p141_p2)   ;;  %vm6673_vm2 = vmand (!%p141_p2), %vm439_vm0, %vm440_vm1  ;;  %vm755_vm7 = vsmask.f32 (!%p141_p2), 7440 }
   0xd   : > { %5597 = vmatprep.subr.bf16.mxu0 %v6337_v7  ;;  %s8376_s13 = smov (!%p168_p3, %s5092_s13), 1  ;;  %v6350_v21 = vld [vmem:[%s8366_s1 + $0xf0] sm:$0xff]   ;;  %v6352_v23 = vld [vmem:[%s8366_s1 + $0x138] sm:$0xff]   ;;  %v6356_v33 = vld [vmem:[%s8366_s1 + $0x40] sm:$0xff]  }
   0xe   : > { %s5464_s23 = sshll.u32 %s8376_s13, 7  ;;  %v6353_v28 = vld [vmem:[%s8366_s1 + $0xf8] sm:$0xff]   ;;  %vm6705_vm5 = vmor %vm1205_vm3, %vm1206_vm4 }
   0xf   : > { %6155 = vmatpush3.bf16.msra.mxu1 %v6581_v6  ;;  %s6650_s5 = scalar_lea.vmem %s8365_s0, %s5464_s23  ;;  %vm6754_vm8 = vmor %vm754_vm6, %vm755_vm7  ;;  %s8299_s21 = scalar_lea.vmem %s8367_s2, %s5464_s23 }
  0x10   : > { %5598 = vmatpush3.bf16.msra.mxu0 %v6338_v9  ;;  %6148 = vmatprep.subr.bf16.mxu1 %v6594_v10  ;;  %v6354_v24 = vld [vmem:[%s6650_s5 + $0x40] sm:$0xff]   ;;  %v6355_v27 = vld [vmem:[%s6650_s5 + $0x48] sm:$0xff]   ;;  %v6362_v49 = vld [vmem:[%s6650_s5 + $0x50] sm:$0xff]   ;;  %s5101_s23 = sshll.u32 %s8376_s13, 3 }
  0x11   : > { %5599 = vmatprep.subr.bf16.mxu0 %v6340_v11  ;;  %v352_v25 = vshrl.u32 %v6354_v24, 16  ;;  %v355_v26 = vshll.u32 %v6354_v24, 16  ;;  %v359_v31 = vshrl.u32 %v6355_v27, 16  ;;  %v362_v32 = vshll.u32 %v6355_v27, 16  ;;  %v6358_v34 = vld [vmem:[%s6650_s5] sm:$0xff]   ;;  %v6363_v54 = vld [vmem:[%s6650_s5 + $0x58] sm:$0xff]   ;;  %s181_s25 = scalar_lea.vmem %s8368_s3, %s5101_s23 }
  0x12   : > { %v296_v39 = vshrl.u32 %v6358_v34, 16  ;;  %v299_v40 = vshll.u32 %v6358_v34, 16  ;;  %v366_v56 = vshrl.u32 %v6362_v49, 16  ;;  %v369_v57 = vshll.u32 %v6362_v49, 16  ;;  %v6698_v61 = vld [vmem:[%s6650_s5 + $0x8] sm:$0xff]  }
  0x13   : > { %6156 = vmatpush3.bf16.msra.mxu1 %v6594_v10  ;;  %v354_v29 = vrot.slane %v352_v25, 7  ;;  %v361_v37 = vrot.slane %v359_v31, 7  ;;  %v373_v59 = vshrl.u32 %v6363_v54, 16  ;;  %v376_v60 = vshll.u32 %v6363_v54, 16 }
  0x14   : > { %5600 = vmatpush3.bf16.msra.mxu0 %v6341_v12  ;;  %6149 = vmatprep.subr.bf16.mxu1 %v6609_v13  ;;  %v298_v47 = vrot.slane %v296_v39, 7  ;;  %v368_v1 = vrot.slane %v366_v56, 7  ;;  %v303_v4 = vshrl.u32 %v6698_v61, 16  ;;  %v306_v9 = vshll.u32 %v6698_v61, 16 }
  0x15   : > { %5601 = vmatprep.subr.bf16.mxu0 %v6343_v14  ;;  %v357_v35 = vor.u32 %v355_v26, %v354_v29  ;;  %v466_v36 = vsel %vm6673_vm2, %v354_v29, 0  ;;  %v364_v42 = vor.u32 %v362_v32, %v361_v37  ;;  %v467_v43 = vsel %vm6673_vm2, %v361_v37, 0 }
  0x16   : > { %v5144_v38 = vcombine.low %v466_v36, %v466_v36  ;;  %v5147_v46 = vcombine.low %v467_v43, %v467_v43  ;;  %v301_v52 = vor.u32 %v299_v40, %v298_v47  ;;  %v458_v53 = vsel %vm6673_vm2, %v298_v47, 0 }
  0x17   : > { %6157 = vmatpush3.bf16.msra.mxu1 %v6609_v13  ;;  %v450_v41 = vsel %vm6673_vm2, 0, %v357_v35  ;;  %v451_v48 = vsel %vm6673_vm2, 0, %v364_v42  ;;  %v5120_v55 = vcombine.low %v458_v53, %v458_v53  ;;  %v375_v2 = vrot.slane %v373_v59, 7  ;;  %v6741_v53 = vld [vmem:[%s6650_s5 + $0x68] sm:$0xff]  }
  0x18   : > { %5602 = vmatpush3.bf16.msra.mxu0 %v6344_v15  ;;  %6150 = vmatprep.subr.bf16.mxu1 %v6626_v16  ;;  %v5142_v44 = vcombine.low %v450_v41, %v450_v41  ;;  %v5143_v45 = vcombine.high %v450_v41, %v450_v41  ;;  %677 = vst [vmem:[#allocation2 + $0x74] sm:$0x1] %v5144_v38  ;;  %680 = vst [vmem:[#allocation2 + $0x80] sm:$0x1] %v5147_v46  ;;  %v442_v58 = vsel %vm6673_vm2, 0, %v301_v52  ;;  %v6722_v41 = vld [vmem:[%s6650_s5 + $0x60] sm:$0xff]  }
  0x19   : > { %5603 = vmatprep.subr.bf16.mxu0 %v6346_v17  ;;  %v5145_v50 = vcombine.low %v451_v48, %v451_v48  ;;  %v5146_v51 = vcombine.high %v451_v48, %v451_v48  ;;  %v5118_v62 = vcombine.low %v442_v58, %v442_v58  ;;  %v5119_v63 = vcombine.high %v442_v58, %v442_v58 }
  0x1a   : > { %675 = vst [vmem:[#allocation2 + $0x6c] sm:$0xf] %v5142_v44  ;;  %676 = vst [vmem:[#allocation2 + $0x70] sm:$0xf] %v5143_v45  ;;  %v371_v7 = vor.u32 %v369_v57, %v368_v1  ;;  %v468_v8 = vsel %vm6673_vm2, %v368_v1, 0  ;;  %v378_v17 = vor.u32 %v376_v60, %v375_v2  ;;  %v6357_v45 = vld [vmem:[%s8366_s1] sm:$0xff]  }
  0x1b   : > { %6158 = vmatpush3.bf16.msra.mxu1 %v6626_v16  ;;  %678 = vst [vmem:[#allocation2 + $0x78] sm:$0xf] %v5145_v50  ;;  %679 = vst [vmem:[#allocation2 + $0x7c] sm:$0xf] %v5146_v51  ;;  %v5150_v15 = vcombine.low %v468_v8, %v468_v8  ;;  %v469_v48 = vsel %vm6673_vm2, %v375_v2, 0 }
  0x1c   : > { %5604 = vmatpush3.bf16.msra.mxu0 %v6347_v18  ;;  %6151 = vmatprep.subr.bf16.mxu1 %v6640_v19  ;;  %653 = vst [vmem:[#allocation2 + $0x14] sm:$0x1] %v5120_v55  ;;  %651 = vst [vmem:[#allocation2 + $0xc] sm:$0xf] %v5118_v62  ;;  %v452_v29 = vsel %vm6673_vm2, 0, %v371_v7  ;;  %v453_v31 = vsel %vm6673_vm2, 0, %v378_v17 }
  0x1d   : > { %5605 = vmatprep.subr.bf16.mxu0 %v6349_v20  ;;  %652 = vst [vmem:[#allocation2 + $0x10] sm:$0xf] %v5119_v63  ;;  %683 = vst [vmem:[#allocation2 + $0x8c] sm:$0x1] %v5150_v15  ;;  %v5148_v39 = vcombine.low %v452_v29, %v452_v29  ;;  %v5149_v40 = vcombine.high %v452_v29, %v452_v29  ;;  %v6360_v62 = vld [vmem:[%s8366_s1 + $0x48] sm:$0xff]   ;;  %v5152_v7 = vcombine.high %v453_v31, %v453_v31 }
  0x1e   : > { %v380_v15 = vshrl.u32 %v6722_v41, 16 }
  0x1f   : > { %6159 = vmatpush3.bf16.msra.mxu1 %v6640_v19  ;;  %v1616_v5 = vld [vmem:[#allocation2 + $0x74] sm:$0x1]  ;;  %681 = vst [vmem:[#allocation2 + $0x84] sm:$0xf] %v5148_v39  ;;  %682 = vst [vmem:[#allocation2 + $0x88] sm:$0xf] %v5149_v40 }
  0x20   : > { %5606 = vmatpush3.bf16.msra.mxu0 %v6350_v21  ;;  %6152 = vmatprep.subr.bf16.mxu1 %v6658_v22  ;;  %v1836_v12 = vshll.u32 %v1616_v5, 16  ;;  %v2133_v14 = vrot.slane %v1616_v5, 5  ;;  %v1617_v21 = vld [vmem:[#allocation2 + $0x80] sm:$0x1]  ;;  %v5151_v5 = vcombine.low %v453_v31, %v453_v31  ;;  %685 = vst [vmem:[#allocation2 + $0x94] sm:$0xf] %v5152_v7 }
  0x21   : > { %5607 = vmatprep.subr.bf16.mxu0 %v6352_v23  ;;  %v1593_v18 = vld [vmem:[#allocation2 + $0x70] sm:$0xf]  ;;  %v2016_v20 = vld [vmem:[#allocation2 + $0x6c] sm:$0xe]  ;;  %v2140_v26 = vrot.slane %v1617_v21, 5  ;;  %v383_v21 = vshll.u32 %v6722_v41, 16 }
  0x22   : > { %v6709_v23 = vrot.slane %v1836_v12, 5  ;;  %v5238_v24 = vrot.slane %v2016_v20, 9  ;;  %v2130_v25 = vrot.slane %v1593_v18, 5  ;;  %v1595_v27 = vld [vmem:[#allocation2 + $0x7c] sm:$0xf]  ;;  %v5153_v12 = vcombine.low %v469_v48, %v469_v48  ;;  %v6361_v20 = vld [vmem:[%s8366_s1 + $0x8] sm:$0xff]  }
  0x23   : > { %6160 = vmatpush3.bf16.msra.mxu1 %v6658_v22  ;;  %v2137_v35 = vrot.slane %v1595_v27, 5  ;;  %v6717_v36 = vld [vmem:[#allocation2 + $0x14] sm:$0x1]  ;;  %v6731_v46 = vld [vmem:[#allocation2 + $0xc] sm:$0xf]  ;;  %v382_v29 = vrot.slane %v380_v15, 7 }
  0x24   : > { %5608 = vmatpush3.bf16.msra.mxu0 %v6353_v28  ;;  %5729 = vmatprep.subr.bf16.mxu1 %v6356_v33  ;;  %v2017_v28 = vld [vmem:[#allocation2 + $0x78] sm:$0xe]  ;;  %v2131_v32 = vsel %vm6705_vm5, %v5238_v24, %v2130_v25  ;;  %v2132_v33 = vrot.slane %v2130_v25, 4  ;;  %v1644_v37 = vshll.u32 %v6717_v36, 16  ;;  %v2077_v38 = vrot.slane %v6717_v36, 5 }
  0x25   : > { %6001 = vmatprep.subr.bf16.mxu0 %v6556_v0  ;;  %v5239_v34 = vrot.slane %v2017_v28, 9  ;;  %v2139_v44 = vrot.slane %v2137_v35, 4  ;;  %v6733_v47 = vld [vmem:[#allocation2 + $0x10] sm:$0xf]  ;;  %v1625_v50 = vshrl.u32 %v6731_v46, 16  ;;  %v1628_v51 = vshll.u32 %v6731_v46, 16 }
  0x26   : > { %v2134_v42 = vsel %vm6705_vm5, %v2132_v33, %v2133_v14  ;;  %v1634_v52 = vshll.u32 %v6733_v47, 16  ;;  %v1638_v55 = vshrl.u32 %v6733_v47, 16  ;;  %v1646_v56 = vrot.slane %v1644_v37, 5  ;;  %v1618_v63 = vld [vmem:[#allocation2 + $0x8c] sm:$0x1] }
  0x27   : > { %v2138_v43 = vsel %vm6705_vm5, %v5239_v34, %v2137_v35  ;;  %v5286_v49 = vcombine.low %v2131_v32, %v2134_v42  ;;  %v2141_v54 = vsel %vm6705_vm5, %v2139_v44, %v2140_v26  ;;  %v1627_v58 = vrot.slane %v1625_v50, 4  ;;  %684 = vst [vmem:[#allocation2 + $0x90] sm:$0xf] %v5151_v5  ;;  %686 = vst [vmem:[#allocation2 + $0x98] sm:$0x1] %v5153_v12  ;;  %v6364_v26 = vld [vmem:[%s8366_s1 + $0x50] sm:$0xff]  }
  0x28   : > { %v5287_v57 = vcombine.low %v2138_v43, %v2141_v54  ;;  %v1630_v59 = vrot.slane %v1628_v51, 5  ;;  %v1636_v60 = vrot.slane %v1634_v52, 5  ;;  %v1640_v1 = vrot.slane %v1638_v55, 4  ;;  %v1597_v33 = vld [vmem:[#allocation2 + $0x88] sm:$0xf]  ;;  %v6365_v35 = vld [vmem:[%s8366_s1 + $0x10] sm:$0xff]  }
  0x29   : > { %6033 = vmatprep.mubr.bf16.mxu1 %v5286_v49  ;;  %v2147_v2 = vrot.slane %v1618_v63, 5  ;;  %v305_v14 = vrot.slane %v303_v4, 7  ;;  %v387_v4 = vshrl.u32 %v6741_v53, 16  ;;  %v390_v24 = vshll.u32 %v6741_v53, 16  ;;  %v2018_v34 = vld [vmem:[#allocation2 + $0x84] sm:$0xe] }
  0x2a   : > { %6034 = vmatmul.mubr.bf16.vlgmr.msra.gmra.mrb[0].mxu1 %v5287_v57  ;;  %v1631_v8 = vor.u32 %v1630_v59, %v1627_v58  ;;  %v1641_v18 = vor.u32 %v1640_v1, %v1636_v60  ;;  %v5246_v32 = vcombine.low %v6731_v46, %v6733_v47  ;;  %v2144_v40 = vrot.slane %v1597_v33, 5  ;;  %v6368_v42 = vld [vmem:[%s8366_s1 + $0x58] sm:$0xff]   ;;  %v6784_v43 = vld [vmem:[%s6650_s5 + $0x10] sm:$0xff]  }
  0x2b   : > { %5730 = vmatpush3.bf16.msra.mxu1 %v6357_v45  ;;  %v308_v27 = vor.u32 %v306_v9, %v305_v14  ;;  %v459_v28 = vsel %vm6673_vm2, %v305_v14, 0  ;;  %v389_v39 = vrot.slane %v387_v4, 7  ;;  %v5240_v9 = vrot.slane %v2018_v34, 9  ;;  %v6793_v52 = vld [vmem:[%s6650_s5 + $0x70] sm:$0xff]   ;;  %v6796_v53 = vld [vmem:[%s6650_s5 + $0x78] sm:$0xff]  }
  0x2c   : > { %v1632_v25 = vrot.slane %v1631_v8, 4  ;;  %5731 = vmatprep.subr.bf16.mxu1 %v6360_v62  ;;  %v1642_v31 = vrot.slane %v1641_v18, 4  ;;  %v5123_v37 = vcombine.low %v459_v28, %v459_v28  ;;  %v385_v47 = vor.u32 %v383_v21, %v382_v29  ;;  %v6369_v54 = vld [vmem:[%s8366_s1 + $0x18] sm:$0xff]   ;;  %v6372_v18 = vld [vmem:[%s8366_s1 + $0x60] sm:$0xff]  }
  0x2d   : > { %v443_v41 = vsel %vm6673_vm2, 0, %v308_v27  ;;  %v2145_v49 = vsel %vm6705_vm5, %v5240_v9, %v2144_v40  ;;  %v2146_v50 = vrot.slane %v2144_v40, 4  ;;  %v470_v51 = vsel %vm6673_vm2, %v382_v29, 0 }
  0x2e   : > { %v1637_v61 = vsel %vm6754_vm8, %v1632_v25, %v1636_v60  ;;  %v1647_v44 = vsel %vm6754_vm8, %v1642_v31, %v1646_v56  ;;  %v5121_v45 = vcombine.low %v443_v41, %v443_v41  ;;  %v5122_v46 = vcombine.high %v443_v41, %v443_v41  ;;  %656 = vst [vmem:[#allocation2 + $0x20] sm:$0x1] %v5123_v37  ;;  %v1599_v60 = vld [vmem:[#allocation2 + $0x94] sm:$0xf]  ;;  %v2019_v62 = vld [vmem:[#allocation2 + $0x90] sm:$0xe] }
  0x2f   : > { %5732 = vmatpush3.bf16.msra.mxu1 %v6361_v20  ;;  %v5262_v48 = vcombine.low %v1637_v61, %v1647_v44  ;;  %v454_v55 = vsel %vm6673_vm2, 0, %v385_v47  ;;  %v5156_v56 = vcombine.low %v470_v51, %v470_v51  ;;  %v392_v57 = vor.u32 %v390_v24, %v389_v39  ;;  %v1619_v8 = vld [vmem:[#allocation2 + $0x98] sm:$0x1] }
  0x30   : > { %5733 = vmatprep.subr.bf16.mxu1 %v6364_v26  ;;  %654 = vst [vmem:[#allocation2 + $0x18] sm:$0xf] %v5121_v45  ;;  %655 = vst [vmem:[#allocation2 + $0x1c] sm:$0xf] %v5122_v46  ;;  %v471_v58 = vsel %vm6673_vm2, %v389_v39, 0  ;;  %v2148_v59 = vsel %vm6705_vm5, %v2146_v50, %v2147_v2  ;;  %v5154_v63 = vcombine.low %v454_v55, %v454_v55  ;;  %v5241_v12 = vrot.slane %v2019_v62, 9 }
  0x31   : > { %2616 = vmatprep.mubr.bf16.mxu0 %v5262_v48  ;;  %v5155_v1 = vcombine.high %v454_v55, %v454_v55  ;;  %v5159_v5 = vcombine.low %v471_v58, %v471_v58  ;;  %v5288_v7 = vcombine.low %v2145_v49, %v2148_v59  ;;  %v2151_v14 = vrot.slane %v1599_v60, 5  ;;  %689 = vst [vmem:[#allocation2 + $0xa4] sm:$0x1] %v5156_v56  ;;  %v6373_v26 = vld [vmem:[%s8366_s1 + $0x20] sm:$0xff]   ;;  %v6376_v39 = vld [vmem:[%s8366_s1 + $0x68] sm:$0xff]   ;;  %v6380_v55 = vld [vmem:[%s8366_s1 + $0x70] sm:$0xff]  }
  0x32   : > { %2617 = vmatmul.mubr.bf16.vlgmr.msra.gmra.mrb[0].mxu0 %v5246_v32  ;;  %v455_v15 = vsel %vm6673_vm2, 0, %v392_v57  ;;  %v2154_v2 = vrot.slane %v1619_v8, 5  ;;  %687 = vst [vmem:[#allocation2 + $0x9c] sm:$0xf] %v5154_v63  ;;  %v310_v4 = vshrl.u32 %v6784_v43, 16  ;;  %v394_v27 = vshrl.u32 %v6793_v52, 16 }
  0x33   : > { %5734 = vmatpush3.bf16.msra.mxu1 %v6365_v35  ;;  %6002 = vmatpush3.bf16.msra.mxu0 %v6556_v0  ;;  %688 = vst [vmem:[#allocation2 + $0xa0] sm:$0xf] %v5155_v1  ;;  %v5157_v20 = vcombine.low %v455_v15, %v455_v15  ;;  %v5158_v21 = vcombine.high %v455_v15, %v455_v15  ;;  %692 = vst [vmem:[#allocation2 + $0xb0] sm:$0x1] %v5159_v5  ;;  %v2153_v25 = vrot.slane %v2151_v14, 4  ;;  %v6377_v49 = vld [vmem:[%s8366_s1 + $0x28] sm:$0xff]  }
  0x34   : > { %5735 = vmatprep.subr.bf16.mxu1 %v6368_v42  ;;  %6037 = vmatprep.mubr.bf16.mxu1 %v5288_v7  ;;  %v2152_v24 = vsel %vm6705_vm5, %v5241_v12, %v2151_v14  ;;  %v313_v0 = vshll.u32 %v6784_v43, 16  ;;  %v312_v29 = vrot.slane %v310_v4, 7  ;;  %v397_v31 = vshll.u32 %v6793_v52, 16 }
  0x35   : > { %6003 = vmatprep.subr.bf16.mxu0 %v6569_v3  ;;  %v6822_v28 = vld [vmem:[#allocation2 + $0x20] sm:$0x1]  ;;  %690 = vst [vmem:[#allocation2 + $0xa8] sm:$0xf] %v5157_v20  ;;  %691 = vst [vmem:[#allocation2 + $0xac] sm:$0xf] %v5158_v21  ;;  %v2155_v34 = vsel %vm6705_vm5, %v2153_v25, %v2154_v2 }
  0x36   : > { %v401_v32 = vshrl.u32 %v6796_v53, 16  ;;  %v404_v33 = vshll.u32 %v6796_v53, 16  ;;  %v1668_v35 = vshll.u32 %v6822_v28, 16  ;;  %v2084_v37 = vrot.slane %v6822_v28, 5  ;;  %v6904_v53 = vld [vmem:[%s8366_s1 + $0x80] sm:$0xff]  }
  0x37   : > { %5736 = vmatpush3.bf16.msra.mxu1 %v6369_v54  ;;  %v396_v61 = vrot.slane %v394_v27, 7  ;;  %v5289_v9 = vcombine.low %v2152_v24, %v2155_v34  ;;  %v6834_v40 = vld [vmem:[#allocation2 + $0x18] sm:$0xf]  ;;  %v6836_v41 = vld [vmem:[#allocation2 + $0x1c] sm:$0xf]  ;;  %v315_v42 = vor.u32 %v313_v0, %v312_v29  ;;  %v460_v43 = vsel %vm6673_vm2, %v312_v29, 0  ;;  %6004 = vmatpush3.bf16.msra.mxu0 %v6569_v3 }
  0x38   : > { %5737 = vmatprep.subr.bf16.mxu1 %v6372_v18  ;;  %v6841_v44 = vrot.slane %v401_v32, 7  ;;  %v1649_v45 = vshrl.u32 %v6834_v40, 16  ;;  %v1652_v46 = vshll.u32 %v6834_v40, 16  ;;  %v1658_v47 = vshll.u32 %v6836_v41, 16  ;;  %6005 = vmatprep.subr.bf16.mxu0 %v6581_v6  ;;  %v1620_v51 = vld [vmem:[#allocation2 + $0xa4] sm:$0x1] }
  0x39   : > { %v1662_v48 = vshrl.u32 %v6836_v41, 16  ;;  %6038 = vmatmul.mubr.bf16.gmra.mrb[4].mxu1 %v5289_v9  ;;  %v1670_v50 = vrot.slane %v1668_v35, 5  ;;  %v5247_v3 = vcombine.low %v6834_v40, %v6836_v41  ;;  %v444_v52 = vsel %vm6673_vm2, 0, %v315_v42  ;;  %v2020_v62 = vld [vmem:[#allocation2 + $0x9c] sm:$0xe] }
  0x3a   : > { %v5126_v54 = vcombine.low %v460_v43, %v460_v43  ;;  %v1651_v56 = vrot.slane %v1649_v45, 4  ;;  %v1654_v57 = vrot.slane %v1652_v46, 5  ;;  %v1660_v58 = vrot.slane %v1658_v47, 5  ;;  %v1601_v60 = vld [vmem:[#allocation2 + $0xa0] sm:$0xf]  ;;  %v6868_v32 = vld [vmem:[%s6650_s5 + $0x18] sm:$0xff]  }
  0x3b   : > { %v1664_v59 = vrot.slane %v1662_v48, 4  ;;  %5738 = vmatpush3.bf16.msra.mxu1 %v6373_v26  ;;  %v2158_v63 = vrot.slane %v1601_v60, 5  ;;  %v2161_v1 = vrot.slane %v1620_v51, 5  ;;  %v1621_v5 = vld [vmem:[#allocation2 + $0xb0] sm:$0x1]  ;;  %v5124_v7 = vcombine.low %v444_v52, %v444_v52  ;;  %6006 = vmatpush3.bf16.msra.mxu0 %v6581_v6  ;;  %v6384_v9 = vld [vmem:[%s8366_s1 + $0x78] sm:$0xff]  }
  0x3c   : > { %v5125_v8 = vcombine.high %v444_v52, %v444_v52  ;;  %659 = vst [vmem:[#allocation2 + $0x2c] sm:$0x1] %v5126_v54  ;;  %5739 = vmatprep.subr.bf16.mxu1 %v6376_v39  ;;  %v1655_v12 = vor.u32 %v1654_v57, %v1651_v56  ;;  %v5242_v15 = vrot.slane %v2020_v62, 9  ;;  %v1603_v18 = vld [vmem:[#allocation2 + $0xac] sm:$0xf]  ;;  %v2168_v20 = vrot.slane %v1621_v5, 5  ;;  %6007 = vmatprep.subr.bf16.mxu0 %v6594_v10 }
  0x3d   : > { %v1665_v14 = vor.u32 %v1664_v59, %v1660_v58  ;;  %v2021_v2 = vld [vmem:[#allocation2 + $0xa8] sm:$0xe]  ;;  %v2160_v21 = vrot.slane %v2158_v63, 4  ;;  %v2165_v24 = vrot.slane %v1603_v18, 5  ;;  %657 = vst [vmem:[#allocation2 + $0x24] sm:$0xf] %v5124_v7  ;;  %v399_v25 = vor.u32 %v397_v31, %v396_v61 }
  0x3e   : > { %v5243_v4 = vrot.slane %v2021_v2, 9  ;;  %658 = vst [vmem:[#allocation2 + $0x28] sm:$0xf] %v5125_v8  ;;  %v6381_v26 = vld [vmem:[%s8366_s1 + $0x30] sm:$0xff]   ;;  %v1656_v6 = vrot.slane %v1655_v12, 4  ;;  %v2159_v27 = vsel %vm6705_vm5, %v5242_v15, %v2158_v63  ;;  %v472_v29 = vsel %vm6673_vm2, %v396_v61, 0 }
  0x3f   : > { %v1666_v0 = vrot.slane %v1665_v14, 4  ;;  %5740 = vmatpush3.bf16.msra.mxu1 %v6377_v49  ;;  %v2162_v34 = vsel %vm6705_vm5, %v2160_v21, %v2161_v1  ;;  %v2167_v35 = vrot.slane %v2165_v24, 4  ;;  %v456_v39 = vsel %vm6673_vm2, 0, %v399_v25  ;;  %6008 = vmatpush3.bf16.msra.mxu0 %v6594_v10  ;;  %v6884_v46 = vld [vmem:[#allocation2] sm:$0xf]  ;;  %v6385_v10 = vld [vmem:[%s8366_s1 + $0x38] sm:$0xff]  }
  0x40   : > { %v2166_v31 = vsel %vm6705_vm5, %v5243_v4, %v2165_v24  ;;  %5741 = vmatprep.subr.bf16.mxu1 %v6380_v55  ;;  %v1661_v61 = vsel %vm6754_vm8, %v1656_v6, %v1660_v58  ;;  %v5290_v43 = vcombine.low %v2159_v27, %v2162_v34  ;;  %v5160_v45 = vcombine.low %v456_v39, %v456_v39  ;;  %v6919_v40 = vld [vmem:[#allocation2 + $0x4] sm:$0xf]  ;;  %v6929_v25 = vld [vmem:[#allocation2 + $0xc] sm:$0xf] }
  0x41   : > { %v1671_v42 = vsel %vm6754_vm8, %v1666_v0, %v1670_v50  ;;  %6009 = vmatprep.subr.bf16.mxu0 %v6609_v13  ;;  %v2169_v48 = vsel %vm6705_vm5, %v2167_v35, %v2168_v20  ;;  %v5161_v49 = vcombine.high %v456_v39, %v456_v39  ;;  %v5162_v51 = vcombine.low %v472_v29, %v472_v29 }
  0x42   : > { %v5263_v47 = vcombine.low %v1661_v61, %v1671_v42  ;;  %6041 = vmatprep.mubr.bf16.mxu1 %v5290_v43  ;;  %v5291_v52 = vcombine.low %v2166_v31, %v2169_v48  ;;  %693 = vst [vmem:[#allocation2 + $0xb4] sm:$0xf] %v5160_v45  ;;  %v406_v50 = vor.u32 %v404_v33, %v6841_v44  ;;  %v473_v55 = vsel %vm6673_vm2, %v6841_v44, 0  ;;  %v738_v61 = vld [vmem:[#allocation2 + $0x8] sm:$0x1] }
  0x43   : > { %v1610_v54 = vld [vmem:[#allocation2 + $0x2c] sm:$0x1]  ;;  %5742 = vmatpush3.bf16.msra.mxu1 %v6381_v26  ;;  %v317_v56 = vshrl.u32 %v6868_v32, 16  ;;  %694 = vst [vmem:[#allocation2 + $0xb8] sm:$0xf] %v5161_v49  ;;  %v5165_v58 = vcombine.low %v473_v55, %v473_v55  ;;  %v320_v59 = vshll.u32 %v6868_v32, 16  ;;  %6010 = vmatpush3.bf16.msra.mxu0 %v6609_v13  ;;  %v5182_v14 = vcombine.low %v6884_v46, %v6919_v40 }
  0x44   : > { %2624 = vmatprep.mubr.bf16.mxu0 %v5263_v47  ;;  %v1692_v57 = vshll.u32 %v1610_v54, 16  ;;  %695 = vst [vmem:[#allocation2 + $0xbc] sm:$0x1] %v5162_v51  ;;  %5743 = vmatprep.subr.bf16.mxu1 %v6384_v9  ;;  %v758_v60 = vshrl.u32 %v6884_v46, 16  ;;  %v6909_v33 = vld [vmem:[#allocation2 + $0x24] sm:$0xf] }
  0x45   : > { %2625 = vmatmul.mubr.bf16.gmra.mrb[4].mxu0 %v5247_v3  ;;  %6042 = vmatmul.mubr.bf16.gmra.mrb[8].mxu1 %v5291_v52  ;;  %v6911_v44 = vld [vmem:[#allocation2 + $0x28] sm:$0xf]  ;;  %v457_v62 = vsel %vm6673_vm2, 0, %v406_v50  ;;  %v319_v63 = vrot.slane %v317_v56, 7  ;;  %v1673_v1 = vshrl.u32 %v6909_v33, 16  ;;  %v1676_v5 = vshll.u32 %v6909_v33, 16 }
  0x46   : > { %v1682_v7 = vshll.u32 %v6911_v44, 16  ;;  %v1686_v8 = vshrl.u32 %v6911_v44, 16  ;;  %698 = vst [vmem:[#allocation2 + $0xc8] sm:$0x1] %v5165_v58  ;;  %v1694_v41 = vrot.slane %v1692_v57, 5  ;;  %v5163_v3 = vcombine.low %v457_v62, %v457_v62  ;;  %6011 = vmatprep.subr.bf16.mxu0 %v6626_v16 }
  0x47   : > { %v5164_v12 = vcombine.high %v457_v62, %v457_v62  ;;  %5744 = vmatpush3.bf16.msra.mxu1 %v6385_v10  ;;  %v1675_v15 = vrot.slane %v1673_v1, 4  ;;  %v1678_v18 = vrot.slane %v1676_v5, 5  ;;  %v322_v21 = vor.u32 %v320_v59, %v319_v63  ;;  %v6932_v32 = vld [vmem:[#allocation2 + $0x10] sm:$0xf]  ;;  %6012 = vmatpush3.bf16.msra.mxu0 %v6626_v16  ;;  %v6387_v16 = vld [vmem:[%s6650_s5 + $0x20] sm:$0xff]  }
  0x48   : > { %v1684_v2 = vrot.slane %v1682_v7, 5  ;;  %v1688_v20 = vrot.slane %v1686_v8, 4  ;;  %6049 = vmatprep.subr.bf16.mxu1 %v6904_v53  ;;  %696 = vst [vmem:[#allocation2 + $0xc0] sm:$0xf] %v5163_v3  ;;  %v461_v13 = vsel %vm6673_vm2, %v319_v63, 0  ;;  %v760_v4 = vrot.slane %v758_v60, 4  ;;  %6013 = vmatprep.subr.bf16.mxu0 %v6640_v19 }
  0x49   : > { %697 = vst [vmem:[#allocation2 + $0xc4] sm:$0xf] %v5164_v12  ;;  %v761_v24 = vshll.u32 %v6884_v46, 16  ;;  %v1679_v26 = vor.u32 %v1678_v18, %v1675_v15  ;;  %v2022_v0 = vld [vmem:[#allocation2 + $0xb4] sm:$0xe]  ;;  %v5129_v27 = vcombine.low %v461_v13, %v461_v13  ;;  %v767_v29 = vshll.u32 %v6919_v40, 16 }
  0x4a   : > { %v1689_v6 = vor.u32 %v1688_v20, %v1684_v2  ;;  %v5248_v34 = vcombine.low %v6909_v33, %v6911_v44  ;;  %v1605_v31 = vld [vmem:[#allocation2 + $0xb8] sm:$0xf]  ;;  %v5244_v39 = vrot.slane %v2022_v0, 9  ;;  %v445_v9 = vsel %vm6673_vm2, 0, %v322_v21  ;;  %v6955_v62 = vld [vmem:[#allocation2 + $0x1c] sm:$0xf] }
  0x4b   : > { %v1622_v35 = vld [vmem:[#allocation2 + $0xbc] sm:$0x1]  ;;  %v5183_v42 = vcombine.low %v6929_v25, %v6932_v32  ;;  %v1680_v43 = vrot.slane %v1679_v26, 4  ;;  %v2172_v47 = vrot.slane %v1605_v31, 5  ;;  %662 = vst [vmem:[#allocation2 + $0x38] sm:$0x1] %v5129_v27  ;;  %v5127_v51 = vcombine.low %v445_v9, %v445_v9  ;;  %6014 = vmatpush3.bf16.msra.mxu0 %v6640_v19 }
  0x4c   : > { %v1690_v45 = vrot.slane %v1689_v6, 4  ;;  %v2175_v48 = vrot.slane %v1622_v35, 5  ;;  %v5128_v10 = vcombine.high %v445_v9, %v445_v9  ;;  %v763_v52 = vrot.slane %v761_v24, 5  ;;  %v6945_v50 = vld [vmem:[#allocation2 + $0x18] sm:$0xf]  ;;  %6015 = vmatprep.subr.bf16.mxu0 %v6658_v22 }
  0x4d   : > { %v1623_v49 = vld [vmem:[#allocation2 + $0xc8] sm:$0x1]  ;;  %v6943_v54 = vrot.slane %v767_v29, 5  ;;  %v1685_v55 = vsel %vm6754_vm8, %v1680_v43, %v1684_v2  ;;  %v2173_v57 = vsel %vm6705_vm5, %v5244_v39, %v2172_v47  ;;  %v2174_v58 = vrot.slane %v2172_v47, 4  ;;  %660 = vst [vmem:[#allocation2 + $0x30] sm:$0xf] %v5127_v51 }
  0x4e   : > { %v1695_v56 = vsel %vm6754_vm8, %v1690_v45, %v1694_v41  ;;  %v2182_v60 = vrot.slane %v1623_v49, 5  ;;  %661 = vst [vmem:[#allocation2 + $0x34] sm:$0xf] %v5128_v10  ;;  %v764_v33 = vor.u32 %v763_v52, %v760_v4  ;;  %v771_v44 = vshrl.u32 %v6919_v40, 16  ;;  %v6972_v31 = vld [vmem:[#allocation2 + $0x24] sm:$0xf] }
  0x4f   : > { %v5264_v59 = vcombine.low %v1685_v55, %v1695_v56  ;;  %v2176_v63 = vsel %vm6705_vm5, %v2174_v58, %v2175_v48  ;;  %v2023_v5 = vld [vmem:[#allocation2 + $0xc0] sm:$0xe]  ;;  %v777_v7 = vshll.u32 %v738_v61, 16  ;;  %v324_v8 = vshrl.u32 %v6387_v16, 16  ;;  %6016 = vmatpush3.bf16.msra.mxu0 %v6658_v22  ;;  %v6977_v43 = vld [vmem:[#allocation2 + $0x28] sm:$0xf] }
  0x50   : > { %v1607_v1 = vld [vmem:[#allocation2 + $0xc4] sm:$0xf]  ;;  %v5184_v19 = vcombine.low %v6945_v50, %v6955_v62  ;;  %v5292_v41 = vcombine.low %v2173_v57, %v2176_v63  ;;  %v5245_v3 = vrot.slane %v2023_v5, 9  ;;  %v765_v15 = vrot.slane %v764_v33, 4 }
  0x51   : > { %2632 = vmatprep.mubr.bf16.mxu0 %v5264_v59  ;;  %v2179_v12 = vrot.slane %v1607_v1, 5  ;;  %v773_v18 = vrot.slane %v771_v44, 4  ;;  %v779_v2 = vrot.slane %v777_v7, 5  ;;  %v326_v20 = vrot.slane %v324_v8, 7  ;;  %v6391_v59 = vld [vmem:[%s6650_s5 + $0x28] sm:$0xff]  }
  0x52   : > { %2633 = vmatmul.mubr.bf16.gmra.mrb[8].mxu0 %v5248_v34  ;;  %v327_v21 = vshll.u32 %v6387_v16, 16  ;;  %6045 = vmatprep.mubr.bf16.mxu1 %v5292_v41  ;;  %v1611_v24 = vld [vmem:[#allocation2 + $0x38] sm:$0x1]  ;;  %v770_v26 = vsel %vm6754_vm8, %v765_v15, %v6943_v54  ;;  %v782_v6 = vshrl.u32 %v6929_v25, 16  ;;  %v785_v61 = vshll.u32 %v6929_v25, 16 }
  0x53   : > { %v2180_v13 = vsel %vm6705_vm5, %v5245_v3, %v2179_v12  ;;  %v2181_v4 = vrot.slane %v2179_v12, 4  ;;  %v1716_v0 = vshll.u32 %v1611_v24, 16  ;;  %v774_v27 = vor.u32 %v773_v18, %v6943_v54  ;;  %v6996_v1 = vld [vmem:[#allocation2 + $0x14] sm:$0x1] }
  0x54   : > { %v329_v29 = vor.u32 %v327_v21, %v326_v20  ;;  %v462_v34 = vsel %vm6673_vm2, %v326_v20, 0  ;;  %v784_v9 = vrot.slane %v782_v6, 4  ;;  %v6979_v22 = vld [vmem:[#allocation2 + $0x30] sm:$0xf]  ;;  %v5185_v49 = vcombine.low %v6972_v31, %v6977_v43 }
  0x55   : > { %v2183_v35 = vsel %vm6705_vm5, %v2181_v4, %v2182_v60  ;;  %v5132_v39 = vcombine.low %v462_v34, %v462_v34  ;;  %v6981_v47 = vld [vmem:[#allocation2 + $0x34] sm:$0xf]  ;;  %v1718_v48 = vrot.slane %v1716_v0, 5  ;;  %v775_v16 = vrot.slane %v774_v27, 4  ;;  %v6395_v4 = vld [vmem:[%s8366_s1 + $0x88] sm:$0xff]  }
  0x56   : > { %v5293_v45 = vcombine.low %v2180_v13, %v2183_v35  ;;  %v1697_v51 = vshrl.u32 %v6979_v22, 16  ;;  %v1700_v10 = vshll.u32 %v6979_v22, 16  ;;  %v1706_v52 = vshll.u32 %v6981_v47, 16 }
  0x57   : > { %v1710_v54 = vshrl.u32 %v6981_v47, 16  ;;  %665 = vst [vmem:[#allocation2 + $0x44] sm:$0x1] %v5132_v39  ;;  %v5249_v55 = vcombine.low %v6979_v22, %v6981_v47  ;;  %v780_v56 = vsel %vm6754_vm8, %v775_v16, %v779_v2  ;;  %v446_v57 = vsel %vm6673_vm2, 0, %v329_v29 }
  0x58   : > { %6046 = vmatmul.mubr.bf16.gmra.mrb[12].mxu1 %v5293_v45  ;;  %v787_v58 = vrot.slane %v785_v61, 5  ;;  %v1699_v60 = vrot.slane %v1697_v51, 4  ;;  %v1702_v33 = vrot.slane %v1700_v10, 5  ;;  %v1708_v44 = vrot.slane %v1706_v52, 5  ;;  %v740_v52 = vld [vmem:[#allocation2 + $0x20] sm:$0x1] }
  0x59   : > { %v1712_v63 = vrot.slane %v1710_v54, 4  ;;  %v5198_v5 = vcombine.low %v770_v26, %v780_v56  ;;  %v5130_v7 = vcombine.low %v446_v57, %v446_v57  ;;  %v5131_v8 = vcombine.high %v446_v57, %v446_v57 }
  0x5a   : > { %v788_v41 = vor.u32 %v787_v58, %v784_v9  ;;  %v1703_v3 = vor.u32 %v1702_v33, %v1699_v60  ;;  %v791_v15 = vshll.u32 %v6932_v32, 16  ;;  %v795_v18 = vshrl.u32 %v6932_v32, 16  ;;  %v6421_v58 = vld [vmem:[%s8366_s1 + $0x1c0] sm:$0xff]  }
  0x5b   : > { %v1713_v12 = vor.u32 %v1712_v63, %v1708_v44  ;;  %3082 = vmatprep.mubr.bf16.mxu1 %v5198_v5  ;;  %663 = vst [vmem:[#allocation2 + $0x3c] sm:$0xf] %v5130_v7  ;;  %664 = vst [vmem:[#allocation2 + $0x40] sm:$0xf] %v5131_v8  ;;  %v801_v20 = vshll.u32 %v6996_v1, 16  ;;  %v1220_v21 = vrot.slane %v6996_v1, 5  ;;  %5865 = vmatprep.subr.bf16.mxu0 %v6421_v58 }
  0x5c   : > { %v7000_v2 = vrot.slane %v788_v41, 4  ;;  %v331_v13 = vshrl.u32 %v6391_v59, 16  ;;  %v1704_v24 = vrot.slane %v1703_v3, 4  ;;  %v793_v6 = vrot.slane %v791_v15, 5  ;;  %v6394_v15 = vld [vmem:[%s6650_s5 + $0x30] sm:$0xff]   ;;  %v6439_v1 = vld [vmem:[%s8366_s1 + $0x1f8] sm:$0xff]  }
  0x5d   : > { %v1714_v26 = vrot.slane %v1713_v12, 4  ;;  %v797_v0 = vrot.slane %v795_v18, 4  ;;  %v803_v29 = vrot.slane %v801_v20, 5  ;;  %v334_v35 = vshll.u32 %v6391_v59, 16 }
  0x5e   : > { %v1612_v27 = vld [vmem:[#allocation2 + $0x44] sm:$0x1]  ;;  %v333_v34 = vrot.slane %v331_v13, 7  ;;  %v806_v39 = vshrl.u32 %v6945_v50, 16  ;;  %v1709_v9 = vsel %vm6754_vm8, %v1704_v24, %v1708_v44  ;;  %v794_v22 = vsel %vm6754_vm8, %v7000_v2, %v793_v6 }
  0x5f   : > { %v1719_v61 = vsel %vm6754_vm8, %v1714_v26, %v1718_v48  ;;  %v1740_v45 = vshll.u32 %v1612_v27, 16  ;;  %v798_v16 = vor.u32 %v797_v0, %v793_v6  ;;  %v809_v57 = vshll.u32 %v6945_v50, 16  ;;  %v6405_v0 = vld [vmem:[%s8366_s1 + $0x98] sm:$0xff]  }
  0x60   : > { %v5265_v47 = vcombine.low %v1709_v9, %v1719_v61  ;;  %3083 = vmatmul.mubr.bf16.vlgmr.msra.gmra.mrb[16].mxu1 %v5182_v14  ;;  %v336_v51 = vor.u32 %v334_v35, %v333_v34  ;;  %v463_v10 = vsel %vm6673_vm2, %v333_v34, 0  ;;  %v808_v56 = vrot.slane %v806_v39, 4 }
  0x61   : > { %v7020_v54 = vrot.slane %v1740_v45, 5  ;;  %6050 = vmatpush3.bf16.msra.mxu1 %v6904_v53  ;;  %v5135_v48 = vcombine.low %v463_v10, %v463_v10  ;;  %v799_v46 = vrot.slane %v798_v16, 4  ;;  %v815_v14 = vshll.u32 %v6955_v62, 16  ;;  %v6401_v53 = vld [vmem:[%s8366_s1 + $0x90] sm:$0xff]  }
  0x62   : > { %2640 = vmatprep.mubr.bf16.mxu0 %v5265_v47  ;;  %v447_v40 = vsel %vm6673_vm2, 0, %v336_v51  ;;  %v819_v59 = vshrl.u32 %v6955_v62, 16  ;;  %6051 = vmatprep.subr.bf16.mxu1 %v6395_v4  ;;  %v7034_v60 = vld [vmem:[#allocation2 + $0x3c] sm:$0xf]  ;;  %v7036_v33 = vld [vmem:[#allocation2 + $0x40] sm:$0xf] }
  0x63   : > { %2641 = vmatmul.mubr.bf16.gmra.mrb[12].mxu0 %v5249_v55  ;;  %v5133_v44 = vcombine.low %v447_v40, %v447_v40  ;;  %v5134_v63 = vcombine.high %v447_v40, %v447_v40  ;;  %668 = vst [vmem:[#allocation2 + $0x50] sm:$0x1] %v5135_v48  ;;  %v811_v5 = vrot.slane %v809_v57, 5  ;;  %v825_v7 = vshll.u32 %v740_v52, 16 }
  0x64   : > { %v1721_v8 = vshrl.u32 %v7034_v60, 16  ;;  %v1724_v41 = vshll.u32 %v7034_v60, 16  ;;  %v1730_v3 = vshll.u32 %v7036_v33, 16  ;;  %v1734_v12 = vshrl.u32 %v7036_v33, 16 }
  0x65   : > { %v5250_v55 = vcombine.low %v7034_v60, %v7036_v33  ;;  %v804_v18 = vsel %vm6754_vm8, %v799_v46, %v803_v29  ;;  %666 = vst [vmem:[#allocation2 + $0x48] sm:$0xf] %v5133_v44  ;;  %667 = vst [vmem:[#allocation2 + $0x4c] sm:$0xf] %v5134_v63  ;;  %v812_v2 = vor.u32 %v811_v5, %v808_v56  ;;  %v817_v20 = vrot.slane %v815_v14, 5 }
  0x66   : > { %6052 = vmatpush3.bf16.msra.mxu1 %v6395_v4  ;;  %v1723_v13 = vrot.slane %v1721_v8, 4  ;;  %v1726_v24 = vrot.slane %v1724_v41, 5  ;;  %v1732_v26 = vrot.slane %v1730_v3, 5  ;;  %v1736_v6 = vrot.slane %v1734_v12, 4  ;;  %v6415_v3 = vld [vmem:[%s8366_s1 + $0xa8] sm:$0xff]  }
  0x67   : > { %6053 = vmatprep.subr.bf16.mxu1 %v6401_v53  ;;  %v5199_v27 = vcombine.low %v794_v22, %v804_v18  ;;  %v813_v34 = vrot.slane %v812_v2, 4  ;;  %v821_v35 = vrot.slane %v819_v59, 4  ;;  %v827_v39 = vrot.slane %v825_v7, 5  ;;  %v6410_v22 = vld [vmem:[%s8366_s1 + $0xa0] sm:$0xff]  }
  0x68   : > { %v1727_v9 = vor.u32 %v1726_v24, %v1723_v13  ;;  %v1737_v29 = vor.u32 %v1736_v6, %v1732_v26  ;;  %v338_v61 = vshrl.u32 %v6394_v15, 16  ;;  %v341_v45 = vshll.u32 %v6394_v15, 16  ;;  %v6398_v13 = vld [vmem:[%s6650_s5 + $0x38] sm:$0xff]  }
  0x69   : > { %3090 = vmatprep.mubr.bf16.mxu1 %v5199_v27  ;;  %v818_v4 = vsel %vm6754_vm8, %v813_v34, %v817_v20  ;;  %v822_v47 = vor.u32 %v821_v35, %v817_v20  ;;  %v830_v16 = vshrl.u32 %v6972_v31, 16  ;;  %v833_v51 = vshll.u32 %v6972_v31, 16  ;;  %v741_v20 = vld [vmem:[#allocation2 + $0x2c] sm:$0x1]  ;;  %v7086_v27 = vld [vmem:[#allocation2 + $0x30] sm:$0xf] }
  0x6a   : > { %6054 = vmatpush3.bf16.msra.mxu1 %v6401_v53  ;;  %v1728_v10 = vrot.slane %v1727_v9, 4  ;;  %v1738_v52 = vrot.slane %v1737_v29, 4  ;;  %v1613_v48 = vld [vmem:[#allocation2 + $0x50] sm:$0x1]  ;;  %v340_v56 = vrot.slane %v338_v61, 7  ;;  %v839_v57 = vshll.u32 %v6977_v43, 16 }
  0x6b   : > { %3091 = vmatmul.mubr.bf16.gmra.mrb[20].mxu1 %v5183_v42  ;;  %6055 = vmatprep.subr.bf16.mxu1 %v6405_v0  ;;  %v1764_v58 = vshll.u32 %v1613_v48, 16  ;;  %v823_v46 = vrot.slane %v822_v47, 4  ;;  %v832_v40 = vrot.slane %v830_v16, 4  ;;  %v835_v14 = vrot.slane %v833_v51, 5  ;;  %v6420_v47 = vld [vmem:[%s8366_s1 + $0xb0] sm:$0xff]  }
  0x6c   : > { %v1733_v59 = vsel %vm6754_vm8, %v1728_v10, %v1732_v26  ;;  %v1743_v53 = vsel %vm6754_vm8, %v1738_v52, %v7020_v54  ;;  %v7066_v60 = vld [vmem:[#allocation2 + $0x48] sm:$0xf]  ;;  %v7068_v25 = vld [vmem:[#allocation2 + $0x4c] sm:$0xf]  ;;  %v343_v32 = vor.u32 %v341_v45, %v340_v56  ;;  %v464_v42 = vsel %vm6673_vm2, %v340_v56, 0 }
  0x6d   : > { %v5266_v33 = vcombine.low %v1733_v59, %v1743_v53  ;;  %v1745_v44 = vshrl.u32 %v7066_v60, 16  ;;  %v1748_v63 = vshll.u32 %v7066_v60, 16  ;;  %v1754_v5 = vshll.u32 %v7068_v25, 16  ;;  %v742_v48 = vld [vmem:[#allocation2 + $0x38] sm:$0x1] }
  0x6e   : > { %6056 = vmatpush3.bf16.msra.mxu1 %v6405_v0  ;;  %v1758_v7 = vshrl.u32 %v7068_v25, 16  ;;  %v1766_v54 = vrot.slane %v1764_v58, 5  ;;  %v5251_v8 = vcombine.low %v7066_v60, %v7068_v25  ;;  %v828_v41 = vsel %vm6754_vm8, %v823_v46, %v827_v39  ;;  %v7135_v25 = vld [vmem:[#allocation2 + $0x6c] sm:$0xf] }
  0x6f   : > { %6057 = vmatprep.subr.bf16.mxu1 %v6410_v22  ;;  %2648 = vmatprep.mubr.bf16.mxu0 %v5266_v33  ;;  %v1747_v12 = vrot.slane %v1745_v44, 4  ;;  %v1750_v15 = vrot.slane %v1748_v63, 5  ;;  %v1756_v18 = vrot.slane %v1754_v5, 5  ;;  %v5200_v2 = vcombine.low %v818_v4, %v828_v41  ;;  %v7094_v4 = vld [vmem:[#allocation2 + $0x34] sm:$0xf] }
  0x70   : > { %2649 = vmatmul.mubr.bf16.gmra.mrb[16].mxu0 %v5250_v55  ;;  %v1760_v24 = vrot.slane %v1758_v7, 4  ;;  %v448_v26 = vsel %vm6673_vm2, 0, %v343_v32  ;;  %v5138_v6 = vcombine.low %v464_v42, %v464_v42  ;;  %v836_v0 = vor.u32 %v835_v14, %v832_v40  ;;  %v6431_v32 = vld [vmem:[%s8366_s1 + $0xb8] sm:$0xff]  }
  0x71   : > { %v1751_v34 = vor.u32 %v1750_v15, %v1747_v12  ;;  %3098 = vmatprep.mubr.bf16.mxu1 %v5200_v2  ;;  %v5136_v35 = vcombine.low %v448_v26, %v448_v26  ;;  %v5137_v39 = vcombine.high %v448_v26, %v448_v26  ;;  %v7088_v9 = vrot.slane %v839_v57, 5 }
  0x72   : > { %6058 = vmatpush3.bf16.msra.mxu1 %v6410_v22  ;;  %v1761_v29 = vor.u32 %v1760_v24, %v1756_v18  ;;  %671 = vst [vmem:[#allocation2 + $0x5c] sm:$0x1] %v5138_v6  ;;  %v837_v55 = vrot.slane %v836_v0, 4  ;;  %v843_v61 = vshrl.u32 %v6977_v43, 16  ;;  %v849_v45 = vshll.u32 %v741_v20, 16 }
  0x73   : > { %3099 = vmatmul.mubr.bf16.gmra.mrb[24].mxu1 %v5184_v19  ;;  %6059 = vmatprep.subr.bf16.mxu1 %v6415_v3  ;;  %v1752_v16 = vrot.slane %v1751_v34, 4  ;;  %669 = vst [vmem:[#allocation2 + $0x54] sm:$0xf] %v5136_v35  ;;  %670 = vst [vmem:[#allocation2 + $0x58] sm:$0xf] %v5137_v39  ;;  %v345_v51 = vshrl.u32 %v6398_v13, 16  ;;  %v5186_v2 = vcombine.low %v7086_v27, %v7094_v4 }
  0x74   : > { %v348_v22 = vshll.u32 %v6398_v13, 16  ;;  %v854_v50 = vshrl.u32 %v7086_v27, 16  ;;  %v1762_v62 = vrot.slane %v1761_v29, 4  ;;  %v842_v19 = vsel %vm6754_vm8, %v837_v55, %v7088_v9 }
  0x75   : > { %v845_v10 = vrot.slane %v843_v61, 4  ;;  %v851_v52 = vrot.slane %v849_v45, 5  ;;  %v1757_v56 = vsel %vm6754_vm8, %v1752_v16, %v1756_v18  ;;  %v347_v57 = vrot.slane %v345_v51, 7 }
  0x76   : > { %v856_v58 = vrot.slane %v854_v50, 4  ;;  %v857_v46 = vshll.u32 %v7086_v27, 16  ;;  %6060 = vmatpush3.bf16.msra.mxu1 %v6415_v3  ;;  %v1767_v40 = vsel %vm6754_vm8, %v1762_v62, %v1766_v54  ;;  %v863_v59 = vshll.u32 %v7094_v4, 16  ;;  %v7144_v62 = vld [vmem:[#allocation2 + $0x3c] sm:$0xf] }
  0x77   : > { %v846_v14 = vor.u32 %v845_v10, %v7088_v9  ;;  %v867_v53 = vshrl.u32 %v7094_v4, 16  ;;  %6061 = vmatprep.subr.bf16.mxu1 %v6420_v47  ;;  %v5267_v42 = vcombine.low %v1757_v56, %v1767_v40  ;;  %v350_v33 = vor.u32 %v348_v22, %v347_v57 }
  0x78   : > { %v465_v44 = vsel %vm6673_vm2, %v347_v57, 0  ;;  %v859_v63 = vrot.slane %v857_v46, 5  ;;  %v7116_v54 = vrot.slane %v863_v59, 5  ;;  %v873_v18 = vshll.u32 %v742_v48, 16  ;;  %v7150_v48 = vld [vmem:[#allocation2 + $0x70] sm:$0xf] }
  0x79   : > { %v847_v5 = vrot.slane %v846_v14, 4  ;;  %v5141_v7 = vcombine.low %v465_v44, %v465_v44  ;;  %v869_v41 = vrot.slane %v867_v53, 4  ;;  %2656 = vmatprep.mubr.bf16.mxu0 %v5267_v42  ;;  %v1614_v3 = vld [vmem:[#allocation2 + $0x5c] sm:$0x1]  ;;  %v449_v12 = vsel %vm6673_vm2, 0, %v350_v33 }
  0x7a   : > { %v860_v15 = vor.u32 %v859_v63, %v856_v58  ;;  %6062 = vmatpush3.bf16.msra.mxu1 %v6420_v47  ;;  %2657 = vmatmul.mubr.bf16.gmra.mrb[20].mxu0 %v5251_v8  ;;  %v7125_v20 = vld [vmem:[#allocation2 + $0x54] sm:$0xf]  ;;  %v7127_v13 = vld [vmem:[#allocation2 + $0x58] sm:$0xf]  ;;  %v1788_v24 = vshll.u32 %v1614_v3, 16  ;;  %v5139_v30 = vcombine.low %v449_v12, %v449_v12  ;;  %v5140_v6 = vcombine.high %v449_v12, %v449_v12 }
  0x7b   : > { %v852_v26 = vsel %vm6754_vm8, %v847_v5, %v851_v52  ;;  %674 = vst [vmem:[#allocation2 + $0x68] sm:$0x1] %v5141_v7  ;;  %6063 = vmatprep.subr.bf16.mxu1 %v6431_v32  ;;  %v1769_v0 = vshrl.u32 %v7125_v20, 16  ;;  %v1772_v34 = vshll.u32 %v7125_v20, 16  ;;  %v1778_v35 = vshll.u32 %v7127_v13, 16 }
  0x7c   : > { %v1782_v60 = vshrl.u32 %v7127_v13, 16  ;;  %v1790_v8 = vrot.slane %v1788_v24, 5  ;;  %v5252_v39 = vcombine.low %v7125_v20, %v7127_v13  ;;  %v5201_v9 = vcombine.low %v842_v19, %v852_v26  ;;  %672 = vst [vmem:[#allocation2 + $0x60] sm:$0xf] %v5139_v30  ;;  %673 = vst [vmem:[#allocation2 + $0x64] sm:$0xf] %v5140_v6 }
  0x7d   : > { %v861_v29 = vrot.slane %v860_v15, 4  ;;  %v1771_v55 = vrot.slane %v1769_v0, 4  ;;  %v1774_v61 = vrot.slane %v1772_v34, 5  ;;  %v1780_v45 = vrot.slane %v1778_v35, 5  ;;  %v7170_v20 = vld [vmem:[#allocation2 + $0x40] sm:$0xf] }
  0x7e   : > { %v1784_v47 = vrot.slane %v1782_v60, 4  ;;  %6064 = vmatpush3.bf16.msra.mxu1 %v6431_v32  ;;  %3106 = vmatprep.mubr.bf16.mxu1 %v5201_v9  ;;  %v870_v51 = vor.u32 %v869_v41, %v7116_v54  ;;  %v875_v22 = vrot.slane %v873_v18, 5  ;;  %v1817_v50 = vshrl.u32 %v7135_v25, 16  ;;  %v743_v13 = vld [vmem:[#allocation2 + $0x44] sm:$0x1] }
  0x7f   : > { %v866_v16 = vsel %vm6754_vm8, %v861_v29, %v7116_v54  ;;  %v1775_v19 = vor.u32 %v1774_v61, %v1771_v55  ;;  %3107 = vmatmul.mubr.bf16.gmra.mrb[28].mxu1 %v5185_v49  ;;  %v1820_v52 = vshll.u32 %v7135_v25, 16  ;;  %v1826_v56 = vshll.u32 %v7150_v48, 16  ;;  %v7181_v61 = vld [vmem:[#allocation2 + $0x78] sm:$0xf] }
  0x80   : > { %v1785_v10 = vor.u32 %v1784_v47, %v1780_v45  ;;  %v871_v57 = vrot.slane %v870_v51, 4  ;;  %v1819_v58 = vrot.slane %v1817_v50, 4  ;;  %v1830_v46 = vshrl.u32 %v7150_v48, 16 }
  0x81   : > { %v5254_v40 = vcombine.low %v7135_v25, %v7150_v48  ;;  %v1776_v14 = vrot.slane %v1775_v19, 4  ;;  %v1822_v32 = vrot.slane %v1820_v52, 5  ;;  %v1828_v42 = vrot.slane %v1826_v56, 5 }
  0x82   : > { %v1786_v59 = vrot.slane %v1785_v10, 4  ;;  %v1615_v53 = vld [vmem:[#allocation2 + $0x68] sm:$0x1]  ;;  %v876_v43 = vsel %vm6754_vm8, %v871_v57, %v875_v22  ;;  %v1832_v49 = vrot.slane %v1830_v46, 4  ;;  %v878_v33 = vshrl.u32 %v7144_v62, 16 }
  0x83   : > { %v1812_v31 = vshll.u32 %v1615_v53, 16  ;;  %v1781_v44 = vsel %vm6754_vm8, %v1776_v14, %v1780_v45  ;;  %v7163_v5 = vld [vmem:[#allocation2 + $0x60] sm:$0xf]  ;;  %v7165_v7 = vld [vmem:[#allocation2 + $0x64] sm:$0xf]  ;;  %v5202_v54 = vcombine.low %v866_v16, %v876_v43  ;;  %v1823_v41 = vor.u32 %v1822_v32, %v1819_v58 }
  0x84   : > { %v1791_v63 = vsel %vm6754_vm8, %v1786_v59, %v1790_v8  ;;  %v1793_v12 = vshrl.u32 %v7163_v5, 16  ;;  %v1796_v15 = vshll.u32 %v7163_v5, 16  ;;  %v1802_v18 = vshll.u32 %v7165_v7, 16  ;;  %v6441_v45 = vld [vmem:[%s8366_s1 + $0x200] sm:$0xff]   ;;  %v7197_v32 = vld [vmem:[#allocation2 + $0x48] sm:$0xf] }
  0x85   : > { %v5268_v3 = vcombine.low %v1781_v44, %v1791_v63  ;;  %v1806_v24 = vshrl.u32 %v7165_v7, 16  ;;  %v1814_v26 = vrot.slane %v1812_v31, 5  ;;  %v5253_v30 = vcombine.low %v7163_v5, %v7165_v7  ;;  %3114 = vmatprep.mubr.bf16.mxu1 %v5202_v54  ;;  %6097 = vmatprep.subr.bf16.mxu1 %v6441_v45  ;;  %v7201_v31 = vld [vmem:[#allocation2 + $0x7c] sm:$0xf]  ;;  %v7205_v7 = vld [vmem:[#allocation2 + $0x4c] sm:$0xf] }
  0x86   : > { %v1824_v6 = vrot.slane %v1823_v41, 4  ;;  %v1795_v0 = vrot.slane %v1793_v12, 4  ;;  %v1798_v34 = vrot.slane %v1796_v15, 5  ;;  %v1804_v35 = vrot.slane %v1802_v18, 5  ;;  %v744_v54 = vld [vmem:[#allocation2 + $0x50] sm:$0x1] }
  0x87   : > { %2664 = vmatprep.mubr.bf16.mxu0 %v5268_v3  ;;  %v1833_v60 = vor.u32 %v1832_v49, %v1828_v42  ;;  %v1808_v8 = vrot.slane %v1806_v24, 4  ;;  %3115 = vmatmul.mubr.bf16.gmra.mrb[32].mxu1 %v5186_v2  ;;  %v880_v29 = vrot.slane %v878_v33, 4  ;;  %v881_v55 = vshll.u32 %v7144_v62, 16  ;;  %v6467_v15 = vld [vmem:[#allocation2 + $0x80] sm:$0x1] }
  0x88   : > { %2665 = vmatmul.mubr.bf16.gmra.mrb[24].mxu0 %v5252_v39  ;;  %v1829_v9 = vsel %vm6754_vm8, %v1824_v6, %v1828_v42  ;;  %v1799_v47 = vor.u32 %v1798_v34, %v1795_v0  ;;  %v887_v39 = vshll.u32 %v7170_v20, 16  ;;  %v891_v51 = vshrl.u32 %v7170_v20, 16 }
  0x89   : > { %v1834_v16 = vrot.slane %v1833_v60, 4  ;;  %v1809_v27 = vor.u32 %v1808_v8, %v1804_v35  ;;  %v883_v4 = vrot.slane %v881_v55, 5  ;;  %v897_v2 = vshll.u32 %v743_v13, 16  ;;  %v7215_v60 = vld [vmem:[#allocation2 + $0x84] sm:$0xf] }
  0x8a   : > { %v5187_v22 = vcombine.low %v7144_v62, %v7170_v20  ;;  %v1800_v50 = vrot.slane %v1799_v47, 4  ;;  %v889_v10 = vrot.slane %v887_v39, 5  ;;  %v893_v52 = vrot.slane %v891_v51, 4 }
  0x8b   : > { %v1839_v19 = vsel %vm6754_vm8, %v1834_v16, %v6709_v23  ;;  %v1810_v56 = vrot.slane %v1809_v27, 4  ;;  %v884_v58 = vor.u32 %v883_v4, %v880_v29  ;;  %v899_v46 = vrot.slane %v897_v2, 5 }
  0x8c   : > { %v5270_v57 = vcombine.low %v1829_v9, %v1839_v19  ;;  %v1805_v14 = vsel %vm6754_vm8, %v1800_v50, %v1804_v35  ;;  %v894_v59 = vor.u32 %v893_v52, %v889_v10  ;;  %v1841_v53 = vshrl.u32 %v7181_v61, 16  ;;  %v7227_v52 = vld [vmem:[#allocation2 + $0x54] sm:$0xf] }
  0x8d   : > { %v1844_v62 = vshll.u32 %v7181_v61, 16  ;;  %v1815_v42 = vsel %vm6754_vm8, %v1810_v56, %v1814_v26  ;;  %v885_v23 = vrot.slane %v884_v58, 4  ;;  %v1850_v43 = vshll.u32 %v7201_v31, 16 }
  0x8e   : > { %v1854_v49 = vshrl.u32 %v7201_v31, 16  ;;  %v5269_v33 = vcombine.low %v1805_v14, %v1815_v42  ;;  %v895_v44 = vrot.slane %v894_v59, 4  ;;  %v1843_v63 = vrot.slane %v1841_v53, 4  ;;  %v7232_v14 = vld [vmem:[#allocation2 + $0x58] sm:$0xf] }
  0x8f   : > { %v1846_v5 = vrot.slane %v1844_v62, 5  ;;  %v890_v41 = vsel %vm6754_vm8, %v885_v23, %v889_v10  ;;  %v1852_v3 = vrot.slane %v1850_v43, 5  ;;  %v1860_v18 = vshll.u32 %v6467_v15, 16 }
  0x90   : > { %v1856_v12 = vrot.slane %v1854_v49, 4  ;;  %2672 = vmatprep.mubr.bf16.mxu0 %v5269_v33  ;;  %v900_v20 = vsel %vm6754_vm8, %v895_v44, %v899_v46  ;;  %v5255_v24 = vcombine.low %v7181_v61, %v7201_v31  ;;  %v902_v26 = vshrl.u32 %v7197_v32, 16  ;;  %v7238_v44 = vld [vmem:[#allocation2 + $0x90] sm:$0xf] }
  0x91   : > { %v1847_v13 = vor.u32 %v1846_v5, %v1843_v63  ;;  %2673 = vmatmul.mubr.bf16.gmra.mrb[28].mxu0 %v5253_v30  ;;  %v5203_v6 = vcombine.low %v890_v41, %v900_v20  ;;  %v1862_v34 = vrot.slane %v1860_v18, 5  ;;  %v905_v35 = vshll.u32 %v7197_v32, 16  ;;  %v745_v41 = vld [vmem:[#allocation2 + $0x5c] sm:$0x1] }
  0x92   : > { %v1857_v0 = vor.u32 %v1856_v12, %v1852_v3  ;;  %2680 = vmatprep.mubr.bf16.mxu0 %v5270_v57  ;;  %v904_v9 = vrot.slane %v902_v26, 4  ;;  %v911_v29 = vshll.u32 %v7205_v7, 16  ;;  %v915_v55 = vshrl.u32 %v7205_v7, 16 }
  0x93   : > { %v1848_v8 = vrot.slane %v1847_v13, 4  ;;  %3122 = vmatprep.mubr.bf16.mxu1 %v5203_v6  ;;  %v907_v47 = vrot.slane %v905_v35, 5  ;;  %v921_v16 = vshll.u32 %v744_v54, 16  ;;  %v5188_v30 = vcombine.low %v7197_v32, %v7205_v7  ;;  %v6469_v32 = vld [vmem:[#allocation2 + $0x8c] sm:$0x1] }
  0x94   : > { %v1858_v45 = vrot.slane %v1857_v0, 4  ;;  %3123 = vmatmul.mubr.bf16.gmra.mrb[36].mxu1 %v5187_v22  ;;  %v913_v51 = vrot.slane %v911_v29, 5  ;;  %v917_v27 = vrot.slane %v915_v55, 4  ;;  %v1865_v4 = vshrl.u32 %v7215_v60, 16  ;;  %v7229_v22 = vld [vmem:[#allocation2 + $0x88] sm:$0xf] }
  0x95   : > { %v1853_v39 = vsel %vm6754_vm8, %v1848_v8, %v1852_v3  ;;  %v908_v50 = vor.u32 %v907_v47, %v904_v9  ;;  %v923_v19 = vrot.slane %v921_v16, 5  ;;  %v1868_v10 = vshll.u32 %v7215_v60, 16  ;;  %v7255_v29 = vld [vmem:[#allocation2 + $0x60] sm:$0xf]  ;;  %v7258_v16 = vld [vmem:[#allocation2 + $0x94] sm:$0xf] }
  0x96   : > { %v1863_v2 = vsel %vm6754_vm8, %v1858_v45, %v1862_v34  ;;  %v918_v57 = vor.u32 %v917_v27, %v913_v51  ;;  %v1867_v58 = vrot.slane %v1865_v4, 4  ;;  %v1874_v46 = vshll.u32 %v7229_v22, 16 }
  0x97   : > { %v5271_v56 = vcombine.low %v1853_v39, %v1863_v2  ;;  %v909_v59 = vrot.slane %v908_v50, 4  ;;  %v1870_v53 = vrot.slane %v1868_v10, 5  ;;  %v1878_v62 = vshrl.u32 %v7229_v22, 16  ;;  %v7264_v50 = vld [vmem:[#allocation2 + $0x64] sm:$0xf] }
  0x98   : > { %v1884_v42 = vshll.u32 %v6469_v32, 16  ;;  %v919_v23 = vrot.slane %v918_v57, 4  ;;  %v1876_v43 = vrot.slane %v1874_v46, 5  ;;  %v5256_v49 = vcombine.low %v7215_v60, %v7229_v22 }
  0x99   : > { %v926_v33 = vshrl.u32 %v7227_v52, 16  ;;  %2681 = vmatmul.mubr.bf16.gmra.mrb[32].mxu0 %v5254_v40  ;;  %v914_v63 = vsel %vm6754_vm8, %v909_v59, %v913_v51  ;;  %v1871_v5 = vor.u32 %v1870_v53, %v1867_v58  ;;  %v1880_v7 = vrot.slane %v1878_v62, 4  ;;  %v6471_v58 = vld [vmem:[#allocation2 + $0x98] sm:$0x1]  ;;  %v746_v62 = vld [vmem:[#allocation2 + $0x68] sm:$0x1] }
  0x9a   : > { %v1886_v54 = vrot.slane %v1884_v42, 5  ;;  %2688 = vmatprep.mubr.bf16.mxu0 %v5271_v56  ;;  %v924_v3 = vsel %vm6754_vm8, %v919_v23, %v923_v19  ;;  %v929_v15 = vshll.u32 %v7227_v52, 16  ;;  %v935_v18 = vshll.u32 %v7232_v14, 16 }
  0x9b   : > { %v928_v12 = vrot.slane %v926_v33, 4  ;;  %v5204_v20 = vcombine.low %v914_v63, %v924_v3  ;;  %v1872_v13 = vrot.slane %v1871_v5, 4  ;;  %v1881_v25 = vor.u32 %v1880_v7, %v1876_v43 }
  0x9c   : > { %v939_v48 = vshrl.u32 %v7232_v14, 16  ;;  %v931_v40 = vrot.slane %v929_v15, 5  ;;  %v937_v26 = vrot.slane %v935_v18, 5  ;;  %v945_v6 = vshll.u32 %v745_v41, 16 }
  0x9d   : > { %v5189_v0 = vcombine.low %v7227_v52, %v7232_v14  ;;  %3130 = vmatprep.mubr.bf16.mxu1 %v5204_v20  ;;  %v1877_v34 = vsel %vm6754_vm8, %v1872_v13, %v1876_v43  ;;  %v1882_v35 = vrot.slane %v1881_v25, 4  ;;  %v1889_v9 = vshrl.u32 %v7238_v44, 16  ;;  %v7278_v43 = vld [vmem:[#allocation2 + $0x9c] sm:$0xf] }
  0x9e   : > { %v941_v8 = vrot.slane %v939_v48, 4  ;;  %3131 = vmatmul.mubr.bf16.gmra.mrb[40].mxu1 %v5188_v30  ;;  %v932_v55 = vor.u32 %v931_v40, %v928_v12  ;;  %v947_v45 = vrot.slane %v945_v6, 5  ;;  %v1892_v47 = vshll.u32 %v7238_v44, 16  ;;  %v7289_v6 = vld [vmem:[#allocation2 + $0x6c] sm:$0xf] }
  0x9f   : > { %v1898_v39 = vshll.u32 %v7258_v16, 16  ;;  %v1887_v51 = vsel %vm6754_vm8, %v1882_v35, %v1886_v54  ;;  %v1891_v4 = vrot.slane %v1889_v9, 4  ;;  %v1902_v2 = vshrl.u32 %v7258_v16, 16  ;;  %v7291_v9 = vld [vmem:[#allocation2 + $0xa0] sm:$0xf] }
  0xa0   : > { %v942_v27 = vor.u32 %v941_v8, %v937_v26  ;;  %v5272_v19 = vcombine.low %v1877_v34, %v1887_v51  ;;  %v933_v10 = vrot.slane %v932_v55, 4  ;;  %v1894_v30 = vrot.slane %v1892_v47, 5 }
  0xa1   : > { %v1900_v52 = vrot.slane %v1898_v39, 5  ;;  %2689 = vmatmul.mubr.bf16.gmra.mrb[36].mxu0 %v5255_v24  ;;  %v1904_v57 = vrot.slane %v1902_v2, 4  ;;  %v1908_v46 = vshll.u32 %v6471_v58, 16  ;;  %v5257_v14 = vcombine.low %v7238_v44, %v7258_v16  ;;  %v6473_v39 = vld [vmem:[#allocation2 + $0xa4] sm:$0x1] }
  0xa2   : > { %v943_v56 = vrot.slane %v942_v27, 4  ;;  %2696 = vmatprep.mubr.bf16.mxu0 %v5272_v19  ;;  %v938_v59 = vsel %vm6754_vm8, %v933_v10, %v937_v26  ;;  %v1895_v53 = vor.u32 %v1894_v30, %v1891_v4  ;;  %v950_v32 = vshrl.u32 %v7255_v29, 16  ;;  %v748_v44 = vld [vmem:[#allocation2 + $0x80] sm:$0x1] }
  0xa3   : > { %v953_v42 = vshll.u32 %v7255_v29, 16  ;;  %v1905_v31 = vor.u32 %v1904_v57, %v1900_v52  ;;  %v1910_v24 = vrot.slane %v1908_v46, 5  ;;  %v959_v23 = vshll.u32 %v7264_v50, 16 }
  0xa4   : > { %v948_v61 = vsel %vm6754_vm8, %v943_v56, %v947_v45  ;;  %v1896_v63 = vrot.slane %v1895_v53, 4  ;;  %v952_v5 = vrot.slane %v950_v32, 4  ;;  %v963_v3 = vshrl.u32 %v7264_v50, 16 }
  0xa5   : > { %v5205_v33 = vcombine.low %v938_v59, %v948_v61  ;;  %v955_v7 = vrot.slane %v953_v42, 5  ;;  %v1906_v54 = vrot.slane %v1905_v31, 4  ;;  %v961_v41 = vrot.slane %v959_v23, 5 }
  0xa6   : > { %v969_v12 = vshll.u32 %v746_v62, 16  ;;  %v1901_v15 = vsel %vm6754_vm8, %v1896_v63, %v1900_v52  ;;  %v5190_v20 = vcombine.low %v7255_v29, %v7264_v50  ;;  %v1913_v13 = vshrl.u32 %v7278_v43, 16  ;;  %v7294_v29 = vld [vmem:[#allocation2 + $0x70] sm:$0xf]  ;;  %v747_v50 = vld [vmem:[#allocation2 + $0x74] sm:$0x1] }
  0xa7   : > { %3138 = vmatprep.mubr.bf16.mxu1 %v5205_v33  ;;  %v956_v18 = vor.u32 %v955_v7, %v952_v5  ;;  %v1911_v25 = vsel %vm6754_vm8, %v1906_v54, %v1910_v24  ;;  %v965_v48 = vrot.slane %v963_v3, 4  ;;  %v1916_v26 = vshll.u32 %v7278_v43, 16  ;;  %v7310_v62 = vld [vmem:[#allocation2 + $0xa8] sm:$0xf]  ;;  %v7318_v3 = vld [vmem:[#allocation2 + $0x78] sm:$0xf] }
  0xa8   : > { %3139 = vmatmul.mubr.bf16.gmra.mrb[44].mxu1 %v5189_v0  ;;  %v971_v40 = vrot.slane %v969_v12, 5  ;;  %v5273_v34 = vcombine.low %v1901_v15, %v1911_v25  ;;  %v1915_v8 = vrot.slane %v1913_v13, 4  ;;  %v1922_v55 = vshll.u32 %v7291_v9, 16  ;;  %v7325_v15 = vld [vmem:[#allocation2 + $0xac] sm:$0xf] }
  0xa9   : > { %v957_v35 = vrot.slane %v956_v18, 4  ;;  %2697 = vmatmul.mubr.bf16.gmra.mrb[40].mxu0 %v5256_v49  ;;  %v966_v0 = vor.u32 %v965_v48, %v961_v41  ;;  %v1918_v45 = vrot.slane %v1916_v26, 5  ;;  %v1926_v47 = vshrl.u32 %v7291_v9, 16  ;;  %v6475_v25 = vld [vmem:[#allocation2 + $0xb0] sm:$0x1] }
  0xaa   : > { %v1932_v51 = vshll.u32 %v6473_v39, 16  ;;  %2704 = vmatprep.mubr.bf16.mxu0 %v5273_v34  ;;  %v1924_v4 = vrot.slane %v1922_v55, 5  ;;  %v5258_v2 = vcombine.low %v7278_v43, %v7291_v9  ;;  %v974_v19 = vshrl.u32 %v7289_v6, 16 }
  0xab   : > { %v962_v27 = vsel %vm6754_vm8, %v957_v35, %v961_v41  ;;  %v967_v10 = vrot.slane %v966_v0, 4  ;;  %v1919_v60 = vor.u32 %v1918_v45, %v1915_v8  ;;  %v1928_v22 = vrot.slane %v1926_v47, 4 }
  0xac   : > { %v1934_v49 = vrot.slane %v1932_v51, 5  ;;  %v976_v30 = vrot.slane %v974_v19, 4  ;;  %v977_v52 = vshll.u32 %v7289_v6, 16  ;;  %v983_v56 = vshll.u32 %v7294_v29, 16 }
  0xad   : > { %v987_v57 = vshrl.u32 %v7294_v29, 16  ;;  %v972_v58 = vsel %vm6754_vm8, %v967_v10, %v971_v40  ;;  %v1920_v46 = vrot.slane %v1919_v60, 4  ;;  %v1929_v59 = vor.u32 %v1928_v22, %v1924_v4  ;;  %v7329_v40 = vld [vmem:[#allocation2 + $0x7c] sm:$0xf] }
  0xae   : > { %v993_v53 = vshll.u32 %v747_v50, 16  ;;  %v5206_v32 = vcombine.low %v962_v27, %v972_v58  ;;  %v979_v42 = vrot.slane %v977_v52, 5  ;;  %v985_v61 = vrot.slane %v983_v56, 5 }
  0xaf   : > { %v989_v31 = vrot.slane %v987_v57, 4  ;;  %v1925_v24 = vsel %vm6754_vm8, %v1920_v46, %v1924_v4  ;;  %v1930_v23 = vrot.slane %v1929_v59, 4  ;;  %v5191_v63 = vcombine.low %v7289_v6, %v7294_v29  ;;  %v7339_v4 = vld [vmem:[#allocation2 + $0xb4] sm:$0xf] }
  0xb0   : > { %v995_v33 = vrot.slane %v993_v53, 5  ;;  %3146 = vmatprep.mubr.bf16.mxu1 %v5206_v32  ;;  %v980_v5 = vor.u32 %v979_v42, %v976_v30  ;;  %v1937_v54 = vshrl.u32 %v7310_v62, 16  ;;  %v1940_v41 = vshll.u32 %v7310_v62, 16  ;;  %v7354_v42 = vld [vmem:[#allocation2 + $0x84] sm:$0xf] }
  0xb1   : > { %v990_v7 = vor.u32 %v989_v31, %v985_v61  ;;  %2705 = vmatmul.mubr.bf16.gmra.mrb[44].mxu0 %v5257_v14  ;;  %3147 = vmatmul.mubr.bf16.gmra.mrb[48].mxu1 %v5190_v20  ;;  %v1935_v12 = vsel %vm6754_vm8, %v1930_v23, %v1934_v49  ;;  %v1946_v18 = vshll.u32 %v7325_v15, 16  ;;  %v1950_v13 = vshrl.u32 %v7325_v15, 16  ;;  %v7356_v23 = vld [vmem:[#allocation2 + $0xb8] sm:$0xf] }
  0xb2   : > { %v1956_v48 = vshll.u32 %v6475_v25, 16  ;;  %v5274_v26 = vcombine.low %v1925_v24, %v1935_v12  ;;  %v981_v6 = vrot.slane %v980_v5, 4  ;;  %v1939_v35 = vrot.slane %v1937_v54, 4  ;;  %v7364_v12 = vld [vmem:[#allocation2 + $0x8c] sm:$0x1] }
  0xb3   : > { %v991_v34 = vrot.slane %v990_v7, 4  ;;  %v1942_v16 = vrot.slane %v1940_v41, 5  ;;  %v1948_v14 = vrot.slane %v1946_v18, 5  ;;  %v1952_v20 = vrot.slane %v1950_v13, 4  ;;  %v7360_v7 = vld [vmem:[#allocation2 + $0x88] sm:$0xf] }
  0xb4   : > { %v1958_v8 = vrot.slane %v1956_v48, 5  ;;  %2712 = vmatprep.mubr.bf16.mxu0 %v5274_v26  ;;  %v986_v55 = vsel %vm6754_vm8, %v981_v6, %v985_v61  ;;  %v5259_v0 = vcombine.low %v7310_v62, %v7325_v15  ;;  %v998_v45 = vshrl.u32 %v7318_v3, 16 }
  0xb5   : > { %v996_v29 = vsel %vm6754_vm8, %v991_v34, %v995_v33  ;;  %v1943_v39 = vor.u32 %v1942_v16, %v1939_v35  ;;  %v1953_v51 = vor.u32 %v1952_v20, %v1948_v14  ;;  %v1001_v27 = vshll.u32 %v7318_v3, 16  ;;  %v7373_v35 = vld [vmem:[#allocation2 + $0xc0] sm:$0xf] }
  0xb6   : > { %v5207_v47 = vcombine.low %v986_v55, %v996_v29  ;;  %v1000_v50 = vrot.slane %v998_v45, 4  ;;  %v1007_v19 = vshll.u32 %v7329_v40, 16  ;;  %v1011_v10 = vshrl.u32 %v7329_v40, 16 }
  0xb7   : > { %v1017_v60 = vshll.u32 %v748_v44, 16  ;;  %v1944_v22 = vrot.slane %v1943_v39, 4  ;;  %v1954_v49 = vrot.slane %v1953_v51, 4  ;;  %v1003_v30 = vrot.slane %v1001_v27, 5 }
  0xb8   : > { %3154 = vmatprep.mubr.bf16.mxu1 %v5207_v47  ;;  %v5192_v52 = vcombine.low %v7318_v3, %v7329_v40  ;;  %v1009_v56 = vrot.slane %v1007_v19, 5  ;;  %v1013_v57 = vrot.slane %v1011_v10, 4  ;;  %v1961_v46 = vshrl.u32 %v7339_v4, 16  ;;  %v7383_v10 = vld [vmem:[#allocation2 + $0xc4] sm:$0xf] }
  0xb9   : > { %v1019_v58 = vrot.slane %v1017_v60, 5  ;;  %2713 = vmatmul.mubr.bf16.gmra.mrb[48].mxu0 %v5258_v2  ;;  %3155 = vmatmul.mubr.bf16.gmra.mrb[52].mxu1 %v5191_v63  ;;  %v1949_v59 = vsel %vm6754_vm8, %v1944_v22, %v1948_v14  ;;  %v1959_v53 = vsel %vm6754_vm8, %v1954_v49, %v1958_v8  ;;  %v1004_v62 = vor.u32 %v1003_v30, %v1000_v50  ;;  %v6477_v63 = vld [vmem:[#allocation2 + $0xbc] sm:$0x1] }
  0xba   : > { %v1964_v32 = vshll.u32 %v7339_v4, 16  ;;  %v5275_v61 = vcombine.low %v1949_v59, %v1959_v53  ;;  %v1014_v31 = vor.u32 %v1013_v57, %v1009_v56  ;;  %v1963_v24 = vrot.slane %v1961_v46, 4  ;;  %v7391_v59 = vld [vmem:[#allocation2 + $0x94] sm:$0xf] }
  0xbb   : > { %v1970_v43 = vshll.u32 %v7356_v23, 16  ;;  %v1005_v9 = vrot.slane %v1004_v62, 4  ;;  %v1974_v33 = vshrl.u32 %v7356_v23, 16  ;;  %v1980_v5 = vshll.u32 %v6477_v63, 16 }
  0xbc   : > { %v1966_v2 = vrot.slane %v1964_v32, 5  ;;  %2720 = vmatprep.mubr.bf16.mxu0 %v5275_v61  ;;  %v1015_v54 = vrot.slane %v1014_v31, 4  ;;  %v5260_v3 = vcombine.low %v7339_v4, %v7356_v23  ;;  %v1022_v15 = vshrl.u32 %v7354_v42, 16  ;;  %v6479_v32 = vld [vmem:[#allocation2 + $0xc8] sm:$0x1] }
  0xbd   : > { %v1972_v41 = vrot.slane %v1970_v43, 5  ;;  %v1010_v18 = vsel %vm6754_vm8, %v1005_v9, %v1009_v56  ;;  %v1976_v25 = vrot.slane %v1974_v33, 4  ;;  %v1982_v48 = vrot.slane %v1980_v5, 5  ;;  %v7389_v56 = vld [vmem:[#allocation2 + $0x90] sm:$0xf] }
  0xbe   : > { %v1967_v13 = vor.u32 %v1966_v2, %v1963_v24  ;;  %v1020_v40 = vsel %vm6754_vm8, %v1015_v54, %v1019_v58  ;;  %v1024_v26 = vrot.slane %v1022_v15, 4  ;;  %v1025_v6 = vshll.u32 %v7354_v42, 16  ;;  %v7397_v23 = vld [vmem:[#allocation2 + $0x98] sm:$0x1]  ;;  %v2008_v2 = vld [vmem:[#allocation2 + $0xc] sm:$0xe] }
  0xbf   : > { %v1031_v34 = vshll.u32 %v7360_v7, 16  ;;  %v5208_v44 = vcombine.low %v1010_v18, %v1020_v40  ;;  %v1977_v14 = vor.u32 %v1976_v25, %v1972_v41  ;;  %v1035_v20 = vshrl.u32 %v7360_v7, 16 }
  0xc0   : > { %v1968_v16 = vrot.slane %v1967_v13, 4  ;;  %v1027_v8 = vrot.slane %v1025_v6, 5  ;;  %v1041_v29 = vshll.u32 %v7364_v12, 16  ;;  %v5193_v45 = vcombine.low %v7354_v42, %v7360_v7  ;;  %v2009_v6 = vld [vmem:[#allocation2 + $0x18] sm:$0xe] }
  0xc1   : > { %v1033_v55 = vrot.slane %v1031_v34, 5  ;;  %2721 = vmatmul.mubr.bf16.gmra.mrb[52].mxu0 %v5259_v0  ;;  %3162 = vmatprep.mubr.bf16.mxu1 %v5208_v44  ;;  %v1978_v39 = vrot.slane %v1977_v14, 4  ;;  %v1037_v51 = vrot.slane %v1035_v20, 4  ;;  %v1985_v27 = vshrl.u32 %v7373_v35, 16  ;;  %v7410_v14 = vld [vmem:[#allocation2 + $0x9c] sm:$0xf] }
  0xc2   : > { %v1973_v47 = vsel %vm6754_vm8, %v1968_v16, %v1972_v41  ;;  %3163 = vmatmul.mubr.bf16.gmra.mrb[56].mxu1 %v5192_v52  ;;  %v1028_v4 = vor.u32 %v1027_v8, %v1024_v26  ;;  %v1043_v50 = vrot.slane %v1041_v29, 5  ;;  %v1988_v19 = vshll.u32 %v7373_v35, 16 }
  0xc3   : > { %v1994_v60 = vshll.u32 %v7383_v10, 16  ;;  %v1983_v0 = vsel %vm6754_vm8, %v1978_v39, %v1982_v48  ;;  %v1038_v22 = vor.u32 %v1037_v51, %v1033_v55  ;;  %v1987_v49 = vrot.slane %v1985_v27, 4  ;;  %v6481_v27 = vld [vmem:[#allocation2 + $0x1c] sm:$0xf] }
  0xc4   : > { %v1998_v30 = vshrl.u32 %v7383_v10, 16  ;;  %v5276_v57 = vcombine.low %v1973_v47, %v1983_v0  ;;  %v1029_v58 = vrot.slane %v1028_v4, 4  ;;  %v1990_v52 = vrot.slane %v1988_v19, 5 }
  0xc5   : > { %v1996_v46 = vrot.slane %v1994_v60, 5  ;;  %v1039_v53 = vrot.slane %v1038_v22, 4  ;;  %v2004_v42 = vshll.u32 %v6479_v32, 16  ;;  %v5261_v61 = vcombine.low %v7373_v35, %v7383_v10 }
  0xc6   : > { %v2000_v62 = vrot.slane %v1998_v30, 4  ;;  %2728 = vmatprep.mubr.bf16.mxu0 %v5276_v57  ;;  %v1034_v31 = vsel %vm6754_vm8, %v1029_v58, %v1033_v55  ;;  %v1991_v24 = vor.u32 %v1990_v52, %v1987_v49  ;;  %v1046_v43 = vshrl.u32 %v7389_v56, 16  ;;  %v6480_v55 = vld [vmem:[#allocation2 + $0x10] sm:$0xf]  ;;  %v7423_v30 = vld [vmem:[#allocation2 + $0xa4] sm:$0x1] }
  0xc7   : > { %v1049_v9 = vshll.u32 %v7389_v56, 16  ;;  %v1044_v33 = vsel %vm6754_vm8, %v1039_v53, %v1043_v50  ;;  %v2006_v5 = vrot.slane %v2004_v42, 5  ;;  %v1055_v54 = vshll.u32 %v7391_v59, 16  ;;  %v7414_v50 = vld [vmem:[#allocation2 + $0xa0] sm:$0xf] }
  0xc8   : > { %v2001_v63 = vor.u32 %v2000_v62, %v1996_v46  ;;  %v5209_v41 = vcombine.low %v1034_v31, %v1044_v33  ;;  %v1992_v15 = vrot.slane %v1991_v24, 4  ;;  %v1048_v18 = vrot.slane %v1046_v43, 4  ;;  %v2010_v31 = vld [vmem:[#allocation2 + $0x24] sm:$0xe] }
  0xc9   : > { %v1051_v13 = vrot.slane %v1049_v9, 5  ;;  %2729 = vmatmul.mubr.bf16.gmra.mrb[56].mxu0 %v5260_v3  ;;  %v1057_v48 = vrot.slane %v1055_v54, 5  ;;  %v1059_v40 = vshrl.u32 %v7391_v59, 16  ;;  %v1065_v26 = vshll.u32 %v7397_v23, 16  ;;  %v2011_v9 = vld [vmem:[#allocation2 + $0x30] sm:$0xe] }
  0xca   : > { %v2002_v25 = vrot.slane %v2001_v63, 4  ;;  %3170 = vmatprep.mubr.bf16.mxu1 %v5209_v41  ;;  %v1997_v34 = vsel %vm6754_vm8, %v1992_v15, %v1996_v46  ;;  %v5194_v44 = vcombine.low %v7389_v56, %v7391_v59  ;;  %v5230_v16 = vrot.slane %v2008_v2, 9  ;;  %v7441_v63 = vld [vmem:[#allocation2 + $0xa8] sm:$0xf]  ;;  %v6483_v15 = vld [vmem:[#allocation2 + $0x2c] sm:$0x1] }
  0xcb   : > { %v1052_v35 = vor.u32 %v1051_v13, %v1048_v18  ;;  %3171 = vmatmul.mubr.bf16.gmra.mrb[60].mxu1 %v5193_v45  ;;  %v1061_v20 = vrot.slane %v1059_v40, 4  ;;  %v1067_v8 = vrot.slane %v1065_v26, 5  ;;  %v2074_v29 = vrot.slane %v6480_v55, 5  ;;  %v6484_v40 = vld [vmem:[#allocation2 + $0x34] sm:$0xf] }
  0xcc   : > { %v2007_v3 = vsel %vm6754_vm8, %v2002_v25, %v2006_v5  ;;  %v5231_v51 = vrot.slane %v2009_v6, 9  ;;  %v2081_v4 = vrot.slane %v6481_v27, 5  ;;  %v1070_v45 = vshrl.u32 %v7410_v14, 16  ;;  %v7443_v6 = vld [vmem:[#allocation2 + $0xac] sm:$0xf] }
  0xcd   : > { %v5277_v47 = vcombine.low %v1997_v34, %v2007_v3  ;;  %v1053_v39 = vrot.slane %v1052_v35, 4  ;;  %v1062_v19 = vor.u32 %v1061_v20, %v1057_v48  ;;  %v2075_v10 = vsel %vm6705_vm5, %v5230_v16, %v2074_v29  ;;  %v6485_v16 = vld [vmem:[#allocation2 + $0x38] sm:$0x1] }
  0xce   : > { %v2076_v60 = vrot.slane %v2074_v29, 4  ;;  %v2082_v22 = vsel %vm6705_vm5, %v5231_v51, %v2081_v4  ;;  %v2083_v49 = vrot.slane %v2081_v4, 4  ;;  %v1073_v56 = vshll.u32 %v7410_v14, 16  ;;  %v6423_v51 = vld [vmem:[%s8366_s1 + $0x1c8] sm:$0xff]  }
  0xcf   : > { %2736 = vmatprep.mubr.bf16.mxu0 %v5277_v47  ;;  %v1058_v0 = vsel %vm6754_vm8, %v1053_v39, %v1057_v48  ;;  %v1063_v57 = vrot.slane %v1062_v19, 4  ;;  %v1072_v52 = vrot.slane %v1070_v45, 4  ;;  %v1079_v46 = vshll.u32 %v7414_v50, 16  ;;  %v7457_v39 = vld [vmem:[#allocation2 + $0xb0] sm:$0x1] }
  0xd0   : > { %v2078_v58 = vsel %vm6705_vm5, %v2076_v60, %v2077_v38  ;;  %v2085_v62 = vsel %vm6705_vm5, %v2083_v49, %v2084_v37  ;;  %v1075_v32 = vrot.slane %v1073_v56, 5  ;;  %v1083_v42 = vshrl.u32 %v7414_v50, 16  ;;  %v2012_v60 = vld [vmem:[#allocation2 + $0x3c] sm:$0xe]  ;;  %v2013_v56 = vld [vmem:[#allocation2 + $0x48] sm:$0xe] }
  0xd1   : > { %v5278_v53 = vcombine.low %v2075_v10, %v2078_v58  ;;  %2737 = vmatmul.mubr.bf16.gmra.mrb[60].mxu0 %v5261_v61  ;;  %v1068_v36 = vsel %vm6754_vm8, %v1063_v57, %v1067_v8  ;;  %v5279_v24 = vcombine.low %v2082_v22, %v2085_v62  ;;  %v1081_v43 = vrot.slane %v1079_v46, 5  ;;  %v6482_v61 = vld [vmem:[#allocation2 + $0x28] sm:$0xf]  ;;  %v6422_v8 = vld [vmem:[%s8366_s1 + $0x180] sm:$0xff]  }
  0xd2   : > { %v1089_v38 = vshll.u32 %v7423_v30, 16  ;;  %v5210_v2 = vcombine.low %v1058_v0, %v1068_v36  ;;  %v1076_v33 = vor.u32 %v1075_v32, %v1072_v52  ;;  %v1085_v28 = vrot.slane %v1083_v42, 4  ;;  %v7478_v36 = vld [vmem:[#allocation2 + $0xb4] sm:$0xf] }
  0xd3   : > { %6017 = vmatprep.mubr.bf16.mxu0 %v5278_v53  ;;  %v5195_v37 = vcombine.low %v7410_v14, %v7414_v50  ;;  %v5232_v54 = vrot.slane %v2010_v31, 9  ;;  %v2088_v41 = vrot.slane %v6482_v61, 5  ;;  %v2091_v18 = vrot.slane %v6483_v15, 5  ;;  %v6424_v53 = vld [vmem:[%s8366_s1 + $0x188] sm:$0xff]   ;;  %v6489_v15 = vld [vmem:[#allocation2 + $0x50] sm:$0x1] }
  0xd4   : > { %v1091_v5 = vrot.slane %v1089_v38, 5  ;;  %3178 = vmatprep.mubr.bf16.mxu1 %v5210_v2  ;;  %v1077_v13 = vrot.slane %v1076_v33, 4  ;;  %v1086_v25 = vor.u32 %v1085_v28, %v1081_v43  ;;  %v5233_v48 = vrot.slane %v2011_v9, 9  ;;  %v6486_v38 = vld [vmem:[#allocation2 + $0x40] sm:$0xf] }
  0xd5   : > { %v2095_v26 = vrot.slane %v6484_v40, 5  ;;  %3179 = vmatmul.mubr.bf16.gmra.mrb[64].mxu1 %v5194_v44  ;;  %v2089_v34 = vsel %vm6705_vm5, %v5232_v54, %v2088_v41  ;;  %v2090_v35 = vrot.slane %v2088_v41, 4  ;;  %v2098_v3 = vrot.slane %v6485_v16, 5  ;;  %v6487_v2 = vld [vmem:[#allocation2 + $0x44] sm:$0x1] }
  0xd6   : > { %v1094_v20 = vshrl.u32 %v7441_v63, 16  ;;  %v1082_v55 = vsel %vm6754_vm8, %v1077_v13, %v1081_v43  ;;  %v1087_v29 = vrot.slane %v1086_v25, 4  ;;  %v1097_v19 = vshll.u32 %v7441_v63, 16  ;;  %v6488_v61 = vld [vmem:[#allocation2 + $0x4c] sm:$0xf] }
  0xd7   : > { %v7455_v47 = vsel %vm6705_vm5, %v5233_v48, %v2095_v26  ;;  %v2097_v44 = vrot.slane %v2095_v26, 4  ;;  %v2092_v27 = vsel %vm6705_vm5, %v2090_v35, %v2091_v18  ;;  %v1103_v10 = vshll.u32 %v7443_v6, 16  ;;  %v7483_v13 = vld [vmem:[#allocation2 + $0xb8] sm:$0xf] }
  0xd8   : > { %v1096_v4 = vrot.slane %v1094_v20, 4  ;;  %v1092_v45 = vsel %vm6754_vm8, %v1087_v29, %v1091_v5  ;;  %v5280_v0 = vcombine.low %v2089_v34, %v2092_v27  ;;  %v1107_v49 = vshrl.u32 %v7443_v6, 16  ;;  %v6427_v34 = vld [vmem:[%s8366_s1 + $0x190] sm:$0xff]   ;;  %v6428_v35 = vld [vmem:[%s8366_s1 + $0x1d8] sm:$0xff]  }
  0xd9   : > { %v2099_v22 = vsel %vm6705_vm5, %v2097_v44, %v2098_v3  ;;  %6018 = vmatmul.mubr.bf16.vlgmr.msra.gmra.mrb[64].mxu0 %v5279_v24  ;;  %v5211_v57 = vcombine.low %v1082_v55, %v1092_v45  ;;  %v1099_v52 = vrot.slane %v1097_v19, 5  ;;  %v1105_v46 = vrot.slane %v1103_v10, 5  ;;  %v6426_v24 = vld [vmem:[%s8366_s1 + $0x1d0] sm:$0xff]   ;;  %v7506_v55 = vld [vmem:[#allocation2 + $0xbc] sm:$0x1] }
  0xda   : > { %v5281_v58 = vcombine.low %v7455_v47, %v2099_v22  ;;  %5866 = vmatpush3.bf16.msra.mxu0 %v6422_v8  ;;  %6021 = vmatprep.mubr.bf16.mxu0 %v5280_v0  ;;  %v1109_v62 = vrot.slane %v1107_v49, 4  ;;  %v1113_v32 = vshll.u32 %v7457_v39, 16  ;;  %v5196_v42 = vcombine.low %v7441_v63, %v7443_v6  ;;  %v2014_v44 = vld [vmem:[#allocation2 + $0x54] sm:$0xe]  ;;  %v2015_v10 = vld [vmem:[#allocation2 + $0x60] sm:$0xe] }
  0xdb   : > { %v5234_v31 = vrot.slane %v2012_v60, 9  ;;  %5867 = vmatprep.subr.bf16.mxu0 %v6423_v51  ;;  %3186 = vmatprep.mubr.bf16.mxu1 %v5211_v57  ;;  %v1100_v43 = vor.u32 %v1099_v52, %v1096_v4  ;;  %v2102_v9 = vrot.slane %v6486_v38, 5  ;;  %v2105_v33 = vrot.slane %v6487_v2, 5  ;;  %v6429_v49 = vld [vmem:[%s8366_s1 + $0x198] sm:$0xff]  }
  0xdc   : > { %v5235_v28 = vrot.slane %v2013_v56, 9  ;;  %v1110_v5 = vor.u32 %v1109_v62, %v1105_v46  ;;  %v1115_v54 = vrot.slane %v1113_v32, 5  ;;  %v2109_v41 = vrot.slane %v6488_v61, 5  ;;  %v6490_v32 = vld [vmem:[#allocation2 + $0x58] sm:$0xf] }
  0xdd   : > { %v2112_v18 = vrot.slane %v6489_v15, 5  ;;  %3187 = vmatmul.mubr.bf16.gmra.mrb[68].mxu1 %v5195_v37  ;;  %v1101_v25 = vrot.slane %v1100_v43, 4  ;;  %v2103_v48 = vsel %vm6705_vm5, %v5234_v31, %v2102_v9  ;;  %v2104_v40 = vrot.slane %v2102_v9, 4  ;;  %v1142_v61 = vld [vmem:[#allocation2 + $0xc] sm:$0xe] }
  0xde   : > { %v1118_v26 = vshrl.u32 %v7478_v36, 16  ;;  %5868 = vmatpush3.bf16.msra.mxu0 %v6424_v53  ;;  %v1111_v16 = vrot.slane %v1110_v5, 4  ;;  %v7499_v14 = vsel %vm6705_vm5, %v5235_v28, %v2109_v41  ;;  %v2111_v37 = vrot.slane %v2109_v41, 4  ;;  %v6432_v53 = vld [vmem:[%s8366_s1 + $0x1e0] sm:$0xff]   ;;  %v6493_v5 = vld [vmem:[#allocation2 + $0x68] sm:$0x1] }
  0xdf   : > { %v1121_v3 = vshll.u32 %v7478_v36, 16  ;;  %5869 = vmatprep.subr.bf16.mxu0 %v6426_v24  ;;  %v1106_v20 = vsel %vm6754_vm8, %v1101_v25, %v1105_v46  ;;  %v2106_v8 = vsel %vm6705_vm5, %v2104_v40, %v2105_v33  ;;  %v1127_v47 = vshll.u32 %v7483_v13, 16  ;;  %v6491_v24 = vld [vmem:[#allocation2 + $0x5c] sm:$0x1]  ;;  %v6492_v33 = vld [vmem:[#allocation2 + $0x64] sm:$0xf] }
  0xe0   : > { %v1120_v29 = vrot.slane %v1118_v26, 4  ;;  %v1116_v51 = vsel %vm6754_vm8, %v1111_v16, %v1115_v54  ;;  %v5282_v27 = vcombine.low %v2103_v48, %v2106_v8  ;;  %v2113_v4 = vsel %vm6705_vm5, %v2111_v37, %v2112_v18  ;;  %v6433_v48 = vld [vmem:[%s8366_s1 + $0x1a0] sm:$0xff]   ;;  %v6434_v16 = vld [vmem:[%s8366_s1 + $0x1e8] sm:$0xff]  }
  0xe1   : > { %v1123_v19 = vrot.slane %v1121_v3, 5  ;;  %6022 = vmatmul.mubr.bf16.gmra.mrb[68].mxu0 %v5281_v58  ;;  %v5212_v60 = vcombine.low %v1106_v20, %v1116_v51  ;;  %v5283_v45 = vcombine.low %v7499_v14, %v2113_v4  ;;  %v1129_v0 = vrot.slane %v1127_v47, 5  ;;  %v1141_v58 = vld [vmem:[#allocation2] sm:$0xe]  ;;  %v6495_v3 = vld [vmem:[#allocation2 + $0x8] sm:$0x1] }
  0xe2   : > { %v1131_v22 = vshrl.u32 %v7483_v13, 16  ;;  %5870 = vmatpush3.bf16.msra.mxu0 %v6427_v34  ;;  %6025 = vmatprep.mubr.bf16.mxu0 %v5282_v27  ;;  %v1137_v57 = vshll.u32 %v7506_v55, 16  ;;  %v5197_v52 = vcombine.low %v7478_v36, %v7483_v13  ;;  %v5236_v46 = vrot.slane %v2014_v44, 9 }
  0xe3   : > { %v1124_v56 = vor.u32 %v1123_v19, %v1120_v29  ;;  %5871 = vmatprep.subr.bf16.mxu0 %v6428_v35  ;;  %3194 = vmatprep.mubr.bf16.mxu1 %v5212_v60  ;;  %v2116_v31 = vrot.slane %v6490_v32, 5  ;;  %v2119_v43 = vrot.slane %v6491_v24, 5  ;;  %v5237_v38 = vrot.slane %v2015_v10, 9  ;;  %v7538_v35 = vld [vmem:[#allocation2 + $0x18] sm:$0xf] }
  0xe4   : > { %v1133_v62 = vrot.slane %v1131_v22, 4  ;;  %v1139_v2 = vrot.slane %v1137_v57, 5  ;;  %v2123_v28 = vrot.slane %v6492_v33, 5  ;;  %v2126_v54 = vrot.slane %v6493_v5, 5  ;;  %v7545_v29 = vld [vmem:[#allocation2 + $0x1c] sm:$0xf] }
  0xe5   : > { %v1125_v9 = vrot.slane %v1124_v56, 4  ;;  %3195 = vmatmul.mubr.bf16.gmra.mrb[72].mxu1 %v5196_v42  ;;  %v2117_v15 = vsel %vm6705_vm5, %v5236_v46, %v2116_v31  ;;  %v2118_v18 = vrot.slane %v2116_v31, 4  ;;  %v5166_v25 = vrot.slane %v1141_v58, 9  ;;  %v6494_v42 = vld [vmem:[#allocation2 + $0x4] sm:$0xf]  ;;  %v6435_v56 = vld [vmem:[%s8366_s1 + $0x1a8] sm:$0xff]  }
  0xe6   : > { %v1134_v41 = vor.u32 %v1133_v62, %v1129_v0  ;;  %5872 = vmatpush3.bf16.msra.mxu0 %v6429_v49  ;;  %v7536_v26 = vsel %vm6705_vm5, %v5237_v38, %v2123_v28  ;;  %v2125_v63 = vrot.slane %v2123_v28, 4  ;;  %v1210_v34 = vrot.slane %v6494_v42, 5  ;;  %v6496_v10 = vld [vmem:[#allocation2 + $0x10] sm:$0xf]  ;;  %v1143_v58 = vld [vmem:[#allocation2 + $0x18] sm:$0xe] }
  0xe7   : > { %v1130_v40 = vsel %vm6754_vm8, %v1125_v9, %v1129_v0  ;;  %5873 = vmatprep.subr.bf16.mxu0 %v6432_v53  ;;  %v2120_v37 = vsel %vm6705_vm5, %v2118_v18, %v2119_v43  ;;  %v1213_v20 = vrot.slane %v6495_v3, 5  ;;  %v5167_v8 = vrot.slane %v1142_v61, 9  ;;  %v7554_v0 = vld [vmem:[#allocation2 + $0x20] sm:$0x1]  ;;  %v6437_v53 = vld [vmem:[%s8366_s1 + $0x1f0] sm:$0xff]  }
  0xe8   : > { %v1135_v14 = vrot.slane %v1134_v41, 4  ;;  %v5284_v47 = vcombine.low %v2117_v15, %v2120_v37  ;;  %v2127_v44 = vsel %vm6705_vm5, %v2125_v63, %v2126_v54  ;;  %v1211_v51 = vsel %vm6705_vm5, %v5166_v25, %v1210_v34  ;;  %v1144_v33 = vld [vmem:[#allocation2 + $0x24] sm:$0xe]  ;;  %v6438_v28 = vld [vmem:[%s8366_s1 + $0x1b0] sm:$0xff]   ;;  %v6497_v41 = vld [vmem:[#allocation2 + $0x1c] sm:$0xf] }
  0xe9   : > { %v1212_v27 = vrot.slane %v1210_v34, 4  ;;  %6026 = vmatmul.mubr.bf16.gmra.mrb[72].mxu0 %v5283_v45  ;;  %v5285_v19 = vcombine.low %v7536_v26, %v2127_v44  ;;  %v1217_v60 = vrot.slane %v6496_v10, 5  ;;  %v3422_v22 = vshrl.u32 %v7538_v35, 16  ;;  %v6498_v63 = vld [vmem:[#allocation2 + $0x20] sm:$0x1]  ;;  %v6440_v10 = vld [vmem:[%s8366_s1 + $0x1b8] sm:$0xff]  }
  0xea   : > { %v1140_v4 = vsel %vm6754_vm8, %v1135_v14, %v1139_v2  ;;  %5874 = vmatpush3.bf16.msra.mxu0 %v6433_v48  ;;  %6029 = vmatprep.mubr.bf16.mxu0 %v5284_v47  ;;  %v3425_v57 = vshll.u32 %v7538_v35, 16  ;;  %v3431_v46 = vshll.u32 %v7545_v29, 16  ;;  %v3435_v9 = vshrl.u32 %v7545_v29, 16  ;;  %v7583_v48 = vld [vmem:[#allocation2 + $0x24] sm:$0xf] }
  0xeb   : > { %v5213_v49 = vcombine.low %v1130_v40, %v1140_v4  ;;  %v1214_v45 = vsel %vm6705_vm5, %v1212_v27, %v1213_v20  ;;  %5875 = vmatprep.subr.bf16.mxu0 %v6434_v16  ;;  %v1218_v32 = vsel %vm6705_vm5, %v5167_v8, %v1217_v60  ;;  %v1219_v31 = vrot.slane %v1217_v60, 4  ;;  %v7585_v40 = vld [vmem:[#allocation2 + $0x28] sm:$0xf]  ;;  %v6500_v20 = vld [vmem:[#allocation2 + $0x2c] sm:$0x1] }
  0xec   : > { %v5214_v62 = vcombine.low %v1211_v51, %v1214_v45  ;;  %v3424_v24 = vrot.slane %v3422_v22, 4  ;;  %v3427_v43 = vrot.slane %v3425_v57, 5  ;;  %v3433_v38 = vrot.slane %v3431_v46, 5  ;;  %v6499_v37 = vld [vmem:[#allocation2 + $0x28] sm:$0xf] }
  0xed   : > { %3202 = vmatprep.mubr.bf16.mxu1 %v5213_v49  ;;  %v3441_v2 = vshll.u32 %v7554_v0, 16  ;;  %v1221_v5 = vsel %vm6705_vm5, %v1219_v31, %v1220_v21  ;;  %v5358_v54 = vcombine.low %v7538_v35, %v7545_v29  ;;  %v5168_v61 = vrot.slane %v1143_v58, 9  ;;  %v7594_v44 = vld [vmem:[#allocation2 + $0x2c] sm:$0x1]  ;;  %v1145_v58 = vld [vmem:[#allocation2 + $0x30] sm:$0xe] }
  0xee   : > { %3203 = vmatmul.mubr.bf16.gmra.mrb[76].mxu1 %v5197_v52  ;;  %v1224_v15 = vrot.slane %v6497_v41, 5  ;;  %5876 = vmatpush3.bf16.msra.mxu0 %v6435_v56  ;;  %v5215_v18 = vcombine.low %v1218_v32, %v1221_v5  ;;  %v3428_v36 = vor.u32 %v3427_v43, %v3424_v24  ;;  %v3437_v52 = vrot.slane %v3435_v9, 4  ;;  %v6443_v24 = vld [vmem:[%s8366_s1 + $0x208] sm:$0xff]   ;;  %v1146_v43 = vld [vmem:[#allocation2 + $0x3c] sm:$0xe]  ;;  %v6501_v5 = vld [vmem:[%s8366_s1 + $0x200] sm:$0xff]  }
  0xef   : > { %6065 = vmatprep.mubr.bf16.mxu1 %v5214_v62  ;;  %v3443_v25 = vrot.slane %v3441_v2, 5  ;;  %5877 = vmatprep.subr.bf16.mxu0 %v6437_v53  ;;  %v1227_v42 = vrot.slane %v6498_v63, 5  ;;  %v5169_v34 = vrot.slane %v1144_v33, 9  ;;  %v1231_v3 = vrot.slane %v6499_v37, 5  ;;  %v6445_v63 = vld [vmem:[%s8366_s1 + $0x210] sm:$0xff]  }
  0xf0   : > { %v1225_v21 = vsel %vm6705_vm5, %v5168_v61, %v1224_v15  ;;  %v1226_v26 = vrot.slane %v1224_v15, 4  ;;  %v3429_v16 = vrot.slane %v3428_v36, 4  ;;  %v3438_v14 = vor.u32 %v3437_v52, %v3433_v38  ;;  %v6502_v52 = vld [vmem:[#allocation2 + $0x34] sm:$0xf] }
  0xf1   : > { %v1234_v8 = vrot.slane %v6500_v20, 5  ;;  %6030 = vmatmul.mubr.bf16.gmra.mrb[76].mxu0 %v5285_v19  ;;  %v3446_v51 = vshrl.u32 %v7583_v48, 16  ;;  %v3449_v27 = vshll.u32 %v7583_v48, 16  ;;  %v3455_v4 = vshll.u32 %v7585_v40, 16 }
  0xf2   : > { %v1228_v47 = vsel %vm6705_vm5, %v1226_v26, %v1227_v42  ;;  %5878 = vmatpush3.bf16.msra.mxu0 %v6438_v28  ;;  %v3434_v60 = vsel %vm6754_vm8, %v3429_v16, %v3433_v38  ;;  %v3439_v19 = vrot.slane %v3438_v14, 4  ;;  %v7606_v49 = vsel %vm6705_vm5, %v5169_v34, %v1231_v3  ;;  %v7622_v28 = vld [vmem:[#allocation2 + $0x30] sm:$0xf]  ;;  %v6504_v34 = vld [vmem:[#allocation2 + $0x40] sm:$0xf] }
  0xf3   : > { %v5216_v22 = vcombine.low %v1225_v21, %v1228_v47  ;;  %5879 = vmatprep.subr.bf16.mxu0 %v6439_v1  ;;  %v1233_v56 = vrot.slane %v1231_v3, 4  ;;  %v3448_v45 = vrot.slane %v3446_v51, 4  ;;  %v3451_v57 = vrot.slane %v3449_v27, 5  ;;  %v6503_v1 = vld [vmem:[#allocation2 + $0x38] sm:$0x1] }
  0xf4   : > { %v7608_v46 = vrot.slane %v3455_v4, 5  ;;  %v3444_v53 = vsel %vm6754_vm8, %v3439_v19, %v3443_v25  ;;  %v3459_v62 = vshrl.u32 %v7585_v40, 16  ;;  %v3465_v32 = vshll.u32 %v7594_v44, 16  ;;  %v6505_v14 = vld [vmem:[#allocation2 + $0x44] sm:$0x1] }
  0xf5   : > { %v3881_v31 = vrot.slane %v7594_v44, 5  ;;  %v5374_v38 = vcombine.low %v3434_v60, %v3444_v53  ;;  %v1235_v9 = vsel %vm6705_vm5, %v1233_v56, %v1234_v8  ;;  %v3452_v2 = vor.u32 %v3451_v57, %v3448_v45  ;;  %v7632_v3 = vld [vmem:[#allocation2 + $0x34] sm:$0xf]  ;;  %v7643_v27 = vld [vmem:[#allocation2 + $0x38] sm:$0x1] }
  0xf6   : > { %6066 = vmatmul.mubr.bf16.vlgmr.msra.gmra.mrb[80].mxu1 %v5215_v18  ;;  %v5359_v33 = vcombine.low %v7583_v48, %v7585_v40  ;;  %5880 = vmatpush3.bf16.msra.mxu0 %v6440_v10  ;;  %v5217_v61 = vcombine.low %v7606_v49, %v1235_v9  ;;  %v3461_v41 = vrot.slane %v3459_v62, 4  ;;  %v3467_v15 = vrot.slane %v3465_v32, 5  ;;  %v1147_v45 = vld [vmem:[#allocation2 + $0x48] sm:$0xe]  ;;  %v6447_v57 = vld [vmem:[%s8366_s1 + $0x218] sm:$0xff]  }
  0xf7   : > { %6098 = vmatpush3.bf16.msra.mxu1 %v6501_v5  ;;  %v5170_v18 = vrot.slane %v1145_v58, 9  ;;  %4413 = vmatprep.mubr.bf16.mxu0 %v5374_v38  ;;  %v3453_v36 = vrot.slane %v3452_v2, 4  ;;  %v1238_v25 = vrot.slane %v6502_v52, 5  ;;  %v1241_v21 = vrot.slane %v6503_v1, 5  ;;  %v1148_v32 = vld [vmem:[#allocation2 + $0x54] sm:$0xe] }
  0xf8   : > { %6069 = vmatprep.mubr.bf16.mxu1 %v5216_v22  ;;  %v5171_v26 = vrot.slane %v1146_v43, 9  ;;  %v3462_v42 = vor.u32 %v3461_v41, %v7608_v46  ;;  %6099 = vmatprep.subr.bf16.mxu1 %v6443_v24  ;;  %v1245_v16 = vrot.slane %v6504_v34, 5  ;;  %v1248_v37 = vrot.slane %v6505_v14, 5  ;;  %v7663_v2 = vld [vmem:[#allocation2 + $0x3c] sm:$0xf] }
  0xf9   : > { %v3470_v20 = vshrl.u32 %v7622_v28, 16  ;;  %4414 = vmatmul.mubr.bf16.vlgmr.msra.gmra.mrb[80].mxu0 %v5358_v54  ;;  %v3458_v8 = vsel %vm6754_vm8, %v3453_v36, %v7608_v46  ;;  %v1239_v47 = vsel %vm6705_vm5, %v5170_v18, %v1238_v25  ;;  %v1240_v51 = vrot.slane %v1238_v25, 4  ;;  %v6506_v52 = vld [vmem:[#allocation2 + $0x4c] sm:$0xf]  ;;  %v6508_v34 = vld [vmem:[#allocation2 + $0x58] sm:$0xf] }
  0xfa   : > { %v3473_v4 = vshll.u32 %v7622_v28, 16  ;;  %v3463_v10 = vrot.slane %v3462_v42, 4  ;;  %v7648_v60 = vsel %vm6705_vm5, %v5171_v26, %v1245_v16  ;;  %v1247_v35 = vrot.slane %v1245_v16, 4  ;;  %v6449_v26 = vld [vmem:[%s8366_s1 + $0x220] sm:$0xff]   ;;  %v6509_v14 = vld [vmem:[#allocation2 + $0x5c] sm:$0x1] }
  0xfb   : > { %6100 = vmatpush3.bf16.msra.mxu1 %v6443_v24  ;;  %v3472_v54 = vrot.slane %v3470_v20, 4  ;;  %v1242_v19 = vsel %vm6705_vm5, %v1240_v51, %v1241_v21  ;;  %v3479_v49 = vshll.u32 %v7632_v3, 16  ;;  %v3483_v56 = vshrl.u32 %v7632_v3, 16  ;;  %v7670_v20 = vld [vmem:[#allocation2 + $0x40] sm:$0xf] }
  0xfc   : > { %v3475_v22 = vrot.slane %v3473_v4, 5  ;;  %6101 = vmatprep.subr.bf16.mxu1 %v6445_v63  ;;  %v3468_v46 = vsel %vm6754_vm8, %v3463_v10, %v3467_v15  ;;  %v5218_v58 = vcombine.low %v1239_v47, %v1242_v19  ;;  %v1249_v53 = vsel %vm6705_vm5, %v1247_v35, %v1248_v37  ;;  %v7680_v4 = vld [vmem:[#allocation2 + $0x44] sm:$0x1] }
  0xfd   : > { %v3489_v62 = vshll.u32 %v7643_v27, 16  ;;  %v5375_v24 = vcombine.low %v3458_v8, %v3468_v46  ;;  %v5219_v43 = vcombine.low %v7648_v60, %v1249_v53  ;;  %v3481_v9 = vrot.slane %v3479_v49, 5 }
  0xfe   : > { %6070 = vmatmul.mubr.bf16.gmra.mrb[84].mxu1 %v5217_v61  ;;  %v3476_v38 = vor.u32 %v3475_v22, %v3472_v54  ;;  %v3485_v5 = vrot.slane %v3483_v56, 4  ;;  %v5360_v15 = vcombine.low %v7622_v28, %v7632_v3  ;;  %v5172_v18 = vrot.slane %v1147_v45, 9  ;;  %v6507_v61 = vld [vmem:[#allocation2 + $0x50] sm:$0x1]  ;;  %v1149_v56 = vld [vmem:[#allocation2 + $0x60] sm:$0xe] }
  0xff   : > { %6073 = vmatprep.mubr.bf16.mxu1 %v5218_v58  ;;  %v3491_v41 = vrot.slane %v3489_v62, 5  ;;  %6102 = vmatpush3.bf16.msra.mxu1 %v6445_v63  ;;  %v1252_v25 = vrot.slane %v6506_v52, 5  ;;  %v1255_v1 = vrot.slane %v6507_v61, 5  ;;  %v5173_v21 = vrot.slane %v1148_v32, 9  ;;  %v6451_v45 = vld [vmem:[%s8366_s1 + $0x228] sm:$0xff]  }
 0x100   : > { %4421 = vmatprep.mubr.bf16.mxu0 %v5375_v24  ;;  %v3477_v36 = vrot.slane %v3476_v38, 4  ;;  %6103 = vmatprep.subr.bf16.mxu1 %v6447_v57  ;;  %v3486_v42 = vor.u32 %v3485_v5, %v3481_v9  ;;  %v1259_v16 = vrot.slane %v6508_v34, 5  ;;  %v1262_v37 = vrot.slane %v6509_v14, 5  ;;  %v1150_v62 = vld [vmem:[#allocation2 + $0x6c] sm:$0xe] }
 0x101   : > { %v3494_v63 = vshrl.u32 %v7663_v2, 16  ;;  %4422 = vmatmul.mubr.bf16.gmra.mrb[84].mxu0 %v5359_v33  ;;  %v1253_v47 = vsel %vm6705_vm5, %v5172_v18, %v1252_v25  ;;  %v1254_v51 = vrot.slane %v1252_v25, 4  ;;  %v3497_v10 = vshll.u32 %v7663_v2, 16  ;;  %v7700_v5 = vld [vmem:[#allocation2 + $0x48] sm:$0xf] }
 0x102   : > { %v3482_v8 = vsel %vm6754_vm8, %v3477_v36, %v3481_v9  ;;  %v3487_v60 = vrot.slane %v3486_v42, 4  ;;  %v7685_v35 = vsel %vm6705_vm5, %v5173_v21, %v1259_v16  ;;  %v1261_v54 = vrot.slane %v1259_v16, 4  ;;  %v6511_v21 = vld [vmem:[#allocation2 + $0x68] sm:$0x1]  ;;  %v6453_v16 = vld [vmem:[%s8366_s1 + $0x230] sm:$0xff]  }
 0x103   : > { %v3496_v19 = vrot.slane %v3494_v63, 4  ;;  %6104 = vmatpush3.bf16.msra.mxu1 %v6447_v57  ;;  %v1256_v48 = vsel %vm6705_vm5, %v1254_v51, %v1255_v1  ;;  %v3499_v33 = vrot.slane %v3497_v10, 5  ;;  %v3503_v22 = vshll.u32 %v7670_v20, 16  ;;  %v6512_v63 = vld [vmem:[#allocation2 + $0x70] sm:$0xf] }
 0x104   : > { %v3507_v49 = vshrl.u32 %v7670_v20, 16  ;;  %6105 = vmatprep.subr.bf16.mxu1 %v6449_v26  ;;  %v3492_v46 = vsel %vm6754_vm8, %v3487_v60, %v3491_v41  ;;  %v5220_v58 = vcombine.low %v1253_v47, %v1256_v48  ;;  %v1263_v57 = vsel %vm6705_vm5, %v1261_v54, %v1262_v37  ;;  %v7711_v51 = vld [vmem:[#allocation2 + $0x4c] sm:$0xf]  ;;  %v7723_v48 = vld [vmem:[#allocation2 + $0x50] sm:$0x1] }
 0x105   : > { %v3513_v53 = vshll.u32 %v7680_v4, 16  ;;  %v5376_v32 = vcombine.low %v3482_v8, %v3492_v46  ;;  %v5221_v24 = vcombine.low %v7685_v35, %v1263_v57  ;;  %v3500_v38 = vor.u32 %v3499_v33, %v3496_v19  ;;  %v7704_v25 = vpop.f32.mrb[0].mxu0 }
 0x106   : > { %6074 = vmatmul.mubr.bf16.gmra.mrb[88].mxu1 %v5219_v43  ;;  %v3505_v9 = vrot.slane %v3503_v22, 5  ;;  %v3509_v18 = vrot.slane %v3507_v49, 4  ;;  %v5361_v41 = vcombine.low %v7663_v2, %v7670_v20  ;;  %v5174_v52 = vrot.slane %v1149_v56, 9  ;;  %v6510_v43 = vld [vmem:[#allocation2 + $0x64] sm:$0xf]  ;;  %v7709_v14 = vpop.f32.mrb[1].mxu0 }
 0x107   : > { %6077 = vmatprep.mubr.bf16.mxu1 %v5220_v58  ;;  %v3515_v36 = vrot.slane %v3513_v53, 5  ;;  %6106 = vmatpush3.bf16.msra.mxu1 %v6449_v26  ;;  %v3501_v61 = vrot.slane %v3500_v38, 4  ;;  %v1266_v1 = vrot.slane %v6510_v43, 5  ;;  %v1269_v42 = vrot.slane %v6511_v21, 5  ;;  %v6513_v26 = vld [vmem:[#allocation2 + $0x74] sm:$0x1] }
 0x108   : > { %4429 = vmatprep.mubr.bf16.mxu0 %v5376_v32  ;;  %v5175_v34 = vrot.slane %v1150_v62, 9  ;;  %6107 = vmatprep.subr.bf16.mxu1 %v6451_v45  ;;  %v3510_v37 = vor.u32 %v3509_v18, %v3505_v9  ;;  %v1273_v8 = vrot.slane %v6512_v63, 5  ;;  %v1276_v47 = vrot.slane %v6513_v26, 5  ;;  %v7714_v60 = vpop.f32.mrb[2].mxu0  ;;  %v1151_v62 = vld [vmem:[#allocation2 + $0x78] sm:$0xe] }
 0x109   : > { %v3518_v10 = vshrl.u32 %v7700_v5, 16  ;;  %4430 = vmatmul.mubr.bf16.gmra.mrb[88].mxu0 %v5360_v15  ;;  %v3506_v35 = vsel %vm6754_vm8, %v3501_v61, %v3505_v9  ;;  %v1267_v54 = vsel %vm6705_vm5, %v5174_v52, %v1266_v1  ;;  %v1268_v19 = vrot.slane %v1266_v1, 4  ;;  %v7726_v22 = vpop.f32.mrb[3].mxu0  ;;  %v6455_v32 = vld [vmem:[%s8366_s1 + $0x238] sm:$0xff]   ;;  %v1152_v52 = vld [vmem:[#allocation2 + $0x84] sm:$0xe] }
 0x10a   : > { %v3521_v33 = vshll.u32 %v7700_v5, 16  ;;  %v3511_v49 = vrot.slane %v3510_v37, 4  ;;  %v1274_v56 = vsel %vm6705_vm5, %v5175_v34, %v1273_v8  ;;  %v1275_v46 = vrot.slane %v1273_v8, 4  ;;  %v6514_v26 = vld [vmem:[#allocation2 + $0x7c] sm:$0xf] }
 0x10b   : > { %v3520_v28 = vrot.slane %v3518_v10, 4  ;;  %6108 = vmatpush3.bf16.msra.mxu1 %v6451_v45  ;;  %v1270_v15 = vsel %vm6705_vm5, %v1268_v19, %v1269_v42  ;;  %v3527_v57 = vshll.u32 %v7711_v51, 16  ;;  %v3531_v53 = vshrl.u32 %v7711_v51, 16  ;;  %v7742_v42 = vld [vmem:[#allocation2 + $0x54] sm:$0xf] }
 0x10c   : > { %v3523_v58 = vrot.slane %v3521_v33, 5  ;;  %6109 = vmatprep.subr.bf16.mxu1 %v6453_v16  ;;  %v3516_v38 = vsel %vm6754_vm8, %v3511_v49, %v3515_v36  ;;  %v5222_v9 = vcombine.low %v1267_v54, %v1270_v15  ;;  %v1277_v45 = vsel %vm6705_vm5, %v1275_v46, %v1276_v47  ;;  %v6515_v10 = vld [vmem:[#allocation2 + $0x80] sm:$0x1]  ;;  %v7748_v49 = vld [vmem:[#allocation2 + $0x58] sm:$0xf] }
 0x10d   : > { %v3537_v18 = vshll.u32 %v7723_v48, 16  ;;  %v5377_v61 = vcombine.low %v3506_v35, %v3516_v38  ;;  %v5223_v43 = vcombine.low %v1274_v56, %v1277_v45  ;;  %v3529_v21 = vrot.slane %v3527_v57, 5  ;;  %v1153_v38 = vld [vmem:[#allocation2 + $0x90] sm:$0xe] }
 0x10e   : > { %6078 = vmatmul.mubr.bf16.gmra.mrb[92].mxu1 %v5221_v24  ;;  %v3524_v1 = vor.u32 %v3523_v58, %v3520_v28  ;;  %v3533_v34 = vrot.slane %v3531_v53, 4  ;;  %v5362_v36 = vcombine.low %v7700_v5, %v7711_v51  ;;  %v5176_v63 = vrot.slane %v1151_v62, 9  ;;  %v7758_v28 = vld [vmem:[#allocation2 + $0x5c] sm:$0x1] }
 0x10f   : > { %6081 = vmatprep.mubr.bf16.mxu1 %v5222_v9  ;;  %v3539_v37 = vrot.slane %v3537_v18, 5  ;;  %6110 = vmatpush3.bf16.msra.mxu1 %v6453_v16  ;;  %v1280_v47 = vrot.slane %v6514_v26, 5  ;;  %v1283_v24 = vrot.slane %v6515_v10, 5  ;;  %v5177_v35 = vrot.slane %v1152_v52, 9 }
 0x110   : > { %4437 = vmatprep.mubr.bf16.mxu0 %v5377_v61  ;;  %v3525_v8 = vrot.slane %v3524_v1, 4  ;;  %6111 = vmatprep.subr.bf16.mxu1 %v6455_v32  ;;  %v3534_v54 = vor.u32 %v3533_v34, %v3529_v21  ;;  %v1287_v19 = vrot.slane %v7360_v7, 5  ;;  %v1290_v33 = vrot.slane %v7364_v12, 5  ;;  %v1154_v61 = vld [vmem:[#allocation2 + $0x9c] sm:$0xe] }
 0x111   : > { %v3542_v56 = vshrl.u32 %v7742_v42, 16  ;;  %4438 = vmatmul.mubr.bf16.gmra.mrb[92].mxu0 %v5361_v41  ;;  %v1281_v16 = vsel %vm6705_vm5, %v5176_v63, %v1280_v47  ;;  %v1282_v46 = vrot.slane %v1280_v47, 4  ;;  %v3545_v7 = vshll.u32 %v7742_v42, 16  ;;  %v7772_v63 = vld [vmem:[#allocation2 + $0x60] sm:$0xf] }
 0x112   : > { %v3530_v5 = vsel %vm6754_vm8, %v3525_v8, %v3529_v21  ;;  %v3535_v12 = vrot.slane %v3534_v54, 4  ;;  %v1288_v15 = vsel %vm6705_vm5, %v5177_v35, %v1287_v19  ;;  %v1289_v58 = vrot.slane %v1287_v19, 4 }
 0x113   : > { %v3544_v57 = vrot.slane %v3542_v56, 4  ;;  %6112 = vmatpush3.bf16.msra.mxu1 %v6455_v32  ;;  %v1284_v2 = vsel %vm6705_vm5, %v1282_v46, %v1283_v24  ;;  %v3547_v41 = vrot.slane %v3545_v7, 5  ;;  %v3551_v53 = vshll.u32 %v7748_v49, 16  ;;  %v7780_v56 = vld [vmem:[#allocation2 + $0x64] sm:$0xf] }
 0x114   : > { %v3555_v62 = vshrl.u32 %v7748_v49, 16  ;;  %v3540_v9 = vsel %vm6754_vm8, %v3535_v12, %v3539_v37  ;;  %v5224_v45 = vcombine.low %v1281_v16, %v1284_v2  ;;  %v1291_v18 = vsel %vm6705_vm5, %v1289_v58, %v1290_v33  ;;  %v7789_v46 = vld [vmem:[#allocation2 + $0x68] sm:$0x1] }
 0x115   : > { %v3561_v52 = vshll.u32 %v7758_v28, 16  ;;  %v5378_v32 = vcombine.low %v3530_v5, %v3540_v9  ;;  %v5225_v1 = vcombine.low %v1288_v15, %v1291_v18  ;;  %v3548_v21 = vor.u32 %v3547_v41, %v3544_v57 }
 0x116   : > { %6082 = vmatmul.mubr.bf16.gmra.mrb[0].mxu1 %v5223_v43  ;;  %v3553_v34 = vrot.slane %v3551_v53, 5  ;;  %v3557_v8 = vrot.slane %v3555_v62, 4  ;;  %v5363_v37 = vcombine.low %v7742_v42, %v7748_v49  ;;  %v5178_v47 = vrot.slane %v1153_v38, 9 }
 0x117   : > { %6085 = vmatprep.mubr.bf16.mxu1 %v5224_v45  ;;  %v3563_v26 = vrot.slane %v3561_v52, 5  ;;  %4445 = vmatprep.mubr.bf16.mxu0 %v5378_v32  ;;  %v3549_v10 = vrot.slane %v3548_v21, 4  ;;  %v1294_v24 = vrot.slane %v7391_v59, 5  ;;  %v1297_v35 = vrot.slane %v7397_v23, 5  ;;  %v1155_v52 = vld [vmem:[#allocation2 + $0xa8] sm:$0xe] }
 0x118   : > { %v5179_v43 = vrot.slane %v1154_v61, 9  ;;  %v3558_v54 = vor.u32 %v3557_v8, %v3553_v34  ;;  %v1301_v19 = vrot.slane %v7414_v50, 5  ;;  %v1304_v33 = vrot.slane %v7423_v30, 5  ;;  %v7783_v16 = vpop.f32.mrb[4].mxu0  ;;  %v1156_v8 = vld [vmem:[#allocation2 + $0xb4] sm:$0xe] }
 0x119   : > { %v3566_v5 = vshrl.u32 %v7772_v63, 16  ;;  %4446 = vmatmul.mubr.bf16.gmra.mrb[96].mxu0 %v5362_v36  ;;  %v3554_v42 = vsel %vm6754_vm8, %v3549_v10, %v3553_v34  ;;  %v1295_v59 = vsel %vm6705_vm5, %v5178_v47, %v1294_v24  ;;  %v1296_v23 = vrot.slane %v1294_v24, 4  ;;  %v7792_v7 = vpop.f32.mrb[5].mxu0 }
 0x11a   : > { %v3569_v50 = vshll.u32 %v7772_v63, 16  ;;  %v3559_v30 = vrot.slane %v3558_v54, 4  ;;  %v1302_v12 = vsel %vm6705_vm5, %v5179_v43, %v1301_v19  ;;  %v1303_v15 = vrot.slane %v1301_v19, 4  ;;  %v7796_v36 = vpop.f32.mrb[6].mxu0  ;;  %v7817_v19 = vld [vmem:[#allocation2 + $0x6c] sm:$0xf] }
 0x11b   : > { %v3568_v58 = vrot.slane %v3566_v5, 4  ;;  %v1298_v57 = vsel %vm6705_vm5, %v1296_v23, %v1297_v35  ;;  %v3575_v41 = vshll.u32 %v7780_v56, 16  ;;  %v3579_v53 = vshrl.u32 %v7780_v56, 16  ;;  %v7802_v62 = vpop.f32.mrb[7].mxu0 }
 0x11c   : > { %v3571_v2 = vrot.slane %v3569_v50, 5  ;;  %v3564_v38 = vsel %vm6754_vm8, %v3559_v30, %v3563_v26  ;;  %v5226_v9 = vcombine.low %v1295_v59, %v1298_v57  ;;  %v1305_v45 = vsel %vm6705_vm5, %v1303_v15, %v1304_v33  ;;  %v7836_v30 = vld [vmem:[#allocation2 + $0x74] sm:$0x1] }
 0x11d   : > { %v3585_v18 = vshll.u32 %v7789_v46, 16  ;;  %v5379_v61 = vcombine.low %v3554_v42, %v3564_v38  ;;  %v5227_v32 = vcombine.low %v1302_v12, %v1305_v45  ;;  %v3577_v34 = vrot.slane %v3575_v41, 5  ;;  %v3805_v41 = vld [vmem:[#allocation2 + $0x18] sm:$0xe] }
 0x11e   : > { %6086 = vmatmul.mubr.bf16.gmra.mrb[4].mxu1 %v5225_v1  ;;  %v3572_v21 = vor.u32 %v3571_v2, %v3568_v58  ;;  %v3581_v47 = vrot.slane %v3579_v53, 4  ;;  %v5364_v24 = vcombine.low %v7772_v63, %v7780_v56  ;;  %v7813_v26 = vadd.f32 %v7709_v14, %v7704_v25  ;;  %v7821_v63 = vld [vmem:[#allocation2 + $0x70] sm:$0xf] }
 0x11f   : > { %6089 = vmatprep.mubr.bf16.mxu1 %v5226_v9  ;;  %v3587_v10 = vrot.slane %v3585_v18, 5  ;;  %4453 = vmatprep.mubr.bf16.mxu0 %v5379_v61  ;;  %v5180_v43 = vrot.slane %v1155_v52, 9  ;;  %v1308_v1 = vrot.slane %v7443_v6, 5  ;;  %v1311_v54 = vrot.slane %v7457_v39, 5  ;;  %v3806_v18 = vld [vmem:[#allocation2 + $0x24] sm:$0xe] }
 0x120   : > { %v3573_v35 = vrot.slane %v3572_v21, 4  ;;  %v3582_v33 = vor.u32 %v3581_v47, %v3577_v34  ;;  %v5181_v5 = vrot.slane %v1156_v8, 9  ;;  %v1315_v42 = vrot.slane %v7483_v13, 5 }
 0x121   : > { %v1318_v59 = vrot.slane %v7506_v55, 5  ;;  %4454 = vmatmul.mubr.bf16.gmra.mrb[100].mxu0 %v5363_v37  ;;  %v1309_v14 = vsel %vm6705_vm5, %v5180_v43, %v1308_v1  ;;  %v1310_v6 = vrot.slane %v1308_v1, 4  ;;  %v7829_v39 = vadd.f32 %v7726_v22, %v7714_v60  ;;  %v7854_v1 = vld [vmem:[#allocation2 + $0x78] sm:$0xf] }
 0x122   : > { %v3578_v25 = vsel %vm6754_vm8, %v3573_v35, %v3577_v34  ;;  %v3583_v23 = vrot.slane %v3582_v33, 4  ;;  %v1316_v13 = vsel %vm6705_vm5, %v5181_v5, %v1315_v42  ;;  %v1317_v50 = vrot.slane %v1315_v42, 4 }
 0x123   : > { %v3590_v55 = vshrl.u32 %v7817_v19, 16  ;;  %v1312_v37 = vsel %vm6705_vm5, %v1310_v6, %v1311_v54  ;;  %v3593_v12 = vshll.u32 %v7817_v19, 16  ;;  %v3599_v15 = vshll.u32 %v7821_v63, 16 }
 0x124   : > { %v3603_v58 = vshrl.u32 %v7821_v63, 16  ;;  %v3588_v60 = vsel %vm6754_vm8, %v3583_v23, %v3587_v10  ;;  %v5228_v22 = vcombine.low %v1309_v14, %v1312_v37  ;;  %v1319_v57 = vsel %vm6705_vm5, %v1317_v50, %v1318_v59  ;;  %v7857_v59 = vld [vmem:[#allocation2 + $0x7c] sm:$0xf]  ;;  %v7872_v50 = vld [vmem:[#allocation2 + $0x80] sm:$0x1] }
 0x125   : > { %v3592_v2 = vrot.slane %v3590_v55, 4  ;;  %v5380_v53 = vcombine.low %v3578_v25, %v3588_v60  ;;  %v5229_v38 = vcombine.low %v1316_v13, %v1319_v57  ;;  %v3595_v9 = vrot.slane %v3593_v12, 5  ;;  %v5621_v52 = vpop.f32.mrb[8].mxu0 }
 0x126   : > { %6090 = vmatmul.mubr.bf16.gmra.mrb[8].mxu1 %v5227_v32  ;;  %v3601_v45 = vrot.slane %v3599_v15, 5  ;;  %v3605_v61 = vrot.slane %v3603_v58, 4  ;;  %v3609_v21 = vshll.u32 %v7836_v30, 16  ;;  %v5365_v34 = vcombine.low %v7817_v19, %v7821_v63  ;;  %v5622_v47 = vpop.f32.mrb[9].mxu0  ;;  %v3807_v58 = vld [vmem:[#allocation2 + $0x30] sm:$0xe] }
 0x127   : > { %6093 = vmatprep.mubr.bf16.mxu1 %v5228_v22  ;;  %v7850_v8 = vadd.f32 %v7792_v7, %v7783_v16  ;;  %4461 = vmatprep.mubr.bf16.mxu0 %v5380_v53  ;;  %v3596_v32 = vor.u32 %v3595_v9, %v3592_v2  ;;  %v5342_v10 = vrot.slane %v3805_v41, 9  ;;  %v3871_v35 = vrot.slane %v7545_v29, 5  ;;  %v5624_v54 = vpop.f32.mrb[10].mxu0  ;;  %v3808_v41 = vld [vmem:[#allocation2 + $0x3c] sm:$0xe] }
 0x128   : > { %v3874_v43 = vrot.slane %v7554_v0, 5  ;;  %v3606_v33 = vor.u32 %v3605_v61, %v3601_v45  ;;  %v3611_v5 = vrot.slane %v3609_v21, 5  ;;  %v5343_v42 = vrot.slane %v3806_v18, 9  ;;  %v5625_v16 = vpop.f32.mrb[11].mxu0 }
 0x129   : > { %v3878_v19 = vrot.slane %v7585_v40, 5  ;;  %4462 = vmatmul.mubr.bf16.gmra.mrb[104].mxu0 %v5364_v24  ;;  %v3597_v7 = vrot.slane %v3596_v32, 4  ;;  %v3872_v25 = vsel %vm6705_vm5, %v5342_v10, %v3871_v35  ;;  %v3873_v14 = vrot.slane %v3871_v35, 4 }
 0x12a   : > { %v7863_v29 = vadd.f32 %v7802_v62, %v7796_v36  ;;  %v3607_v0 = vrot.slane %v3606_v33, 4  ;;  %v3614_v40 = vshrl.u32 %v7854_v1, 16  ;;  %v3617_v55 = vshll.u32 %v7854_v1, 16 }
 0x12b   : > { %v3879_v6 = vsel %vm6705_vm5, %v5343_v42, %v3878_v19  ;;  %v3880_v23 = vrot.slane %v3878_v19, 4  ;;  %v3602_v13 = vsel %vm6754_vm8, %v3597_v7, %v3601_v45  ;;  %v3875_v24 = vsel %vm6705_vm5, %v3873_v14, %v3874_v43  ;;  %v7891_v43 = vld [vmem:[#allocation2 + $0x84] sm:$0xf]  ;;  %v7896_v42 = vld [vmem:[#allocation2 + $0x88] sm:$0xf] }
 0x12c   : > { %v3623_v36 = vshll.u32 %v7857_v59, 16  ;;  %v3612_v62 = vsel %vm6754_vm8, %v3607_v0, %v3611_v5  ;;  %v5390_v37 = vcombine.low %v3872_v25, %v3875_v24  ;;  %v3616_v15 = vrot.slane %v3614_v40, 4  ;;  %v7906_v25 = vld [vmem:[#allocation2 + $0x8c] sm:$0x1]  ;;  %v3809_v40 = vld [vmem:[#allocation2 + $0x48] sm:$0xe] }
 0x12d   : > { %v3882_v12 = vsel %vm6705_vm5, %v3880_v23, %v3881_v31  ;;  %v5381_v60 = vcombine.low %v3602_v13, %v3612_v62  ;;  %v3619_v57 = vrot.slane %v3617_v55, 5  ;;  %v3627_v53 = vshrl.u32 %v7857_v59, 16 }
 0x12e   : > { %6094 = vmatmul.mubr.bf16.gmra.mrb[12].mxu1 %v5229_v38  ;;  %v5391_v22 = vcombine.low %v3879_v6, %v3882_v12  ;;  %v3625_v2 = vrot.slane %v3623_v36, 5  ;;  %v3633_v9 = vshll.u32 %v7872_v50, 16  ;;  %v5366_v45 = vcombine.low %v7854_v1, %v7857_v59 }
 0x12f   : > { %6113 = vmatprep.mubr.bf16.mxu1 %v5390_v37  ;;  %v7886_v44 = vadd.f32 %v5622_v47, %v5621_v52  ;;  %4469 = vmatprep.mubr.bf16.mxu0 %v5381_v60  ;;  %v3620_v31 = vor.u32 %v3619_v57, %v3616_v15  ;;  %v5344_v18 = vrot.slane %v3807_v58, 9  ;;  %v3885_v38 = vrot.slane %v7632_v3, 5 }
 0x130   : > { %v3888_v61 = vrot.slane %v7643_v27, 5  ;;  %v3629_v21 = vrot.slane %v3627_v53, 4  ;;  %v3635_v32 = vrot.slane %v3633_v9, 5  ;;  %v5345_v10 = vrot.slane %v3808_v41, 9 }
 0x131   : > { %v3892_v35 = vrot.slane %v7670_v20, 5  ;;  %4470 = vmatmul.mubr.bf16.gmra.mrb[108].mxu0 %v5365_v34  ;;  %v3621_v33 = vrot.slane %v3620_v31, 4  ;;  %v3886_v52 = vsel %vm6705_vm5, %v5344_v18, %v3885_v38  ;;  %v3887_v47 = vrot.slane %v3885_v38, 4 }
 0x132   : > { %v3895_v5 = vrot.slane %v7680_v4, 5  ;;  %v3630_v3 = vor.u32 %v3629_v21, %v3625_v2  ;;  %v7900_v7 = vadd.f32 %v5625_v16, %v5624_v54  ;;  %v3638_v14 = vshrl.u32 %v7891_v43, 16 }
 0x133   : > { %v3893_v27 = vsel %vm6705_vm5, %v5345_v10, %v3892_v35  ;;  %v3894_v19 = vrot.slane %v3892_v35, 4  ;;  %v3626_v20 = vsel %vm6754_vm8, %v3621_v33, %v3625_v2  ;;  %v3889_v34 = vsel %vm6705_vm5, %v3887_v47, %v3888_v61  ;;  %v7910_v0 = vpop.f32.mrb[16].mxu1  ;;  %v3810_v2 = vld [vmem:[#allocation2 + $0x54] sm:$0xe]  ;;  %v7929_v35 = vld [vmem:[#allocation2 + $0x90] sm:$0xf] }
 0x134   : > { %v3641_v4 = vshll.u32 %v7891_v43, 16  ;;  %v3631_v6 = vrot.slane %v3630_v3, 4  ;;  %v5392_v23 = vcombine.low %v3886_v52, %v3889_v34  ;;  %v3647_v16 = vshll.u32 %v7896_v42, 16  ;;  %v7915_v13 = vpop.f32.mrb[17].mxu1 }
 0x135   : > { %v3896_v54 = vsel %vm6705_vm5, %v3894_v19, %v3895_v5  ;;  %v3640_v55 = vrot.slane %v3638_v14, 4  ;;  %v3651_v62 = vshrl.u32 %v7896_v42, 16  ;;  %v7918_v37 = vpop.f32.mrb[18].mxu1  ;;  %v3657_v58 = vshll.u32 %v7906_v25, 16 }
 0x136   : > { %6114 = vmatmul.mubr.bf16.vlgmr.msra.gmra.mrb[80].mxu1 %v5391_v22  ;;  %v5393_v24 = vcombine.low %v3893_v27, %v3896_v54  ;;  %v3643_v36 = vrot.slane %v3641_v4, 5  ;;  %v3636_v12 = vsel %vm6754_vm8, %v3631_v6, %v3635_v32  ;;  %v3649_v15 = vrot.slane %v3647_v16, 5  ;;  %v5627_v57 = vpop.f32.mrb[12].mxu0  ;;  %v5749_v22 = vpop.f32.mrb[19].mxu1  ;;  %v7932_v27 = vld [vmem:[#allocation2 + $0x94] sm:$0xf] }
 0x137   : > { %6117 = vmatprep.mubr.bf16.mxu1 %v5392_v23  ;;  %v5367_v60 = vcombine.low %v7891_v43, %v7896_v42  ;;  %v5382_v41 = vcombine.low %v3626_v20, %v3636_v12  ;;  %v3653_v9 = vrot.slane %v3651_v62, 4  ;;  %v5628_v31 = vpop.f32.mrb[13].mxu0  ;;  %v5346_v18 = vrot.slane %v3809_v40, 9 }
 0x138   : > { %v3644_v53 = vor.u32 %v3643_v36, %v3640_v55  ;;  %v3659_v38 = vrot.slane %v3657_v58, 5  ;;  %v7925_v61 = vadd.f32 %v5628_v31, %v5627_v57  ;;  %v3899_v21 = vrot.slane %v7711_v51, 5  ;;  %v5630_v10 = vpop.f32.mrb[14].mxu0  ;;  %v3811_v36 = vld [vmem:[#allocation2 + $0x60] sm:$0xe] }
 0x139   : > { %v3902_v32 = vrot.slane %v7723_v48, 5  ;;  %4477 = vmatprep.mubr.bf16.mxu0 %v5382_v41  ;;  %v3654_v52 = vor.u32 %v3653_v9, %v3649_v15  ;;  %v5347_v47 = vrot.slane %v3810_v2, 9  ;;  %v3906_v5 = vrot.slane %v7748_v49, 5  ;;  %v5631_v3 = vpop.f32.mrb[15].mxu0  ;;  %v3812_v31 = vld [vmem:[#allocation2 + $0x6c] sm:$0xe] }
 0x13a   : > { %v3645_v33 = vrot.slane %v3644_v53, 4  ;;  %4478 = vmatmul.mubr.bf16.gmra.mrb[112].mxu0 %v5366_v45  ;;  %v3900_v51 = vsel %vm6705_vm5, %v5346_v18, %v3899_v21  ;;  %v3901_v48 = vrot.slane %v3899_v21, 4  ;;  %v3909_v19 = vrot.slane %v7758_v28, 5  ;;  %v7948_v45 = vld [vmem:[#allocation2 + $0x98] sm:$0x1] }
 0x13b   : > { %v7940_v20 = vadd.f32 %v5631_v3, %v5630_v10  ;;  %v3655_v14 = vrot.slane %v3654_v52, 4  ;;  %v3907_v49 = vsel %vm6705_vm5, %v5347_v47, %v3906_v5  ;;  %v3908_v4 = vrot.slane %v3906_v5, 4 }
 0x13c   : > { %v3650_v34 = vsel %vm6754_vm8, %v3645_v33, %v3649_v15  ;;  %v3903_v1 = vsel %vm6705_vm5, %v3901_v48, %v3902_v32  ;;  %v3662_v6 = vshrl.u32 %v7929_v35, 16  ;;  %v3665_v23 = vshll.u32 %v7929_v35, 16  ;;  %v7970_v33 = vld [vmem:[#allocation2 + $0x9c] sm:$0xf] }
 0x13d   : > { %v3671_v28 = vshll.u32 %v7932_v27, 16  ;;  %v3660_v54 = vsel %vm6754_vm8, %v3655_v14, %v3659_v38  ;;  %v5394_v16 = vcombine.low %v3900_v51, %v3903_v1  ;;  %v3910_v40 = vsel %vm6705_vm5, %v3908_v4, %v3909_v19 }
 0x13e   : > { %6118 = vmatmul.mubr.bf16.gmra.mrb[84].mxu1 %v5393_v24  ;;  %v3675_v55 = vshrl.u32 %v7932_v27, 16  ;;  %v7958_v62 = vpop.f32.mrb[20].mxu1  ;;  %v5383_v12 = vcombine.low %v3650_v34, %v3660_v54  ;;  %v5395_v15 = vcombine.low %v3907_v49, %v3910_v40  ;;  %v3664_v58 = vrot.slane %v3662_v6, 4  ;;  %v7986_v49 = vld [vmem:[#allocation2 + $0xa0] sm:$0xf] }
 0x13f   : > { %v3667_v57 = vrot.slane %v3665_v23, 5  ;;  %v5752_v2 = vpop.f32.mrb[21].mxu1  ;;  %6121 = vmatprep.mubr.bf16.mxu1 %v5394_v16  ;;  %v3673_v41 = vrot.slane %v3671_v28, 5  ;;  %v3681_v53 = vshll.u32 %v7948_v45, 16  ;;  %v5368_v9 = vcombine.low %v7929_v35, %v7932_v27  ;;  %v7995_v23 = vld [vmem:[#allocation2 + $0xa4] sm:$0x1] }
 0x140   : > { %v3677_v24 = vrot.slane %v3675_v55, 4  ;;  %v5754_v18 = vpop.f32.mrb[22].mxu1  ;;  %4485 = vmatprep.mubr.bf16.mxu0 %v5383_v12  ;;  %v7965_v21 = vadd.f32 %v7915_v13, %v7910_v0  ;;  %v7968_v32 = vadd.f32 %v5749_v22, %v7918_v37  ;;  %v5348_v10 = vrot.slane %v3811_v36, 9 }
 0x141   : > { %v3668_v38 = vor.u32 %v3667_v57, %v3664_v58  ;;  %v5755_v52 = vpop.f32.mrb[23].mxu1  ;;  %v3683_v5 = vrot.slane %v3681_v53, 5  ;;  %v3913_v3 = vrot.slane %v7780_v56, 5  ;;  %v3916_v35 = vrot.slane %v7789_v46, 5 }
 0x142   : > { %v3678_v47 = vor.u32 %v3677_v24, %v3673_v41  ;;  %4486 = vmatmul.mubr.bf16.gmra.mrb[116].mxu0 %v5367_v60  ;;  %v5349_v0 = vrot.slane %v3812_v31, 9  ;;  %v3920_v13 = vrot.slane %v7821_v63, 5  ;;  %v3923_v37 = vrot.slane %v7836_v30, 5 }
 0x143   : > { %v3669_v51 = vrot.slane %v3668_v38, 4  ;;  %v5633_v48 = vpop.f32.mrb[16].mxu0  ;;  %v3914_v19 = vsel %vm6705_vm5, %v5348_v10, %v3913_v3  ;;  %v3915_v34 = vrot.slane %v3913_v3, 4  ;;  %v3686_v56 = vshrl.u32 %v7970_v33, 16  ;;  %v3814_v3 = vld [vmem:[#allocation2 + $0x84] sm:$0xe] }
 0x144   : > { %v3679_v22 = vrot.slane %v3678_v47, 4  ;;  %v5634_v14 = vpop.f32.mrb[17].mxu0  ;;  %v3921_v43 = vsel %vm6705_vm5, %v5349_v0, %v3920_v13  ;;  %v3922_v60 = vrot.slane %v3920_v13, 4  ;;  %v3689_v63 = vshll.u32 %v7970_v33, 16 }
 0x145   : > { %v3674_v46 = vsel %vm6754_vm8, %v3669_v51, %v3673_v41  ;;  %v7991_v4 = vadd.f32 %v5634_v14, %v5633_v48  ;;  %v3917_v1 = vsel %vm6705_vm5, %v3915_v34, %v3916_v35  ;;  %v5636_v6 = vpop.f32.mrb[18].mxu0  ;;  %v3688_v28 = vrot.slane %v3686_v56, 4  ;;  %v8021_v14 = vld [vmem:[#allocation2 + $0xac] sm:$0xf] }
 0x146   : > { %6122 = vmatmul.mubr.bf16.gmra.mrb[88].mxu1 %v5395_v15  ;;  %v3684_v30 = vsel %vm6754_vm8, %v3679_v22, %v3683_v5  ;;  %v7997_v54 = vpop.f32.mrb[24].mxu1  ;;  %v5396_v40 = vcombine.low %v3914_v19, %v3917_v1  ;;  %v3924_v55 = vsel %vm6705_vm5, %v3922_v60, %v3923_v37  ;;  %v5637_v36 = vpop.f32.mrb[19].mxu0  ;;  %v3691_v12 = vrot.slane %v3689_v63, 5  ;;  %v3813_v15 = vld [vmem:[#allocation2 + $0x78] sm:$0xe] }
 0x147   : > { %v5384_v16 = vcombine.low %v3674_v46, %v3684_v30  ;;  %v8001_v58 = vpop.f32.mrb[25].mxu1  ;;  %v5397_v57 = vcombine.low %v3921_v43, %v3924_v55  ;;  %v8003_v41 = vadd.f32 %v5637_v36, %v5636_v6  ;;  %v3695_v24 = vshll.u32 %v7986_v49, 16  ;;  %v8015_v22 = vld [vmem:[#allocation2 + $0xa8] sm:$0xf]  ;;  %v8033_v1 = vld [vmem:[#allocation2 + $0xb0] sm:$0x1] }
 0x148   : > { %v3699_v53 = vshrl.u32 %v7986_v49, 16  ;;  %v5760_v31 = vpop.f32.mrb[26].mxu1  ;;  %6125 = vmatprep.mubr.bf16.mxu1 %v5396_v40  ;;  %v3692_v38 = vor.u32 %v3691_v12, %v3688_v28  ;;  %v3705_v10 = vshll.u32 %v7995_v23, 16  ;;  %v5369_v47 = vcombine.low %v7970_v33, %v7986_v49 }
 0x149   : > { %4493 = vmatprep.mubr.bf16.mxu0 %v5384_v16  ;;  %v8011_v5 = vadd.f32 %v5752_v2, %v7958_v62  ;;  %v5761_v35 = vpop.f32.mrb[27].mxu1  ;;  %v3697_v51 = vrot.slane %v3695_v24, 5  ;;  %v8013_v13 = vadd.f32 %v5755_v52, %v5754_v18  ;;  %v5350_v37 = vrot.slane %v3813_v15, 9 }
 0x14a   : > { %v3701_v0 = vrot.slane %v3699_v53, 4  ;;  %4494 = vmatmul.mubr.bf16.gmra.mrb[120].mxu0 %v5368_v9  ;;  %v3693_v48 = vrot.slane %v3692_v38, 4  ;;  %v3707_v19 = vrot.slane %v3705_v10, 5  ;;  %v3927_v34 = vrot.slane %v7857_v59, 5 }
 0x14b   : > { %v3930_v56 = vrot.slane %v7872_v50, 5  ;;  %v5351_v46 = vrot.slane %v3814_v3, 9  ;;  %v3934_v62 = vrot.slane %v7896_v42, 5  ;;  %v3937_v2 = vrot.slane %v7906_v25, 5 }
 0x14c   : > { %v3702_v33 = vor.u32 %v3701_v0, %v3697_v51  ;;  %v3698_v18 = vsel %vm6754_vm8, %v3693_v48, %v3697_v51  ;;  %v3928_v9 = vsel %vm6705_vm5, %v5350_v37, %v3927_v34  ;;  %v3929_v52 = vrot.slane %v3927_v34, 4 }
 0x14d   : > { %v3710_v43 = vshrl.u32 %v8015_v22, 16  ;;  %v5639_v50 = vpop.f32.mrb[20].mxu0  ;;  %v3935_v60 = vsel %vm6705_vm5, %v5351_v46, %v3934_v62  ;;  %v3936_v42 = vrot.slane %v3934_v62, 4  ;;  %v3713_v25 = vshll.u32 %v8015_v22, 16  ;;  %v8054_v62 = vld [vmem:[#allocation2 + $0xb4] sm:$0xf] }
 0x14e   : > { %6126 = vmatmul.mubr.bf16.gmra.mrb[92].mxu1 %v5397_v57  ;;  %v3703_v59 = vrot.slane %v3702_v33, 4  ;;  %v5640_v63 = vpop.f32.mrb[21].mxu0  ;;  %v3931_v30 = vsel %vm6705_vm5, %v3929_v52, %v3930_v56  ;;  %v3719_v28 = vshll.u32 %v8021_v14, 16  ;;  %v3723_v16 = vshrl.u32 %v8021_v14, 16  ;;  %v3815_v57 = vld [vmem:[#allocation2 + $0x90] sm:$0xe] }
 0x14f   : > { %v3712_v6 = vrot.slane %v3710_v43, 4  ;;  %v8039_v55 = vadd.f32 %v5640_v63, %v5639_v50  ;;  %v5398_v36 = vcombine.low %v3928_v9, %v3931_v30  ;;  %v5642_v12 = vpop.f32.mrb[22].mxu0  ;;  %v3938_v15 = vsel %vm6705_vm5, %v3936_v42, %v3937_v2  ;;  %v8058_v43 = vld [vmem:[#allocation2 + $0xb8] sm:$0xf] }
 0x150   : > { %v3708_v40 = vsel %vm6754_vm8, %v3703_v59, %v3707_v19  ;;  %v5399_v53 = vcombine.low %v3935_v60, %v3938_v15  ;;  %v5643_v38 = vpop.f32.mrb[23].mxu0  ;;  %v3715_v10 = vrot.slane %v3713_v25, 5  ;;  %v3721_v3 = vrot.slane %v3719_v28, 5  ;;  %v3816_v19 = vld [vmem:[#allocation2 + $0x9c] sm:$0xe] }
 0x151   : > { %v5385_v24 = vcombine.low %v3698_v18, %v3708_v40  ;;  %6129 = vmatprep.mubr.bf16.mxu1 %v5398_v36  ;;  %v8043_v51 = vadd.f32 %v5643_v38, %v5642_v12  ;;  %v3725_v0 = vrot.slane %v3723_v16, 4  ;;  %v3729_v37 = vshll.u32 %v8033_v1, 16  ;;  %v3817_v36 = vld [vmem:[#allocation2 + $0xa8] sm:$0xe] }
 0x152   : > { %v5370_v48 = vcombine.low %v8015_v22, %v8021_v14  ;;  %v3716_v34 = vor.u32 %v3715_v10, %v3712_v6  ;;  %v8050_v56 = vadd.f32 %v8001_v58, %v7997_v54  ;;  %v8052_v33 = vadd.f32 %v5761_v35, %v5760_v31  ;;  %v5763_v2 = vpop.f32.mrb[28].mxu1 }
 0x153   : > { %4501 = vmatprep.mubr.bf16.mxu0 %v5385_v24  ;;  %v5352_v46 = vrot.slane %v3815_v57, 9  ;;  %v3726_v18 = vor.u32 %v3725_v0, %v3721_v3  ;;  %v3731_v9 = vrot.slane %v3729_v37, 5  ;;  %v3941_v52 = vrot.slane %v7932_v27, 5  ;;  %v5764_v59 = vpop.f32.mrb[29].mxu1  ;;  %v3818_v0 = vld [vmem:[#allocation2 + $0xb4] sm:$0xe] }
 0x154   : > { %4502 = vmatmul.mubr.bf16.gmra.mrb[124].mxu0 %v5369_v47  ;;  %v3944_v22 = vrot.slane %v7948_v45, 5  ;;  %v3717_v50 = vrot.slane %v3716_v34, 4  ;;  %v5353_v60 = vrot.slane %v3816_v19, 9  ;;  %v3948_v54 = vrot.slane %v7986_v49, 5  ;;  %v5766_v31 = vpop.f32.mrb[30].mxu1 }
 0x155   : > { %v3951_v58 = vrot.slane %v7995_v23, 5  ;;  %v3727_v35 = vrot.slane %v3726_v18, 4  ;;  %v3942_v47 = vsel %vm6705_vm5, %v5352_v46, %v3941_v52  ;;  %v3943_v42 = vrot.slane %v3941_v52, 4  ;;  %v5767_v25 = vpop.f32.mrb[31].mxu1  ;;  %v3418_v49 = vld [vmem:[#allocation2 + $0xbc] sm:$0x1] }
 0x156   : > { %6130 = vmatmul.mubr.bf16.gmra.mrb[0].mxu1 %v5399_v53  ;;  %v3734_v27 = vshrl.u32 %v8054_v62, 16  ;;  %v3722_v45 = vsel %vm6754_vm8, %v3717_v50, %v3721_v3  ;;  %v3949_v63 = vsel %vm6705_vm5, %v5353_v60, %v3948_v54  ;;  %v3950_v30 = vrot.slane %v3948_v54, 4 }
 0x157   : > { %v3737_v23 = vshll.u32 %v8054_v62, 16  ;;  %v3732_v6 = vsel %vm6754_vm8, %v3727_v35, %v3731_v9  ;;  %v3945_v28 = vsel %vm6705_vm5, %v3943_v42, %v3944_v22  ;;  %v3743_v40 = vshll.u32 %v8058_v43, 16  ;;  %v8082_v9 = vld [vmem:[#allocation2 + $0xc0] sm:$0xf] }
 0x158   : > { %v3736_v16 = vrot.slane %v3734_v27, 4  ;;  %v5386_v12 = vcombine.low %v3722_v45, %v3732_v6  ;;  %v5400_v15 = vcombine.low %v3942_v47, %v3945_v28  ;;  %v3952_v57 = vsel %vm6705_vm5, %v3950_v30, %v3951_v58  ;;  %v3419_v28 = vld [vmem:[#allocation2 + $0xc8] sm:$0x1] }
 0x159   : > { %v3739_v24 = vrot.slane %v3737_v23, 5  ;;  %v5401_v53 = vcombine.low %v3949_v63, %v3952_v57  ;;  %v3745_v38 = vrot.slane %v3743_v40, 5  ;;  %v3747_v10 = vshrl.u32 %v8058_v43, 16 }
 0x15a   : > { %v3753_v3 = vshll.u32 %v3418_v49, 16  ;;  %4509 = vmatprep.mubr.bf16.mxu0 %v5386_v12  ;;  %6133 = vmatprep.mubr.bf16.mxu1 %v5400_v15  ;;  %v5371_v34 = vcombine.low %v8054_v62, %v8058_v43  ;;  %v8080_v46 = vadd.f32 %v5764_v59, %v5763_v2  ;;  %v5354_v18 = vrot.slane %v3817_v36, 9  ;;  %v5769_v52 = vpop.f32.mrb[32].mxu1 }
 0x15b   : > { %v5645_v37 = vpop.f32.mrb[24].mxu0  ;;  %v3740_v19 = vor.u32 %v3739_v24, %v3736_v16  ;;  %v3749_v50 = vrot.slane %v3747_v10, 4  ;;  %v8084_v54 = vadd.f32 %v5767_v25, %v5766_v31  ;;  %v3955_v58 = vrot.slane %v8021_v14, 5  ;;  %v5770_v35 = vpop.f32.mrb[33].mxu1  ;;  %v8093_v25 = vld [vmem:[#allocation2 + $0xc4] sm:$0xf] }
 0x15c   : > { %4510 = vmatmul.mubr.bf16.gmra.mrb[128].mxu0 %v5370_v48  ;;  %v5646_v22 = vpop.f32.mrb[25].mxu0  ;;  %v3755_v60 = vrot.slane %v3753_v3, 5  ;;  %v3958_v62 = vrot.slane %v8033_v1, 5  ;;  %v5355_v2 = vrot.slane %v3818_v0, 9  ;;  %v5772_v59 = vpop.f32.mrb[34].mxu1  ;;  %v3962_v31 = vrot.slane %v8058_v43, 5 }
 0x15d   : > { %v8087_v47 = vadd.f32 %v5646_v22, %v5645_v37  ;;  %v5648_v42 = vpop.f32.mrb[26].mxu0  ;;  %v3741_v27 = vrot.slane %v3740_v19, 4  ;;  %v3750_v63 = vor.u32 %v3749_v50, %v3745_v38  ;;  %v3956_v48 = vsel %vm6705_vm5, %v5354_v18, %v3955_v58  ;;  %v5773_v14 = vpop.f32.mrb[35].mxu1  ;;  %v3819_v0 = vld [vmem:[#allocation2 + $0xc0] sm:$0xe] }
 0x15e   : > { %6134 = vmatmul.mubr.bf16.gmra.mrb[4].mxu1 %v5401_v53  ;;  %v5649_v45 = vpop.f32.mrb[27].mxu0  ;;  %v3957_v30 = vrot.slane %v3955_v58, 4  ;;  %v3965_v1 = vrot.slane %v3418_v49, 5  ;;  %v3758_v16 = vshrl.u32 %v8082_v9, 16  ;;  %v3963_v12 = vsel %vm6705_vm5, %v5355_v2, %v3962_v31  ;;  %v3820_v50 = vld [vmem:[#allocation2 + $0xcc] sm:$0xe] }
 0x15f   : > { %v8095_v23 = vadd.f32 %v5649_v45, %v5648_v42  ;;  %v3746_v6 = vsel %vm6754_vm8, %v3741_v27, %v3745_v38  ;;  %v3751_v40 = vrot.slane %v3750_v63, 4  ;;  %v3964_v43 = vrot.slane %v3962_v31, 4  ;;  %v3420_v31 = vld [vmem:[#allocation2 + $0xd4] sm:$0x1] }
 0x160   : > { %v3959_v36 = vsel %vm6705_vm5, %v3957_v30, %v3958_v62  ;;  %v3760_v57 = vrot.slane %v3758_v16, 4  ;;  %v3761_v24 = vshll.u32 %v8082_v9, 16  ;;  %v3767_v53 = vshll.u32 %v8093_v25, 16 }
 0x161   : > { %v5402_v15 = vcombine.low %v3956_v48, %v3959_v36  ;;  %v3756_v49 = vsel %vm6754_vm8, %v3751_v40, %v3755_v60  ;;  %v3966_v38 = vsel %vm6705_vm5, %v3964_v43, %v3965_v1  ;;  %v3771_v10 = vshrl.u32 %v8093_v25, 16  ;;  %v8115_v60 = vld [vmem:[#allocation2 + $0xd0] sm:$0xf] }
 0x162   : > { %v3777_v3 = vshll.u32 %v3419_v28, 16  ;;  %v5387_v37 = vcombine.low %v3746_v6, %v3756_v49  ;;  %v5403_v19 = vcombine.low %v3963_v12, %v3966_v38  ;;  %v3763_v18 = vrot.slane %v3761_v24, 5 }
 0x163   : > { %6137 = vmatprep.mubr.bf16.mxu1 %v5402_v15  ;;  %v3769_v22 = vrot.slane %v3767_v53, 5  ;;  %v3773_v58 = vrot.slane %v3771_v10, 4  ;;  %v5372_v27 = vcombine.low %v8082_v9, %v8093_v25  ;;  %v8113_v62 = vadd.f32 %v5770_v35, %v5769_v52  ;;  %v8121_v52 = vld [vmem:[#allocation2 + $0xcc] sm:$0xf] }
 0x164   : > { %v3779_v42 = vrot.slane %v3777_v3, 5  ;;  %4517 = vmatprep.mubr.bf16.mxu0 %v5387_v37  ;;  %v5651_v2 = vpop.f32.mrb[28].mxu0  ;;  %v3764_v45 = vor.u32 %v3763_v18, %v3760_v57  ;;  %v8117_v63 = vadd.f32 %v5773_v14, %v5772_v59  ;;  %v5356_v48 = vrot.slane %v3819_v0, 9 }
 0x165   : > { %v3969_v30 = vrot.slane %v8093_v25, 5  ;;  %4518 = vmatmul.mubr.bf16.gmra.mrb[132].mxu0 %v5371_v34  ;;  %v5652_v6 = vpop.f32.mrb[29].mxu0  ;;  %v3774_v1 = vor.u32 %v3773_v58, %v3769_v22  ;;  %v3972_v16 = vrot.slane %v3419_v28, 5  ;;  %v5357_v40 = vrot.slane %v3820_v50, 9 }
 0x166   : > { %6138 = vmatmul.mubr.bf16.gmra.mrb[8].mxu1 %v5403_v19  ;;  %v3976_v9 = vrot.slane %v8115_v60, 5  ;;  %v8123_v35 = vadd.f32 %v5652_v6, %v5651_v2  ;;  %v5654_v36 = vpop.f32.mrb[30].mxu0  ;;  %v3765_v12 = vrot.slane %v3764_v45, 4  ;;  %v3979_v28 = vrot.slane %v3420_v31, 5 }
 0x167   : > { %v3970_v59 = vsel %vm6705_vm5, %v5356_v48, %v3969_v30  ;;  %v3971_v14 = vrot.slane %v3969_v30, 4  ;;  %v5655_v25 = vpop.f32.mrb[31].mxu0  ;;  %v3775_v43 = vrot.slane %v3774_v1, 4  ;;  %v5775_v57 = vpop.f32.mrb[36].mxu1  ;;  %v3782_v38 = vshrl.u32 %v8121_v52, 16 }
 0x168   : > { %v3977_v34 = vsel %vm6705_vm5, %v5357_v40, %v3976_v9  ;;  %v3978_v15 = vrot.slane %v3976_v9, 4  ;;  %v8129_v24 = vadd.f32 %v5655_v25, %v5654_v36  ;;  %v3770_v53 = vsel %vm6754_vm8, %v3765_v12, %v3769_v22  ;;  %v5776_v10 = vpop.f32.mrb[37].mxu1 }
 0x169   : > { %v3973_v49 = vsel %vm6705_vm5, %v3971_v14, %v3972_v16  ;;  %v3780_v3 = vsel %vm6754_vm8, %v3775_v43, %v3779_v42  ;;  %v3785_v19 = vshll.u32 %v8121_v52, 16  ;;  %v5778_v18 = vpop.f32.mrb[38].mxu1  ;;  %v3784_v2 = vrot.slane %v3782_v38, 4 }
 0x16a   : > { %v5404_v0 = vcombine.low %v3970_v59, %v3973_v49  ;;  %v3980_v37 = vsel %vm6705_vm5, %v3978_v15, %v3979_v28  ;;  %v5388_v50 = vcombine.low %v3770_v53, %v3780_v3  ;;  %v3791_v22 = vshll.u32 %v8115_v60, 16  ;;  %v5779_v45 = vpop.f32.mrb[39].mxu1 }
 0x16b   : > { %v5405_v58 = vcombine.low %v3977_v34, %v3980_v37  ;;  %v3787_v48 = vrot.slane %v3785_v19, 5  ;;  %v3795_v30 = vshrl.u32 %v8115_v60, 16  ;;  %v3801_v6 = vshll.u32 %v3420_v31, 16 }
 0x16c   : > { %6141 = vmatprep.mubr.bf16.mxu1 %v5404_v0  ;;  %4525 = vmatprep.mubr.bf16.mxu0 %v5388_v50  ;;  %v5657_v42 = vpop.f32.mrb[32].mxu0  ;;  %v3793_v1 = vrot.slane %v3791_v22, 5  ;;  %v8143_v16 = vadd.f32 %v5776_v10, %v5775_v57  ;;  %v8145_v11 = vadd.f32 %v5779_v45, %v5778_v18  ;;  %v5373_v49 = vcombine.low %v8121_v52, %v8115_v60 }
 0x16d   : > { %4526 = vmatmul.mubr.bf16.gmra.mrb[136].mxu0 %v5372_v27  ;;  %v5658_v40 = vpop.f32.mrb[33].mxu0  ;;  %v3788_v9 = vor.u32 %v3787_v48, %v3784_v2  ;;  %v3797_v36 = vrot.slane %v3795_v30, 4  ;;  %v3803_v34 = vrot.slane %v3801_v6, 5 }
 0x16e   : > { %6142 = vmatmul.mubr.bf16.gmra.mrb[12].mxu1 %v5405_v58  ;;  %v5659_v12 = vadd.f32 %v5658_v40, %v5657_v42  ;;  %v5660_v59 = vpop.f32.mrb[34].mxu0 }
 0x16f   : > { %v5661_v14 = vpop.f32.mrb[35].mxu0  ;;  %v3789_v25 = vrot.slane %v3788_v9, 4  ;;  %v3798_v43 = vor.u32 %v3797_v36, %v3793_v1 }
 0x170   : > { %v5662_v15 = vadd.f32 %v5661_v14, %v5660_v59 }
 0x171   : > { %v3794_v31 = vsel %vm6754_vm8, %v3789_v25, %v3793_v1  ;;  %v3799_v28 = vrot.slane %v3798_v43, 4  ;;  %v5781_v57 = vpop.f32.mrb[40].mxu1 }
 0x172   : > { %v5782_v53 = vpop.f32.mrb[41].mxu1 }
 0x173   : > { %v3804_v27 = vsel %vm6754_vm8, %v3799_v28, %v3803_v34  ;;  %v8153_v38 = vadd.f32 %v5782_v53, %v5781_v57  ;;  %v5784_v10 = vpop.f32.mrb[42].mxu1 }
 0x174   : > { %v5389_v3 = vcombine.low %v3794_v31, %v3804_v27  ;;  %v5663_v0 = vpop.f32.mrb[36].mxu0  ;;  %v5785_v37 = vpop.f32.mrb[43].mxu1 }
 0x175   : > { %v5664_v19 = vpop.f32.mrb[37].mxu0  ;;  %v8155_v18 = vadd.f32 %v5785_v37, %v5784_v10 }
 0x176   : > { %4533 = vmatprep.mubr.bf16.mxu0 %v5389_v3  ;;  %v5665_v50 = vadd.f32 %v5664_v19, %v5663_v0  ;;  %v5666_v58 = vpop.f32.mrb[38].mxu0 }
 0x177   : > { %4534 = vmatmul.mubr.bf16.gmra.mrb[140].mxu0 %v5373_v49  ;;  %v5667_v2 = vpop.f32.mrb[39].mxu0 }
 0x178   : > { %v5668_v22 = vadd.f32 %v5667_v2, %v5666_v58 }
 0x17b   : > { %v5787_v17 = vpop.f32.mrb[44].mxu1 }
 0x17c   : > { %v5788_v45 = vpop.f32.mrb[45].mxu1  ;;  %v5669_v48 = vpop.f32.mrb[40].mxu0 }
 0x17d   : > { %v8157_v30 = vadd.f32 %v5788_v45, %v5787_v17  ;;  %v5790_v60 = vpop.f32.mrb[46].mxu1  ;;  %v5670_v52 = vpop.f32.mrb[41].mxu0 }
 0x17e   : > { %v5791_v6 = vpop.f32.mrb[47].mxu1  ;;  %v5671_v42 = vadd.f32 %v5670_v52, %v5669_v48  ;;  %v5672_v1 = vpop.f32.mrb[42].mxu0 }
 0x17f   : > { %v8159_v40 = vadd.f32 %v5791_v6, %v5790_v60  ;;  %v5673_v9 = vpop.f32.mrb[43].mxu0 }
 0x180   : > { %v5674_v36 = vadd.f32 %v5673_v9, %v5672_v1 }
 0x184   : > { %v5675_v59 = vpop.f32.mrb[44].mxu0  ;;  %v5793_v14 = vpop.f32.mrb[48].mxu1 }
 0x185   : > { %v5676_v25 = vpop.f32.mrb[45].mxu0  ;;  %v5794_v43 = vpop.f32.mrb[49].mxu1 }
 0x186   : > { %v5677_v34 = vadd.f32 %v5676_v25, %v5675_v59  ;;  %v5678_v31 = vpop.f32.mrb[46].mxu0  ;;  %v5795_v28 = vadd.f32 %v5794_v43, %v5793_v14  ;;  %v5796_v57 = vpop.f32.mrb[50].mxu1 }
 0x187   : > { %v5679_v53 = vpop.f32.mrb[47].mxu0  ;;  %v5797_v27 = vpop.f32.mrb[51].mxu1 }
 0x188   : > { %v5680_v49 = vadd.f32 %v5679_v53, %v5678_v31  ;;  %v8161_v10 = vadd.f32 %v5795_v28, %v5659_v12  ;;  %v5798_v3 = vadd.f32 %v5797_v27, %v5796_v57 }
 0x18a   : > { %v8163_v0 = vadd.f32 %v5798_v3, %v5662_v15 }
 0x18c   : > { %v5681_v37 = vpop.f32.mrb[48].mxu0  ;;  %v5799_v19 = vpop.f32.mrb[52].mxu1 }
 0x18d   : > { %v5682_v58 = vpop.f32.mrb[49].mxu0  ;;  %v5800_v2 = vpop.f32.mrb[53].mxu1 }
 0x18e   : > { %v5683_v17 = vadd.f32 %v5682_v58, %v5681_v37  ;;  %v5684_v45 = vpop.f32.mrb[50].mxu0  ;;  %v5801_v48 = vadd.f32 %v5800_v2, %v5799_v19  ;;  %v5802_v60 = vpop.f32.mrb[54].mxu1 }
 0x18f   : > { %v5685_v52 = vpop.f32.mrb[51].mxu0  ;;  %v5803_v6 = vpop.f32.mrb[55].mxu1 }
 0x190   : > { %v5686_v1 = vadd.f32 %v5685_v52, %v5684_v45  ;;  %v8165_v9 = vadd.f32 %v5801_v48, %v5665_v50  ;;  %v5804_v59 = vadd.f32 %v5803_v6, %v5802_v60 }
 0x192   : > { %v8167_v14 = vadd.f32 %v5804_v59, %v5668_v22 }
 0x194   : > { %v5687_v12 = vpop.f32.mrb[52].mxu0 }
 0x195   : > { %v5688_v25 = vpop.f32.mrb[53].mxu0  ;;  %v5805_v15 = vpop.f32.mrb[56].mxu1 }
 0x196   : > { %v5689_v43 = vadd.f32 %v5688_v25, %v5687_v12  ;;  %v5690_v31 = vpop.f32.mrb[54].mxu0  ;;  %v5806_v28 = vpop.f32.mrb[57].mxu1 }
 0x197   : > { %v5691_v57 = vpop.f32.mrb[55].mxu0  ;;  %v5807_v53 = vadd.f32 %v5806_v28, %v5805_v15  ;;  %v5808_v27 = vpop.f32.mrb[58].mxu1 }
 0x198   : > { %v5692_v3 = vadd.f32 %v5691_v57, %v5690_v31  ;;  %v5809_v37 = vpop.f32.mrb[59].mxu1 }
 0x199   : > { %v8169_v19 = vadd.f32 %v5807_v53, %v5671_v42  ;;  %v5810_v58 = vadd.f32 %v5809_v37, %v5808_v27 }
 0x19b   : > { %v8171_v2 = vadd.f32 %v5810_v58, %v5674_v36 }
 0x19c   : > { %v5693_v50 = vpop.f32.mrb[56].mxu0 }
 0x19d   : > { %v5694_v45 = vpop.f32.mrb[57].mxu0 }
 0x19e   : > { %v8173_v22 = vadd.f32 %v5694_v45, %v5693_v50  ;;  %v5696_v48 = vpop.f32.mrb[58].mxu0  ;;  %v5811_v60 = vpop.f32.mrb[60].mxu1 }
 0x19f   : > { %v5697_v52 = vpop.f32.mrb[59].mxu0  ;;  %v5812_v6 = vpop.f32.mrb[61].mxu1 }
 0x1a0   : > { %v8175_v59 = vadd.f32 %v5697_v52, %v5696_v48  ;;  %v5813_v12 = vadd.f32 %v5812_v6, %v5811_v60  ;;  %v5814_v25 = vpop.f32.mrb[62].mxu1 }
 0x1a1   : > { %v5815_v15 = vpop.f32.mrb[63].mxu1 }
 0x1a2   : > { %v8177_v31 = vadd.f32 %v5813_v12, %v5677_v34  ;;  %v5816_v42 = vadd.f32 %v5815_v15, %v5814_v25 }
 0x1a4   : > { %v5699_v28 = vpop.f32.mrb[60].mxu0  ;;  %v8179_v57 = vadd.f32 %v5816_v42, %v5680_v49 }
 0x1a5   : > { %v5700_v36 = vpop.f32.mrb[61].mxu0 }
 0x1a6   : > { %v8181_v53 = vadd.f32 %v5700_v36, %v5699_v28  ;;  %v5702_v27 = vpop.f32.mrb[62].mxu0 }
 0x1a7   : > { %v5703_v37 = vpop.f32.mrb[63].mxu0 }
 0x1a8   : > { %v8183_v58 = vadd.f32 %v5703_v37, %v5702_v27  ;;  %v5817_v50 = vpop.f32.mrb[64].mxu1 }
 0x1a9   : > { %v5818_v45 = vpop.f32.mrb[65].mxu1 }
 0x1aa   : > { %v5819_v48 = vadd.f32 %v5818_v45, %v5817_v50  ;;  %v5820_v52 = vpop.f32.mrb[66].mxu1 }
 0x1ab   : > { %v5821_v60 = vpop.f32.mrb[67].mxu1 }
 0x1ac   : > { %v8185_v6 = vadd.f32 %v5819_v48, %v5683_v17  ;;  %v6019_v34 = vpop.f32.mrb[64].mxu0  ;;  %v5822_v12 = vadd.f32 %v5821_v60, %v5820_v52 }
 0x1ad   : > { %v2788_v25 = vadd.f32 %v6019_v34, %v7850_v8  ;;  %v2779_v49 = vpop.f32.mrb[65].mxu0 }
 0x1ae   : > { %v8188_v15 = vadd.f32 %v5822_v12, %v5686_v1  ;;  %v2780_v42 = vadd.f32 %v7813_v26, %v2779_v49  ;;  %v6020_v28 = vpop.f32.mrb[66].mxu0 }
 0x1af   : > { %v8192_v36 = vadd.f32 %v8011_v5, %v2788_v25  ;;  %v2791_v27 = vadd.f32 %v6020_v28, %v7863_v29  ;;  %v2782_v37 = vpop.f32.mrb[67].mxu0 }
 0x1b0   : > { %v8196_v50 = vadd.f32 %v7965_v21, %v2780_v42  ;;  %v2783_v17 = vadd.f32 %v7829_v39, %v2782_v37  ;;  %v5823_v45 = vpop.f32.mrb[68].mxu1 }
 0x1b1   : > { %v8200_v8 = vadd.f32 %v8013_v13, %v2791_v27  ;;  %v5824_v1 = vpop.f32.mrb[69].mxu1 }
 0x1b2   : > { %v8203_v48 = vadd.f32 %v7968_v32, %v2783_v17  ;;  %v5825_v26 = vadd.f32 %v5824_v1, %v5823_v45  ;;  %v5826_v52 = vpop.f32.mrb[70].mxu1 }
 0x1b3   : > { %v5827_v5 = vpop.f32.mrb[71].mxu1 }
 0x1b4   : > { %v8205_v60 = vadd.f32 %v5825_v26, %v5689_v43  ;;  %v6023_v29 = vpop.f32.mrb[68].mxu0  ;;  %v5828_v34 = vadd.f32 %v5827_v5, %v5826_v52 }
 0x1b5   : > { %v2804_v21 = vadd.f32 %v6023_v29, %v7925_v61  ;;  %v2795_v12 = vpop.f32.mrb[69].mxu0 }
 0x1b6   : > { %v8208_v25 = vadd.f32 %v5828_v34, %v5692_v3  ;;  %v2796_v39 = vadd.f32 %v7886_v44, %v2795_v12  ;;  %v6024_v13 = vpop.f32.mrb[70].mxu0 }
 0x1b7   : > { %v8212_v49 = vadd.f32 %v8080_v46, %v2804_v21  ;;  %v2807_v32 = vadd.f32 %v6024_v13, %v7940_v20  ;;  %v2798_v42 = vpop.f32.mrb[71].mxu0 }
 0x1b8   : > { %v8216_v28 = vadd.f32 %v8050_v56, %v2796_v39  ;;  %v2799_v43 = vadd.f32 %v7900_v7, %v2798_v42  ;;  %v5829_v27 = vpop.f32.mrb[72].mxu1 }
 0x1b9   : > { %v8220_v61 = vadd.f32 %v8084_v54, %v2807_v32  ;;  %v5830_v3 = vpop.f32.mrb[73].mxu1 }
 0x1ba   : > { %v3104_v37 = vadd.f32 %v8052_v33, %v2799_v43  ;;  %v5831_v44 = vadd.f32 %v5830_v3, %v5829_v27  ;;  %v5832_v17 = vpop.f32.mrb[74].mxu1 }
 0x1bb   : > { %v5833_v45 = vpop.f32.mrb[75].mxu1 }
 0x1bc   : > { %v8224_v46 = vadd.f32 %v5831_v44, %v8173_v22  ;;  %v6027_v20 = vpop.f32.mrb[72].mxu0  ;;  %v5834_v1 = vadd.f32 %v5833_v45, %v5832_v17 }
 0x1bd   : > { %v2820_v56 = vadd.f32 %v6027_v20, %v8039_v55  ;;  %v2811_v26 = vpop.f32.mrb[73].mxu0 }
 0x1be   : > { %v8228_v7 = vadd.f32 %v5834_v1, %v8175_v59  ;;  %v2812_v54 = vadd.f32 %v7991_v4, %v2811_v26  ;;  %v6028_v52 = vpop.f32.mrb[74].mxu0 }
 0x1bf   : > { %v8232_v5 = vadd.f32 %v8143_v16, %v2820_v56  ;;  %v2823_v33 = vadd.f32 %v6028_v52, %v8043_v51  ;;  %v2814_v29 = vpop.f32.mrb[75].mxu0 }
 0x1c0   : > { %v3117_v22 = vadd.f32 %v8113_v62, %v2812_v54  ;;  %v2815_v34 = vadd.f32 %v8003_v41, %v2814_v29 }
 0x1c1   : > { %v5835_v21 = vpop.f32.mrb[76].mxu1  ;;  %v8238_v55 = vadd.f32 %v8145_v11, %v2823_v33 }
 0x1c2   : > { %v5836_v12 = vpop.f32.mrb[77].mxu1  ;;  %v3120_v59 = vadd.f32 %v8117_v63, %v2815_v34 }
 0x1c3   : > { %v5837_v39 = vadd.f32 %v5836_v12, %v5835_v21  ;;  %v5838_v4 = vpop.f32.mrb[78].mxu1 }
 0x1c4   : > { %v5839_v13 = vpop.f32.mrb[79].mxu1  ;;  %v6031_v32 = vpop.f32.mrb[76].mxu0 }
 0x1c5   : > { %v8242_v16 = vadd.f32 %v5837_v39, %v8181_v53  ;;  %v5840_v51 = vadd.f32 %v5839_v13, %v5838_v4  ;;  %v2836_v42 = vadd.f32 %v6031_v32, %v8123_v35  ;;  %v2827_v62 = vpop.f32.mrb[77].mxu0 }
 0x1c6   : > { %v2828_v11 = vadd.f32 %v8087_v47, %v2827_v62  ;;  %v6032_v43 = vpop.f32.mrb[78].mxu0 }
 0x1c7   : > { %v8246_v41 = vadd.f32 %v5840_v51, %v8183_v58  ;;  %v8250_v27 = vadd.f32 %v8157_v30, %v2836_v42  ;;  %v2839_v63 = vadd.f32 %v6032_v43, %v8129_v24  ;;  %v2830_v3 = vpop.f32.mrb[79].mxu0 }
 0x1c8   : > { %v3133_v53 = vadd.f32 %v8153_v38, %v2828_v11  ;;  %v2831_v44 = vadd.f32 %v8095_v23, %v2830_v3 }
 0x1c9   : > { %v8256_v17 = vadd.f32 %v8159_v40, %v2839_v63 }
 0x1ca   : > { %v3136_v35 = vadd.f32 %v8155_v18, %v2831_v44 }
 0x1cc   : > { %v5881_v58 = vpop.f32.mrb[80].mxu0 }
 0x1cd   : > { %v5882_v45 = vpop.f32.mrb[81].mxu0 }
 0x1ce   : > { %v5883_v20 = vadd.f32 %v5882_v45, %v5881_v58  ;;  %v5884_v47 = vpop.f32.mrb[82].mxu0 }
 0x1cf   : > { %v5885_v1 = vpop.f32.mrb[83].mxu0 }
 0x1d0   : > { %v5886_v56 = vadd.f32 %v5885_v1, %v5884_v47  ;;  %v6167_v30 = vadd.f32 %v5883_v20, %v8196_v50 }
 0x1d2   : > { %v8261_v24 = vadd.f32 %v5886_v56, %v8203_v48 }
 0x1d4   : > { %v5887_v26 = vpop.f32.mrb[84].mxu0 }
 0x1d5   : > { %v5888_v38 = vpop.f32.mrb[85].mxu0 }
 0x1d6   : > { %v5889_v54 = vadd.f32 %v5888_v38, %v5887_v26  ;;  %v5890_v23 = vpop.f32.mrb[86].mxu0 }
 0x1d7   : > { %v5891_v52 = vpop.f32.mrb[87].mxu0 }
 0x1d8   : > { %v5892_v40 = vadd.f32 %v5891_v52, %v5890_v23  ;;  %v6163_v33 = vadd.f32 %v5889_v54, %v8192_v36 }
 0x1da   : > { %v6171_v18 = vadd.f32 %v5892_v40, %v8200_v8 }
 0x1dc   : > { %v5893_v29 = vpop.f32.mrb[88].mxu0 }
 0x1dd   : > { %v5894_v34 = vpop.f32.mrb[89].mxu0 }
 0x1de   : > { %v5895_v21 = vadd.f32 %v5894_v34, %v5893_v29  ;;  %v5896_v12 = vpop.f32.mrb[90].mxu0 }
 0x1df   : > { %v5897_v39 = vpop.f32.mrb[91].mxu0 }
 0x1e0   : > { %v5898_v4 = vadd.f32 %v5897_v39, %v5896_v12  ;;  %v8266_v50 = vadd.f32 %v5895_v21, %v8216_v28 }
 0x1e2   : > { %v8268_v48 = vadd.f32 %v5898_v4, %v3104_v37 }
 0x1e4   : > { %v5899_v13 = vpop.f32.mrb[92].mxu0 }
 0x1e5   : > { %v5900_v32 = vpop.f32.mrb[93].mxu0 }
 0x1e6   : > { %v5901_v51 = vadd.f32 %v5900_v32, %v5899_v13  ;;  %v5902_v42 = vpop.f32.mrb[94].mxu0 }
 0x1e7   : > { %v5903_v62 = vpop.f32.mrb[95].mxu0 }
 0x1e8   : > { %v5904_v11 = vadd.f32 %v5903_v62, %v5902_v42  ;;  %v6179_v36 = vadd.f32 %v5901_v51, %v8212_v49 }
 0x1ea   : > { %v8272_v8 = vadd.f32 %v5904_v11, %v8220_v61 }
 0x1ec   : > { %v5905_v43 = vpop.f32.mrb[96].mxu0 }
 0x1ed   : > { %v5906_v63 = vpop.f32.mrb[97].mxu0 }
 0x1ee   : > { %v5907_v3 = vadd.f32 %v5906_v63, %v5905_v43  ;;  %v5908_v44 = vpop.f32.mrb[98].mxu0 }
 0x1ef   : > { %v5909_v58 = vpop.f32.mrb[99].mxu0 }
 0x1f0   : > { %v5910_v28 = vadd.f32 %v5909_v58, %v5908_v44  ;;  %v8274_v45 = vadd.f32 %v5907_v3, %v3117_v22 }
 0x1f2   : > { %v8276_v37 = vadd.f32 %v5910_v28, %v3120_v59 }
 0x1f4   : > { %v5911_v20 = vpop.f32.mrb[100].mxu0 }
 0x1f5   : > { %v5912_v47 = vpop.f32.mrb[101].mxu0 }
 0x1f6   : > { %v5913_v1 = vadd.f32 %v5912_v47, %v5911_v20  ;;  %v5914_v56 = vpop.f32.mrb[102].mxu0 }
 0x1f7   : > { %v5915_v26 = vpop.f32.mrb[103].mxu0 }
 0x1f8   : > { %v5916_v38 = vadd.f32 %v5915_v26, %v5914_v56  ;;  %v8279_v49 = vadd.f32 %v5913_v1, %v8232_v5 }
 0x1fa   : > { %v8282_v61 = vadd.f32 %v5916_v38, %v8238_v55 }
 0x1fc   : > { %v5917_v54 = vpop.f32.mrb[104].mxu0 }
 0x1fd   : > { %v5918_v23 = vpop.f32.mrb[105].mxu0 }
 0x1fe   : > { %v5919_v52 = vadd.f32 %v5918_v23, %v5917_v54  ;;  %v5920_v40 = vpop.f32.mrb[106].mxu0 }
 0x1ff   : > { %v5921_v22 = vpop.f32.mrb[107].mxu0 }
 0x200   : > { %v5922_v29 = vadd.f32 %v5921_v22, %v5920_v40  ;;  %v8284_v59 = vadd.f32 %v5919_v52, %v3133_v53 }
 0x202   : > { %v8286_v34 = vadd.f32 %v5922_v29, %v3136_v35 }
 0x204   : > { %v5923_v21 = vpop.f32.mrb[108].mxu0 }
 0x205   : > { %v5924_v12 = vpop.f32.mrb[109].mxu0 }
 0x206   : > { %v5925_v39 = vadd.f32 %v5924_v12, %v5923_v21  ;;  %v5926_v4 = vpop.f32.mrb[110].mxu0 }
 0x207   : > { %v5927_v5 = vpop.f32.mrb[111].mxu0 }
 0x208   : > { %v5928_v13 = vadd.f32 %v5927_v5, %v5926_v4  ;;  %v8289_v55 = vadd.f32 %v5925_v39, %v8250_v27 }
 0x209   : > { %v6115_v32 = vpop.f32.mrb[80].mxu1 }
 0x20a   : > { %v6164_v51 = vadd.f32 %v6163_v33, %v6115_v32  ;;  %v4576_v42 = vpop.f32.mrb[81].mxu1  ;;  %v8292_v53 = vadd.f32 %v5928_v13, %v8256_v17 }
 0x20b   : > { %v6168_v62 = vadd.f32 %v6167_v30, %v4576_v42  ;;  %v6116_v11 = vpop.f32.mrb[82].mxu1 }
 0x20c   : > { %v6172_v35 = vadd.f32 %v6171_v18, %v6116_v11  ;;  %v4579_v43 = vpop.f32.mrb[83].mxu1  ;;  %v4934_v20 = vmul.f32 %v6164_v51, %v6164_v51 }
 0x20d   : > { %v6176_v27 = vadd.f32 %v8261_v24, %v4579_v43  ;;  %v5929_v33 = vpop.f32.mrb[112].mxu0  ;;  %v4932_v3 = vmul.f32 %v6168_v62, %v6168_v62 }
 0x20e   : > { %v5506_v63 = vpack.c.bf16 %v6172_v35, %v6164_v51  ;;  %v5930_v17 = vpop.f32.mrb[113].mxu0  ;;  %v4935_v52 = vmul.f32 %v6172_v35, %v6172_v35 }
 0x20f   : > { %v5501_v30 = vpack.c.bf16 %v6176_v27, %v6168_v62  ;;  %v4895_v44 = vadd.f32 %v6176_v27, %v6168_v62  ;;  %v4933_v58 = vmul.f32 %v6176_v27, %v6176_v27  ;;  %v5931_v18 = vadd.f32 %v5930_v17, %v5929_v33  ;;  %v5932_v28 = vpop.f32.mrb[114].mxu0 }
 0x210   : > { %5578 = vst [vmem:[%s8299_s21 + $0x8] sm:$0xff] %v5506_v63   ;;  %v5933_v56 = vpop.f32.mrb[115].mxu0 }
 0x211   : > { %5502 = vst [vmem:[%s8299_s21] sm:$0xff] %v5501_v30   ;;  %v4896_v47 = vadd.f32 %v6164_v51, %v4895_v44  ;;  %v4964_v1 = vadd.f32 %v4933_v58, %v4932_v3  ;;  %v6119_v26 = vpop.f32.mrb[84].mxu1  ;;  %v5934_v38 = vadd.f32 %v5933_v56, %v5932_v28  ;;  %v8305_v24 = vadd.f32 %v8161_v10, %v5931_v18 }
 0x212   : > { %v6180_v54 = vadd.f32 %v6179_v36, %v6119_v26  ;;  %v4592_v23 = vpop.f32.mrb[85].mxu1 }
 0x213   : > { %v4965_v40 = vadd.f32 %v4964_v1, %v4934_v20  ;;  %v6184_v22 = vadd.f32 %v8266_v50, %v4592_v23  ;;  %v4897_v29 = vadd.f32 %v6172_v35, %v4896_v47  ;;  %v6120_v21 = vpop.f32.mrb[86].mxu1  ;;  %v8310_v4 = vadd.f32 %v8163_v0, %v5934_v38 }
 0x214   : > { %v6188_v12 = vadd.f32 %v8272_v8, %v6120_v21  ;;  %v4595_v39 = vpop.f32.mrb[87].mxu1  ;;  %v4938_v27 = vmul.f32 %v6180_v54, %v6180_v54 }
 0x215   : > { %v4898_v5 = vadd.f32 %v6184_v22, %v4897_v29  ;;  %v4936_v36 = vmul.f32 %v6184_v22, %v6184_v22  ;;  %v4966_v13 = vadd.f32 %v4965_v40, %v4935_v52  ;;  %v6192_v10 = vadd.f32 %v8268_v48, %v4595_v39  ;;  %v5935_v51 = vpop.f32.mrb[116].mxu0 }
 0x216   : > { %v5516_v32 = vpack.c.bf16 %v6188_v12, %v6180_v54  ;;  %v5936_v35 = vpop.f32.mrb[117].mxu0  ;;  %v4939_v17 = vmul.f32 %v6188_v12, %v6188_v12 }
 0x217   : > { %v4967_v42 = vadd.f32 %v4966_v13, %v4936_v36  ;;  %v5511_v62 = vpack.c.bf16 %v6192_v10, %v6184_v22  ;;  %v4899_v50 = vadd.f32 %v6192_v10, %v4898_v5  ;;  %v4937_v11 = vmul.f32 %v6192_v10, %v6192_v10  ;;  %v5938_v8 = vpop.f32.mrb[118].mxu0 }
 0x218   : > { %5580 = vst [vmem:[%s8299_s21 + $0x18] sm:$0xff] %v5516_v32   ;;  %v5937_v43 = vadd.f32 %v5936_v35, %v5935_v51  ;;  %v5939_v33 = vpop.f32.mrb[119].mxu0 }
 0x219   : > { %5579 = vst [vmem:[%s8299_s21 + $0x10] sm:$0xff] %v5511_v62   ;;  %v4900_v0 = vadd.f32 %v6180_v54, %v4899_v50  ;;  %v4968_v63 = vadd.f32 %v4967_v42, %v4937_v11  ;;  %v6123_v3 = vpop.f32.mrb[88].mxu1  ;;  %v5940_v30 = vadd.f32 %v5939_v33, %v5938_v8 }
 0x21a   : > { %v6196_v44 = vadd.f32 %v8279_v49, %v6123_v3  ;;  %v4608_v48 = vpop.f32.mrb[89].mxu1  ;;  %v6226_v58 = vadd.f32 %v8165_v9, %v5937_v43 }
 0x21b   : > { %v4969_v18 = vadd.f32 %v4968_v63, %v4938_v27  ;;  %v6200_v28 = vadd.f32 %v8274_v45, %v4608_v48  ;;  %v4901_v20 = vadd.f32 %v6188_v12, %v4900_v0  ;;  %v6124_v47 = vpop.f32.mrb[90].mxu1  ;;  %v6232_v26 = vadd.f32 %v8167_v14, %v5940_v30 }
 0x21c   : > { %v6204_v1 = vadd.f32 %v8282_v61, %v6124_v47  ;;  %v4611_v56 = vpop.f32.mrb[91].mxu1  ;;  %v4942_v61 = vmul.f32 %v6196_v44, %v6196_v44 }
 0x21d   : > { %v4902_v38 = vadd.f32 %v6200_v28, %v4901_v20  ;;  %v4940_v54 = vmul.f32 %v6200_v28, %v6200_v28  ;;  %v4970_v23 = vadd.f32 %v4969_v18, %v4939_v17  ;;  %v6208_v49 = vadd.f32 %v8276_v37, %v4611_v56  ;;  %v5941_v9 = vpop.f32.mrb[120].mxu0 }
 0x21e   : > { %v5526_v52 = vpack.c.bf16 %v6204_v1, %v6196_v44  ;;  %v5942_v21 = vpop.f32.mrb[121].mxu0  ;;  %v4943_v42 = vmul.f32 %v6204_v1, %v6204_v1 }
 0x21f   : > { %v4971_v40 = vadd.f32 %v4970_v23, %v4940_v54  ;;  %v5521_v22 = vpack.c.bf16 %v6208_v49, %v6200_v28  ;;  %v4903_v29 = vadd.f32 %v6208_v49, %v4902_v38  ;;  %v4941_v45 = vmul.f32 %v6208_v49, %v6208_v49  ;;  %v5944_v39 = vpop.f32.mrb[122].mxu0 }
 0x220   : > { %5582 = vst [vmem:[%s8299_s21 + $0x28] sm:$0xff] %v5526_v52   ;;  %v5943_v12 = vadd.f32 %v5942_v21, %v5941_v9  ;;  %v5945_v36 = vpop.f32.mrb[123].mxu0 }
 0x221   : > { %5581 = vst [vmem:[%s8299_s21 + $0x20] sm:$0xff] %v5521_v22   ;;  %v4904_v5 = vadd.f32 %v6196_v44, %v4903_v29  ;;  %v4972_v14 = vadd.f32 %v4971_v40, %v4941_v45  ;;  %v6127_v13 = vpop.f32.mrb[92].mxu1  ;;  %v5946_v10 = vadd.f32 %v5945_v36, %v5944_v39 }
 0x222   : > { %v6212_v32 = vadd.f32 %v8289_v55, %v6127_v13  ;;  %v4624_v37 = vpop.f32.mrb[93].mxu1  ;;  %v8325_v51 = vadd.f32 %v8169_v19, %v5943_v12 }
 0x223   : > { %v4973_v62 = vadd.f32 %v4972_v14, %v4942_v61  ;;  %v6216_v50 = vadd.f32 %v8284_v59, %v4624_v37  ;;  %v4905_v11 = vadd.f32 %v6204_v1, %v4904_v5  ;;  %v6128_v35 = vpop.f32.mrb[94].mxu1  ;;  %v8330_v27 = vadd.f32 %v8171_v2, %v5946_v10 }
 0x224   : > { %v6220_v43 = vadd.f32 %v8292_v53, %v6128_v35  ;;  %v4627_v8 = vpop.f32.mrb[95].mxu1  ;;  %v4946_v18 = vmul.f32 %v6212_v32, %v6212_v32 }
 0x225   : > { %v4906_v0 = vadd.f32 %v6216_v50, %v4905_v11  ;;  %v4944_v55 = vmul.f32 %v6216_v50, %v6216_v50  ;;  %v4974_v63 = vadd.f32 %v4973_v62, %v4943_v42  ;;  %v6224_v19 = vadd.f32 %v8286_v34, %v4627_v8 }
 0x226   : > { %v5536_v33 = vpack.c.bf16 %v6220_v43, %v6212_v32  ;;  %v4947_v1 = vmul.f32 %v6220_v43, %v6220_v43 }
 0x227   : > { %v4975_v3 = vadd.f32 %v4974_v63, %v4944_v55  ;;  %v5947_v30 = vpop.f32.mrb[124].mxu0  ;;  %v5531_v44 = vpack.c.bf16 %v6224_v19, %v6216_v50  ;;  %v4907_v59 = vadd.f32 %v6224_v19, %v4906_v0  ;;  %v4945_v48 = vmul.f32 %v6224_v19, %v6224_v19 }
 0x228   : > { %5584 = vst [vmem:[%s8299_s21 + $0x38] sm:$0xff] %v5536_v33   ;;  %v5948_v17 = vpop.f32.mrb[125].mxu0 }
 0x229   : > { %5583 = vst [vmem:[%s8299_s21 + $0x30] sm:$0xff] %v5531_v44   ;;  %v4908_v53 = vadd.f32 %v6212_v32, %v4907_v59  ;;  %v4976_v28 = vadd.f32 %v4975_v3, %v4945_v48  ;;  %v5949_v20 = vadd.f32 %v5948_v17, %v5947_v30  ;;  %v5950_v2 = vpop.f32.mrb[126].mxu0  ;;  %v6131_v47 = vpop.f32.mrb[0].mxu1 }
 0x22a   : > { %v5951_v56 = vpop.f32.mrb[127].mxu0  ;;  %v6227_v38 = vadd.f32 %v6226_v58, %v6131_v47  ;;  %v4640_v54 = vpop.f32.mrb[1].mxu1 }
 0x22b   : > { %v4977_v34 = vadd.f32 %v4976_v28, %v4946_v18  ;;  %v5952_v23 = vadd.f32 %v5951_v56, %v5950_v2  ;;  %v6230_v49 = vadd.f32 %v8305_v24, %v4640_v54  ;;  %v4909_v52 = vadd.f32 %v6220_v43, %v4908_v53  ;;  %v6132_v9 = vpop.f32.mrb[2].mxu1 }
 0x22c   : > { %v6233_v40 = vadd.f32 %v6232_v26, %v6132_v9  ;;  %v4643_v22 = vpop.f32.mrb[3].mxu1  ;;  %v6238_v29 = vadd.f32 %v8177_v31, %v5949_v20  ;;  %v4950_v26 = vmul.f32 %v6227_v38, %v6227_v38 }
 0x22d   : > { %v4910_v45 = vadd.f32 %v6230_v49, %v4909_v52  ;;  %v4948_v21 = vmul.f32 %v6230_v49, %v6230_v49  ;;  %v4978_v12 = vadd.f32 %v4977_v34, %v4947_v1  ;;  %v6236_v39 = vadd.f32 %v8310_v4, %v4643_v22 }
 0x22e   : > { %v5546_v61 = vpack.c.bf16 %v6233_v40, %v6227_v38  ;;  %v6244_v58 = vadd.f32 %v8179_v57, %v5952_v23  ;;  %v4951_v50 = vmul.f32 %v6233_v40, %v6233_v40 }
 0x22f   : > { %v4979_v5 = vadd.f32 %v4978_v12, %v4948_v21  ;;  %v5953_v14 = vpop.f32.mrb[128].mxu0  ;;  %v5541_v36 = vpack.c.bf16 %v6236_v39, %v6230_v49  ;;  %v4911_v24 = vadd.f32 %v6236_v39, %v4910_v45  ;;  %v4949_v13 = vmul.f32 %v6236_v39, %v6236_v39 }
 0x230   : > { %5586 = vst [vmem:[%s8299_s21 + $0x48] sm:$0xff] %v5546_v61   ;;  %v5954_v10 = vpop.f32.mrb[129].mxu0 }
 0x231   : > { %5585 = vst [vmem:[%s8299_s21 + $0x40] sm:$0xff] %v5541_v36   ;;  %v4912_v32 = vadd.f32 %v6227_v38, %v4911_v24  ;;  %v4980_v37 = vadd.f32 %v4979_v5, %v4949_v13  ;;  %v5955_v31 = vadd.f32 %v5954_v10, %v5953_v14  ;;  %v5956_v42 = vpop.f32.mrb[130].mxu0  ;;  %v6135_v62 = vpop.f32.mrb[4].mxu1 }
 0x232   : > { %v5957_v11 = vpop.f32.mrb[131].mxu0  ;;  %v6239_v4 = vadd.f32 %v6238_v29, %v6135_v62  ;;  %v4656_v35 = vpop.f32.mrb[5].mxu1 }
 0x233   : > { %v4981_v43 = vadd.f32 %v4980_v37, %v4950_v26  ;;  %v5958_v57 = vadd.f32 %v5957_v11, %v5956_v42  ;;  %v6242_v8 = vadd.f32 %v8325_v51, %v4656_v35  ;;  %v4913_v0 = vadd.f32 %v6233_v40, %v4912_v32  ;;  %v6136_v55 = vpop.f32.mrb[6].mxu1 }
 0x234   : > { %v6245_v63 = vadd.f32 %v6244_v58, %v6136_v55  ;;  %v4659_v19 = vpop.f32.mrb[7].mxu1  ;;  %v6253_v33 = vadd.f32 %v8185_v6, %v5955_v31  ;;  %v4954_v20 = vmul.f32 %v6239_v4, %v6239_v4 }
 0x235   : > { %v4914_v3 = vadd.f32 %v6242_v8, %v4913_v0  ;;  %v4952_v30 = vmul.f32 %v6242_v8, %v6242_v8  ;;  %v4982_v44 = vadd.f32 %v4981_v43, %v4951_v50  ;;  %v6248_v59 = vadd.f32 %v8330_v27, %v4659_v19 }
 0x236   : > { %v5556_v48 = vpack.c.bf16 %v6245_v63, %v6239_v4  ;;  %v6259_v17 = vadd.f32 %v8188_v15, %v5958_v57  ;;  %v4955_v15 = vmul.f32 %v6245_v63, %v6245_v63 }
 0x237   : > { %v4983_v18 = vadd.f32 %v4982_v44, %v4952_v30  ;;  %v5551_v53 = vpack.c.bf16 %v6248_v59, %v6242_v8  ;;  %v4915_v28 = vadd.f32 %v6248_v59, %v4914_v3  ;;  %v4953_v51 = vmul.f32 %v6248_v59, %v6248_v59 }
 0x238   : > { %5588 = vst [vmem:[%s8299_s21 + $0x58] sm:$0xff] %v5556_v48   ;;  %v5959_v2 = vpop.f32.mrb[132].mxu0 }
 0x239   : > { %5587 = vst [vmem:[%s8299_s21 + $0x50] sm:$0xff] %v5551_v53   ;;  %v4916_v47 = vadd.f32 %v6239_v4, %v4915_v28  ;;  %v4984_v1 = vadd.f32 %v4983_v18, %v4953_v51  ;;  %v6139_v56 = vpop.f32.mrb[8].mxu1  ;;  %v5960_v6 = vpop.f32.mrb[133].mxu0 }
 0x23a   : > { %v4672_v38 = vpop.f32.mrb[9].mxu1  ;;  %v5961_v34 = vadd.f32 %v5960_v6, %v5959_v2  ;;  %v5962_v23 = vpop.f32.mrb[134].mxu0 }
 0x23b   : > { %v4985_v54 = vadd.f32 %v4984_v1, %v4954_v20  ;;  %v6254_v27 = vadd.f32 %v6253_v33, %v4672_v38  ;;  %v4917_v49 = vadd.f32 %v6245_v63, %v4916_v47  ;;  %v6140_v52 = vpop.f32.mrb[10].mxu1  ;;  %v5963_v9 = vpop.f32.mrb[135].mxu0 }
 0x23c   : > { %v4675_v40 = vpop.f32.mrb[11].mxu1  ;;  %v5964_v22 = vadd.f32 %v5963_v9, %v5962_v23  ;;  %v6250_v29 = vadd.f32 %v8205_v60, %v5961_v34 }
 0x23d   : > { %v4918_v45 = vadd.f32 %v6254_v27, %v4917_v49  ;;  %v4956_v21 = vmul.f32 %v6254_v27, %v6254_v27  ;;  %v4986_v12 = vadd.f32 %v4985_v54, %v4955_v15  ;;  %v6260_v39 = vadd.f32 %v6259_v17, %v4675_v40 }
 0x23e   : > { %v6251_v61 = vadd.f32 %v6250_v29, %v6139_v56  ;;  %v6256_v58 = vadd.f32 %v8208_v25, %v5964_v22 }
 0x23f   : > { %v4987_v5 = vadd.f32 %v4986_v12, %v4956_v21  ;;  %v5561_v14 = vpack.c.bf16 %v6260_v39, %v6254_v27  ;;  %v4919_v36 = vadd.f32 %v6260_v39, %v4918_v45  ;;  %v4957_v24 = vmul.f32 %v6260_v39, %v6260_v39 }
 0x240   : > { %v6257_v13 = vadd.f32 %v6256_v58, %v6140_v52  ;;  %v5965_v10 = vpop.f32.mrb[136].mxu0  ;;  %v4958_v32 = vmul.f32 %v6251_v61, %v6251_v61 }
 0x241   : > { %v6143_v26 = vpop.f32.mrb[12].mxu1  ;;  %5589 = vst [vmem:[%s8299_s21 + $0x60] sm:$0xff] %v5561_v14   ;;  %v4920_v37 = vadd.f32 %v6251_v61, %v4919_v36  ;;  %v4988_v31 = vadd.f32 %v4987_v5, %v4957_v24  ;;  %v5966_v60 = vpop.f32.mrb[137].mxu0 }
 0x242   : > { %v4688_v42 = vpop.f32.mrb[13].mxu1  ;;  %v5566_v62 = vpack.c.bf16 %v6257_v13, %v6251_v61  ;;  %v5967_v50 = vadd.f32 %v5966_v60, %v5965_v10  ;;  %v5968_v11 = vpop.f32.mrb[138].mxu0  ;;  %v4959_v35 = vmul.f32 %v6257_v13, %v6257_v13 }
 0x243   : > { %v6144_v4 = vpop.f32.mrb[14].mxu1  ;;  %v4989_v25 = vadd.f32 %v4988_v31, %v4958_v32  ;;  %v5969_v43 = vpop.f32.mrb[139].mxu0  ;;  %v4921_v57 = vadd.f32 %v6257_v13, %v4920_v37 }
 0x244   : > { %v4691_v8 = vpop.f32.mrb[15].mxu1  ;;  %5590 = vst [vmem:[%s8299_s21 + $0x68] sm:$0xff] %v5566_v62   ;;  %v5970_v0 = vadd.f32 %v5969_v43, %v5968_v11  ;;  %v6265_v55 = vadd.f32 %v8224_v46, %v5967_v50 }
 0x245   : > { %v4990_v63 = vadd.f32 %v4989_v25, %v4959_v35 }
 0x246   : > { %v6266_v19 = vadd.f32 %v6265_v55, %v4688_v42  ;;  %v6271_v33 = vadd.f32 %v8228_v7, %v5970_v0 }
 0x248   : > { %v4922_v3 = vadd.f32 %v6266_v19, %v4921_v57  ;;  %v4960_v30 = vmul.f32 %v6266_v19, %v6266_v19  ;;  %v6272_v44 = vadd.f32 %v6271_v33, %v4691_v8 }
 0x24a   : > { %v4991_v59 = vadd.f32 %v4990_v63, %v4960_v30  ;;  %v5971_v48 = vpop.f32.mrb[140].mxu0  ;;  %v5571_v17 = vpack.c.bf16 %v6272_v44, %v6266_v19  ;;  %v4923_v18 = vadd.f32 %v6272_v44, %v4922_v3  ;;  %v4961_v53 = vmul.f32 %v6272_v44, %v6272_v44 }
 0x24b   : > { %v5972_v28 = vpop.f32.mrb[141].mxu0 }
 0x24c   : > { %5591 = vst [vmem:[%s8299_s21 + $0x70] sm:$0xff] %v5571_v17   ;;  %v4992_v51 = vadd.f32 %v4991_v59, %v4961_v53  ;;  %v5973_v20 = vadd.f32 %v5972_v28, %v5971_v48  ;;  %v5974_v2 = vpop.f32.mrb[142].mxu0 }
 0x24d   : > { %v5975_v47 = vpop.f32.mrb[143].mxu0 }
 0x24e   : > { %v6262_v46 = vadd.f32 %v8242_v16, %v5973_v20  ;;  %v5976_v1 = vadd.f32 %v5975_v47, %v5974_v2 }
 0x250   : > { %v6263_v56 = vadd.f32 %v6262_v46, %v6143_v26  ;;  %v6268_v7 = vadd.f32 %v8246_v41, %v5976_v1 }
 0x252   : > { %v4924_v6 = vadd.f32 %v6263_v56, %v4923_v18  ;;  %v4962_v38 = vmul.f32 %v6263_v56, %v6263_v56  ;;  %v6269_v54 = vadd.f32 %v6268_v7, %v6144_v4 }
 0x254   : > { %v4993_v34 = vadd.f32 %v4992_v51, %v4962_v38  ;;  %v5576_v23 = vpack.c.bf16 %v6269_v54, %v6263_v56  ;;  %v4925_v27 = vadd.f32 %v6269_v54, %v4924_v6  ;;  %v4963_v49 = vmul.f32 %v6269_v54, %v6269_v54 }
 0x256   : > { %5592 = vst [vmem:[%s8299_s21 + $0x78] sm:$0xff] %v5576_v23   ;;  %v4926_v52 = vrot.slane %v4925_v27, 4  ;;  %v4994_v15 = vadd.f32 %v4993_v34, %v4963_v49 }
 0x258   : > { %v4927_v9 = vadd.f32 %v4926_v52, %v4925_v27  ;;  %v4995_v40 = vrot.slane %v4994_v15, 4 }
 0x25a   : > { %v4928_v22 = vrot.slane %v4927_v9, 2  ;;  %v4996_v29 = vadd.f32 %v4995_v40, %v4994_v15 }
 0x25c   : > { %v4929_v16 = vadd.f32 %v4928_v22, %v4927_v9  ;;  %v4997_v45 = vrot.slane %v4996_v29, 2 }
 0x25e   : > { %v4930_v21 = vrot.slane %v4929_v16, 1  ;;  %v4998_v12 = vadd.f32 %v4997_v45, %v4996_v29 }
 0x260   : > { %v4999_v41 = vrot.slane %v4998_v12, 1  ;;  %v4931_v39 = vadd.f32 %v4930_v21, %v4929_v16 }
 0x262   : > { %v5000_v61 = vadd.f32 %v4999_v41, %v4998_v12 }
 0x264   : > { %v5002_v58 = vsel %vm439_vm0, %v4931_v39, %v5000_v61 }
 0x265   : > { %v5004_v5 = vsel %vm5003_vm9, %v5002_v58, 0.0 }
 0x266   : > { %5005 = vst [vmem:[%s181_s25] sm:$0xff] %v5004_v5 }
 0x267 PF: > { %s14_s12 = sadd.s32 1, %s6522_s12  }
 0x268   : > { %p11_p4 = scmp.ge.s32.totalorder %s14_s12, 4  }
 0x26a   :  { %13 = sbr.rel (!%p11_p4) target bundleno = 1 (0x1), region = 73 }

</bundles_post_ra>
